<compile_context>
chip_gen: v5e
topology: v5e:2x2
jax: 0.10.0
libtpu: 0.0.40
codegen_flags: <defaults>
</compile_context>

<pallas_src>
import functools

import jax
import jax.numpy as jnp
from jax.experimental import pallas as pl
from jax.experimental.pallas import tpu as pltpu

KSIZE = 4
STRIDE = 2
PAD = 1
NEG_SLOPE = 0.2
BN_EPS = 1e-5
MAX_TM = 2048                   # row-tile cap; VMEM budget usually binds first
_SLACK = 2 * 1024 * 1024        # headroom for Mosaic internal scratch

_VMEM_SPEC = pl.BlockSpec(memory_space=pltpu.MemorySpace.VMEM)


def _vmem_budget():
    """Per-generation scoped-VMEM budget (v5e/v6e: ~96 MiB, v7x: ~48 MiB)."""
    try:
        cap = int(pltpu.get_tpu_info().vmem_capacity_bytes)
    except Exception:
        cap = 64 * 1024 * 1024
    return max(24 * 1024 * 1024, min(cap * 3 // 4, 100 * 1024 * 1024))


_VMEM_BUDGET = _vmem_budget()


# ----------------------------- Pallas kernels ------------------------------

def conv_bias_lrelu_kernel(p_ref, w_ref, b_ref, o_ref):
    """conv1: out = LeakyReLU(patches @ W + b).  bf16 in, f32 math, bf16 out."""
    z = jnp.dot(p_ref[...], w_ref[...], preferred_element_type=jnp.float32)
    z = z + b_ref[...]                               # (1, C_out) broadcast
    o_ref[...] = jnp.where(z > 0, z, NEG_SLOPE * z).astype(o_ref.dtype)


def matmul_stats_kernel(p_ref, w_ref, z_ref, sum_ref, sq_ref):
    """conv2..4 pass 1: z = patches @ W (once), plus per-tile channel stats.

    Each grid step writes its own z tile and its own stats block, so the grid
    axis is fully independent ("parallel"); the tiny cross-tile reduction is
    done in XLA glue.
    """
    z = jnp.dot(p_ref[...], w_ref[...], preferred_element_type=jnp.float32)
    z_ref[...] = z.astype(z_ref.dtype)
    sum_ref[...] = jnp.sum(z, axis=0, keepdims=True)[None]       # (1,1,C)
    sq_ref[...] = jnp.sum(z * z, axis=0, keepdims=True)[None]    # (1,1,C)


def bn_lrelu_kernel(z_ref, s_ref, t_ref, o_ref):
    """conv2..4 pass 2: out = LeakyReLU(z * scale + shift).  Pure VPU."""
    y = z_ref[...].astype(jnp.float32) * s_ref[...] + t_ref[...]
    o_ref[...] = jnp.where(y > 0, y, NEG_SLOPE * y).astype(o_ref.dtype)


def head_kernel(f_ref, w_ref, b_ref, o_ref):
    """Adaptive avg-pool over H*W + FC(512->1) + sigmoid, as VPU mul-reduce."""
    feat = f_ref[...].astype(jnp.float32)            # [N, HW, C]
    pooled = jnp.mean(feat, axis=1)                  # [N, C]
    logits = jnp.sum(pooled * w_ref[...], axis=-1, keepdims=True) + b_ref[...]
    o_ref[...] = jax.nn.sigmoid(logits)


# ----------------------------- wrappers (glue) ------------------------------

def _round_up(x, m):
    return (x + m - 1) // m * m


def _choose_tm(m, per_row_bytes, fixed_bytes, cap=MAX_TM):
    """Largest row tile (multiple of 8) that fits the per-call VMEM budget."""
    avail = max(_VMEM_BUDGET - fixed_bytes - _SLACK, 1 << 20)
    tm = min(avail // per_row_bytes, cap)
    tm = max(8, (tm // 8) * 8)
    if tm >= m:
        return _round_up(m, 8)          # single (possibly padded) tile
    return int(tm)


def _im2col_nhwc(x):
    """x: [N, H, W, C] (bf16) -> patches [N*Ho*Wo, KH*KW*C] (order kh, kw, c)."""
    n, h, w, c = x.shape
    ho = (h + 2 * PAD - KSIZE) // STRIDE + 1
    wo = (w + 2 * PAD - KSIZE) // STRIDE + 1
    xp = jnp.pad(x, ((0, 0), (PAD, PAD), (PAD, PAD), (0, 0)))
    cols = []
    for kh in range(KSIZE):
        for kw in range(KSIZE):
            cols.append(xp[:, kh:kh + STRIDE * ho:STRIDE,
                              kw:kw + STRIDE * wo:STRIDE, :])
    p = jnp.concatenate(cols, axis=-1)               # [N, Ho, Wo, KH*KW*C]
    return p.reshape(n * ho * wo, KSIZE * KSIZE * c), ho, wo


def _reorder_weight(w):
    """torch [C_out, C_in, KH, KW] -> [KH*KW*C_in, C_out] matching im2col."""
    c_out = w.shape[0]
    return w.transpose(2, 3, 1, 0).reshape(-1, c_out)


def _patch_setup(x, c_out):
    """im2col + per-layer tile choice + zero-row padding of M."""
    patches, ho, wo = _im2col_nhwc(x)
    m, k = patches.shape
    tm = _choose_tm(m,
                    per_row_bytes=4 * k + 4 * c_out,   # bf16 patches+z, 2 bufs
                    fixed_bytes=4 * k * c_out)         # pinned bf16 weights x2
    m_pad = _round_up(m, tm)
    if m_pad != m:
        patches = jnp.pad(patches, ((0, m_pad - m), (0, 0)))
    return patches, m, m_pad, tm, k, ho, wo


def _conv1_layer(x, w2d, b2d):
    """conv1 + bias + LeakyReLU.  x: NHWC bf16 -> NHWC bf16."""
    n = x.shape[0]
    c_out = w2d.shape[1]
    patches, m, m_pad, tm, k, ho, wo = _patch_setup(x, c_out)
    out = pl.pallas_call(
        conv_bias_lrelu_kernel,
        out_shape=jax.ShapeDtypeStruct((m_pad, c_out), jnp.bfloat16),
        grid_spec=pltpu.PrefetchScalarGridSpec(
            num_scalar_prefetch=0,
            grid=(m_pad // tm,),
            in_specs=[
                pl.BlockSpec((tm, k), lambda i: (i, 0)),
                pl.BlockSpec((k, c_out), lambda i: (0, 0)),   # pinned weights
                pl.BlockSpec((1, c_out), lambda i: (0, 0)),   # pinned bias
            ],
            out_specs=pl.BlockSpec((tm, c_out), lambda i: (i, 0)),
        ),
        compiler_params=pltpu.CompilerParams(
            dimension_semantics=("parallel",),
            vmem_limit_bytes=_VMEM_BUDGET),
    )(patches, w2d, b2d)
    return out[:m].reshape(n, ho, wo, c_out)


def _conv_bn_layer(x, w2d, gamma, beta):
    """conv + BN(training stats) + LeakyReLU.  x: NHWC bf16 -> NHWC bf16."""
    n = x.shape[0]
    c_out = w2d.shape[1]
    patches, m, m_pad, tm, k, ho, wo = _patch_setup(x, c_out)
    n_tiles = m_pad // tm

    # ---- pass 1: single matmul per tile, pre-BN z + per-tile channel stats.
    z, psum, psq = pl.pallas_call(
        matmul_stats_kernel,
        out_shape=(
            jax.ShapeDtypeStruct((m_pad, c_out), jnp.bfloat16),
            jax.ShapeDtypeStruct((n_tiles, 1, c_out), jnp.float32),
            jax.ShapeDtypeStruct((n_tiles, 1, c_out), jnp.float32),
        ),
        grid_spec=pltpu.PrefetchScalarGridSpec(
            num_scalar_prefetch=0,
            grid=(n_tiles,),
            in_specs=[
                pl.BlockSpec((tm, k), lambda i: (i, 0)),
                pl.BlockSpec((k, c_out), lambda i: (0, 0)),   # pinned weights
            ],
            out_specs=(
                pl.BlockSpec((tm, c_out), lambda i: (i, 0)),
                pl.BlockSpec((1, 1, c_out), lambda i: (i, 0, 0)),
                pl.BlockSpec((1, 1, c_out), lambda i: (i, 0, 0)),
            ),
        ),
        compiler_params=pltpu.CompilerParams(
            dimension_semantics=("parallel",),
            vmem_limit_bytes=_VMEM_BUDGET),
    )(patches, w2d)

    # ---- tiny XLA reduce: exact full-M training-mode BN stats.
    # Padded zero rows contribute 0 to both sums (no conv bias); divide by the
    # true M.  Conv bias is exactly cancelled by the BN mean subtraction.
    ch_sum = jnp.sum(psum, axis=(0, 1))
    ch_sq = jnp.sum(psq, axis=(0, 1))
    mean = ch_sum / m
    var = jnp.maximum(ch_sq / m - mean * mean, 0.0)      # biased batch var
    inv_std = jax.lax.rsqrt(var + BN_EPS)
    scale = (gamma * inv_std).reshape(1, c_out)
    shift = (beta - mean * gamma * inv_std).reshape(1, c_out)

    # ---- pass 2: pure VPU normalize + LeakyReLU (reads z, ~K/C_out x less
    # traffic than re-reading patches, zero MXU work).
    out = pl.pallas_call(
        bn_lrelu_kernel,
        out_shape=jax.ShapeDtypeStruct((m_pad, c_out), jnp.bfloat16),
        grid_spec=pltpu.PrefetchScalarGridSpec(
            num_scalar_prefetch=0,
            grid=(n_tiles,),
            in_specs=[
                pl.BlockSpec((tm, c_out), lambda i: (i, 0)),
                pl.BlockSpec((1, c_out), lambda i: (0, 0)),   # pinned scale
                pl.BlockSpec((1, c_out), lambda i: (0, 0)),   # pinned shift
            ],
            out_specs=pl.BlockSpec((tm, c_out), lambda i: (i, 0)),
        ),
        compiler_params=pltpu.CompilerParams(
            dimension_semantics=("parallel",),
            vmem_limit_bytes=_VMEM_BUDGET),
    )(z, scale, shift)
    return out[:m].reshape(n, ho, wo, c_out)


def _head(x, fc_w, fc_b):
    """x: [N, H, W, 512] NHWC -> sigmoid(fc(avgpool(x))) : [N, 1] f32."""
    n, h, w, c = x.shape
    feat = x.reshape(n, h * w, c)          # channel-last already: no transpose
    return pl.pallas_call(
        head_kernel,
        out_shape=jax.ShapeDtypeStruct((n, 1), jnp.float32),
        in_specs=[_VMEM_SPEC] * 3,
        out_specs=_VMEM_SPEC,
        compiler_params=pltpu.CompilerParams(vmem_limit_bytes=_VMEM_BUDGET),
    )(feat, fc_w, fc_b)


# ----------------------------- params & forward -----------------------------

def init_params(key, in_channels=3):
    """Deterministic synthetic parameters matching the PyTorch module shapes."""
    ks = jax.random.split(key, 10)

    def conv_w(k, co, ci):
        return jax.random.normal(k, (co, ci, KSIZE, KSIZE), jnp.float32) * 0.05

    # conv2..4 biases exist for shape fidelity but are mathematically cancelled
    # by training-mode BatchNorm, so the kernels never consume them.
    return {
        "conv1_w": conv_w(ks[0], 64, in_channels),
        "conv1_b": jax.random.normal(ks[1], (64,), jnp.float32) * 0.05,
        "conv2_w": conv_w(ks[2], 128, 64),
        "conv2_b": jax.random.normal(ks[3], (128,), jnp.float32) * 0.05,
        "bn2_g": jnp.ones((128,), jnp.float32),
        "bn2_b": jnp.zeros((128,), jnp.float32),
        "conv3_w": conv_w(ks[4], 256, 128),
        "conv3_b": jax.random.normal(ks[5], (256,), jnp.float32) * 0.05,
        "bn3_g": jnp.ones((256,), jnp.float32),
        "bn3_b": jnp.zeros((256,), jnp.float32),
        "conv4_w": conv_w(ks[6], 512, 256),
        "conv4_b": jax.random.normal(ks[7], (512,), jnp.float32) * 0.05,
        "bn4_g": jnp.ones((512,), jnp.float32),
        "bn4_b": jnp.zeros((512,), jnp.float32),
        "fc_w": jax.random.normal(ks[8], (1, 512), jnp.float32) * 0.05,
        "fc_b": jax.random.normal(ks[9], (1,), jnp.float32) * 0.05,
    }


def pack_params(params):
    """One-time weight repack (im2col order, bf16) hoisted out of the forward."""
    return {
        "conv1_w": _reorder_weight(params["conv1_w"]).astype(jnp.bfloat16),
        "conv1_b": params["conv1_b"].reshape(1, -1).astype(jnp.float32),
        "conv2_w": _reorder_weight(params["conv2_w"]).astype(jnp.bfloat16),
        "bn2_g": params["bn2_g"].astype(jnp.float32),
        "bn2_b": params["bn2_b"].astype(jnp.float32),
        "conv3_w": _reorder_weight(params["conv3_w"]).astype(jnp.bfloat16),
        "bn3_g": params["bn3_g"].astype(jnp.float32),
        "bn3_b": params["bn3_b"].astype(jnp.float32),
        "conv4_w": _reorder_weight(params["conv4_w"]).astype(jnp.bfloat16),
        "bn4_g": params["bn4_g"].astype(jnp.float32),
        "bn4_b": params["bn4_b"].astype(jnp.float32),
        "fc_w": params["fc_w"].reshape(1, -1).astype(jnp.float32),
        "fc_b": params["fc_b"].reshape(1, 1).astype(jnp.float32),
    }


@jax.jit
def discriminator_forward(x, packed):
    """x: [N, C_in, H, W] (NCHW f32, like the PyTorch module) -> [N, 1] f32."""
    h = x.transpose(0, 2, 3, 1).astype(jnp.bfloat16)   # one NCHW->NHWC + bf16
    h = _conv1_layer(h, packed["conv1_w"], packed["conv1_b"])
    h = _conv_bn_layer(h, packed["conv2_w"], packed["bn2_g"], packed["bn2_b"])
    h = _conv_bn_layer(h, packed["conv3_w"], packed["bn3_g"], packed["bn3_b"])
    h = _conv_bn_layer(h, packed["conv4_w"], packed["bn4_g"], packed["bn4_b"])
    return _head(h, packed["fc_w"], packed["fc_b"])


if __name__ == "__main__":
    key = jax.random.PRNGKey(0)
    k_param, k_x = jax.random.split(key)
    params = init_params(k_param, in_channels=3)
    packed = pack_params(params)
    # Small NCHW input: batch=2, channels=3, 16x16 spatial (16->8->4->2->1).
    x = jax.random.normal(k_x, (2, 3, 16, 16), jnp.float32)
    out = discriminator_forward(x, packed)
    out = jax.block_until_ready(out)
    assert out.shape == (2, 1)
    assert bool(jnp.all(jnp.isfinite(out)))
    print("KERNEL_OK")
</pallas_src>

<mosaic_0001>
module attributes {stable_mosaic.version = 11 : i64} {
  func.func @conv_bias_lrelu_kernel(%arg0: i32, %arg1: memref<128x48xbf16, #tpu.memory_space<vmem>>, %arg2: memref<48x64xbf16, #tpu.memory_space<vmem>>, %arg3: memref<1x64xf32, #tpu.memory_space<vmem>>, %arg4: memref<128x64xbf16, #tpu.memory_space<vmem>>) attributes {dimension_semantics = [#tpu.dimension_semantics<parallel>], iteration_bounds = array<i64: 1>, scalar_prefetch = 0 : i64, scratch_operands = 0 : i64, tpu.core_type = #tpu.core_type<tc>, window_params = [{transform_indices = @transform_0, window_bounds = array<i64: 128, 48>}, {pipeline_mode = #tpu.pipeline_mode<synchronous>, transform_indices = @transform_1, window_bounds = array<i64: 48, 64>}, {pipeline_mode = #tpu.pipeline_mode<synchronous>, transform_indices = @transform_2, window_bounds = array<i64: 1, 64>}, {transform_indices = @transform_3, window_bounds = array<i64: 128, 64>}]} {
    %c0 = arith.constant 0 : index
    %c0_0 = arith.constant 0 : index
    %0 = vector.load %arg1[%c0, %c0_0] : memref<128x48xbf16, #tpu.memory_space<vmem>>, vector<128x48xbf16>
    %c0_1 = arith.constant 0 : index
    %c0_2 = arith.constant 0 : index
    %1 = vector.load %arg2[%c0_1, %c0_2] : memref<48x64xbf16, #tpu.memory_space<vmem>>, vector<48x64xbf16>
    %cst = arith.constant dense<0.000000e+00> : vector<128x64xf32>
    %2 = tpu.matmul %0, %1, %cst {dimension_numbers = #tpu.dot_dimension_numbers<[1], [0], [0], [1], [0, 0, 1, 1], [], []>} : vector<128x48xbf16>, vector<48x64xbf16>, vector<128x64xf32> -> vector<128x64xf32>
    %c0_3 = arith.constant 0 : index
    %c0_4 = arith.constant 0 : index
    %3 = vector.load %arg3[%c0_3, %c0_4] : memref<1x64xf32, #tpu.memory_space<vmem>>, vector<1x64xf32>
    %4 = vector.broadcast %3 : vector<1x64xf32> to vector<128x64xf32>
    %5 = arith.addf %2, %4 : vector<128x64xf32>
    %cst_5 = arith.constant 0.000000e+00 : f32
    %6 = vector.broadcast %cst_5 : f32 to vector<128x64xf32>
    %7 = arith.cmpf ogt, %5, %6 : vector<128x64xf32>
    %cst_6 = arith.constant 2.000000e-01 : f32
    %8 = vector.broadcast %cst_6 : f32 to vector<128x64xf32>
    %9 = arith.mulf %8, %5 : vector<128x64xf32>
    %10 = arith.select %7, %5, %9 : vector<128x64xi1>, vector<128x64xf32>
    %11 = arith.truncf %10 : vector<128x64xf32> to vector<128x64xbf16>
    %c0_7 = arith.constant 0 : index
    %c0_8 = arith.constant 0 : index
    %12 = vector.load %arg4[%c0_7, %c0_8] : memref<128x64xbf16, #tpu.memory_space<vmem>>, vector<128x64xbf16>
    tpu.vector_store %arg4[%c0_7, %c0_8], %11 {strides = array<i32>} : memref<128x64xbf16, #tpu.memory_space<vmem>>, vector<128x64xbf16>,
    return
  }
  func.func @transform_0(%arg0: i32) -> (i32, i32) {
    %c0_i32 = arith.constant 0 : i32
    %c0_i32_0 = arith.constant 0 : i32
    return %arg0, %c0_i32 : i32, i32
  }
  func.func @transform_1(%arg0: i32) -> (i32, i32) {
    %c0_i32 = arith.constant 0 : i32
    %c0_i32_0 = arith.constant 0 : i32
    %c0_i32_1 = arith.constant 0 : i32
    return %c0_i32, %c0_i32_0 : i32, i32
  }
  func.func @transform_2(%arg0: i32) -> (i32, i32) {
    %c0_i32 = arith.constant 0 : i32
    %c0_i32_0 = arith.constant 0 : i32
    %c0_i32_1 = arith.constant 0 : i32
    return %c0_i32, %c0_i32_0 : i32, i32
  }
  func.func @transform_3(%arg0: i32) -> (i32, i32) {
    %c0_i32 = arith.constant 0 : i32
    %c0_i32_0 = arith.constant 0 : i32
    return %arg0, %c0_i32 : i32, i32
  }
}

module attributes {stable_mosaic.version = 11 : i64} {
  func.func @bn_lrelu_kernel(%arg0: i32, %arg1: memref<32x128xbf16, #tpu.memory_space<vmem>>, %arg2: memref<1x128xf32, #tpu.memory_space<vmem>>, %arg3: memref<1x128xf32, #tpu.memory_space<vmem>>, %arg4: memref<32x128xbf16, #tpu.memory_space<vmem>>) attributes {dimension_semantics = [#tpu.dimension_semantics<parallel>], iteration_bounds = array<i64: 1>, scalar_prefetch = 0 : i64, scratch_operands = 0 : i64, tpu.core_type = #tpu.core_type<tc>, window_params = [{transform_indices = @transform_0, window_bounds = array<i64: 32, 128>}, {pipeline_mode = #tpu.pipeline_mode<synchronous>, transform_indices = @transform_1, window_bounds = array<i64: 1, 128>}, {pipeline_mode = #tpu.pipeline_mode<synchronous>, transform_indices = @transform_2, window_bounds = array<i64: 1, 128>}, {transform_indices = @transform_3, window_bounds = array<i64: 32, 128>}]} {
    %c0 = arith.constant 0 : index
    %c0_0 = arith.constant 0 : index
    %0 = vector.load %arg1[%c0, %c0_0] : memref<32x128xbf16, #tpu.memory_space<vmem>>, vector<32x128xbf16>
    %1 = arith.extf %0 : vector<32x128xbf16> to vector<32x128xf32>
    %c0_1 = arith.constant 0 : index
    %c0_2 = arith.constant 0 : index
    %2 = vector.load %arg2[%c0_1, %c0_2] : memref<1x128xf32, #tpu.memory_space<vmem>>, vector<1x128xf32>
    %3 = vector.broadcast %2 : vector<1x128xf32> to vector<32x128xf32>
    %4 = arith.mulf %1, %3 : vector<32x128xf32>
    %c0_3 = arith.constant 0 : index
    %c0_4 = arith.constant 0 : index
    %5 = vector.load %arg3[%c0_3, %c0_4] : memref<1x128xf32, #tpu.memory_space<vmem>>, vector<1x128xf32>
    %6 = vector.broadcast %5 : vector<1x128xf32> to vector<32x128xf32>
    %7 = arith.addf %4, %6 : vector<32x128xf32>
    %cst = arith.constant 0.000000e+00 : f32
    %8 = vector.broadcast %cst : f32 to vector<32x128xf32>
    %9 = arith.cmpf ogt, %7, %8 : vector<32x128xf32>
    %cst_5 = arith.constant 2.000000e-01 : f32
    %10 = vector.broadcast %cst_5 : f32 to vector<32x128xf32>
    %11 = arith.mulf %10, %7 : vector<32x128xf32>
    %12 = arith.select %9, %7, %11 : vector<32x128xi1>, vector<32x128xf32>
    %13 = arith.truncf %12 : vector<32x128xf32> to vector<32x128xbf16>
    %c0_6 = arith.constant 0 : index
    %c0_7 = arith.constant 0 : index
    %14 = vector.load %arg4[%c0_6, %c0_7] : memref<32x128xbf16, #tpu.memory_space<vmem>>, vector<32x128xbf16>
    tpu.vector_store %arg4[%c0_6, %c0_7], %13 {strides = array<i32>} : memref<32x128xbf16, #tpu.memory_space<vmem>>, vector<32x128xbf16>,
    return
  }
  func.func @transform_0(%arg0: i32) -> (i32, i32) {
    %c0_i32 = arith.constant 0 : i32
    %c0_i32_0 = arith.constant 0 : i32
    return %arg0, %c0_i32 : i32, i32
  }
  func.func @transform_1(%arg0: i32) -> (i32, i32) {
    %c0_i32 = arith.constant 0 : i32
    %c0_i32_0 = arith.constant 0 : i32
    %c0_i32_1 = arith.constant 0 : i32
    return %c0_i32, %c0_i32_0 : i32, i32
  }
  func.func @transform_2(%arg0: i32) -> (i32, i32) {
    %c0_i32 = arith.constant 0 : i32
    %c0_i32_0 = arith.constant 0 : i32
    %c0_i32_1 = arith.constant 0 : i32
    return %c0_i32, %c0_i32_0 : i32, i32
  }
  func.func @transform_3(%arg0: i32) -> (i32, i32) {
    %c0_i32 = arith.constant 0 : i32
    %c0_i32_0 = arith.constant 0 : i32
    return %arg0, %c0_i32 : i32, i32
  }
}

module attributes {stable_mosaic.version = 11 : i64} {
  func.func @matmul_stats_kernel(%arg0: i32, %arg1: memref<32x1024xbf16, #tpu.memory_space<vmem>>, %arg2: memref<1024x128xbf16, #tpu.memory_space<vmem>>, %arg3: memref<32x128xbf16, #tpu.memory_space<vmem>>, %arg4: memref<1x1x128xf32, #tpu.memory_space<vmem>>, %arg5: memref<1x1x128xf32, #tpu.memory_space<vmem>>) attributes {dimension_semantics = [#tpu.dimension_semantics<parallel>], iteration_bounds = array<i64: 1>, scalar_prefetch = 0 : i64, scratch_operands = 0 : i64, tpu.core_type = #tpu.core_type<tc>, window_params = [{transform_indices = @transform_0, window_bounds = array<i64: 32, 1024>}, {pipeline_mode = #tpu.pipeline_mode<synchronous>, transform_indices = @transform_1, window_bounds = array<i64: 1024, 128>}, {transform_indices = @transform_2, window_bounds = array<i64: 32, 128>}, {transform_indices = @transform_3, window_bounds = array<i64: 1, 1, 128>}, {transform_indices = @transform_4, window_bounds = array<i64: 1, 1, 128>}]} {
    %c0 = arith.constant 0 : index
    %c0_0 = arith.constant 0 : index
    %0 = vector.load %arg1[%c0, %c0_0] : memref<32x1024xbf16, #tpu.memory_space<vmem>>, vector<32x1024xbf16>
    %c0_1 = arith.constant 0 : index
    %c0_2 = arith.constant 0 : index
    %1 = vector.load %arg2[%c0_1, %c0_2] : memref<1024x128xbf16, #tpu.memory_space<vmem>>, vector<1024x128xbf16>
    %cst = arith.constant dense<0.000000e+00> : vector<32x128xf32>
    %2 = tpu.matmul %0, %1, %cst {dimension_numbers = #tpu.dot_dimension_numbers<[1], [0], [0], [1], [0, 0, 1, 1], [], []>} : vector<32x1024xbf16>, vector<1024x128xbf16>, vector<32x128xf32> -> vector<32x128xf32>
    %3 = arith.truncf %2 : vector<32x128xf32> to vector<32x128xbf16>
    %c0_3 = arith.constant 0 : index
    %c0_4 = arith.constant 0 : index
    %4 = vector.load %arg3[%c0_3, %c0_4] : memref<32x128xbf16, #tpu.memory_space<vmem>>, vector<32x128xbf16>
    tpu.vector_store %arg3[%c0_3, %c0_4], %3 {strides = array<i32>} : memref<32x128xbf16, #tpu.memory_space<vmem>>, vector<32x128xbf16>,
    %cst_5 = arith.constant dense<0.000000e+00> : vector<128xf32>
    %5 = vector.multi_reduction <add>, %2, %cst_5 [0] : vector<32x128xf32> to vector<128xf32>
    %6 = vector.shape_cast %5 : vector<128xf32> to vector<1x128xf32>
    %7 = vector.shape_cast %6 : vector<1x128xf32> to vector<1x1x128xf32>
    %c0_6 = arith.constant 0 : index
    %c0_7 = arith.constant 0 : index
    %c0_8 = arith.constant 0 : index
    %8 = vector.load %arg4[%c0_6, %c0_7, %c0_8] : memref<1x1x128xf32, #tpu.memory_space<vmem>>, vector<1x1x128xf32>
    tpu.vector_store %arg4[%c0_6, %c0_7, %c0_8], %7 {strides = array<i32>} : memref<1x1x128xf32, #tpu.memory_space<vmem>>, vector<1x1x128xf32>,
    %9 = arith.mulf %2, %2 : vector<32x128xf32>
    %cst_9 = arith.constant dense<0.000000e+00> : vector<128xf32>
    %10 = vector.multi_reduction <add>, %9, %cst_9 [0] : vector<32x128xf32> to vector<128xf32>
    %11 = vector.shape_cast %10 : vector<128xf32> to vector<1x128xf32>
    %12 = vector.shape_cast %11 : vector<1x128xf32> to vector<1x1x128xf32>
    %c0_10 = arith.constant 0 : index
    %c0_11 = arith.constant 0 : index
    %c0_12 = arith.constant 0 : index
    %13 = vector.load %arg5[%c0_10, %c0_11, %c0_12] : memref<1x1x128xf32, #tpu.memory_space<vmem>>, vector<1x1x128xf32>
    tpu.vector_store %arg5[%c0_10, %c0_11, %c0_12], %12 {strides = array<i32>} : memref<1x1x128xf32, #tpu.memory_space<vmem>>, vector<1x1x128xf32>,
    return
  }
  func.func @transform_0(%arg0: i32) -> (i32, i32) {
    %c0_i32 = arith.constant 0 : i32
    %c0_i32_0 = arith.constant 0 : i32
    return %arg0, %c0_i32 : i32, i32
  }
  func.func @transform_1(%arg0: i32) -> (i32, i32) {
    %c0_i32 = arith.constant 0 : i32
    %c0_i32_0 = arith.constant 0 : i32
    %c0_i32_1 = arith.constant 0 : i32
    return %c0_i32, %c0_i32_0 : i32, i32
  }
  func.func @transform_2(%arg0: i32) -> (i32, i32) {
    %c0_i32 = arith.constant 0 : i32
    %c0_i32_0 = arith.constant 0 : i32
    return %arg0, %c0_i32 : i32, i32
  }
  func.func @transform_3(%arg0: i32) -> (i32, i32, i32) {
    %c0_i32 = arith.constant 0 : i32
    %c0_i32_0 = arith.constant 0 : i32
    %c0_i32_1 = arith.constant 0 : i32
    return %arg0, %c0_i32, %c0_i32_0 : i32, i32, i32
  }
  func.func @transform_4(%arg0: i32) -> (i32, i32, i32) {
    %c0_i32 = arith.constant 0 : i32
    %c0_i32_0 = arith.constant 0 : i32
    %c0_i32_1 = arith.constant 0 : i32
    return %arg0, %c0_i32, %c0_i32_0 : i32, i32, i32
  }
}

module attributes {stable_mosaic.version = 11 : i64} {
  func.func @matmul_stats_kernel(%arg0: i32, %arg1: memref<8x2048xbf16, #tpu.memory_space<vmem>>, %arg2: memref<2048x256xbf16, #tpu.memory_space<vmem>>, %arg3: memref<8x256xbf16, #tpu.memory_space<vmem>>, %arg4: memref<1x1x256xf32, #tpu.memory_space<vmem>>, %arg5: memref<1x1x256xf32, #tpu.memory_space<vmem>>) attributes {dimension_semantics = [#tpu.dimension_semantics<parallel>], iteration_bounds = array<i64: 1>, scalar_prefetch = 0 : i64, scratch_operands = 0 : i64, tpu.core_type = #tpu.core_type<tc>, window_params = [{transform_indices = @transform_0, window_bounds = array<i64: 8, 2048>}, {pipeline_mode = #tpu.pipeline_mode<synchronous>, transform_indices = @transform_1, window_bounds = array<i64: 2048, 256>}, {transform_indices = @transform_2, window_bounds = array<i64: 8, 256>}, {transform_indices = @transform_3, window_bounds = array<i64: 1, 1, 256>}, {transform_indices = @transform_4, window_bounds = array<i64: 1, 1, 256>}]} {
    %c0 = arith.constant 0 : index
    %c0_0 = arith.constant 0 : index
    %0 = vector.load %arg1[%c0, %c0_0] : memref<8x2048xbf16, #tpu.memory_space<vmem>>, vector<8x2048xbf16>
    %c0_1 = arith.constant 0 : index
    %c0_2 = arith.constant 0 : index
    %1 = vector.load %arg2[%c0_1, %c0_2] : memref<2048x256xbf16, #tpu.memory_space<vmem>>, vector<2048x256xbf16>
    %cst = arith.constant dense<0.000000e+00> : vector<8x256xf32>
    %2 = tpu.matmul %0, %1, %cst {dimension_numbers = #tpu.dot_dimension_numbers<[1], [0], [0], [1], [0, 0, 1, 1], [], []>} : vector<8x2048xbf16>, vector<2048x256xbf16>, vector<8x256xf32> -> vector<8x256xf32>
    %3 = arith.truncf %2 : vector<8x256xf32> to vector<8x256xbf16>
    %c0_3 = arith.constant 0 : index
    %c0_4 = arith.constant 0 : index
    %4 = vector.load %arg3[%c0_3, %c0_4] : memref<8x256xbf16, #tpu.memory_space<vmem>>, vector<8x256xbf16>
    tpu.vector_store %arg3[%c0_3, %c0_4], %3 {strides = array<i32>} : memref<8x256xbf16, #tpu.memory_space<vmem>>, vector<8x256xbf16>,
    %cst_5 = arith.constant dense<0.000000e+00> : vector<256xf32>
    %5 = vector.multi_reduction <add>, %2, %cst_5 [0] : vector<8x256xf32> to vector<256xf32>
    %6 = vector.shape_cast %5 : vector<256xf32> to vector<1x256xf32>
    %7 = vector.shape_cast %6 : vector<1x256xf32> to vector<1x1x256xf32>
    %c0_6 = arith.constant 0 : index
    %c0_7 = arith.constant 0 : index
    %c0_8 = arith.constant 0 : index
    %8 = vector.load %arg4[%c0_6, %c0_7, %c0_8] : memref<1x1x256xf32, #tpu.memory_space<vmem>>, vector<1x1x256xf32>
    tpu.vector_store %arg4[%c0_6, %c0_7, %c0_8], %7 {strides = array<i32>} : memref<1x1x256xf32, #tpu.memory_space<vmem>>, vector<1x1x256xf32>,
    %9 = arith.mulf %2, %2 : vector<8x256xf32>
    %cst_9 = arith.constant dense<0.000000e+00> : vector<256xf32>
    %10 = vector.multi_reduction <add>, %9, %cst_9 [0] : vector<8x256xf32> to vector<256xf32>
    %11 = vector.shape_cast %10 : vector<256xf32> to vector<1x256xf32>
    %12 = vector.shape_cast %11 : vector<1x256xf32> to vector<1x1x256xf32>
    %c0_10 = arith.constant 0 : index
    %c0_11 = arith.constant 0 : index
    %c0_12 = arith.constant 0 : index
    %13 = vector.load %arg5[%c0_10, %c0_11, %c0_12] : memref<1x1x256xf32, #tpu.memory_space<vmem>>, vector<1x1x256xf32>
    tpu.vector_store %arg5[%c0_10, %c0_11, %c0_12], %12 {strides = array<i32>} : memref<1x1x256xf32, #tpu.memory_space<vmem>>, vector<1x1x256xf32>,
    return
  }
  func.func @transform_0(%arg0: i32) -> (i32, i32) {
    %c0_i32 = arith.constant 0 : i32
    %c0_i32_0 = arith.constant 0 : i32
    return %arg0, %c0_i32 : i32, i32
  }
  func.func @transform_1(%arg0: i32) -> (i32, i32) {
    %c0_i32 = arith.constant 0 : i32
    %c0_i32_0 = arith.constant 0 : i32
    %c0_i32_1 = arith.constant 0 : i32
    return %c0_i32, %c0_i32_0 : i32, i32
  }
  func.func @transform_2(%arg0: i32) -> (i32, i32) {
    %c0_i32 = arith.constant 0 : i32
    %c0_i32_0 = arith.constant 0 : i32
    return %arg0, %c0_i32 : i32, i32
  }
  func.func @transform_3(%arg0: i32) -> (i32, i32, i32) {
    %c0_i32 = arith.constant 0 : i32
    %c0_i32_0 = arith.constant 0 : i32
    %c0_i32_1 = arith.constant 0 : i32
    return %arg0, %c0_i32, %c0_i32_0 : i32, i32, i32
  }
  func.func @transform_4(%arg0: i32) -> (i32, i32, i32) {
    %c0_i32 = arith.constant 0 : i32
    %c0_i32_0 = arith.constant 0 : i32
    %c0_i32_1 = arith.constant 0 : i32
    return %arg0, %c0_i32, %c0_i32_0 : i32, i32, i32
  }
}

module attributes {stable_mosaic.version = 11 : i64} {
  func.func @bn_lrelu_kernel(%arg0: i32, %arg1: memref<8x256xbf16, #tpu.memory_space<vmem>>, %arg2: memref<1x256xf32, #tpu.memory_space<vmem>>, %arg3: memref<1x256xf32, #tpu.memory_space<vmem>>, %arg4: memref<8x256xbf16, #tpu.memory_space<vmem>>) attributes {dimension_semantics = [#tpu.dimension_semantics<parallel>], iteration_bounds = array<i64: 1>, scalar_prefetch = 0 : i64, scratch_operands = 0 : i64, tpu.core_type = #tpu.core_type<tc>, window_params = [{transform_indices = @transform_0, window_bounds = array<i64: 8, 256>}, {pipeline_mode = #tpu.pipeline_mode<synchronous>, transform_indices = @transform_1, window_bounds = array<i64: 1, 256>}, {pipeline_mode = #tpu.pipeline_mode<synchronous>, transform_indices = @transform_2, window_bounds = array<i64: 1, 256>}, {transform_indices = @transform_3, window_bounds = array<i64: 8, 256>}]} {
    %c0 = arith.constant 0 : index
    %c0_0 = arith.constant 0 : index
    %0 = vector.load %arg1[%c0, %c0_0] : memref<8x256xbf16, #tpu.memory_space<vmem>>, vector<8x256xbf16>
    %1 = arith.extf %0 : vector<8x256xbf16> to vector<8x256xf32>
    %c0_1 = arith.constant 0 : index
    %c0_2 = arith.constant 0 : index
    %2 = vector.load %arg2[%c0_1, %c0_2] : memref<1x256xf32, #tpu.memory_space<vmem>>, vector<1x256xf32>
    %3 = vector.broadcast %2 : vector<1x256xf32> to vector<8x256xf32>
    %4 = arith.mulf %1, %3 : vector<8x256xf32>
    %c0_3 = arith.constant 0 : index
    %c0_4 = arith.constant 0 : index
    %5 = vector.load %arg3[%c0_3, %c0_4] : memref<1x256xf32, #tpu.memory_space<vmem>>, vector<1x256xf32>
    %6 = vector.broadcast %5 : vector<1x256xf32> to vector<8x256xf32>
    %7 = arith.addf %4, %6 : vector<8x256xf32>
    %cst = arith.constant 0.000000e+00 : f32
    %8 = vector.broadcast %cst : f32 to vector<8x256xf32>
    %9 = arith.cmpf ogt, %7, %8 : vector<8x256xf32>
    %cst_5 = arith.constant 2.000000e-01 : f32
    %10 = vector.broadcast %cst_5 : f32 to vector<8x256xf32>
    %11 = arith.mulf %10, %7 : vector<8x256xf32>
    %12 = arith.select %9, %7, %11 : vector<8x256xi1>, vector<8x256xf32>
    %13 = arith.truncf %12 : vector<8x256xf32> to vector<8x256xbf16>
    %c0_6 = arith.constant 0 : index
    %c0_7 = arith.constant 0 : index
    %14 = vector.load %arg4[%c0_6, %c0_7] : memref<8x256xbf16, #tpu.memory_space<vmem>>, vector<8x256xbf16>
    tpu.vector_store %arg4[%c0_6, %c0_7], %13 {strides = array<i32>} : memref<8x256xbf16, #tpu.memory_space<vmem>>, vector<8x256xbf16>,
    return
  }
  func.func @transform_0(%arg0: i32) -> (i32, i32) {
    %c0_i32 = arith.constant 0 : i32
    %c0_i32_0 = arith.constant 0 : i32
    return %arg0, %c0_i32 : i32, i32
  }
  func.func @transform_1(%arg0: i32) -> (i32, i32) {
    %c0_i32 = arith.constant 0 : i32
    %c0_i32_0 = arith.constant 0 : i32
    %c0_i32_1 = arith.constant 0 : i32
    return %c0_i32, %c0_i32_0 : i32, i32
  }
  func.func @transform_2(%arg0: i32) -> (i32, i32) {
    %c0_i32 = arith.constant 0 : i32
    %c0_i32_0 = arith.constant 0 : i32
    %c0_i32_1 = arith.constant 0 : i32
    return %c0_i32, %c0_i32_0 : i32, i32
  }
  func.func @transform_3(%arg0: i32) -> (i32, i32) {
    %c0_i32 = arith.constant 0 : i32
    %c0_i32_0 = arith.constant 0 : i32
    return %arg0, %c0_i32 : i32, i32
  }
}

module attributes {stable_mosaic.version = 11 : i64} {
  func.func @bn_lrelu_kernel(%arg0: i32, %arg1: memref<8x512xbf16, #tpu.memory_space<vmem>>, %arg2: memref<1x512xf32, #tpu.memory_space<vmem>>, %arg3: memref<1x512xf32, #tpu.memory_space<vmem>>, %arg4: memref<8x512xbf16, #tpu.memory_space<vmem>>) attributes {dimension_semantics = [#tpu.dimension_semantics<parallel>], iteration_bounds = array<i64: 1>, scalar_prefetch = 0 : i64, scratch_operands = 0 : i64, tpu.core_type = #tpu.core_type<tc>, window_params = [{transform_indices = @transform_0, window_bounds = array<i64: 8, 512>}, {pipeline_mode = #tpu.pipeline_mode<synchronous>, transform_indices = @transform_1, window_bounds = array<i64: 1, 512>}, {pipeline_mode = #tpu.pipeline_mode<synchronous>, transform_indices = @transform_2, window_bounds = array<i64: 1, 512>}, {transform_indices = @transform_3, window_bounds = array<i64: 8, 512>}]} {
    %c0 = arith.constant 0 : index
    %c0_0 = arith.constant 0 : index
    %0 = vector.load %arg1[%c0, %c0_0] : memref<8x512xbf16, #tpu.memory_space<vmem>>, vector<8x512xbf16>
    %1 = arith.extf %0 : vector<8x512xbf16> to vector<8x512xf32>
    %c0_1 = arith.constant 0 : index
    %c0_2 = arith.constant 0 : index
    %2 = vector.load %arg2[%c0_1, %c0_2] : memref<1x512xf32, #tpu.memory_space<vmem>>, vector<1x512xf32>
    %3 = vector.broadcast %2 : vector<1x512xf32> to vector<8x512xf32>
    %4 = arith.mulf %1, %3 : vector<8x512xf32>
    %c0_3 = arith.constant 0 : index
    %c0_4 = arith.constant 0 : index
    %5 = vector.load %arg3[%c0_3, %c0_4] : memref<1x512xf32, #tpu.memory_space<vmem>>, vector<1x512xf32>
    %6 = vector.broadcast %5 : vector<1x512xf32> to vector<8x512xf32>
    %7 = arith.addf %4, %6 : vector<8x512xf32>
    %cst = arith.constant 0.000000e+00 : f32
    %8 = vector.broadcast %cst : f32 to vector<8x512xf32>
    %9 = arith.cmpf ogt, %7, %8 : vector<8x512xf32>
    %cst_5 = arith.constant 2.000000e-01 : f32
    %10 = vector.broadcast %cst_5 : f32 to vector<8x512xf32>
    %11 = arith.mulf %10, %7 : vector<8x512xf32>
    %12 = arith.select %9, %7, %11 : vector<8x512xi1>, vector<8x512xf32>
    %13 = arith.truncf %12 : vector<8x512xf32> to vector<8x512xbf16>
    %c0_6 = arith.constant 0 : index
    %c0_7 = arith.constant 0 : index
    %14 = vector.load %arg4[%c0_6, %c0_7] : memref<8x512xbf16, #tpu.memory_space<vmem>>, vector<8x512xbf16>
    tpu.vector_store %arg4[%c0_6, %c0_7], %13 {strides = array<i32>} : memref<8x512xbf16, #tpu.memory_space<vmem>>, vector<8x512xbf16>,
    return
  }
  func.func @transform_0(%arg0: i32) -> (i32, i32) {
    %c0_i32 = arith.constant 0 : i32
    %c0_i32_0 = arith.constant 0 : i32
    return %arg0, %c0_i32 : i32, i32
  }
  func.func @transform_1(%arg0: i32) -> (i32, i32) {
    %c0_i32 = arith.constant 0 : i32
    %c0_i32_0 = arith.constant 0 : i32
    %c0_i32_1 = arith.constant 0 : i32
    return %c0_i32, %c0_i32_0 : i32, i32
  }
  func.func @transform_2(%arg0: i32) -> (i32, i32) {
    %c0_i32 = arith.constant 0 : i32
    %c0_i32_0 = arith.constant 0 : i32
    %c0_i32_1 = arith.constant 0 : i32
    return %c0_i32, %c0_i32_0 : i32, i32
  }
  func.func @transform_3(%arg0: i32) -> (i32, i32) {
    %c0_i32 = arith.constant 0 : i32
    %c0_i32_0 = arith.constant 0 : i32
    return %arg0, %c0_i32 : i32, i32
  }
}

module attributes {stable_mosaic.version = 11 : i64} {
  func.func @matmul_stats_kernel(%arg0: i32, %arg1: memref<8x4096xbf16, #tpu.memory_space<vmem>>, %arg2: memref<4096x512xbf16, #tpu.memory_space<vmem>>, %arg3: memref<8x512xbf16, #tpu.memory_space<vmem>>, %arg4: memref<1x1x512xf32, #tpu.memory_space<vmem>>, %arg5: memref<1x1x512xf32, #tpu.memory_space<vmem>>) attributes {dimension_semantics = [#tpu.dimension_semantics<parallel>], iteration_bounds = array<i64: 1>, scalar_prefetch = 0 : i64, scratch_operands = 0 : i64, tpu.core_type = #tpu.core_type<tc>, window_params = [{transform_indices = @transform_0, window_bounds = array<i64: 8, 4096>}, {pipeline_mode = #tpu.pipeline_mode<synchronous>, transform_indices = @transform_1, window_bounds = array<i64: 4096, 512>}, {transform_indices = @transform_2, window_bounds = array<i64: 8, 512>}, {transform_indices = @transform_3, window_bounds = array<i64: 1, 1, 512>}, {transform_indices = @transform_4, window_bounds = array<i64: 1, 1, 512>}]} {
    %c0 = arith.constant 0 : index
    %c0_0 = arith.constant 0 : index
    %0 = vector.load %arg1[%c0, %c0_0] : memref<8x4096xbf16, #tpu.memory_space<vmem>>, vector<8x4096xbf16>
    %c0_1 = arith.constant 0 : index
    %c0_2 = arith.constant 0 : index
    %1 = vector.load %arg2[%c0_1, %c0_2] : memref<4096x512xbf16, #tpu.memory_space<vmem>>, vector<4096x512xbf16>
    %cst = arith.constant dense<0.000000e+00> : vector<8x512xf32>
    %2 = tpu.matmul %0, %1, %cst {dimension_numbers = #tpu.dot_dimension_numbers<[1], [0], [0], [1], [0, 0, 1, 1], [], []>} : vector<8x4096xbf16>, vector<4096x512xbf16>, vector<8x512xf32> -> vector<8x512xf32>
    %3 = arith.truncf %2 : vector<8x512xf32> to vector<8x512xbf16>
    %c0_3 = arith.constant 0 : index
    %c0_4 = arith.constant 0 : index
    %4 = vector.load %arg3[%c0_3, %c0_4] : memref<8x512xbf16, #tpu.memory_space<vmem>>, vector<8x512xbf16>
    tpu.vector_store %arg3[%c0_3, %c0_4], %3 {strides = array<i32>} : memref<8x512xbf16, #tpu.memory_space<vmem>>, vector<8x512xbf16>,
    %cst_5 = arith.constant dense<0.000000e+00> : vector<512xf32>
    %5 = vector.multi_reduction <add>, %2, %cst_5 [0] : vector<8x512xf32> to vector<512xf32>
    %6 = vector.shape_cast %5 : vector<512xf32> to vector<1x512xf32>
    %7 = vector.shape_cast %6 : vector<1x512xf32> to vector<1x1x512xf32>
    %c0_6 = arith.constant 0 : index
    %c0_7 = arith.constant 0 : index
    %c0_8 = arith.constant 0 : index
    %8 = vector.load %arg4[%c0_6, %c0_7, %c0_8] : memref<1x1x512xf32, #tpu.memory_space<vmem>>, vector<1x1x512xf32>
    tpu.vector_store %arg4[%c0_6, %c0_7, %c0_8], %7 {strides = array<i32>} : memref<1x1x512xf32, #tpu.memory_space<vmem>>, vector<1x1x512xf32>,
    %9 = arith.mulf %2, %2 : vector<8x512xf32>
    %cst_9 = arith.constant dense<0.000000e+00> : vector<512xf32>
    %10 = vector.multi_reduction <add>, %9, %cst_9 [0] : vector<8x512xf32> to vector<512xf32>
    %11 = vector.shape_cast %10 : vector<512xf32> to vector<1x512xf32>
    %12 = vector.shape_cast %11 : vector<1x512xf32> to vector<1x1x512xf32>
    %c0_10 = arith.constant 0 : index
    %c0_11 = arith.constant 0 : index
    %c0_12 = arith.constant 0 : index
    %13 = vector.load %arg5[%c0_10, %c0_11, %c0_12] : memref<1x1x512xf32, #tpu.memory_space<vmem>>, vector<1x1x512xf32>
    tpu.vector_store %arg5[%c0_10, %c0_11, %c0_12], %12 {strides = array<i32>} : memref<1x1x512xf32, #tpu.memory_space<vmem>>, vector<1x1x512xf32>,
    return
  }
  func.func @transform_0(%arg0: i32) -> (i32, i32) {
    %c0_i32 = arith.constant 0 : i32
    %c0_i32_0 = arith.constant 0 : i32
    return %arg0, %c0_i32 : i32, i32
  }
  func.func @transform_1(%arg0: i32) -> (i32, i32) {
    %c0_i32 = arith.constant 0 : i32
    %c0_i32_0 = arith.constant 0 : i32
    %c0_i32_1 = arith.constant 0 : i32
    return %c0_i32, %c0_i32_0 : i32, i32
  }
  func.func @transform_2(%arg0: i32) -> (i32, i32) {
    %c0_i32 = arith.constant 0 : i32
    %c0_i32_0 = arith.constant 0 : i32
    return %arg0, %c0_i32 : i32, i32
  }
  func.func @transform_3(%arg0: i32) -> (i32, i32, i32) {
    %c0_i32 = arith.constant 0 : i32
    %c0_i32_0 = arith.constant 0 : i32
    %c0_i32_1 = arith.constant 0 : i32
    return %arg0, %c0_i32, %c0_i32_0 : i32, i32, i32
  }
  func.func @transform_4(%arg0: i32) -> (i32, i32, i32) {
    %c0_i32 = arith.constant 0 : i32
    %c0_i32_0 = arith.constant 0 : i32
    %c0_i32_1 = arith.constant 0 : i32
    return %arg0, %c0_i32, %c0_i32_0 : i32, i32, i32
  }
}

module attributes {stable_mosaic.version = 11 : i64} {
  func.func @head_kernel(%arg0: memref<2x1x512xbf16, #tpu.memory_space<vmem>>, %arg1: memref<1x512xf32, #tpu.memory_space<vmem>>, %arg2: memref<1x1xf32, #tpu.memory_space<vmem>>, %arg3: memref<2x1xf32, #tpu.memory_space<vmem>>) attributes {dimension_semantics = [], scalar_prefetch = 0 : i64, scratch_operands = 0 : i64, tpu.core_type = #tpu.core_type<tc>} {
    %c0 = arith.constant 0 : index
    %c0_0 = arith.constant 0 : index
    %c0_1 = arith.constant 0 : index
    %0 = vector.load %arg0[%c0, %c0_0, %c0_1] : memref<2x1x512xbf16, #tpu.memory_space<vmem>>, vector<2x1x512xbf16>
    %1 = arith.extf %0 : vector<2x1x512xbf16> to vector<2x1x512xf32>
    %cst = arith.constant dense<0.000000e+00> : vector<2x512xf32>
    %2 = vector.multi_reduction <add>, %1, %cst [1] : vector<2x1x512xf32> to vector<2x512xf32>
    %cst_2 = arith.constant 1.000000e+00 : f32
    %3 = vector.broadcast %cst_2 : f32 to vector<2x512xf32>
    %4 = arith.divf %2, %3 : vector<2x512xf32>
    %c0_3 = arith.constant 0 : index
    %c0_4 = arith.constant 0 : index
    %5 = vector.load %arg1[%c0_3, %c0_4] : memref<1x512xf32, #tpu.memory_space<vmem>>, vector<1x512xf32>
    %6 = vector.broadcast %5 : vector<1x512xf32> to vector<2x512xf32>
    %7 = arith.mulf %4, %6 : vector<2x512xf32>
    %cst_5 = arith.constant dense<0.000000e+00> : vector<2xf32>
    %8 = vector.multi_reduction <add>, %7, %cst_5 [1] : vector<2x512xf32> to vector<2xf32>
    %9 = vector.shape_cast %8 : vector<2xf32> to vector<2x1xf32>
    %c0_6 = arith.constant 0 : index
    %c0_7 = arith.constant 0 : index
    %10 = vector.load %arg2[%c0_6, %c0_7] : memref<1x1xf32, #tpu.memory_space<vmem>>, vector<1x1xf32>
    %11 = vector.broadcast %10 : vector<1x1xf32> to vector<2x1xf32>
    %12 = arith.addf %9, %11 : vector<2x1xf32>
    %13 = arith.negf %12 : vector<2x1xf32>
    %14 = math.exp %13 : vector<2x1xf32>
    %cst_8 = arith.constant 1.000000e+00 : f32
    %15 = vector.broadcast %cst_8 : f32 to vector<2x1xf32>
    %16 = arith.addf %15, %14 : vector<2x1xf32>
    %17 = arith.divf %15, %16 : vector<2x1xf32>
    %c0_9 = arith.constant 0 : index
    %c0_10 = arith.constant 0 : index
    %18 = vector.load %arg3[%c0_9, %c0_10] : memref<2x1xf32, #tpu.memory_space<vmem>>, vector<2x1xf32>
    tpu.vector_store %arg3[%c0_9, %c0_10], %17 {strides = array<i32>} : memref<2x1xf32, #tpu.memory_space<vmem>>, vector<2x1xf32>,
    return
  }
}

</mosaic_0001>

<bundles_post_ra>
// kernel: discriminator_forward.8
= control target key start
LH: loop header
LB: loop body
LE: loop exit
PB: predicated region body
PF: predicated region fallthrough
CT: control target
= control target key end

     0   :  { %8 = vsyncpa [#allocation3], 0  ;;  %s563_s0 = inlined_call_operand.vmem [shape: bf16[128,48], index: 0, kind: input, shape index: {}]   ;;  %s564_s1 = inlined_call_operand.hbm [shape: bf16[48,64], index: 1, kind: input, shape index: {}]   ;;  %s565_s2 = inlined_call_operand.hbm [shape: f32[1,64], index: 2, kind: input, shape index: {}]   ;;  %s566_s3 = inlined_call_operand.vmem [shape: bf16[128,64], index: 3, kind: output, shape index: {}]  }
   0x1   :  { %s16_s14 = sshll.u32 %s564_s1, 4  ;;  %s17_s14 = int_to_ptr.hbm [resolvable:$true] %s16_s14 }
   0x2   :  { %9 = vsyncpa [#allocation5], 0  ;;  %s419_s15 = smov [#allocation2]   ;;  %s30_s19 = sshll.u32 %s565_s2, 4  ;;  %s31_s19 = int_to_ptr.hbm [resolvable:$true] %s30_s19 }
   0x3   :  { %s18_s16 = sshll.u32 %s419_s15, 4  ;;  %s420_s20 = smov 64   ;;  %s19_s16 = int_to_ptr.vmem [resolvable:$true] %s18_s16 }
   0x4   :  { %s421_s21 = smov 4   ;;  %s422_s22 = smov [#allocation4]  }
   0x5   :  { %24 = dma.hbm_to_vmem [thread:$0]  %s17_s14, 384, %s19_s16, [#allocation3], %s420_s20, %s420_s20, %s421_s21  }
   0x6   :  { %s32_s23 = sshll.u32 %s422_s22, 4  ;;  %s33_s23 = int_to_ptr.vmem [resolvable:$true] %s32_s23 }
   0x7   :  { %35 = dma.hbm_to_vmem [thread:$0]  %s31_s19, 16, %s33_s23, [#allocation5]  }
   0x8   :  { %415 = dma.done.wait [#allocation3], 384  }
   0x9   :  { %416 = vsyncadd [#allocation3], 4294966912 }
   0xa   :  { %417 = dma.done.wait [#allocation5], 16  }
   0xb   :  { %418 = vsyncadd [#allocation5], 4294967280  ;;  %v352_v0 = vld [vmem:[#allocation2 + $0x10] sm:$0xff]  ;;  %v351_v1 = vld [vmem:[#allocation2 + $0x8] sm:$0xff]  ;;  %vm129_vm0 = vcmask 392192   ;;  %vm267_vm3 = vcmask 519168  }
   0xc   :  { %159 = vmatpush.bf16.msra.mxu0 %v352_v0  ;;  %353 = vmatpush.bf16.msra.mxu1 %v352_v0  ;;  %v350_v2 = vld [vmem:[#allocation2] sm:$0xff]  ;;  %v344_v4 = vld [vmem:[%s563_s0 + $0x10] sm:$0xff]  ;;  %v343_v7 = vld [vmem:[%s563_s0 + $0x8] sm:$0xff] }
   0xd   :  { %354 = vmatpush.bf16.msra.mxu2 %v352_v0  ;;  %355 = vmatpush.bf16.msra.mxu3 %v352_v0  ;;  %v342_v3 = vld [vmem:[%s563_s0] sm:$0xff]  ;;  %v348_v6 = vld [vmem:[%s563_s0 + $0x30] sm:$0xff]  ;;  %v345_v8 = vld [vmem:[%s563_s0 + $0x18] sm:$0xff] }
   0xe   :  { %v346_v5 = vld [vmem:[%s563_s0 + $0x20] sm:$0xff]  ;;  %v347_v9 = vld [vmem:[%s563_s0 + $0x28] sm:$0xff]  ;;  %v349_v10 = vld [vmem:[%s563_s0 + $0x38] sm:$0xff] }
   0xf   :  { %v481_v11 = vld [vmem:[#allocation4] ss:$0 sm:$0xff] }
  0x10   :  { %160 = vmatpush.bf16.msra.mxu0 %v351_v1  ;;  %356 = vmatpush.bf16.msra.mxu1 %v351_v1 }
  0x11   :  { %357 = vmatpush.bf16.msra.mxu2 %v351_v1  ;;  %358 = vmatpush.bf16.msra.mxu3 %v351_v1 }
  0x14   :  { %161 = vmatpush.bf16.msra.mxu0 %v350_v2  ;;  %359 = vmatpush.bf16.msra.mxu1 %v350_v2 }
  0x15   :  { %360 = vmatpush.bf16.msra.mxu2 %v350_v2  ;;  %361 = vmatpush.bf16.msra.mxu3 %v350_v2 }
  0x17   :  { %334 = vmatmul.msk.bf16.vlgmr.msra.gmra.mxu0 %vm129_vm0, %v342_v3  ;;  %336 = vmatmul.msk.bf16.vlgmr.msra.gmra.mxu1 %vm129_vm0, %v344_v4 }
  0x18   :  { %338 = vmatmul.msk.bf16.vlgmr.msra.gmra.mxu2 %vm129_vm0, %v346_v5  ;;  %340 = vmatmul.msk.bf16.vlgmr.msra.gmra.mxu3 %vm129_vm0, %v348_v6 }
  0x27   :  { %335 = vmatmul.msk.bf16.gmra.mxu0 %vm129_vm0, %v343_v7  ;;  %337 = vmatmul.msk.bf16.gmra.mxu1 %vm129_vm0, %v345_v8 }
  0x28   :  { %339 = vmatmul.msk.bf16.gmra.mxu2 %vm129_vm0, %v347_v9  ;;  %341 = vmatmul.msk.bf16.gmra.mxu3 %vm129_vm0, %v349_v10 }
  0x94   :  { %v163_v12 = vpop.f32.mrf.mxu0  ;;  %v173_v13 = vpop.f32.mrf.mxu1 }
  0x95   :  { %v164_v14 = vadd.f32 %v481_v11, %v163_v12  ;;  %v174_v15 = vadd.f32 %v481_v11, %v173_v13 }
  0x97   :  { %vm203_vm1 = vcmp.gt.f32.partialorder %v164_v14, 0.0  ;;  %v219_v16 = vmul.f32 0.2, %v164_v14  ;;  %vm207_vm2 = vcmp.gt.f32.partialorder %v174_v15, 0.0  ;;  %v223_v17 = vmul.f32 0.2, %v174_v15 }
  0x99   :  { %v235_v18 = vsel %vm203_vm1, %v164_v14, %v219_v16  ;;  %v239_v19 = vsel %vm207_vm2, %v174_v15, %v223_v17 }
  0x9a   :  { %v251_v20 = vpack.c.bf16 %v235_v18, %v235_v18  ;;  %v255_v21 = vpack.c.bf16 %v239_v19, %v239_v19 }
  0x9b   :  { %v183_v22 = vpop.f32.mrf.mxu2  ;;  %v193_v23 = vpop.f32.mrf.mxu3 }
  0x9c   :  { %268 = vst.msk [vmem:[%s566_s3] sm:$0xf] %vm267_vm3, %v251_v20  ;;  %v184_v24 = vadd.f32 %v481_v11, %v183_v22  ;;  %v194_v25 = vadd.f32 %v481_v11, %v193_v23  ;;  %v165_v26 = vpop.f32.mrf.mxu0  ;;  %v175_v27 = vpop.f32.mrf.mxu1 }
  0x9d   :  { %272 = vst.msk [vmem:[%s566_s3 + $0x10] sm:$0xf] %vm267_vm3, %v255_v21  ;;  %v166_v28 = vadd.f32 %v481_v11, %v165_v26  ;;  %v176_v29 = vadd.f32 %v481_v11, %v175_v27 }
  0x9e   :  { %vm211_vm4 = vcmp.gt.f32.partialorder %v184_v24, 0.0  ;;  %v227_v30 = vmul.f32 0.2, %v184_v24  ;;  %vm215_vm5 = vcmp.gt.f32.partialorder %v194_v25, 0.0  ;;  %v231_v31 = vmul.f32 0.2, %v194_v25 }
  0x9f   :  { %vm204_vm6 = vcmp.gt.f32.partialorder %v166_v28, 0.0  ;;  %v220_v32 = vmul.f32 0.2, %v166_v28  ;;  %vm208_vm7 = vcmp.gt.f32.partialorder %v176_v29, 0.0  ;;  %v224_v33 = vmul.f32 0.2, %v176_v29 }
  0xa0   :  { %v243_v34 = vsel %vm211_vm4, %v184_v24, %v227_v30  ;;  %v247_v35 = vsel %vm215_vm5, %v194_v25, %v231_v31 }
  0xa1   :  { %v259_v36 = vpack.c.bf16 %v243_v34, %v243_v34  ;;  %v263_v37 = vpack.c.bf16 %v247_v35, %v247_v35  ;;  %v236_v38 = vsel %vm204_vm6, %v166_v28, %v220_v32  ;;  %v240_v39 = vsel %vm208_vm7, %v176_v29, %v224_v33 }
  0xa2   :  { %v252_v40 = vpack.c.bf16 %v236_v38, %v236_v38  ;;  %v256_v41 = vpack.c.bf16 %v240_v39, %v240_v39 }
  0xa3   :  { %276 = vst.msk [vmem:[%s566_s3 + $0x20] sm:$0xf] %vm267_vm3, %v259_v36  ;;  %v185_v42 = vpop.f32.mrf.mxu2  ;;  %v195_v43 = vpop.f32.mrf.mxu3 }
  0xa4   :  { %280 = vst.msk [vmem:[%s566_s3 + $0x30] sm:$0xf] %vm267_vm3, %v263_v37  ;;  %v186_v44 = vadd.f32 %v481_v11, %v185_v42  ;;  %v196_v45 = vadd.f32 %v481_v11, %v195_v43  ;;  %v168_v46 = vpop.f32.mrf.mxu0  ;;  %v178_v47 = vpop.f32.mrf.mxu1 }
  0xa5   :  { %269 = vst.msk [vmem:[%s566_s3 + $0x4] sm:$0xf] %vm267_vm3, %v252_v40  ;;  %v169_v48 = vadd.f32 %v481_v11, %v168_v46  ;;  %v179_v49 = vadd.f32 %v481_v11, %v178_v47 }
  0xa6   :  { %273 = vst.msk [vmem:[%s566_s3 + $0x14] sm:$0xf] %vm267_vm3, %v256_v41  ;;  %vm212_vm8 = vcmp.gt.f32.partialorder %v186_v44, 0.0  ;;  %v228_v50 = vmul.f32 0.2, %v186_v44  ;;  %vm216_vm9 = vcmp.gt.f32.partialorder %v196_v45, 0.0 }
  0xa7   :  { %v232_v51 = vmul.f32 0.2, %v196_v45  ;;  %vm205_vm10 = vcmp.gt.f32.partialorder %v169_v48, 0.0  ;;  %v221_v52 = vmul.f32 0.2, %v169_v48  ;;  %vm209_vm11 = vcmp.gt.f32.partialorder %v179_v49, 0.0 }
  0xa8   :  { %v244_v53 = vsel %vm212_vm8, %v186_v44, %v228_v50  ;;  %v225_v54 = vmul.f32 0.2, %v179_v49 }
  0xa9   :  { %v260_v55 = vpack.c.bf16 %v244_v53, %v244_v53  ;;  %v248_v56 = vsel %vm216_vm9, %v196_v45, %v232_v51  ;;  %v237_v57 = vsel %vm205_vm10, %v169_v48, %v221_v52 }
  0xaa   :  { %v264_v58 = vpack.c.bf16 %v248_v56, %v248_v56  ;;  %v253_v59 = vpack.c.bf16 %v237_v57, %v237_v57  ;;  %v241_v60 = vsel %vm209_vm11, %v179_v49, %v225_v54 }
  0xab   :  { %277 = vst.msk [vmem:[%s566_s3 + $0x24] sm:$0xf] %vm267_vm3, %v260_v55  ;;  %v257_v61 = vpack.c.bf16 %v241_v60, %v241_v60  ;;  %v188_v62 = vpop.f32.mrf.mxu2  ;;  %v198_v63 = vpop.f32.mrf.mxu3 }
  0xac   :  { %281 = vst.msk [vmem:[%s566_s3 + $0x34] sm:$0xf] %vm267_vm3, %v264_v58  ;;  %v189_v0 = vadd.f32 %v481_v11, %v188_v62  ;;  %v199_v1 = vadd.f32 %v481_v11, %v198_v63  ;;  %v170_v2 = vpop.f32.mrf.mxu0  ;;  %v180_v3 = vpop.f32.mrf.mxu1 }
  0xad   :  { %270 = vst.msk [vmem:[%s566_s3 + $0x8] sm:$0xf] %vm267_vm3, %v253_v59  ;;  %v171_v4 = vadd.f32 %v481_v11, %v170_v2  ;;  %v181_v5 = vadd.f32 %v481_v11, %v180_v3 }
  0xae   :  { %274 = vst.msk [vmem:[%s566_s3 + $0x18] sm:$0xf] %vm267_vm3, %v257_v61  ;;  %vm213_vm12 = vcmp.gt.f32.partialorder %v189_v0, 0.0  ;;  %v229_v6 = vmul.f32 0.2, %v189_v0  ;;  %vm217_vm13 = vcmp.gt.f32.partialorder %v199_v1, 0.0 }
  0xaf   :  { %v233_v7 = vmul.f32 0.2, %v199_v1  ;;  %vm206_vm14 = vcmp.gt.f32.partialorder %v171_v4, 0.0  ;;  %v222_v8 = vmul.f32 0.2, %v171_v4  ;;  %vm210_vm15 = vcmp.gt.f32.partialorder %v181_v5, 0.0 }
  0xb0   :  { %v245_v9 = vsel %vm213_vm12, %v189_v0, %v229_v6  ;;  %v226_v10 = vmul.f32 0.2, %v181_v5 }
  0xb1   :  { %v261_v12 = vpack.c.bf16 %v245_v9, %v245_v9  ;;  %v249_v13 = vsel %vm217_vm13, %v199_v1, %v233_v7  ;;  %v238_v14 = vsel %vm206_vm14, %v171_v4, %v222_v8 }
  0xb2   :  { %v265_v15 = vpack.c.bf16 %v249_v13, %v249_v13  ;;  %v254_v16 = vpack.c.bf16 %v238_v14, %v238_v14  ;;  %v242_v17 = vsel %vm210_vm15, %v181_v5, %v226_v10 }
  0xb3   :  { %278 = vst.msk [vmem:[%s566_s3 + $0x28] sm:$0xf] %vm267_vm3, %v261_v12  ;;  %v258_v18 = vpack.c.bf16 %v242_v17, %v242_v17  ;;  %v190_v19 = vpop.f32.mrf.mxu2  ;;  %v200_v20 = vpop.f32.mrf.mxu3 }
  0xb4   :  { %282 = vst.msk [vmem:[%s566_s3 + $0x38] sm:$0xf] %vm267_vm3, %v265_v15  ;;  %v191_v21 = vadd.f32 %v481_v11, %v190_v19  ;;  %v201_v22 = vadd.f32 %v481_v11, %v200_v20 }
  0xb5   :  { %271 = vst.msk [vmem:[%s566_s3 + $0xc] sm:$0xf] %vm267_vm3, %v254_v16 }
  0xb6   :  { %275 = vst.msk [vmem:[%s566_s3 + $0x1c] sm:$0xf] %vm267_vm3, %v258_v18  ;;  %vm214_vm0 = vcmp.gt.f32.partialorder %v191_v21, 0.0  ;;  %v230_v23 = vmul.f32 0.2, %v191_v21  ;;  %vm218_vm1 = vcmp.gt.f32.partialorder %v201_v22, 0.0 }
  0xb7   :  { %v234_v24 = vmul.f32 0.2, %v201_v22 }
  0xb8   :  { %v246_v25 = vsel %vm214_vm0, %v191_v21, %v230_v23 }
  0xb9   :  { %v262_v26 = vpack.c.bf16 %v246_v25, %v246_v25  ;;  %v250_v27 = vsel %vm218_vm1, %v201_v22, %v234_v24 }
  0xba   :  { %v266_v28 = vpack.c.bf16 %v250_v27, %v250_v27 }
  0xbb   :  { %279 = vst.msk [vmem:[%s566_s3 + $0x2c] sm:$0xf] %vm267_vm3, %v262_v26 }
  0xbc   :  { %283 = vst.msk [vmem:[%s566_s3 + $0x3c] sm:$0xf] %vm267_vm3, %v266_v28 }
  0xbd   :  { %288 = vsyncpa [#allocation3], 1 }
  0xbe   :  { %289 = vsyncpa [#allocation5], 1 }

// kernel: discriminator_forward.10
= control target key start
LH: loop header
LB: loop body
LE: loop exit
PB: predicated region body
PF: predicated region fallthrough
CT: control target
= control target key end

     0   :  { %s122_s0 = inlined_call_operand.vmem [shape: bf16[32,128], index: 0, kind: input, shape index: {}]   ;;  %s123_s1 = inlined_call_operand.vmem [shape: f32[1,128], index: 1, kind: input, shape index: {}]   ;;  %s124_s2 = inlined_call_operand.vmem [shape: f32[1,128], index: 2, kind: input, shape index: {}]   ;;  %s125_s3 = inlined_call_operand.vmem [shape: bf16[32,128], index: 3, kind: output, shape index: {}]  }
   0x1   :  { %v63_v0 = vld [vmem:[%s122_s0] sm:$0xff]   ;;  %v80_v5 = vld [vmem:[%s122_s0 + $0x8] sm:$0xff]  }
   0x2   :  { %v82_v1 = vld [vmem:[%s123_s1] ss:$0 sm:$0xff]  ;;  %v64_v2 = vunpack.c.l.bf16 %v63_v0  ;;  %v65_v3 = vunpack.c.h.bf16 %v63_v0  ;;  %v68_v6 = vunpack.c.l.bf16 %v80_v5  ;;  %v69_v7 = vunpack.c.h.bf16 %v80_v5 }
   0x3   :  { %v83_v4 = vld [vmem:[%s124_s2] ss:$0 sm:$0xff] }
   0x4   :  { %v26_v8 = vmul.f32 %v82_v1, %v64_v2  ;;  %v27_v9 = vmul.f32 %v82_v1, %v65_v3  ;;  %v28_v10 = vmul.f32 %v82_v1, %v68_v6  ;;  %v29_v11 = vmul.f32 %v82_v1, %v69_v7 }
   0x6   :  { %v34_v12 = vadd.f32 %v83_v4, %v26_v8  ;;  %v35_v13 = vadd.f32 %v83_v4, %v27_v9  ;;  %v36_v14 = vadd.f32 %v83_v4, %v28_v10  ;;  %v37_v15 = vadd.f32 %v83_v4, %v29_v11 }
   0x8   :  { %vm38_vm0 = vcmp.gt.f32.partialorder %v34_v12, 0.0  ;;  %vm39_vm1 = vcmp.gt.f32.partialorder %v35_v13, 0.0  ;;  %v42_v16 = vmul.f32 0.2, %v34_v12  ;;  %v43_v17 = vmul.f32 0.2, %v35_v13 }
   0x9   :  { %vm40_vm2 = vcmp.gt.f32.partialorder %v36_v14, 0.0  ;;  %vm41_vm3 = vcmp.gt.f32.partialorder %v37_v15, 0.0  ;;  %v44_v18 = vmul.f32 0.2, %v36_v14  ;;  %v45_v19 = vmul.f32 0.2, %v37_v15 }
   0xa   :  { %v46_v20 = vsel %vm38_vm0, %v34_v12, %v42_v16  ;;  %v47_v21 = vsel %vm39_vm1, %v35_v13, %v43_v17 }
   0xb   :  { %v73_v22 = vpack.c.bf16 %v47_v21, %v46_v20  ;;  %v48_v23 = vsel %vm40_vm2, %v36_v14, %v44_v18  ;;  %v49_v24 = vsel %vm41_vm3, %v37_v15, %v45_v19 }
   0xc   :  { %v78_v25 = vpack.c.bf16 %v49_v24, %v48_v23 }
   0xd   :  { %74 = vst [vmem:[%s125_s3] sm:$0xff] %v73_v22  }
   0xe   :  { %81 = vst [vmem:[%s125_s3 + $0x8] sm:$0xff] %v78_v25  }

// kernel: discriminator_forward.9
= control target key start
LH: loop header
LB: loop body
LE: loop exit
PB: predicated region body
PF: predicated region fallthrough
CT: control target
= control target key end

     0   :  { %10 = vsyncpa [#allocation3], 0  ;;  %s1275_s18 = smov [#allocation2]   ;;  %s1276_s20 = smov 64   ;;  %s1414_s0 = inlined_call_operand.vmem [shape: bf16[32,1024], index: 0, kind: input, shape index: {}]   ;;  %s1415_s1 = inlined_call_operand.hbm [shape: bf16[1024,128], index: 1, kind: input, shape index: {}]   ;;  %s1416_s2 = inlined_call_operand.vmem [shape: bf16[32,128], index: 2, kind: output, shape index: {0}]   ;;  %s1417_s3 = inlined_call_operand.vmem [shape: f32[1,1,128], index: 3, kind: output, shape index: {1}]   ;;  %s1418_s4 = inlined_call_operand.vmem [shape: f32[1,1,128], index: 4, kind: output, shape index: {2}]  }
   0x1   :  { %s17_s17 = sshll.u32 %s1415_s1, 4  ;;  %s19_s19 = sshll.u32 %s1275_s18, 4  ;;  %s18_s17 = int_to_ptr.hbm [resolvable:$true] %s17_s17  ;;  %s20_s19 = int_to_ptr.vmem [resolvable:$true] %s19_s19 }
   0x2   :  { %s1277_s21 = smov 4  }
   0x3   :  { %25 = dma.hbm_to_vmem [thread:$0]  %s18_s17, 8192, %s20_s19, [#allocation3], %s1276_s20, %s1276_s20, %s1277_s21  }
   0x4   :  { %1273 = dma.done.wait [#allocation3], 8192  }
   0x5   :  { %1274 = vsyncadd [#allocation3], 4294959104  ;;  %v1178_v0 = vld [vmem:[#allocation2 + $0x38] sm:$0xff]  ;;  %v1177_v4 = vld [vmem:[#allocation2 + $0x30] sm:$0xff] }
   0x6   :  { %v1186_v1 = vld [vmem:[#allocation2 + $0x78] sm:$0xff]  ;;  %638 = vmatpush.bf16.msra.mxu0 %v1178_v0  ;;  %v1185_v5 = vld [vmem:[#allocation2 + $0x70] sm:$0xff]  ;;  %v1176_v8 = vld [vmem:[#allocation2 + $0x28] sm:$0xff] }
   0x7   :  { %v1194_v2 = vld [vmem:[#allocation2 + $0xb8] sm:$0xff]  ;;  %657 = vmatpush.bf16.msra.mxu1 %v1186_v1  ;;  %v1193_v6 = vld [vmem:[#allocation2 + $0xb0] sm:$0xff]  ;;  %v1184_v9 = vld [vmem:[#allocation2 + $0x68] sm:$0xff] }
   0x8   :  { %v1202_v3 = vld [vmem:[#allocation2 + $0xf8] sm:$0xff]  ;;  %676 = vmatpush.bf16.msra.mxu2 %v1194_v2  ;;  %v1201_v7 = vld [vmem:[#allocation2 + $0xf0] sm:$0xff]  ;;  %v1192_v10 = vld [vmem:[#allocation2 + $0xa8] sm:$0xff] }
   0x9   :  { %695 = vmatpush.bf16.msra.mxu3 %v1202_v3  ;;  %v1200_v11 = vld [vmem:[#allocation2 + $0xe8] sm:$0xff]  ;;  %v1175_v12 = vld [vmem:[#allocation2 + $0x20] sm:$0xff]  ;;  %v1174_v16 = vld [vmem:[#allocation2 + $0x18] sm:$0xff] }
   0xa   :  { %639 = vmatpush.bf16.msra.mxu0 %v1177_v4  ;;  %v1183_v13 = vld [vmem:[#allocation2 + $0x60] sm:$0xff]  ;;  %v1182_v17 = vld [vmem:[#allocation2 + $0x58] sm:$0xff]  ;;  %v1173_v20 = vld [vmem:[#allocation2 + $0x10] sm:$0xff] }
   0xb   :  { %658 = vmatpush.bf16.msra.mxu1 %v1185_v5  ;;  %v1191_v14 = vld [vmem:[#allocation2 + $0xa0] sm:$0xff]  ;;  %v1190_v18 = vld [vmem:[#allocation2 + $0x98] sm:$0xff]  ;;  %v1181_v21 = vld [vmem:[#allocation2 + $0x50] sm:$0xff] }
   0xc   :  { %677 = vmatpush.bf16.msra.mxu2 %v1193_v6  ;;  %v1199_v15 = vld [vmem:[#allocation2 + $0xe0] sm:$0xff]  ;;  %v1198_v19 = vld [vmem:[#allocation2 + $0xd8] sm:$0xff]  ;;  %v1189_v22 = vld [vmem:[#allocation2 + $0x90] sm:$0xff] }
   0xd   :  { %696 = vmatpush.bf16.msra.mxu3 %v1201_v7  ;;  %v1197_v23 = vld [vmem:[#allocation2 + $0xd0] sm:$0xff]  ;;  %v1172_v24 = vld [vmem:[#allocation2 + $0x8] sm:$0xff]  ;;  %v1171_v28 = vld [vmem:[#allocation2] sm:$0xff] }
   0xe   :  { %640 = vmatpush.bf16.msra.mxu0 %v1176_v8  ;;  %v1180_v25 = vld [vmem:[#allocation2 + $0x48] sm:$0xff]  ;;  %v1179_v29 = vld [vmem:[#allocation2 + $0x40] sm:$0xff]  ;;  %v1226_v40 = vld [vmem:[#allocation2 + $0x1b8] sm:$0xff] }
   0xf   :  { %659 = vmatpush.bf16.msra.mxu1 %v1184_v9  ;;  %v1188_v26 = vld [vmem:[#allocation2 + $0x88] sm:$0xff]  ;;  %v1187_v30 = vld [vmem:[#allocation2 + $0x80] sm:$0xff]  ;;  %v1210_v41 = vld [vmem:[#allocation2 + $0x138] sm:$0xff] }
  0x10   :  { %678 = vmatpush.bf16.msra.mxu2 %v1192_v10  ;;  %v1196_v27 = vld [vmem:[#allocation2 + $0xc8] sm:$0xff]  ;;  %v1195_v31 = vld [vmem:[#allocation2 + $0xc0] sm:$0xff]  ;;  %v1218_v46 = vld [vmem:[#allocation2 + $0x178] sm:$0xff] }
  0x11   :  { %697 = vmatpush.bf16.msra.mxu3 %v1200_v11  ;;  %v837_v32 = vld [vmem:[%s1414_s0] sm:$0xf]  ;;  %v1155_v34 = vld [vmem:[%s1414_s0 + $0x4] sm:$0xf]  ;;  %v845_v36 = vld [vmem:[%s1414_s0 + $0x8] sm:$0xf] }
  0x12   :  { %641 = vmatpush.bf16.msra.mxu0 %v1175_v12  ;;  %v1159_v33 = vld [vmem:[%s1414_s0 + $0x1c] sm:$0xf0]  ;;  %v839_v35 = vld [vmem:[%s1414_s0 + $0x20] sm:$0xf0]  ;;  %v1160_v37 = vld [vmem:[%s1414_s0 + $0x24] sm:$0xf0] }
  0x13   :  { %660 = vmatpush.bf16.msra.mxu1 %v1183_v13  ;;  %v1156_v38 = vld [vmem:[%s1414_s0 + $0xc] sm:$0xf]  ;;  %v838_v42 = vor.u32 %v1159_v33, %v837_v32  ;;  %v842_v43 = vor.u32 %v1155_v34, %v839_v35  ;;  %v846_v44 = vor.u32 %v1160_v37, %v845_v36  ;;  %v1234_v47 = vld [vmem:[#allocation2 + $0x1f8] sm:$0xff]  ;;  %v1225_v48 = vld [vmem:[#allocation2 + $0x1b0] sm:$0xff] }
  0x14   :  { %679 = vmatpush.bf16.msra.mxu2 %v1191_v14  ;;  %v847_v39 = vld [vmem:[%s1414_s0 + $0x28] sm:$0xf0]  ;;  %v1209_v49 = vld [vmem:[#allocation2 + $0x130] sm:$0xff]  ;;  %v1223_v56 = vld [vmem:[#allocation2 + $0x1a0] sm:$0xff] }
  0x15   :  { %698 = vmatpush.bf16.msra.mxu3 %v1199_v15  ;;  %v850_v45 = vor.u32 %v1156_v38, %v847_v39  ;;  %v1217_v50 = vld [vmem:[#allocation2 + $0x170] sm:$0xff]  ;;  %v1224_v52 = vld [vmem:[#allocation2 + $0x1a8] sm:$0xff]  ;;  %v1207_v57 = vld [vmem:[#allocation2 + $0x120] sm:$0xff] }
  0x16   :  { %642 = vmatpush.bf16.msra.mxu0 %v1174_v16  ;;  %v1233_v51 = vld [vmem:[#allocation2 + $0x1f0] sm:$0xff]  ;;  %v1208_v53 = vld [vmem:[#allocation2 + $0x128] sm:$0xff]  ;;  %v1215_v58 = vld [vmem:[#allocation2 + $0x160] sm:$0xff] }
  0x17   :  { %661 = vmatpush.bf16.msra.mxu1 %v1182_v17  ;;  %v1216_v54 = vld [vmem:[#allocation2 + $0x168] sm:$0xff]  ;;  %v1231_v59 = vld [vmem:[#allocation2 + $0x1e0] sm:$0xff]  ;;  %v1222_v4 = vld [vmem:[#allocation2 + $0x198] sm:$0xff] }
  0x18   :  { %680 = vmatpush.bf16.msra.mxu2 %v1190_v18  ;;  %v1232_v55 = vld [vmem:[#allocation2 + $0x1e8] sm:$0xff]  ;;  %v869_v60 = vld [vmem:[%s1414_s0 + $0x40] sm:$0xf]  ;;  %v1163_v62 = vld [vmem:[%s1414_s0 + $0x44] sm:$0xf] }
  0x19   :  { %699 = vmatpush.bf16.msra.mxu3 %v1198_v19  ;;  %v1167_v61 = vld [vmem:[%s1414_s0 + $0x5c] sm:$0xf0]  ;;  %v871_v63 = vld [vmem:[%s1414_s0 + $0x60] sm:$0xf0]  ;;  %v877_v0 = vld [vmem:[%s1414_s0 + $0x48] sm:$0xf] }
  0x1a   :  { %643 = vmatpush.bf16.msra.mxu0 %v1173_v20  ;;  %v1168_v1 = vld [vmem:[%s1414_s0 + $0x64] sm:$0xf0]  ;;  %v1164_v2 = vld [vmem:[%s1414_s0 + $0x4c] sm:$0xf]  ;;  %v1206_v5 = vld [vmem:[#allocation2 + $0x118] sm:$0xff]  ;;  %v870_v6 = vor.u32 %v1167_v61, %v869_v60  ;;  %v874_v7 = vor.u32 %v1163_v62, %v871_v63 }
  0x1b   :  { %662 = vmatpush.bf16.msra.mxu1 %v1181_v21  ;;  %v879_v3 = vld [vmem:[%s1414_s0 + $0x68] sm:$0xf0]  ;;  %v878_v8 = vor.u32 %v1168_v1, %v877_v0  ;;  %v1214_v10 = vld [vmem:[#allocation2 + $0x158] sm:$0xff]  ;;  %v1221_v12 = vld [vmem:[#allocation2 + $0x190] sm:$0xff] }
  0x1c   :  { %681 = vmatpush.bf16.msra.mxu2 %v1189_v22  ;;  %v882_v9 = vor.u32 %v1164_v2, %v879_v3  ;;  %v1230_v11 = vld [vmem:[#allocation2 + $0x1d8] sm:$0xff]  ;;  %v1205_v13 = vld [vmem:[#allocation2 + $0x110] sm:$0xff]  ;;  %v1220_v16 = vld [vmem:[#allocation2 + $0x188] sm:$0xff] }
  0x1d   :  { %700 = vmatpush.bf16.msra.mxu3 %v1197_v23  ;;  %v1213_v14 = vld [vmem:[#allocation2 + $0x150] sm:$0xff]  ;;  %v1204_v17 = vld [vmem:[#allocation2 + $0x108] sm:$0xff]  ;;  %v1219_v20 = vld [vmem:[#allocation2 + $0x180] sm:$0xff] }
  0x1e   :  { %644 = vmatpush.bf16.msra.mxu0 %v1172_v24  ;;  %v1229_v15 = vld [vmem:[#allocation2 + $0x1d0] sm:$0xff]  ;;  %v1212_v18 = vld [vmem:[#allocation2 + $0x148] sm:$0xff]  ;;  %v1203_v21 = vld [vmem:[#allocation2 + $0x100] sm:$0xff] }
  0x1f   :  { %663 = vmatpush.bf16.msra.mxu1 %v1180_v25  ;;  %v1228_v19 = vld [vmem:[#allocation2 + $0x1c8] sm:$0xff]  ;;  %v1211_v22 = vld [vmem:[#allocation2 + $0x140] sm:$0xff]  ;;  %v853_v24 = vld [vmem:[%s1414_s0 + $0x10] sm:$0xf] }
  0x20   :  { %682 = vmatpush.bf16.msra.mxu2 %v1188_v26  ;;  %v1227_v23 = vld [vmem:[#allocation2 + $0x1c0] sm:$0xff]  ;;  %v1161_v25 = vld [vmem:[%s1414_s0 + $0x2c] sm:$0xf0]  ;;  %v1157_v26 = vld [vmem:[%s1414_s0 + $0x14] sm:$0xf] }
  0x21   :  { %701 = vmatpush.bf16.msra.mxu3 %v1196_v27  ;;  %v855_v27 = vld [vmem:[%s1414_s0 + $0x30] sm:$0xf0]  ;;  %v854_v32 = vor.u32 %v1161_v25, %v853_v24  ;;  %v885_v36 = vld [vmem:[%s1414_s0 + $0x50] sm:$0xf] }
  0x22   :  { %645 = vmatpush.bf16.msra.mxu0 %v1171_v28  ;;  %v861_v28 = vld [vmem:[%s1414_s0 + $0x18] sm:$0xf]  ;;  %v858_v33 = vor.u32 %v1157_v26, %v855_v27  ;;  %v1169_v37 = vld [vmem:[%s1414_s0 + $0x6c] sm:$0xf0]  ;;  %v1165_v38 = vld [vmem:[%s1414_s0 + $0x54] sm:$0xf] }
  0x23   :  { %664 = vmatpush.bf16.msra.mxu1 %v1179_v29  ;;  %v1162_v29 = vld [vmem:[%s1414_s0 + $0x34] sm:$0xf0]  ;;  %v887_v39 = vld [vmem:[%s1414_s0 + $0x70] sm:$0xf0] }
  0x24   :  { %683 = vmatpush.bf16.msra.mxu2 %v1187_v30  ;;  %v1158_v30 = vld [vmem:[%s1414_s0 + $0x1c] sm:$0xf]  ;;  %v862_v34 = vor.u32 %v1162_v29, %v861_v28 }
  0x25   :  { %702 = vmatpush.bf16.msra.mxu3 %v1195_v31  ;;  %646 = vmatmul.bf16.vlgmr.msra.gmra.mxu0 %v838_v42  ;;  %v863_v31 = vld [vmem:[%s1414_s0 + $0x38] sm:$0xf0] }
  0x26   :  { %714 = vmatpush.bf16.msrb.mxu0 %v1210_v41  ;;  %665 = vmatmul.bf16.vlgmr.msra.gmra.mxu1 %v842_v43  ;;  %v866_v35 = vor.u32 %v1158_v30, %v863_v31  ;;  %v1170_v41 = vld [vmem:[%s1414_s0 + $0x74] sm:$0xf0]  ;;  %v1166_v42 = vld [vmem:[%s1414_s0 + $0x5c] sm:$0xf] }
  0x27   :  { %684 = vmatmul.bf16.vlgmr.msra.gmra.mxu2 %v846_v44  ;;  %733 = vmatpush.bf16.msrb.mxu1 %v1218_v46  ;;  %v895_v43 = vld [vmem:[%s1414_s0 + $0x78] sm:$0xf0]  ;;  %v886_v44 = vor.u32 %v1169_v37, %v885_v36 }
  0x28   :  { %752 = vmatpush.bf16.msrb.mxu2 %v1226_v40  ;;  %703 = vmatmul.bf16.vlgmr.msra.gmra.mxu3 %v850_v45  ;;  %v893_v40 = vld [vmem:[%s1414_s0 + $0x58] sm:$0xf]  ;;  %v890_v45 = vor.u32 %v1165_v38, %v887_v39 }
  0x29   :  { %771 = vmatpush.bf16.msrb.mxu3 %v1234_v47  ;;  %v894_v46 = vor.u32 %v1170_v41, %v893_v40  ;;  %v898_v47 = vor.u32 %v1166_v42, %v895_v43 }
  0x2a   :  { %715 = vmatpush.bf16.msrb.mxu0 %v1209_v49 }
  0x2b   :  { %734 = vmatpush.bf16.msrb.mxu1 %v1217_v50 }
  0x2c   :  { %753 = vmatpush.bf16.msrb.mxu2 %v1225_v48 }
  0x2d   :  { %772 = vmatpush.bf16.msrb.mxu3 %v1233_v51 }
  0x2e   :  { %716 = vmatpush.bf16.msrb.mxu0 %v1208_v53 }
  0x2f   :  { %735 = vmatpush.bf16.msrb.mxu1 %v1216_v54 }
  0x30   :  { %754 = vmatpush.bf16.msrb.mxu2 %v1224_v52 }
  0x31   :  { %773 = vmatpush.bf16.msrb.mxu3 %v1232_v55 }
  0x32   :  { %717 = vmatpush.bf16.msrb.mxu0 %v1207_v57 }
  0x33   :  { %736 = vmatpush.bf16.msrb.mxu1 %v1215_v58 }
  0x34   :  { %755 = vmatpush.bf16.msrb.mxu2 %v1223_v56 }
  0x35   :  { %774 = vmatpush.bf16.msrb.mxu3 %v1231_v59  ;;  %651 = vmatmul.bf16.gmra.mxu0 %v870_v6 }
  0x36   :  { %718 = vmatpush.bf16.msrb.mxu0 %v1206_v5  ;;  %670 = vmatmul.bf16.gmra.mxu1 %v874_v7 }
  0x37   :  { %689 = vmatmul.bf16.gmra.mxu2 %v878_v8  ;;  %737 = vmatpush.bf16.msrb.mxu1 %v1214_v10 }
  0x38   :  { %756 = vmatpush.bf16.msrb.mxu2 %v1222_v4  ;;  %708 = vmatmul.bf16.gmra.mxu3 %v882_v9 }
  0x39   :  { %775 = vmatpush.bf16.msrb.mxu3 %v1230_v11 }
  0x3a   :  { %719 = vmatpush.bf16.msrb.mxu0 %v1205_v13 }
  0x3b   :  { %738 = vmatpush.bf16.msrb.mxu1 %v1213_v14 }
  0x3c   :  { %757 = vmatpush.bf16.msrb.mxu2 %v1221_v12 }
  0x3d   :  { %776 = vmatpush.bf16.msrb.mxu3 %v1229_v15 }
  0x3e   :  { %720 = vmatpush.bf16.msrb.mxu0 %v1204_v17 }
  0x3f   :  { %739 = vmatpush.bf16.msrb.mxu1 %v1212_v18 }
  0x40   :  { %758 = vmatpush.bf16.msrb.mxu2 %v1220_v16 }
  0x41   :  { %777 = vmatpush.bf16.msrb.mxu3 %v1228_v19 }
  0x42   :  { %721 = vmatpush.bf16.msrb.mxu0 %v1203_v21 }
  0x43   :  { %740 = vmatpush.bf16.msrb.mxu1 %v1211_v22 }
  0x44   :  { %759 = vmatpush.bf16.msrb.mxu2 %v1219_v20 }
  0x45   :  { %778 = vmatpush.bf16.msrb.mxu3 %v1227_v23  ;;  %722 = vmatmul.bf16.vlgmr.msrb.gmra.mxu0 %v854_v32 }
  0x46   :  { %741 = vmatmul.bf16.vlgmr.msrb.gmra.mxu1 %v858_v33 }
  0x47   :  { %760 = vmatmul.bf16.vlgmr.msrb.gmra.mxu2 %v862_v34 }
  0x48   :  { %779 = vmatmul.bf16.vlgmr.msrb.gmra.mxu3 %v866_v35 }
  0x55   :  { %727 = vmatmul.bf16.gmra.mxu0 %v886_v44 }
  0x56   :  { %746 = vmatmul.bf16.gmra.mxu1 %v890_v45 }
  0x57   :  { %765 = vmatmul.bf16.gmra.mxu2 %v894_v46 }
  0x58   :  { %784 = vmatmul.bf16.gmra.mxu3 %v898_v47 }
  0xa2   :  { %v647_v48 = vpop.f32.mrf.mxu0 }
  0xa3   :  { %v666_v49 = vpop.f32.mrf.mxu1 }
  0xa4   :  { %v667_v0 = vadd.f32 %v666_v49, %v647_v48 }
  0xaa   :  { %v685_v50 = vpop.f32.mrf.mxu2  ;;  %v649_v52 = vpop.f32.mrf.mxu0 }
  0xab   :  { %v704_v51 = vpop.f32.mrf.mxu3  ;;  %v668_v53 = vpop.f32.mrf.mxu1  ;;  %v686_v3 = vadd.f32 %v685_v50, %v667_v0 }
  0xac   :  { %v669_v4 = vadd.f32 %v668_v53, %v649_v52 }
  0xad   :  { %v705_v6 = vadd.f32 %v704_v51, %v686_v3 }
  0xb2   :  { %v687_v54 = vpop.f32.mrf.mxu2  ;;  %v652_v56 = vpop.f32.mrf.mxu0 }
  0xb3   :  { %v706_v55 = vpop.f32.mrf.mxu3  ;;  %v671_v57 = vpop.f32.mrf.mxu1  ;;  %v688_v5 = vadd.f32 %v687_v54, %v669_v4 }
  0xb4   :  { %v672_v13 = vadd.f32 %v671_v57, %v652_v56 }
  0xb5   :  { %v707_v8 = vadd.f32 %v706_v55, %v688_v5 }
  0xba   :  { %v690_v58 = vpop.f32.mrf.mxu2  ;;  %v654_v60 = vpop.f32.mrf.mxu0 }
  0xbb   :  { %v709_v59 = vpop.f32.mrf.mxu3  ;;  %v673_v61 = vpop.f32.mrf.mxu1  ;;  %v691_v15 = vadd.f32 %v690_v58, %v672_v13 }
  0xbc   :  { %v674_v24 = vadd.f32 %v673_v61, %v654_v60 }
  0xbd   :  { %v710_v20 = vadd.f32 %v709_v59, %v691_v15 }
  0xc2   :  { %v692_v62 = vpop.f32.mrf.mxu2  ;;  %v723_v1 = vpop.f32.mrf.mxu0 }
  0xc3   :  { %v711_v63 = vpop.f32.mrf.mxu3  ;;  %v742_v2 = vpop.f32.mrf.mxu1  ;;  %v724_v9 = vadd.f32 %v723_v1, %v705_v6  ;;  %v693_v29 = vadd.f32 %v692_v62, %v674_v24 }
  0xc5   :  { %v743_v16 = vadd.f32 %v742_v2, %v724_v9  ;;  %v712_v33 = vadd.f32 %v711_v63, %v693_v29 }
  0xca   :  { %v761_v7 = vpop.f32.mrf.mxu2  ;;  %v725_v11 = vpop.f32.mrf.mxu0 }
  0xcb   :  { %v780_v10 = vpop.f32.mrf.mxu3  ;;  %v744_v12 = vpop.f32.mrf.mxu1  ;;  %v726_v14 = vadd.f32 %v725_v11, %v707_v8  ;;  %v762_v17 = vadd.f32 %v761_v7, %v743_v16 }
  0xcd   :  { %v745_v18 = vadd.f32 %v744_v12, %v726_v14  ;;  %v781_v25 = vadd.f32 %v780_v10, %v762_v17 }
  0xcf   :  { %v808_v43 = vmul.f32 %v781_v25, %v781_v25 }
  0xd2   :  { %v763_v19 = vpop.f32.mrf.mxu2  ;;  %v728_v23 = vpop.f32.mrf.mxu0 }
  0xd3   :  { %v764_v21 = vadd.f32 %v763_v19, %v745_v18  ;;  %v782_v22 = vpop.f32.mrf.mxu3  ;;  %v729_v27 = vadd.f32 %v728_v23, %v710_v20  ;;  %v747_v28 = vpop.f32.mrf.mxu1 }
  0xd5   :  { %v783_v26 = vadd.f32 %v782_v22, %v764_v21  ;;  %v748_v31 = vadd.f32 %v747_v28, %v729_v27 }
  0xd7   :  { %v1238_v30 = vpack.c.bf16 %v783_v26, %v781_v25  ;;  %v809_v40 = vmul.f32 %v783_v26, %v783_v26  ;;  %v798_v44 = vadd.f32 %v783_v26, %v781_v25 }
  0xd9   :  { %1239 = vst [vmem:[%s1416_s2] sm:$0xff] %v1238_v30   ;;  %v812_v48 = vadd.f32 %v809_v40, %v808_v43 }
  0xda   :  { %v766_v32 = vpop.f32.mrf.mxu2  ;;  %v730_v36 = vpop.f32.mrf.mxu0 }
  0xdb   :  { %v767_v34 = vadd.f32 %v766_v32, %v748_v31  ;;  %v785_v35 = vpop.f32.mrf.mxu3  ;;  %v731_v37 = vadd.f32 %v730_v36, %v712_v33  ;;  %v749_v39 = vpop.f32.mrf.mxu1 }
  0xdd   :  { %v786_v38 = vadd.f32 %v785_v35, %v767_v34  ;;  %v750_v41 = vadd.f32 %v749_v39, %v731_v37 }
  0xdf   :  { %v810_v45 = vmul.f32 %v786_v38, %v786_v38  ;;  %v799_v49 = vadd.f32 %v798_v44, %v786_v38 }
  0xe1   :  { %v813_v51 = vadd.f32 %v812_v48, %v810_v45 }
  0xe2   :  { %v768_v42 = vpop.f32.mrf.mxu2 }
  0xe3   :  { %v769_v46 = vadd.f32 %v768_v42, %v750_v41  ;;  %v787_v47 = vpop.f32.mrf.mxu3 }
  0xe5   :  { %v788_v50 = vadd.f32 %v787_v47, %v769_v46 }
  0xe7   :  { %v1243_v52 = vpack.c.bf16 %v788_v50, %v786_v38  ;;  %v800_v53 = vadd.f32 %v799_v49, %v788_v50  ;;  %v811_v54 = vmul.f32 %v788_v50, %v788_v50 }
  0xe9   :  { %1245 = vst [vmem:[%s1416_s2 + $0x8] sm:$0xff] %v1243_v52   ;;  %v801_v55 = vrot.slane %v800_v53, 4  ;;  %v814_v56 = vadd.f32 %v813_v51, %v811_v54 }
  0xeb   :  { %v802_v57 = vadd.f32 %v801_v55, %v800_v53  ;;  %v815_v58 = vrot.slane %v814_v56, 4 }
  0xed   :  { %v803_v59 = vrot.slane %v802_v57, 2  ;;  %v816_v60 = vadd.f32 %v815_v58, %v814_v56 }
  0xef   :  { %v804_v61 = vadd.f32 %v803_v59, %v802_v57  ;;  %v817_v62 = vrot.slane %v816_v60, 2 }
  0xf1   :  { %v805_v63 = vrot.slane %v804_v61, 1  ;;  %v818_v0 = vadd.f32 %v817_v62, %v816_v60 }
  0xf3   :  { %v806_v1 = vadd.f32 %v805_v63, %v804_v61  ;;  %v819_v2 = vrot.slane %v818_v0, 1 }
  0xf5   :  { %807 = vst [vmem:[%s1417_s3] sm:$0x1] %v806_v1  ;;  %v820_v3 = vadd.f32 %v819_v2, %v818_v0 }
  0xf7   :  { %821 = vst [vmem:[%s1418_s4] sm:$0x1] %v820_v3 }
  0xf8   :  { %834 = vsyncpa [#allocation3], 1 }

// kernel: discriminator_forward.12
= control target key start
LH: loop header
LB: loop body
LE: loop exit
PB: predicated region body
PF: predicated region fallthrough
CT: control target
= control target key end

     0   :  { %s77_s0 = inlined_call_operand.vmem [shape: bf16[8,256], index: 0, kind: input, shape index: {}]   ;;  %s78_s1 = inlined_call_operand.vmem [shape: f32[1,256], index: 1, kind: input, shape index: {}]   ;;  %s79_s2 = inlined_call_operand.vmem [shape: f32[1,256], index: 2, kind: input, shape index: {}]   ;;  %s80_s3 = inlined_call_operand.vmem [shape: bf16[8,256], index: 3, kind: output, shape index: {}]  }
   0x1   :  { %v14_v0 = vld [vmem:[%s77_s0] sm:$0xff] }
   0x2   :  { %v17_v1 = vld [vmem:[%s78_s1] sm:$0x3]  ;;  %v15_v3 = vunpack.c.l.bf16 %v14_v0  ;;  %v16_v4 = vunpack.c.h.bf16 %v14_v0 }
   0x3   :  { %v25_v2 = vld [vmem:[%s79_s2] sm:$0x3]  ;;  %v19_v5 = vperm.slane %v17_v1, 0  ;;  %v20_v6 = vperm.slane %v17_v1, 1 }
   0x4   :  { %v27_v7 = vperm.slane %v25_v2, 0  ;;  %v28_v8 = vperm.slane %v25_v2, 1 }
   0x5   :  { %v23_v9 = vmul.f32 %v19_v5, %v15_v3  ;;  %v24_v10 = vmul.f32 %v20_v6, %v16_v4 }
   0x7   :  { %v31_v11 = vadd.f32 %v27_v7, %v23_v9  ;;  %v32_v12 = vadd.f32 %v28_v8, %v24_v10 }
   0x9   :  { %vm33_vm0 = vcmp.gt.f32.partialorder %v31_v11, 0.0  ;;  %vm34_vm1 = vcmp.gt.f32.partialorder %v32_v12, 0.0  ;;  %v35_v13 = vmul.f32 0.2, %v31_v11  ;;  %v36_v14 = vmul.f32 0.2, %v32_v12 }
   0xb   :  { %v37_v15 = vsel %vm33_vm0, %v31_v11, %v35_v13  ;;  %v38_v16 = vsel %vm34_vm1, %v32_v12, %v36_v14 }
   0xc   :  { %v39_v17 = vpack.c.bf16 %v38_v16, %v37_v15 }
   0xe   :  { %40 = vst [vmem:[%s80_s3] sm:$0xff] %v39_v17 }

// kernel: discriminator_forward.14
= control target key start
LH: loop header
LB: loop body
LE: loop exit
PB: predicated region body
PF: predicated region fallthrough
CT: control target
= control target key end

     0   :  { %s106_s0 = inlined_call_operand.vmem [shape: bf16[8,512], index: 0, kind: input, shape index: {}]   ;;  %s107_s1 = inlined_call_operand.vmem [shape: f32[1,512], index: 1, kind: input, shape index: {}]   ;;  %s108_s2 = inlined_call_operand.vmem [shape: f32[1,512], index: 2, kind: input, shape index: {}]   ;;  %s109_s3 = inlined_call_operand.vmem [shape: bf16[8,512], index: 3, kind: output, shape index: {}]  }
   0x1   :  { %v14_v0 = vld [vmem:[%s106_s0] sm:$0xff]  ;;  %v15_v7 = vld [vmem:[%s106_s0 + $0x8] sm:$0xff] }
   0x2   :  { %v20_v1 = vld [vmem:[%s107_s1] sm:$0xf]  ;;  %v16_v3 = vunpack.c.l.bf16 %v14_v0  ;;  %v17_v4 = vunpack.c.h.bf16 %v14_v0  ;;  %v18_v10 = vunpack.c.l.bf16 %v15_v7  ;;  %v19_v11 = vunpack.c.h.bf16 %v15_v7 }
   0x3   :  { %v34_v2 = vld [vmem:[%s108_s2] sm:$0xf]  ;;  %v22_v5 = vperm.slane %v20_v1, 0  ;;  %v23_v6 = vperm.slane %v20_v1, 1  ;;  %v24_v14 = vperm.slane %v20_v1, 2  ;;  %v25_v15 = vperm.slane %v20_v1, 3 }
   0x4   :  { %v36_v8 = vperm.slane %v34_v2, 0  ;;  %v37_v9 = vperm.slane %v34_v2, 1  ;;  %v38_v16 = vperm.slane %v34_v2, 2  ;;  %v39_v17 = vperm.slane %v34_v2, 3 }
   0x5   :  { %v30_v12 = vmul.f32 %v22_v5, %v16_v3  ;;  %v31_v13 = vmul.f32 %v23_v6, %v17_v4  ;;  %v32_v20 = vmul.f32 %v24_v14, %v18_v10  ;;  %v33_v21 = vmul.f32 %v25_v15, %v19_v11 }
   0x7   :  { %v44_v18 = vadd.f32 %v36_v8, %v30_v12  ;;  %v45_v19 = vadd.f32 %v37_v9, %v31_v13  ;;  %v46_v24 = vadd.f32 %v38_v16, %v32_v20  ;;  %v47_v25 = vadd.f32 %v39_v17, %v33_v21 }
   0x9   :  { %vm48_vm0 = vcmp.gt.f32.partialorder %v44_v18, 0.0  ;;  %vm49_vm1 = vcmp.gt.f32.partialorder %v45_v19, 0.0  ;;  %v52_v22 = vmul.f32 0.2, %v44_v18  ;;  %v53_v23 = vmul.f32 0.2, %v45_v19 }
   0xa   :  { %vm50_vm2 = vcmp.gt.f32.partialorder %v46_v24, 0.0  ;;  %vm51_vm3 = vcmp.gt.f32.partialorder %v47_v25, 0.0  ;;  %v54_v29 = vmul.f32 0.2, %v46_v24  ;;  %v55_v30 = vmul.f32 0.2, %v47_v25 }
   0xb   :  { %v56_v26 = vsel %vm48_vm0, %v44_v18, %v52_v22  ;;  %v57_v27 = vsel %vm49_vm1, %v45_v19, %v53_v23 }
   0xc   :  { %v60_v28 = vpack.c.bf16 %v57_v27, %v56_v26  ;;  %v58_v31 = vsel %vm50_vm2, %v46_v24, %v54_v29  ;;  %v59_v32 = vsel %vm51_vm3, %v47_v25, %v55_v30 }
   0xd   :  { %v61_v33 = vpack.c.bf16 %v59_v32, %v58_v31 }
   0xe   :  { %62 = vst [vmem:[%s109_s3] sm:$0xff] %v60_v28 }
   0xf   :  { %63 = vst [vmem:[%s109_s3 + $0x8] sm:$0xff] %v61_v33 }

// kernel: discriminator_forward.11
= control target key start
LH: loop header
LB: loop body
LE: loop exit
PB: predicated region body
PF: predicated region fallthrough
CT: control target
= control target key end

     0   :  { %10 = vsyncpa [#allocation3], 0  ;;  %s3413_s18 = smov [#allocation2]   ;;  %s3414_s20 = smov 128   ;;  %s3547_s0 = inlined_call_operand.vmem [shape: bf16[8,2048], index: 0, kind: input, shape index: {}]   ;;  %s3548_s1 = inlined_call_operand.hbm [shape: bf16[2048,256], index: 1, kind: input, shape index: {}]   ;;  %s3549_s2 = inlined_call_operand.vmem [shape: bf16[8,256], index: 2, kind: output, shape index: {0}]   ;;  %s3550_s3 = inlined_call_operand.vmem [shape: f32[1,1,256], index: 3, kind: output, shape index: {1}]   ;;  %s3551_s4 = inlined_call_operand.vmem [shape: f32[1,1,256], index: 4, kind: output, shape index: {2}]  }
   0x1   :  { %s17_s17 = sshll.u32 %s3548_s1, 4  ;;  %s19_s19 = sshll.u32 %s3413_s18, 4  ;;  %s18_s17 = int_to_ptr.hbm [resolvable:$true] %s17_s17  ;;  %s20_s19 = int_to_ptr.vmem [resolvable:$true] %s19_s19 }
   0x2   :  { %s3415_s21 = smov 8  }
   0x3   :  { %25 = dma.hbm_to_vmem [thread:$0]  %s18_s17, 32768, %s20_s19, [#allocation3], %s3414_s20, %s3414_s20, %s3415_s21  }
   0x4   :  { %3411 = dma.done.wait [#allocation3], 32768  }
   0x5   :  { %3412 = vsyncadd [#allocation3], 4294934528  ;;  %v2162_v0 = vld [vmem:[#allocation2 + $0x70] sm:$0xf]  ;;  %v3143_v1 = vld [vmem:[#allocation2 + $0x74] sm:$0xf0] }
   0x6   :  { %v2226_v2 = vld [vmem:[#allocation2 + $0xf0] sm:$0xf]  ;;  %v2163_v3 = vor.u32 %v3143_v1, %v2162_v0  ;;  %v3159_v4 = vld [vmem:[#allocation2 + $0xf4] sm:$0xf0]  ;;  %v2154_v11 = vld [vmem:[#allocation2 + $0x60] sm:$0xf] }
   0x7   :  { %v2290_v5 = vld [vmem:[#allocation2 + $0x170] sm:$0xf]  ;;  %v3175_v6 = vld [vmem:[#allocation2 + $0x174] sm:$0xf0]  ;;  %v2227_v7 = vor.u32 %v3159_v4, %v2226_v2  ;;  %v3141_v13 = vld [vmem:[#allocation2 + $0x64] sm:$0xf0] }
   0x8   :  { %v2291_v8 = vor.u32 %v3175_v6, %v2290_v5  ;;  %v2354_v9 = vld [vmem:[#allocation2 + $0x1f0] sm:$0xf]  ;;  %v3191_v10 = vld [vmem:[#allocation2 + $0x1f4] sm:$0xf0]  ;;  %1630 = vmatpush.bf16.msra.mxu0 %v2163_v3  ;;  %v2218_v14 = vld [vmem:[#allocation2 + $0xe0] sm:$0xf]  ;;  %v2155_v16 = vor.u32 %v3141_v13, %v2154_v11 }
   0x9   :  { %v2355_v12 = vor.u32 %v3191_v10, %v2354_v9  ;;  %v3157_v15 = vld [vmem:[#allocation2 + $0xe4] sm:$0xf0]  ;;  %1643 = vmatpush.bf16.msra.mxu1 %v2227_v7  ;;  %v2282_v18 = vld [vmem:[#allocation2 + $0x160] sm:$0xf]  ;;  %v2146_v23 = vld [vmem:[#allocation2 + $0x50] sm:$0xf] }
   0xa   :  { %1656 = vmatpush.bf16.msra.mxu2 %v2291_v8  ;;  %v2219_v17 = vor.u32 %v3157_v15, %v2218_v14  ;;  %v3173_v19 = vld [vmem:[#allocation2 + $0x164] sm:$0xf0]  ;;  %v2346_v20 = vld [vmem:[#allocation2 + $0x1e0] sm:$0xf]  ;;  %v3139_v24 = vld [vmem:[#allocation2 + $0x54] sm:$0xf0] }
   0xb   :  { %1669 = vmatpush.bf16.msra.mxu3 %v2355_v12  ;;  %v2283_v21 = vor.u32 %v3173_v19, %v2282_v18  ;;  %v3189_v22 = vld [vmem:[#allocation2 + $0x1e4] sm:$0xf0]  ;;  %v2210_v26 = vld [vmem:[#allocation2 + $0xd0] sm:$0xf]  ;;  %v3155_v27 = vld [vmem:[#allocation2 + $0xd4] sm:$0xf0]  ;;  %v2147_v29 = vor.u32 %v3139_v24, %v2146_v23 }
   0xc   :  { %v2347_v25 = vor.u32 %v3189_v22, %v2346_v20  ;;  %v2274_v28 = vld [vmem:[#allocation2 + $0x150] sm:$0xf]  ;;  %1631 = vmatpush.bf16.msra.mxu0 %v2155_v16  ;;  %v3171_v30 = vld [vmem:[#allocation2 + $0x154] sm:$0xf0]  ;;  %v2211_v33 = vor.u32 %v3155_v27, %v2210_v26  ;;  %v2138_v35 = vld [vmem:[#allocation2 + $0x40] sm:$0xf] }
   0xd   :  { %v2338_v31 = vld [vmem:[#allocation2 + $0x1d0] sm:$0xf]  ;;  %v3187_v32 = vld [vmem:[#allocation2 + $0x1d4] sm:$0xf0]  ;;  %1644 = vmatpush.bf16.msra.mxu1 %v2219_v17  ;;  %v2275_v34 = vor.u32 %v3171_v30, %v2274_v28  ;;  %v3137_v36 = vld [vmem:[#allocation2 + $0x44] sm:$0xf0] }
   0xe   :  { %1657 = vmatpush.bf16.msra.mxu2 %v2283_v21  ;;  %v2202_v37 = vld [vmem:[#allocation2 + $0xc0] sm:$0xf]  ;;  %v2339_v38 = vor.u32 %v3187_v32, %v2338_v31  ;;  %v3153_v39 = vld [vmem:[#allocation2 + $0xc4] sm:$0xf0]  ;;  %v2139_v44 = vor.u32 %v3137_v36, %v2138_v35  ;;  %v2130_v47 = vld [vmem:[#allocation2 + $0x30] sm:$0xf] }
   0xf   :  { %1670 = vmatpush.bf16.msra.mxu3 %v2347_v25  ;;  %v2266_v40 = vld [vmem:[#allocation2 + $0x140] sm:$0xf]  ;;  %v3169_v41 = vld [vmem:[#allocation2 + $0x144] sm:$0xf0]  ;;  %v2203_v45 = vor.u32 %v3153_v39, %v2202_v37  ;;  %v3135_v48 = vld [vmem:[#allocation2 + $0x34] sm:$0xf0] }
  0x10   :  { %v2330_v42 = vld [vmem:[#allocation2 + $0x1c0] sm:$0xf]  ;;  %v3185_v43 = vld [vmem:[#allocation2 + $0x1c4] sm:$0xf0]  ;;  %1632 = vmatpush.bf16.msra.mxu0 %v2147_v29  ;;  %v2267_v46 = vor.u32 %v3169_v41, %v2266_v40  ;;  %v2194_v49 = vld [vmem:[#allocation2 + $0xb0] sm:$0xf]  ;;  %v2131_v56 = vor.u32 %v3135_v48, %v2130_v47 }
  0x11   :  { %1645 = vmatpush.bf16.msra.mxu1 %v2211_v33  ;;  %v2331_v50 = vor.u32 %v3185_v43, %v2330_v42  ;;  %v3151_v51 = vld [vmem:[#allocation2 + $0xb4] sm:$0xf0]  ;;  %v2258_v52 = vld [vmem:[#allocation2 + $0x130] sm:$0xf]  ;;  %v2122_v59 = vld [vmem:[#allocation2 + $0x20] sm:$0xf] }
  0x12   :  { %1658 = vmatpush.bf16.msra.mxu2 %v2275_v34  ;;  %v3167_v53 = vld [vmem:[#allocation2 + $0x134] sm:$0xf0]  ;;  %v2322_v54 = vld [vmem:[#allocation2 + $0x1b0] sm:$0xf]  ;;  %v2195_v57 = vor.u32 %v3151_v51, %v2194_v49  ;;  %v3133_v60 = vld [vmem:[#allocation2 + $0x24] sm:$0xf0] }
  0x13   :  { %1671 = vmatpush.bf16.msra.mxu3 %v2339_v38  ;;  %v3183_v55 = vld [vmem:[#allocation2 + $0x1b4] sm:$0xf0]  ;;  %v2259_v58 = vor.u32 %v3167_v53, %v2258_v52  ;;  %v2186_v61 = vld [vmem:[#allocation2 + $0xa0] sm:$0xf]  ;;  %v3149_v63 = vld [vmem:[#allocation2 + $0xa4] sm:$0xf0]  ;;  %v2123_v4 = vor.u32 %v3133_v60, %v2122_v59 }
  0x14   :  { %1633 = vmatpush.bf16.msra.mxu0 %v2139_v44  ;;  %v2323_v62 = vor.u32 %v3183_v55, %v2322_v54  ;;  %v2250_v0 = vld [vmem:[#allocation2 + $0x120] sm:$0xf]  ;;  %v3165_v1 = vld [vmem:[#allocation2 + $0x124] sm:$0xf0]  ;;  %v2187_v5 = vor.u32 %v3149_v63, %v2186_v61  ;;  %v2114_v7 = vld [vmem:[#allocation2 + $0x10] sm:$0xf] }
  0x15   :  { %1646 = vmatpush.bf16.msra.mxu1 %v2203_v45  ;;  %v2314_v2 = vld [vmem:[#allocation2 + $0x1a0] sm:$0xf]  ;;  %v3181_v3 = vld [vmem:[#allocation2 + $0x1a4] sm:$0xf0]  ;;  %v2251_v6 = vor.u32 %v3165_v1, %v2250_v0  ;;  %v3131_v8 = vld [vmem:[#allocation2 + $0x14] sm:$0xf0] }
  0x16   :  { %1659 = vmatpush.bf16.msra.mxu2 %v2267_v46  ;;  %v2178_v9 = vld [vmem:[#allocation2 + $0x90] sm:$0xf]  ;;  %v2315_v10 = vor.u32 %v3181_v3, %v2314_v2  ;;  %v3147_v11 = vld [vmem:[#allocation2 + $0x94] sm:$0xf0]  ;;  %v2115_v16 = vor.u32 %v3131_v8, %v2114_v7  ;;  %v2106_v17 = vld [vmem:[#allocation2] sm:$0xf] }
  0x17   :  { %1672 = vmatpush.bf16.msra.mxu3 %v2331_v50  ;;  %v2242_v12 = vld [vmem:[#allocation2 + $0x110] sm:$0xf]  ;;  %v3163_v13 = vld [vmem:[#allocation2 + $0x114] sm:$0xf0]  ;;  %v3129_v18 = vld [vmem:[#allocation2 + $0x4] sm:$0xf0]  ;;  %v2179_v19 = vor.u32 %v3147_v11, %v2178_v9 }
  0x18   :  { %1634 = vmatpush.bf16.msra.mxu0 %v2131_v56  ;;  %v2306_v14 = vld [vmem:[#allocation2 + $0x190] sm:$0xf]  ;;  %v3179_v15 = vld [vmem:[#allocation2 + $0x194] sm:$0xf0]  ;;  %v2243_v20 = vor.u32 %v3163_v13, %v2242_v12  ;;  %v2170_v21 = vld [vmem:[#allocation2 + $0x80] sm:$0xf]  ;;  %v2107_v31 = vor.u32 %v3129_v18, %v2106_v17 }
  0x19   :  { %1647 = vmatpush.bf16.msra.mxu1 %v2195_v57  ;;  %v3145_v22 = vld [vmem:[#allocation2 + $0x84] sm:$0xf0]  ;;  %v2234_v23 = vld [vmem:[#allocation2 + $0x100] sm:$0xf]  ;;  %v2307_v24 = vor.u32 %v3179_v15, %v2306_v14  ;;  %v2418_v28 = vld [vmem:[#allocation2 + $0x270] sm:$0xf] }
  0x1a   :  { %1660 = vmatpush.bf16.msra.mxu2 %v2259_v58  ;;  %v3161_v25 = vld [vmem:[#allocation2 + $0x104] sm:$0xf0]  ;;  %v2298_v26 = vld [vmem:[#allocation2 + $0x180] sm:$0xf]  ;;  %v3207_v29 = vld [vmem:[#allocation2 + $0x274] sm:$0xf0]  ;;  %v2171_v35 = vor.u32 %v3145_v22, %v2170_v21 }
  0x1b   :  { %1673 = vmatpush.bf16.msra.mxu3 %v2323_v62  ;;  %v3177_v27 = vld [vmem:[#allocation2 + $0x184] sm:$0xf0]  ;;  %v2482_v30 = vld [vmem:[#allocation2 + $0x2f0] sm:$0xf]  ;;  %v3223_v32 = vld [vmem:[#allocation2 + $0x2f4] sm:$0xf0]  ;;  %v2235_v36 = vor.u32 %v3161_v25, %v2234_v23  ;;  %v2419_v40 = vor.u32 %v3207_v29, %v2418_v28 }
  0x1c   :  { %1635 = vmatpush.bf16.msra.mxu0 %v2123_v4  ;;  %v2546_v33 = vld [vmem:[#allocation2 + $0x370] sm:$0xf]  ;;  %v3239_v34 = vld [vmem:[#allocation2 + $0x374] sm:$0xf0]  ;;  %v2299_v39 = vor.u32 %v3177_v27, %v2298_v26  ;;  %v2483_v41 = vor.u32 %v3223_v32, %v2482_v30  ;;  %v2410_v43 = vld [vmem:[#allocation2 + $0x260] sm:$0xf] }
  0x1d   :  { %1648 = vmatpush.bf16.msra.mxu1 %v2187_v5  ;;  %v2610_v37 = vld [vmem:[#allocation2 + $0x3f0] sm:$0xf]  ;;  %v3255_v38 = vld [vmem:[#allocation2 + $0x3f4] sm:$0xf0]  ;;  %v2547_v42 = vor.u32 %v3239_v34, %v2546_v33  ;;  %v3205_v44 = vld [vmem:[#allocation2 + $0x264] sm:$0xf0] }
  0x1e   :  { %1661 = vmatpush.bf16.msra.mxu2 %v2251_v6  ;;  %v2474_v45 = vld [vmem:[#allocation2 + $0x2e0] sm:$0xf]  ;;  %v2611_v46 = vor.u32 %v3255_v38, %v2610_v37  ;;  %v3221_v47 = vld [vmem:[#allocation2 + $0x2e4] sm:$0xf0]  ;;  %v2411_v52 = vor.u32 %v3205_v44, %v2410_v43  ;;  %v2402_v53 = vld [vmem:[#allocation2 + $0x250] sm:$0xf] }
  0x1f   :  { %1674 = vmatpush.bf16.msra.mxu3 %v2315_v10  ;;  %v2538_v48 = vld [vmem:[#allocation2 + $0x360] sm:$0xf]  ;;  %v3237_v49 = vld [vmem:[#allocation2 + $0x364] sm:$0xf0]  ;;  %v2475_v54 = vor.u32 %v3221_v47, %v2474_v45  ;;  %v3203_v56 = vld [vmem:[#allocation2 + $0x254] sm:$0xf0] }
  0x20   :  { %1636 = vmatpush.bf16.msra.mxu0 %v2115_v16  ;;  %v2602_v50 = vld [vmem:[#allocation2 + $0x3e0] sm:$0xf]  ;;  %v3253_v51 = vld [vmem:[#allocation2 + $0x3e4] sm:$0xf0]  ;;  %v2539_v55 = vor.u32 %v3237_v49, %v2538_v48  ;;  %v2466_v57 = vld [vmem:[#allocation2 + $0x2d0] sm:$0xf]  ;;  %v2403_v3 = vor.u32 %v3203_v56, %v2402_v53 }
  0x21   :  { %1649 = vmatpush.bf16.msra.mxu1 %v2179_v19  ;;  %v31_v58 = vld [vmem:[%s3547_s0 + $0x8] sm:$0xff]  ;;  %v2603_v59 = vor.u32 %v3253_v51, %v2602_v50  ;;  %v3219_v60 = vld [vmem:[#allocation2 + $0x2d4] sm:$0xf0]  ;;  %v2530_v61 = vld [vmem:[#allocation2 + $0x350] sm:$0xf]  ;;  %vm2063_vm0 = vcmask 1040384  }
  0x22   :  { %1662 = vmatpush.bf16.msra.mxu2 %v2243_v20  ;;  %v3235_v62 = vld [vmem:[#allocation2 + $0x354] sm:$0xf0]  ;;  %v304_v63 = vunpack.c.l.b16 %v31_v58  ;;  %v305_v0 = vunpack.c.h.b16 %v31_v58  ;;  %v2594_v1 = vld [vmem:[#allocation2 + $0x3d0] sm:$0xf]  ;;  %v30_v5 = vld [vmem:[%s3547_s0] sm:$0xff]  ;;  %v2467_v7 = vor.u32 %v3219_v60, %v2466_v57 }
  0x23   :  { %1675 = vmatpush.bf16.msra.mxu3 %v2307_v24  ;;  %v3251_v2 = vld [vmem:[#allocation2 + $0x3d4] sm:$0xf0]  ;;  %v2531_v8 = vor.u32 %v3235_v62, %v2530_v61  ;;  %v2394_v9 = vld [vmem:[#allocation2 + $0x240] sm:$0xf]  ;;  %v3201_v10 = vld [vmem:[#allocation2 + $0x244] sm:$0xf0]  ;;  %v302_v12 = vunpack.c.l.b16 %v30_v5  ;;  %v303_v13 = vunpack.c.h.b16 %v30_v5 }
  0x24   :  { %1637 = vmatpush.bf16.msra.mxu0 %v2107_v31  ;;  %v3447_v4 = vpack.c.b16 %v304_v63, %v304_v63  ;;  %v3452_v6 = vpack.c.b16 %v305_v0, %v305_v0  ;;  %v2458_v11 = vld [vmem:[#allocation2 + $0x2c0] sm:$0xf]  ;;  %v2595_v14 = vor.u32 %v3251_v2, %v2594_v1  ;;  %v3217_v15 = vld [vmem:[#allocation2 + $0x2c4] sm:$0xf0]  ;;  %v2395_v22 = vor.u32 %v3201_v10, %v2394_v9  ;;  %v2386_v25 = vld [vmem:[#allocation2 + $0x230] sm:$0xf] }
  0x25   :  { %1650 = vmatpush.bf16.msra.mxu1 %v2171_v35  ;;  %v2522_v16 = vld [vmem:[#allocation2 + $0x340] sm:$0xf]  ;;  %v3233_v17 = vld [vmem:[#allocation2 + $0x344] sm:$0xf0]  ;;  %v3455_v20 = vpack.c.b16 %v302_v12, %v302_v12  ;;  %v3458_v21 = vpack.c.b16 %v303_v13, %v303_v13  ;;  %v2459_v23 = vor.u32 %v3217_v15, %v2458_v11  ;;  %v3199_v26 = vld [vmem:[#allocation2 + $0x234] sm:$0xf0] }
  0x26   :  { %1663 = vmatpush.bf16.msra.mxu2 %v2235_v36  ;;  %v2586_v18 = vld [vmem:[#allocation2 + $0x3c0] sm:$0xf]  ;;  %v3249_v19 = vld [vmem:[#allocation2 + $0x3c4] sm:$0xf0]  ;;  %v2523_v24 = vor.u32 %v3233_v17, %v2522_v16  ;;  %v2450_v27 = vld [vmem:[#allocation2 + $0x2b0] sm:$0xf]  ;;  %v2387_v34 = vor.u32 %v3199_v26, %v2386_v25 }
  0x27   :  { %1676 = vmatpush.bf16.msra.mxu3 %v2299_v39  ;;  %v2587_v28 = vor.u32 %v3249_v19, %v2586_v18  ;;  %v3215_v29 = vld [vmem:[#allocation2 + $0x2b4] sm:$0xf0]  ;;  %v2514_v30 = vld [vmem:[#allocation2 + $0x330] sm:$0xf]  ;;  %1638 = vmatmul.bf16.vlgmr.msra.gmra.mxu0 %v3455_v20  ;;  %v2378_v37 = vld [vmem:[#allocation2 + $0x220] sm:$0xf] }
  0x28   :  { %1682 = vmatpush.bf16.msrb.mxu0 %v2419_v40  ;;  %v3231_v31 = vld [vmem:[#allocation2 + $0x334] sm:$0xf0]  ;;  %v2578_v32 = vld [vmem:[#allocation2 + $0x3b0] sm:$0xf]  ;;  %1651 = vmatmul.bf16.vlgmr.msra.gmra.mxu1 %v3458_v21  ;;  %v2451_v35 = vor.u32 %v3215_v29, %v2450_v27  ;;  %v3197_v38 = vld [vmem:[#allocation2 + $0x224] sm:$0xf0] }
  0x29   :  { %1695 = vmatpush.bf16.msrb.mxu1 %v2483_v41  ;;  %1664 = vmatmul.bf16.vlgmr.msra.gmra.mxu2 %v3447_v4  ;;  %v3247_v33 = vld [vmem:[#allocation2 + $0x3b4] sm:$0xf0]  ;;  %v2515_v36 = vor.u32 %v3231_v31, %v2514_v30  ;;  %v2442_v39 = vld [vmem:[#allocation2 + $0x2a0] sm:$0xf]  ;;  %v3213_v41 = vld [vmem:[#allocation2 + $0x2a4] sm:$0xf0] }
  0x2a   :  { %1708 = vmatpush.bf16.msrb.mxu2 %v2547_v42  ;;  %1677 = vmatmul.bf16.vlgmr.msra.gmra.mxu3 %v3452_v6  ;;  %v2579_v40 = vor.u32 %v3247_v33, %v2578_v32  ;;  %v2506_v42 = vld [vmem:[#allocation2 + $0x320] sm:$0xf]  ;;  %v3229_v43 = vld [vmem:[#allocation2 + $0x324] sm:$0xf0]  ;;  %v2443_v47 = vor.u32 %v3213_v41, %v2442_v39  ;;  %v2370_v49 = vld [vmem:[#allocation2 + $0x210] sm:$0xf] }
  0x2b   :  { %1721 = vmatpush.bf16.msrb.mxu3 %v2611_v46  ;;  %v2570_v44 = vld [vmem:[#allocation2 + $0x3a0] sm:$0xf]  ;;  %v3245_v45 = vld [vmem:[#allocation2 + $0x3a4] sm:$0xf0]  ;;  %v2379_v46 = vor.u32 %v3197_v38, %v2378_v37  ;;  %v2507_v48 = vor.u32 %v3229_v43, %v2506_v42  ;;  %v3195_v50 = vld [vmem:[#allocation2 + $0x214] sm:$0xf0] }
  0x2c   :  { %1683 = vmatpush.bf16.msrb.mxu0 %v2411_v52  ;;  %v2434_v51 = vld [vmem:[#allocation2 + $0x290] sm:$0xf]  ;;  %v2571_v52 = vor.u32 %v3245_v45, %v2570_v44  ;;  %v3211_v53 = vld [vmem:[#allocation2 + $0x294] sm:$0xf0]  ;;  %v2362_v58 = vld [vmem:[#allocation2 + $0x200] sm:$0xf] }
  0x2d   :  { %1696 = vmatpush.bf16.msrb.mxu1 %v2475_v54  ;;  %v2498_v54 = vld [vmem:[#allocation2 + $0x310] sm:$0xf]  ;;  %v3243_v57 = vld [vmem:[#allocation2 + $0x394] sm:$0xf0]  ;;  %v3193_v60 = vld [vmem:[#allocation2 + $0x204] sm:$0xf0]  ;;  %v2435_v63 = vor.u32 %v3211_v53, %v2434_v51 }
  0x2e   :  { %1709 = vmatpush.bf16.msrb.mxu2 %v2539_v55  ;;  %v3227_v55 = vld [vmem:[#allocation2 + $0x314] sm:$0xf0]  ;;  %v2562_v56 = vld [vmem:[#allocation2 + $0x390] sm:$0xf]  ;;  %v2426_v61 = vld [vmem:[#allocation2 + $0x280] sm:$0xf]  ;;  %v2363_v13 = vor.u32 %v3193_v60, %v2362_v58 }
  0x2f   :  { %1722 = vmatpush.bf16.msrb.mxu3 %v2603_v59  ;;  %v2371_v59 = vor.u32 %v3195_v50, %v2370_v49  ;;  %v3209_v62 = vld [vmem:[#allocation2 + $0x284] sm:$0xf0]  ;;  %v2499_v0 = vor.u32 %v3227_v55, %v2498_v54  ;;  %v2490_v1 = vld [vmem:[#allocation2 + $0x300] sm:$0xf]  ;;  %v2563_v5 = vor.u32 %v3243_v57, %v2562_v56  ;;  %v32_v9 = vld [vmem:[%s3547_s0 + $0x10] sm:$0xff] }
  0x30   :  { %1684 = vmatpush.bf16.msrb.mxu0 %v2403_v3  ;;  %v3225_v2 = vld [vmem:[#allocation2 + $0x304] sm:$0xf0]  ;;  %v33_v3 = vld [vmem:[%s3547_s0 + $0x18] sm:$0xff]  ;;  %v2674_v10 = vld [vmem:[#allocation2 + $0x470] sm:$0xf]  ;;  %v2427_v18 = vor.u32 %v3209_v62, %v2426_v61 }
  0x31   :  { %1697 = vmatpush.bf16.msrb.mxu1 %v2467_v7  ;;  %v2554_v7 = vld [vmem:[#allocation2 + $0x380] sm:$0xf]  ;;  %v3271_v11 = vld [vmem:[#allocation2 + $0x474] sm:$0xf0]  ;;  %v2738_v12 = vld [vmem:[#allocation2 + $0x4f0] sm:$0xf]  ;;  %v308_v17 = vunpack.c.l.b16 %v33_v3  ;;  %v2491_v19 = vor.u32 %v3225_v2, %v2490_v1  ;;  %v309_v25 = vunpack.c.h.b16 %v33_v3 }
  0x32   :  { %1710 = vmatpush.bf16.msrb.mxu2 %v2531_v8  ;;  %v3241_v8 = vld [vmem:[#allocation2 + $0x384] sm:$0xf0]  ;;  %v2802_v15 = vld [vmem:[#allocation2 + $0x570] sm:$0xf]  ;;  %v3303_v16 = vld [vmem:[#allocation2 + $0x574] sm:$0xf0]  ;;  %v2675_v27 = vor.u32 %v3271_v11, %v2674_v10 }
  0x33   :  { %1723 = vmatpush.bf16.msrb.mxu3 %v2595_v14  ;;  %v3287_v14 = vld [vmem:[#allocation2 + $0x4f4] sm:$0xf0]  ;;  %v2555_v26 = vor.u32 %v3241_v8, %v2554_v7  ;;  %v2803_v30 = vor.u32 %v3303_v16, %v2802_v15  ;;  %v2666_v31 = vld [vmem:[#allocation2 + $0x460] sm:$0xf]  ;;  %v3269_v32 = vld [vmem:[#allocation2 + $0x464] sm:$0xf0]  ;;  %v3468_v38 = vpack.c.b16 %v308_v17, %v308_v17  ;;  %v3472_v42 = vpack.c.b16 %v309_v25, %v309_v25 }
  0x34   :  { %1685 = vmatpush.bf16.msrb.mxu0 %v2395_v22  ;;  %v2866_v22 = vld [vmem:[#allocation2 + $0x5f0] sm:$0xf]  ;;  %v2739_v29 = vor.u32 %v3287_v14, %v2738_v12  ;;  %v2730_v33 = vld [vmem:[#allocation2 + $0x4e0] sm:$0xf]  ;;  %v3301_v37 = vld [vmem:[#allocation2 + $0x564] sm:$0xf0]  ;;  %v2667_v43 = vor.u32 %v3269_v32, %v2666_v31 }
  0x35   :  { %1698 = vmatpush.bf16.msrb.mxu1 %v2459_v23  ;;  %v3319_v23 = vld [vmem:[#allocation2 + $0x5f4] sm:$0xf0]  ;;  %v2858_v39 = vld [vmem:[#allocation2 + $0x5e0] sm:$0xf]  ;;  %v2722_v49 = vld [vmem:[#allocation2 + $0x4d0] sm:$0xf] }
  0x36   :  { %1711 = vmatpush.bf16.msrb.mxu2 %v2523_v24  ;;  %v306_v24 = vunpack.c.l.b16 %v32_v9  ;;  %v3283_v51 = vld [vmem:[#allocation2 + $0x4d4] sm:$0xf0]  ;;  %v2850_v54 = vld [vmem:[#allocation2 + $0x5d0] sm:$0xf]  ;;  %v3265_v60 = vld [vmem:[#allocation2 + $0x444] sm:$0xf0] }
  0x37   :  { %1724 = vmatpush.bf16.msrb.mxu3 %v2587_v28  ;;  %v307_v28 = vunpack.c.h.b16 %v32_v9  ;;  %v3299_v53 = vld [vmem:[#allocation2 + $0x554] sm:$0xf0]  ;;  %v2723_v57 = vor.u32 %v3283_v51, %v2722_v49  ;;  %v2714_v61 = vld [vmem:[#allocation2 + $0x4c0] sm:$0xf]  ;;  %v3297_v1 = vld [vmem:[#allocation2 + $0x544] sm:$0xf0] }
  0x38   :  { %1686 = vmatpush.bf16.msrb.mxu0 %v2387_v34  ;;  %v2867_v34 = vor.u32 %v3319_v23, %v2866_v22  ;;  %v3470_v41 = vpack.c.b16 %v306_v24, %v306_v24  ;;  %v3315_v55 = vld [vmem:[#allocation2 + $0x5d4] sm:$0xf0]  ;;  %v2842_v2 = vld [vmem:[#allocation2 + $0x5c0] sm:$0xf]  ;;  %v3313_v3 = vld [vmem:[#allocation2 + $0x5c4] sm:$0xf0] }
  0x39   :  { %1699 = vmatpush.bf16.msrb.mxu1 %v2451_v35  ;;  %v3285_v35 = vld [vmem:[#allocation2 + $0x4e4] sm:$0xf0]  ;;  %v3474_v44 = vpack.c.b16 %v307_v28, %v307_v28  ;;  %v2851_v62 = vor.u32 %v3315_v55, %v2850_v54  ;;  %v2642_v9 = vld [vmem:[#allocation2 + $0x430] sm:$0xf]  ;;  %v3263_v10 = vld [vmem:[#allocation2 + $0x434] sm:$0xf0]  ;;  %v2843_v12 = vor.u32 %v3313_v3, %v2842_v2 }
  0x3a   :  { %1712 = vmatpush.bf16.msrb.mxu2 %v2515_v36  ;;  %v2794_v36 = vld [vmem:[#allocation2 + $0x560] sm:$0xf]  ;;  %v2731_v45 = vor.u32 %v3285_v35, %v2730_v33  ;;  %v2706_v11 = vld [vmem:[#allocation2 + $0x4b0] sm:$0xf]  ;;  %v3295_v15 = vld [vmem:[#allocation2 + $0x534] sm:$0xf0] }
  0x3b   :  { %1725 = vmatpush.bf16.msrb.mxu3 %v2579_v40  ;;  %v3317_v40 = vld [vmem:[#allocation2 + $0x5e4] sm:$0xf0]  ;;  %v2770_v14 = vld [vmem:[#allocation2 + $0x530] sm:$0xf]  ;;  %v3311_v17 = vld [vmem:[#allocation2 + $0x5b4] sm:$0xf0] }
  0x3c   :  { %1687 = vmatpush.bf16.msrb.mxu0 %v2379_v46  ;;  %v2795_v46 = vor.u32 %v3301_v37, %v2794_v36  ;;  %v2859_v50 = vor.u32 %v3317_v40, %v2858_v39  ;;  %v2834_v16 = vld [vmem:[#allocation2 + $0x5b0] sm:$0xf]  ;;  %v2771_v22 = vor.u32 %v3295_v15, %v2770_v14  ;;  %v2634_v23 = vld [vmem:[#allocation2 + $0x420] sm:$0xf]  ;;  %v3261_v24 = vld [vmem:[#allocation2 + $0x424] sm:$0xf0] }
  0x3d   :  { %1700 = vmatpush.bf16.msrb.mxu1 %v2443_v47  ;;  %v2658_v47 = vld [vmem:[#allocation2 + $0x450] sm:$0xf]  ;;  %v2698_v25 = vld [vmem:[#allocation2 + $0x4a0] sm:$0xf]  ;;  %v3309_v31 = vld [vmem:[#allocation2 + $0x5a4] sm:$0xf0]  ;;  %v2635_v32 = vor.u32 %v3261_v24, %v2634_v23 }
  0x3e   :  { %1713 = vmatpush.bf16.msrb.mxu2 %v2507_v48  ;;  %v3267_v48 = vld [vmem:[#allocation2 + $0x454] sm:$0xf0]  ;;  %v2762_v28 = vld [vmem:[#allocation2 + $0x520] sm:$0xf]  ;;  %v2626_v35 = vld [vmem:[#allocation2 + $0x410] sm:$0xf] }
  0x3f   :  { %1726 = vmatpush.bf16.msrb.mxu3 %v2571_v52  ;;  %v2786_v52 = vld [vmem:[#allocation2 + $0x550] sm:$0xf]  ;;  %v2659_v56 = vor.u32 %v3267_v48, %v2658_v47  ;;  %v3259_v36 = vld [vmem:[#allocation2 + $0x414] sm:$0xf0]  ;;  %v2618_v48 = vld [vmem:[#allocation2 + $0x400] sm:$0xf] }
  0x40   :  { %1688 = vmatpush.bf16.msrb.mxu0 %v2371_v59  ;;  %v2787_v58 = vor.u32 %v3299_v53, %v2786_v52  ;;  %v2650_v59 = vld [vmem:[#allocation2 + $0x440] sm:$0xf]  ;;  %v2690_v37 = vld [vmem:[#allocation2 + $0x490] sm:$0xf]  ;;  %v3275_v40 = vld [vmem:[#allocation2 + $0x494] sm:$0xf0]  ;;  %v2627_v49 = vor.u32 %v3259_v36, %v2626_v35 }
  0x41   :  { %1701 = vmatpush.bf16.msrb.mxu1 %v2435_v63  ;;  %v3281_v63 = vld [vmem:[#allocation2 + $0x4c4] sm:$0xf0]  ;;  %v3307_v47 = vld [vmem:[#allocation2 + $0x594] sm:$0xf0]  ;;  %v2682_v51 = vld [vmem:[#allocation2 + $0x480] sm:$0xf]  ;;  %v2691_v53 = vor.u32 %v3275_v40, %v2690_v37 }
  0x42   :  { %1714 = vmatpush.bf16.msrb.mxu2 %v2499_v0  ;;  %v2778_v0 = vld [vmem:[#allocation2 + $0x540] sm:$0xf]  ;;  %v2715_v7 = vor.u32 %v3281_v63, %v2714_v61  ;;  %v3273_v52 = vld [vmem:[#allocation2 + $0x484] sm:$0xf0]  ;;  %v3335_v63 = vld [vmem:[#allocation2 + $0x674] sm:$0xf0] }
  0x43   :  { %1727 = vmatpush.bf16.msrb.mxu3 %v2563_v5  ;;  %v2651_v5 = vor.u32 %v3265_v60, %v2650_v59  ;;  %v2779_v8 = vor.u32 %v3297_v1, %v2778_v0  ;;  %v2746_v55 = vld [vmem:[#allocation2 + $0x500] sm:$0xf]  ;;  %v3305_v60 = vld [vmem:[#allocation2 + $0x584] sm:$0xf0]  ;;  %v2994_v0 = vld [vmem:[#allocation2 + $0x6f0] sm:$0xf] }
  0x44   :  { %1689 = vmatpush.bf16.msrb.mxu0 %v2363_v13  ;;  %v3279_v13 = vld [vmem:[#allocation2 + $0x4b4] sm:$0xf0]  ;;  %v2810_v59 = vld [vmem:[#allocation2 + $0x580] sm:$0xf]  ;;  %v35_v61 = vld [vmem:[%s3547_s0 + $0x28] sm:$0xff] }
  0x45   :  { %1702 = vmatpush.bf16.msrb.mxu1 %v2427_v18  ;;  %v2643_v18 = vor.u32 %v3263_v10, %v2642_v9  ;;  %v3351_v2 = vld [vmem:[#allocation2 + $0x6f4] sm:$0xf0]  ;;  %v3058_v3 = vld [vmem:[#allocation2 + $0x770] sm:$0xf]  ;;  %v2811_v14 = vor.u32 %v3305_v60, %v2810_v59  ;;  %v2986_v23 = vld [vmem:[#allocation2 + $0x6e0] sm:$0xf] }
  0x46   :  { %1715 = vmatpush.bf16.msrb.mxu2 %v2491_v19  ;;  %v2707_v19 = vor.u32 %v3279_v13, %v2706_v11  ;;  %v3122_v10 = vld [vmem:[#allocation2 + $0x7f0] sm:$0xf]  ;;  %v3383_v11 = vld [vmem:[#allocation2 + $0x7f4] sm:$0xf0]  ;;  %v3361_v59 = vld [vmem:[#allocation2 + $0x744] sm:$0xf0] }
  0x47   :  { %1728 = vmatpush.bf16.msrb.mxu3 %v2555_v26  ;;  %1690 = vmatmul.bf16.vlgmr.msrb.gmra.mxu0 %v3470_v41  ;;  %v2835_v26 = vor.u32 %v3311_v17, %v2834_v16  ;;  %v313_v16 = vunpack.c.h.b16 %v35_v61  ;;  %v2995_v17 = vor.u32 %v3351_v2, %v2994_v0  ;;  %v3123_v24 = vor.u32 %v3383_v11, %v3122_v10  ;;  %v2914_v37 = vld [vmem:[#allocation2 + $0x650] sm:$0xf]  ;;  %v3098_v60 = vld [vmem:[#allocation2 + $0x7c0] sm:$0xf]  ;;  %v3327_v2 = vld [vmem:[#allocation2 + $0x634] sm:$0xf0] }
  0x48   :  { %1734 = vmatpush.bf16.msra.mxu0 %v2675_v27  ;;  %1703 = vmatmul.bf16.vlgmr.msrb.gmra.mxu1 %v3474_v44  ;;  %v3277_v27 = vld [vmem:[#allocation2 + $0x4a4] sm:$0xf0]  ;;  %v2978_v40 = vld [vmem:[#allocation2 + $0x6d0] sm:$0xf]  ;;  %v3375_v11 = vld [vmem:[#allocation2 + $0x7b4] sm:$0xf0] }
  0x49   :  { %1747 = vmatpush.bf16.msra.mxu1 %v2739_v29  ;;  %1716 = vmatmul.bf16.vlgmr.msrb.gmra.mxu2 %v3468_v38  ;;  %v3293_v29 = vld [vmem:[#allocation2 + $0x524] sm:$0xf0]  ;;  %v2699_v33 = vor.u32 %v3277_v27, %v2698_v25  ;;  %v3050_v27 = vld [vmem:[#allocation2 + $0x760] sm:$0xf]  ;;  %v3090_v10 = vld [vmem:[#allocation2 + $0x7b0] sm:$0xf] }
  0x4a   :  { %1760 = vmatpush.bf16.msra.mxu2 %v2803_v30  ;;  %1729 = vmatmul.bf16.vlgmr.msrb.gmra.mxu3 %v3472_v42  ;;  %v2826_v30 = vld [vmem:[#allocation2 + $0x5a0] sm:$0xf] }
  0x4b   :  { %1773 = vmatpush.bf16.msra.mxu3 %v2867_v34  ;;  %v2763_v34 = vor.u32 %v3293_v29, %v2762_v28  ;;  %v2827_v39 = vor.u32 %v3309_v31, %v2826_v30  ;;  %v3365_v28 = vld [vmem:[#allocation2 + $0x764] sm:$0xf0]  ;;  %v3114_v31 = vld [vmem:[#allocation2 + $0x7e0] sm:$0xf] }
  0x4c   :  { %1735 = vmatpush.bf16.msra.mxu0 %v2667_v43  ;;  %v2754_v43 = vld [vmem:[#allocation2 + $0x510] sm:$0xf]  ;;  %v3051_v36 = vor.u32 %v3365_v28, %v3050_v27 }
  0x4d   :  { %1748 = vmatpush.bf16.msra.mxu1 %v2731_v45  ;;  %v3291_v45 = vld [vmem:[#allocation2 + $0x514] sm:$0xf0] }
  0x4e   :  { %1761 = vmatpush.bf16.msra.mxu2 %v2795_v46  ;;  %v2818_v46 = vld [vmem:[#allocation2 + $0x590] sm:$0xf]  ;;  %v2755_v54 = vor.u32 %v3291_v45, %v2754_v43  ;;  %v3347_v45 = vld [vmem:[#allocation2 + $0x6d4] sm:$0xf0] }
  0x4f   :  { %1774 = vmatpush.bf16.msra.mxu3 %v2859_v50  ;;  %v3257_v50 = vld [vmem:[#allocation2 + $0x404] sm:$0xf0] }
  0x50   :  { %1736 = vmatpush.bf16.msra.mxu0 %v2659_v56  ;;  %v3289_v56 = vld [vmem:[#allocation2 + $0x504] sm:$0xf0]  ;;  %v2619_v1 = vor.u32 %v3257_v50, %v2618_v48  ;;  %v3106_v48 = vld [vmem:[#allocation2 + $0x7d0] sm:$0xf] }
  0x51   :  { %1749 = vmatpush.bf16.msra.mxu1 %v2723_v57  ;;  %v34_v57 = vld [vmem:[%s3547_s0 + $0x20] sm:$0xff]  ;;  %v2747_v9 = vor.u32 %v3289_v56, %v2746_v55 }
  0x52   :  { %1762 = vmatpush.bf16.msra.mxu2 %v2787_v58  ;;  %v2819_v58 = vor.u32 %v3307_v47, %v2818_v46  ;;  %v311_v13 = vunpack.c.h.b16 %v34_v57  ;;  %v3042_v46 = vld [vmem:[#allocation2 + $0x750] sm:$0xf]  ;;  %v3363_v47 = vld [vmem:[#allocation2 + $0x754] sm:$0xf0]  ;;  %v2970_v55 = vld [vmem:[#allocation2 + $0x6c0] sm:$0xf] }
  0x53   :  { %1775 = vmatpush.bf16.msra.mxu3 %v2851_v62  ;;  %v2930_v62 = vld [vmem:[#allocation2 + $0x670] sm:$0xf] }
  0x54   :  { %1737 = vmatpush.bf16.msra.mxu0 %v2651_v5  ;;  %v3367_v5 = vld [vmem:[#allocation2 + $0x774] sm:$0xf0]  ;;  %v2931_v15 = vor.u32 %v3335_v63, %v2930_v62  ;;  %v3490_v30 = vpack.c.b16 %v311_v13, %v311_v13 }
  0x55   :  { %1750 = vmatpush.bf16.msra.mxu1 %v2715_v7  ;;  %v310_v7 = vunpack.c.l.b16 %v34_v57  ;;  %v3345_v57 = vld [vmem:[#allocation2 + $0x6c4] sm:$0xf0] }
  0x56   :  { %1763 = vmatpush.bf16.msra.mxu2 %v2779_v8  ;;  %v2683_v8 = vor.u32 %v3273_v52, %v2682_v51  ;;  %v2979_v51 = vor.u32 %v3347_v45, %v2978_v40  ;;  %v3043_v52 = vor.u32 %v3363_v47, %v3042_v46  ;;  %v2971_v63 = vor.u32 %v3345_v57, %v2970_v55  ;;  %v3355_v40 = vld [vmem:[#allocation2 + $0x714] sm:$0xf0]  ;;  %v2874_v46 = vld [vmem:[#allocation2 + $0x600] sm:$0xf]  ;;  %v36_v55 = vld [vmem:[%s3547_s0 + $0x30] sm:$0xff] }
  0x57   :  { %1776 = vmatpush.bf16.msra.mxu3 %v2843_v12  ;;  %v312_v12 = vunpack.c.l.b16 %v35_v61  ;;  %v3486_v25 = vpack.c.b16 %v310_v7, %v310_v7  ;;  %v3377_v61 = vld [vmem:[#allocation2 + $0x7c4] sm:$0xf0]  ;;  %v3343_v7 = vld [vmem:[#allocation2 + $0x6b4] sm:$0xf0]  ;;  %v3066_v57 = vld [vmem:[#allocation2 + $0x780] sm:$0xf] }
  0x58   :  { %1738 = vmatpush.bf16.msra.mxu0 %v2643_v18  ;;  %v3059_v18 = vor.u32 %v3367_v5, %v3058_v3  ;;  %v2962_v3 = vld [vmem:[#allocation2 + $0x6b0] sm:$0xf]  ;;  %v3099_v5 = vor.u32 %v3377_v61, %v3098_v60  ;;  %v3371_v45 = vld [vmem:[#allocation2 + $0x794] sm:$0xf0]  ;;  %v3142_v60 = vld [vmem:[#allocation2 + $0x74] sm:$0xf] }
  0x59   :  { %1751 = vmatpush.bf16.msra.mxu1 %v2707_v19  ;;  %v2922_v19 = vld [vmem:[#allocation2 + $0x660] sm:$0xf]  ;;  %v3488_v29 = vpack.c.b16 %v312_v12, %v312_v12  ;;  %v2963_v13 = vor.u32 %v3343_v7, %v2962_v3  ;;  %v2164_v61 = vld [vmem:[#allocation2 + $0x78] sm:$0xf0]  ;;  %v314_v3 = vunpack.c.l.b16 %v36_v55 }
  0x5a   :  { %1764 = vmatpush.bf16.msra.mxu2 %v2771_v22  ;;  %v3333_v22 = vld [vmem:[#allocation2 + $0x664] sm:$0xf0] }
  0x5b   :  { %1777 = vmatpush.bf16.msra.mxu3 %v2835_v26  ;;  %v3349_v26 = vld [vmem:[#allocation2 + $0x6e4] sm:$0xf0] }
  0x5c   :  { %1739 = vmatpush.bf16.msra.mxu0 %v2635_v32  ;;  %v3381_v32 = vld [vmem:[#allocation2 + $0x7e4] sm:$0xf0]  ;;  %v2987_v35 = vor.u32 %v3349_v26, %v2986_v23 }
  0x5d   :  { %1752 = vmatpush.bf16.msra.mxu1 %v2699_v33  ;;  %v3492_v33 = vpack.c.b16 %v313_v16, %v313_v16  ;;  %v3115_v43 = vor.u32 %v3381_v32, %v3114_v31  ;;  %v3325_v16 = vld [vmem:[#allocation2 + $0x624] sm:$0xf0]  ;;  %v2882_v32 = vld [vmem:[#allocation2 + $0x610] sm:$0xf] }
  0x5e   :  { %1765 = vmatpush.bf16.msra.mxu2 %v2763_v34  ;;  %v2923_v34 = vor.u32 %v3333_v22, %v2922_v19  ;;  %v3341_v19 = vld [vmem:[#allocation2 + $0x6a4] sm:$0xf0]  ;;  %v3018_v22 = vld [vmem:[#allocation2 + $0x720] sm:$0xf] }
  0x5f   :  { %1778 = vmatpush.bf16.msra.mxu3 %v2827_v39  ;;  %v3331_v39 = vld [vmem:[#allocation2 + $0x654] sm:$0xf0]  ;;  %v3357_v23 = vld [vmem:[#allocation2 + $0x724] sm:$0xf0] }
  0x60   :  { %1740 = vmatpush.bf16.msra.mxu0 %v2627_v49  ;;  %v3379_v49 = vld [vmem:[#allocation2 + $0x7d4] sm:$0xf0]  ;;  %v2915_v50 = vor.u32 %v3331_v39, %v2914_v37  ;;  %v3373_v26 = vld [vmem:[#allocation2 + $0x7a4] sm:$0xf0]  ;;  %v3019_v31 = vor.u32 %v3357_v23, %v3018_v22  ;;  %v3010_v39 = vld [vmem:[#allocation2 + $0x710] sm:$0xf]  ;;  %v3504_v23 = vpack.c.b16 %v314_v3, %v314_v3 }
  0x61   :  { %1753 = vmatpush.bf16.msra.mxu1 %v2691_v53  ;;  %v2906_v53 = vld [vmem:[#allocation2 + $0x640] sm:$0xf]  ;;  %v3107_v56 = vor.u32 %v3379_v49, %v3106_v48  ;;  %v3339_v37 = vld [vmem:[#allocation2 + $0x694] sm:$0xf0]  ;;  %v3321_v48 = vld [vmem:[#allocation2 + $0x604] sm:$0xf0] }
  0x62   :  { %1766 = vmatpush.bf16.msra.mxu2 %v2755_v54  ;;  %v3329_v54 = vld [vmem:[#allocation2 + $0x644] sm:$0xf0]  ;;  %v2938_v49 = vld [vmem:[#allocation2 + $0x680] sm:$0xf]  ;;  %v3134_v3 = vld [vmem:[#allocation2 + $0x34] sm:$0xf] }
  0x63   :  { %1779 = vmatpush.bf16.msra.mxu3 %v2819_v58  ;;  %v3034_v58 = vld [vmem:[#allocation2 + $0x740] sm:$0xf]  ;;  %v2907_v62 = vor.u32 %v3329_v54, %v2906_v53  ;;  %v3353_v54 = vld [vmem:[#allocation2 + $0x704] sm:$0xf0] }
  0x64   :  { %1741 = vmatpush.bf16.msra.mxu0 %v2619_v1  ;;  %v3035_v0 = vor.u32 %v3361_v59, %v3034_v58  ;;  %v2898_v1 = vld [vmem:[#allocation2 + $0x630] sm:$0xf]  ;;  %v3002_v53 = vld [vmem:[#allocation2 + $0x700] sm:$0xf]  ;;  %v3369_v58 = vld [vmem:[#allocation2 + $0x784] sm:$0xf0] }
  0x65   :  { %1754 = vmatpush.bf16.msra.mxu1 %v2683_v8  ;;  %v3026_v8 = vld [vmem:[#allocation2 + $0x730] sm:$0xf]  ;;  %v2899_v12 = vor.u32 %v3327_v2, %v2898_v1  ;;  %v37_v59 = vld [vmem:[%s3547_s0 + $0x38] sm:$0xff]  ;;  %v3174_v1 = vld [vmem:[#allocation2 + $0x174] sm:$0xf]  ;;  %v3003_v7 = vor.u32 %v3353_v54, %v3002_v53 }
  0x66   :  { %1767 = vmatpush.bf16.msra.mxu2 %v2747_v9  ;;  %v3359_v9 = vld [vmem:[#allocation2 + $0x734] sm:$0xf0]  ;;  %v2292_v2 = vld [vmem:[#allocation2 + $0x178] sm:$0xf0] }
  0x67   :  { %1780 = vmatpush.bf16.msra.mxu3 %v2811_v14  ;;  %1742 = vmatmul.bf16.vlgmr.msra.gmra.mxu0 %v3486_v25  ;;  %v3027_v14 = vor.u32 %v3359_v9, %v3026_v8  ;;  %v3190_v8 = vld [vmem:[#allocation2 + $0x1f4] sm:$0xf]  ;;  %v2356_v9 = vld [vmem:[#allocation2 + $0x1f8] sm:$0xf0] }
  0x68   :  { %1786 = vmatpush.bf16.msrb.mxu0 %v2931_v15  ;;  %1755 = vmatmul.bf16.vlgmr.msra.gmra.mxu1 %v3490_v30  ;;  %v2890_v15 = vld [vmem:[#allocation2 + $0x620] sm:$0xf]  ;;  %v2359_v22 = vor.u32 %v3190_v8, %v2356_v9  ;;  %v2196_v9 = vld [vmem:[#allocation2 + $0xb8] sm:$0xf0] }
  0x69   :  { %1799 = vmatpush.bf16.msrb.mxu1 %v2995_v17  ;;  %1768 = vmatmul.bf16.vlgmr.msra.gmra.mxu2 %v3488_v29  ;;  %v2954_v17 = vld [vmem:[#allocation2 + $0x6a0] sm:$0xf]  ;;  %v2891_v27 = vor.u32 %v3325_v16, %v2890_v15  ;;  %v2295_v16 = vor.u32 %v3174_v1, %v2292_v2 }
  0x6a   :  { %1812 = vmatpush.bf16.msrb.mxu2 %v3059_v18  ;;  %1781 = vmatmul.bf16.vlgmr.msra.gmra.mxu3 %v3492_v33  ;;  %v3091_v18 = vor.u32 %v3375_v11, %v3090_v10  ;;  %v2955_v28 = vor.u32 %v3341_v19, %v2954_v17  ;;  %v316_v10 = vunpack.c.l.b16 %v37_v59  ;;  %v315_v11 = vunpack.c.h.b16 %v36_v55  ;;  %v3140_v17 = vld [vmem:[#allocation2 + $0x64] sm:$0xf] }
  0x6b   :  { %1825 = vmatpush.bf16.msrb.mxu3 %v3123_v24  ;;  %v3082_v24 = vld [vmem:[#allocation2 + $0x7a0] sm:$0xf]  ;;  %v3156_v19 = vld [vmem:[#allocation2 + $0xe4] sm:$0xf] }
  0x6c   :  { %1787 = vmatpush.bf16.msrb.mxu0 %v2923_v34  ;;  %v3323_v34 = vld [vmem:[#allocation2 + $0x614] sm:$0xf0]  ;;  %v3136_v55 = vld [vmem:[#allocation2 + $0x44] sm:$0xf] }
  0x6d   :  { %1800 = vmatpush.bf16.msrb.mxu1 %v2987_v35  ;;  %v2946_v35 = vld [vmem:[#allocation2 + $0x690] sm:$0xf]  ;;  %v2883_v47 = vor.u32 %v3323_v34, %v2882_v32  ;;  %v3188_v32 = vld [vmem:[#allocation2 + $0x1e4] sm:$0xf]  ;;  %v2348_v34 = vld [vmem:[#allocation2 + $0x1e8] sm:$0xf0] }
  0x6e   :  { %1813 = vmatpush.bf16.msrb.mxu2 %v3051_v36  ;;  %v3083_v36 = vor.u32 %v3373_v26, %v3082_v24  ;;  %v2220_v24 = vld [vmem:[#allocation2 + $0xe8] sm:$0xf0]  ;;  %v3172_v26 = vld [vmem:[#allocation2 + $0x164] sm:$0xf] }
  0x6f   :  { %1826 = vmatpush.bf16.msrb.mxu3 %v3115_v43  ;;  %v3074_v43 = vld [vmem:[#allocation2 + $0x790] sm:$0xf] }
  0x70   :  { %1788 = vmatpush.bf16.msrb.mxu0 %v2915_v50  ;;  %v3337_v50 = vld [vmem:[#allocation2 + $0x684] sm:$0xf0] }
  0x71   :  { %1801 = vmatpush.bf16.msrb.mxu1 %v2979_v51  ;;  %v2947_v51 = vor.u32 %v3339_v37, %v2946_v35  ;;  %v2223_v37 = vor.u32 %v3156_v19, %v2220_v24  ;;  %v3148_v19 = vld [vmem:[#allocation2 + $0xa4] sm:$0xf]  ;;  %v2188_v24 = vld [vmem:[#allocation2 + $0xa8] sm:$0xf0] }
  0x72   :  { %1814 = vmatpush.bf16.msrb.mxu2 %v3043_v52  ;;  %v3011_v52 = vor.u32 %v3355_v40, %v3010_v39  ;;  %v3138_v40 = vld [vmem:[#allocation2 + $0x54] sm:$0xf] }
  0x73   :  { %1827 = vmatpush.bf16.msrb.mxu3 %v3107_v56  ;;  %v3075_v56 = vor.u32 %v3371_v45, %v3074_v43  ;;  %v2148_v43 = vld [vmem:[#allocation2 + $0x58] sm:$0xf0]  ;;  %v3154_v45 = vld [vmem:[#allocation2 + $0xd4] sm:$0xf] }
  0x74   :  { %1789 = vmatpush.bf16.msrb.mxu0 %v2907_v62  ;;  %v3158_v62 = vld [vmem:[#allocation2 + $0xf4] sm:$0xf] }
  0x75   :  { %1802 = vmatpush.bf16.msrb.mxu1 %v2971_v63  ;;  %v2875_v63 = vor.u32 %v3321_v48, %v2874_v46  ;;  %v2351_v46 = vor.u32 %v3188_v32, %v2348_v34  ;;  %v3170_v48 = vld [vmem:[#allocation2 + $0x154] sm:$0xf]  ;;  %v3180_v32 = vld [vmem:[#allocation2 + $0x1a4] sm:$0xf]  ;;  %v2316_v34 = vld [vmem:[#allocation2 + $0x1a8] sm:$0xf0] }
  0x76   :  { %1815 = vmatpush.bf16.msrb.mxu2 %v3035_v0  ;;  %v2228_v0 = vld [vmem:[#allocation2 + $0xf8] sm:$0xf0] }
  0x77   :  { %1828 = vmatpush.bf16.msrb.mxu3 %v3099_v5  ;;  %v2939_v5 = vor.u32 %v3337_v50, %v2938_v49  ;;  %v2231_v15 = vor.u32 %v3158_v62, %v2228_v0  ;;  %v2276_v49 = vld [vmem:[#allocation2 + $0x158] sm:$0xf0]  ;;  %v3186_v50 = vld [vmem:[#allocation2 + $0x1d4] sm:$0xf]  ;;  %v3184_v62 = vld [vmem:[#allocation2 + $0x1c4] sm:$0xf] }
  0x78   :  { %1790 = vmatpush.bf16.msrb.mxu0 %v2899_v12  ;;  %v3067_v12 = vor.u32 %v3369_v58, %v3066_v57  ;;  %v2279_v54 = vor.u32 %v3170_v48, %v2276_v49  ;;  %v3152_v57 = vld [vmem:[#allocation2 + $0xc4] sm:$0xf]  ;;  %v3162_v48 = vld [vmem:[#allocation2 + $0x114] sm:$0xf]  ;;  %v2244_v49 = vld [vmem:[#allocation2 + $0x118] sm:$0xf0] }
  0x79   :  { %1803 = vmatpush.bf16.msrb.mxu1 %v2963_v13  ;;  %v2167_v13 = vor.u32 %v3142_v60, %v2164_v61  ;;  %v3168_v60 = vld [vmem:[#allocation2 + $0x144] sm:$0xf]  ;;  %v2268_v61 = vld [vmem:[#allocation2 + $0x148] sm:$0xf0] }
  0x7a   :  { %1816 = vmatpush.bf16.msrb.mxu2 %v3027_v14  ;;  %v317_v14 = vunpack.c.h.b16 %v37_v59  ;;  %v2204_v59 = vld [vmem:[#allocation2 + $0xc8] sm:$0xf0]  ;;  %v2271_v2 = vor.u32 %v3168_v60, %v2268_v61 }
  0x7b   :  { %1829 = vmatpush.bf16.msrb.mxu3 %v3091_v18  ;;  %v2156_v18 = vld [vmem:[#allocation2 + $0x68] sm:$0xf0]  ;;  %v2207_v1 = vor.u32 %v3152_v57, %v2204_v59  ;;  %v3144_v57 = vld [vmem:[#allocation2 + $0x84] sm:$0xf] }
  0x7c   :  { %1791 = vmatpush.bf16.msrb.mxu0 %v2891_v27  ;;  %v2284_v27 = vld [vmem:[#allocation2 + $0x168] sm:$0xf0]  ;;  %v3510_v35 = vpack.c.b16 %v317_v14, %v317_v14  ;;  %v3160_v59 = vld [vmem:[#allocation2 + $0x104] sm:$0xf] }
  0x7d   :  { %1804 = vmatpush.bf16.msrb.mxu1 %v2955_v28  ;;  %v3506_v28 = vpack.c.b16 %v316_v10, %v316_v10  ;;  %v2287_v39 = vor.u32 %v3172_v26, %v2284_v27  ;;  %v3166_v10 = vld [vmem:[#allocation2 + $0x134] sm:$0xf]  ;;  %v3164_v26 = vld [vmem:[#allocation2 + $0x124] sm:$0xf]  ;;  %v2252_v27 = vld [vmem:[#allocation2 + $0x128] sm:$0xf0] }
  0x7e   :  { %1817 = vmatpush.bf16.msrb.mxu2 %v3019_v31  ;;  %v3508_v31 = vpack.c.b16 %v315_v11, %v315_v11  ;;  %v2260_v11 = vld [vmem:[#allocation2 + $0x138] sm:$0xf0]  ;;  %v2236_v61 = vld [vmem:[#allocation2 + $0x108] sm:$0xf0] }
  0x7f   :  { %1830 = vmatpush.bf16.msrb.mxu3 %v3083_v36  ;;  %v2159_v36 = vor.u32 %v3140_v17, %v2156_v18  ;;  %v3132_v17 = vld [vmem:[#allocation2 + $0x24] sm:$0xf]  ;;  %v2124_v18 = vld [vmem:[#allocation2 + $0x28] sm:$0xf0] }
  0x80   :  { %1792 = vmatpush.bf16.msrb.mxu0 %v2883_v47  ;;  %v2212_v47 = vld [vmem:[#allocation2 + $0xd8] sm:$0xf0] }
  0x81   :  { %1805 = vmatpush.bf16.msrb.mxu1 %v2947_v51  ;;  %v2340_v51 = vld [vmem:[#allocation2 + $0x1d8] sm:$0xf0]  ;;  %v2215_v53 = vor.u32 %v3154_v45, %v2212_v47  ;;  %v3146_v45 = vld [vmem:[#allocation2 + $0x94] sm:$0xf] }
  0x82   :  { %1818 = vmatpush.bf16.msrb.mxu2 %v3011_v52  ;;  %v2151_v52 = vor.u32 %v3138_v40, %v2148_v43  ;;  %v2343_v58 = vor.u32 %v3186_v50, %v2340_v51  ;;  %v3130_v40 = vld [vmem:[#allocation2 + $0x14] sm:$0xf]  ;;  %v2116_v43 = vld [vmem:[#allocation2 + $0x18] sm:$0xf0] }
  0x83   :  { %1831 = vmatpush.bf16.msrb.mxu3 %v3075_v56  ;;  %v2140_v56 = vld [vmem:[#allocation2 + $0x48] sm:$0xf0]  ;;  %v2180_v47 = vld [vmem:[#allocation2 + $0x98] sm:$0xf0]  ;;  %v3178_v50 = vld [vmem:[#allocation2 + $0x194] sm:$0xf] }
  0x84   :  { %1793 = vmatpush.bf16.msrb.mxu0 %v2875_v63  ;;  %v2332_v63 = vld [vmem:[#allocation2 + $0x1c8] sm:$0xf0]  ;;  %v2143_v0 = vor.u32 %v3136_v55, %v2140_v56  ;;  %v2308_v51 = vld [vmem:[#allocation2 + $0x198] sm:$0xf0]  ;;  %v2183_v55 = vor.u32 %v3146_v45, %v2180_v47  ;;  %v2247_v56 = vor.u32 %v3162_v48, %v2244_v49  ;;  %v3218_v45 = vld [vmem:[#allocation2 + $0x2d4] sm:$0xf] }
  0x85   :  { %1806 = vmatpush.bf16.msrb.mxu1 %v2939_v5  ;;  %v2132_v5 = vld [vmem:[#allocation2 + $0x38] sm:$0xf0]  ;;  %v2335_v8 = vor.u32 %v3184_v62, %v2332_v63  ;;  %v2311_v60 = vor.u32 %v3178_v50, %v2308_v51  ;;  %v3176_v62 = vld [vmem:[#allocation2 + $0x184] sm:$0xf]  ;;  %v2300_v63 = vld [vmem:[#allocation2 + $0x188] sm:$0xf0] }
  0x86   :  { %1819 = vmatpush.bf16.msrb.mxu2 %v3003_v7  ;;  %v3150_v7 = vld [vmem:[#allocation2 + $0xb4] sm:$0xf]  ;;  %v2135_v14 = vor.u32 %v3134_v3, %v2132_v5  ;;  %v2484_v5 = vld [vmem:[#allocation2 + $0x2f8] sm:$0xf0] }
  0x87   :  { %1832 = vmatpush.bf16.msrb.mxu3 %v3067_v12  ;;  %1794 = vmatmul.bf16.vlgmr.msrb.gmra.mxu0 %v3504_v23  ;;  %v3182_v12 = vld [vmem:[#allocation2 + $0x1b4] sm:$0xf]  ;;  %v2468_v47 = vld [vmem:[#allocation2 + $0x2d8] sm:$0xf0] }
  0x88   :  { %1838 = vmatpush.bf16.msra.mxu0 %v2167_v13  ;;  %1807 = vmatmul.bf16.vlgmr.msrb.gmra.mxu1 %v3508_v31  ;;  %v2324_v13 = vld [vmem:[#allocation2 + $0x1b8] sm:$0xf0]  ;;  %v3234_v48 = vld [vmem:[#allocation2 + $0x354] sm:$0xf] }
  0x89   :  { %1851 = vmatpush.bf16.msra.mxu1 %v2231_v15  ;;  %1820 = vmatmul.bf16.vlgmr.msrb.gmra.mxu2 %v3506_v28  ;;  %v2199_v15 = vor.u32 %v3150_v7, %v2196_v9  ;;  %v3238_v7 = vld [vmem:[#allocation2 + $0x374] sm:$0xf]  ;;  %v2532_v49 = vld [vmem:[#allocation2 + $0x358] sm:$0xf0] }
  0x8a   :  { %1864 = vmatpush.bf16.msra.mxu2 %v2295_v16  ;;  %1833 = vmatmul.bf16.vlgmr.msrb.gmra.mxu3 %v3510_v35  ;;  %v2263_v16 = vor.u32 %v3166_v10, %v2260_v11  ;;  %v2239_v10 = vor.u32 %v3160_v59, %v2236_v61  ;;  %v3254_v11 = vld [vmem:[#allocation2 + $0x3f4] sm:$0xf]  ;;  %v2596_v51 = vld [vmem:[#allocation2 + $0x3d8] sm:$0xf0]  ;;  %v3232_v59 = vld [vmem:[#allocation2 + $0x344] sm:$0xf] }
  0x8b   :  { %1877 = vmatpush.bf16.msra.mxu3 %v2359_v22  ;;  %v2327_v22 = vor.u32 %v3182_v12, %v2324_v13  ;;  %v2612_v12 = vld [vmem:[#allocation2 + $0x3f8] sm:$0xf0]  ;;  %v2303_v13 = vor.u32 %v3176_v62, %v2300_v63  ;;  %v3250_v50 = vld [vmem:[#allocation2 + $0x3d4] sm:$0xf]  ;;  %v3248_v61 = vld [vmem:[#allocation2 + $0x3c4] sm:$0xf] }
  0x8c   :  { %1839 = vmatpush.bf16.msra.mxu0 %v2159_v36  ;;  %v2127_v36 = vor.u32 %v3132_v17, %v2124_v18  ;;  %v3204_v17 = vld [vmem:[#allocation2 + $0x264] sm:$0xf]  ;;  %v2412_v18 = vld [vmem:[#allocation2 + $0x268] sm:$0xf0]  ;;  %v3198_v63 = vld [vmem:[#allocation2 + $0x234] sm:$0xf] }
  0x8d   :  { %1852 = vmatpush.bf16.msra.mxu1 %v2223_v37  ;;  %v2191_v37 = vor.u32 %v3148_v19, %v2188_v24  ;;  %v3220_v19 = vld [vmem:[#allocation2 + $0x2e4] sm:$0xf]  ;;  %v2476_v24 = vld [vmem:[#allocation2 + $0x2e8] sm:$0xf0] }
  0x8e   :  { %1865 = vmatpush.bf16.msra.mxu2 %v2287_v39  ;;  %v2255_v39 = vor.u32 %v3164_v26, %v2252_v27  ;;  %v3236_v26 = vld [vmem:[#allocation2 + $0x364] sm:$0xf]  ;;  %v2540_v27 = vld [vmem:[#allocation2 + $0x368] sm:$0xf0] }
  0x8f   :  { %1878 = vmatpush.bf16.msra.mxu3 %v2351_v46  ;;  %v2319_v46 = vor.u32 %v3180_v32, %v2316_v34  ;;  %v3252_v32 = vld [vmem:[#allocation2 + $0x3e4] sm:$0xf]  ;;  %v2604_v34 = vld [vmem:[#allocation2 + $0x3e8] sm:$0xf0] }
  0x90   :  { %1840 = vmatpush.bf16.msra.mxu0 %v2151_v52  ;;  %v2119_v52 = vor.u32 %v3130_v40, %v2116_v43  ;;  %v3202_v40 = vld [vmem:[#allocation2 + $0x254] sm:$0xf]  ;;  %v2404_v43 = vld [vmem:[#allocation2 + $0x258] sm:$0xf0] }
  0x91   :  { %1853 = vmatpush.bf16.msra.mxu1 %v2215_v53  ;;  %v3128_v53 = vld [vmem:[#allocation2 + $0x4] sm:$0xf] }
  0x92   :  { %1866 = vmatpush.bf16.msra.mxu2 %v2279_v54  ;;  %v2108_v54 = vld [vmem:[#allocation2 + $0x8] sm:$0xf0] }
  0x93   :  { %1879 = vmatpush.bf16.msra.mxu3 %v2343_v58  ;;  %v2172_v58 = vld [vmem:[#allocation2 + $0x88] sm:$0xf0]  ;;  %v2111_v3 = vor.u32 %v3128_v53, %v2108_v54  ;;  %v2471_v53 = vor.u32 %v3218_v45, %v2468_v47  ;;  %v2535_v54 = vor.u32 %v3234_v48, %v2532_v49  ;;  %v2436_v47 = vld [vmem:[#allocation2 + $0x298] sm:$0xf0]  ;;  %v3226_v48 = vld [vmem:[#allocation2 + $0x314] sm:$0xf] }
  0x94   :  { %1841 = vmatpush.bf16.msra.mxu0 %v2143_v0  ;;  %v3206_v0 = vld [vmem:[#allocation2 + $0x274] sm:$0xf]  ;;  %v2175_v9 = vor.u32 %v3144_v57, %v2172_v58  ;;  %v3216_v57 = vld [vmem:[#allocation2 + $0x2c4] sm:$0xf]  ;;  %v2599_v58 = vor.u32 %v3250_v50, %v2596_v51  ;;  %v2500_v49 = vld [vmem:[#allocation2 + $0x318] sm:$0xf0] }
  0x95   :  { %1854 = vmatpush.bf16.msra.mxu1 %v2207_v1  ;;  %v2420_v1 = vld [vmem:[#allocation2 + $0x278] sm:$0xf0]  ;;  %v3242_v51 = vld [vmem:[#allocation2 + $0x394] sm:$0xf] }
  0x96   :  { %1867 = vmatpush.bf16.msra.mxu2 %v2271_v2  ;;  %v3222_v2 = vld [vmem:[#allocation2 + $0x2f4] sm:$0xf] }
  0x97   :  { %1880 = vmatpush.bf16.msra.mxu3 %v2335_v8  ;;  %v2548_v8 = vld [vmem:[#allocation2 + $0x378] sm:$0xf0] }
  0x98   :  { %1842 = vmatpush.bf16.msra.mxu0 %v2135_v14  ;;  %v2423_v14 = vor.u32 %v3206_v0, %v2420_v1  ;;  %v2388_v0 = vld [vmem:[#allocation2 + $0x238] sm:$0xf0]  ;;  %v3214_v1 = vld [vmem:[#allocation2 + $0x2b4] sm:$0xf] }
  0x99   :  { %1855 = vmatpush.bf16.msra.mxu1 %v2199_v15  ;;  %v2487_v15 = vor.u32 %v3222_v2, %v2484_v5  ;;  %v3230_v5 = vld [vmem:[#allocation2 + $0x334] sm:$0xf] }
  0x9a   :  { %1868 = vmatpush.bf16.msra.mxu2 %v2263_v16  ;;  %v2551_v16 = vor.u32 %v3238_v7, %v2548_v8  ;;  %v2516_v7 = vld [vmem:[#allocation2 + $0x338] sm:$0xf0]  ;;  %v3246_v8 = vld [vmem:[#allocation2 + $0x3b4] sm:$0xf] }
  0x9b   :  { %1881 = vmatpush.bf16.msra.mxu3 %v2327_v22  ;;  %v2615_v22 = vor.u32 %v3254_v11, %v2612_v12  ;;  %v2519_v12 = vor.u32 %v3230_v5, %v2516_v7  ;;  %v2740_v5 = vld [vmem:[#allocation2 + $0x4f8] sm:$0xf0]  ;;  %v3302_v7 = vld [vmem:[#allocation2 + $0x574] sm:$0xf] }
  0x9c   :  { %1843 = vmatpush.bf16.msra.mxu0 %v2127_v36  ;;  %v2415_v36 = vor.u32 %v3204_v17, %v2412_v18  ;;  %v2444_v17 = vld [vmem:[#allocation2 + $0x2a8] sm:$0xf0]  ;;  %v3228_v18 = vld [vmem:[#allocation2 + $0x324] sm:$0xf] }
  0x9d   :  { %1856 = vmatpush.bf16.msra.mxu1 %v2191_v37  ;;  %v2479_v37 = vor.u32 %v3220_v19, %v2476_v24  ;;  %v2508_v19 = vld [vmem:[#allocation2 + $0x328] sm:$0xf0] }
  0x9e   :  { %1869 = vmatpush.bf16.msra.mxu2 %v2255_v39  ;;  %v2543_v39 = vor.u32 %v3236_v26, %v2540_v27  ;;  %v2572_v24 = vld [vmem:[#allocation2 + $0x3a8] sm:$0xf0] }
  0x9f   :  { %1882 = vmatpush.bf16.msra.mxu3 %v2319_v46  ;;  %v2607_v46 = vor.u32 %v3252_v32, %v2604_v34 }
  0xa0   :  { %1844 = vmatpush.bf16.msra.mxu0 %v2119_v52  ;;  %v2407_v52 = vor.u32 %v3202_v40, %v2404_v43  ;;  %v3210_v40 = vld [vmem:[#allocation2 + $0x294] sm:$0xf] }
  0xa1   :  { %1857 = vmatpush.bf16.msra.mxu1 %v2183_v55  ;;  %v3200_v55 = vld [vmem:[#allocation2 + $0x244] sm:$0xf] }
  0xa2   :  { %1870 = vmatpush.bf16.msra.mxu2 %v2247_v56  ;;  %v2396_v56 = vld [vmem:[#allocation2 + $0x248] sm:$0xf0] }
  0xa3   :  { %1883 = vmatpush.bf16.msra.mxu3 %v2311_v60  ;;  %v2524_v60 = vld [vmem:[#allocation2 + $0x348] sm:$0xf0] }
  0xa4   :  { %1845 = vmatpush.bf16.msra.mxu0 %v2111_v3  ;;  %v2452_v3 = vld [vmem:[#allocation2 + $0x2b8] sm:$0xf0]  ;;  %v1639_v26 = vpop.f32.mrf.mxu0 }
  0xa5   :  { %1858 = vmatpush.bf16.msra.mxu1 %v2175_v9  ;;  %v2580_v9 = vld [vmem:[#allocation2 + $0x3b8] sm:$0xf0]  ;;  %v2455_v11 = vor.u32 %v3214_v1, %v2452_v3  ;;  %v1652_v32 = vpop.f32.mrf.mxu1  ;;  %v3286_v1 = vld [vmem:[#allocation2 + $0x4f4] sm:$0xf] }
  0xa6   :  { %1871 = vmatpush.bf16.msra.mxu2 %v2239_v10  ;;  %v2391_v10 = vor.u32 %v3198_v63, %v2388_v0  ;;  %v1653_v43 = vadd.f32 %v1652_v32, %v1639_v26  ;;  %v3270_v63 = vld [vmem:[#allocation2 + $0x474] sm:$0xf]  ;;  %v2676_v0 = vld [vmem:[#allocation2 + $0x478] sm:$0xf0]  ;;  %v3284_v26 = vld [vmem:[#allocation2 + $0x4e4] sm:$0xf] }
  0xa7   :  { %1884 = vmatpush.bf16.msra.mxu3 %v2303_v13  ;;  %1846 = vmatmul.bf16.vlgmr.msra.gmra.mxu0 %v3455_v20  ;;  %v2588_v20 = vld [vmem:[#allocation2 + $0x3c8] sm:$0xf0]  ;;  %v3196_v13 = vld [vmem:[#allocation2 + $0x224] sm:$0xf] }
  0xa8   :  { %1890 = vmatpush.bf16.msrb.mxu0 %v2423_v14  ;;  %1859 = vmatmul.bf16.vlgmr.msra.gmra.mxu1 %v3458_v21  ;;  %v2527_v21 = vor.u32 %v3232_v59, %v2524_v60  ;;  %v2591_v2 = vor.u32 %v3248_v61, %v2588_v20  ;;  %v2380_v14 = vld [vmem:[#allocation2 + $0x228] sm:$0xf0]  ;;  %v3224_v60 = vld [vmem:[#allocation2 + $0x304] sm:$0xf] }
  0xa9   :  { %1903 = vmatpush.bf16.msrb.mxu1 %v2487_v15  ;;  %1872 = vmatmul.bf16.vlgmr.msra.gmra.mxu2 %v3447_v4  ;;  %v2460_v4 = vld [vmem:[#allocation2 + $0x2c8] sm:$0xf0]  ;;  %v3212_v15 = vld [vmem:[#allocation2 + $0x2a4] sm:$0xf]  ;;  %v2383_v27 = vor.u32 %v3196_v13, %v2380_v14  ;;  %v2868_v13 = vld [vmem:[#allocation2 + $0x5f8] sm:$0xf0] }
  0xaa   :  { %1916 = vmatpush.bf16.msrb.mxu2 %v2551_v16  ;;  %1885 = vmatmul.bf16.vlgmr.msra.gmra.mxu3 %v3452_v6  ;;  %v2399_v6 = vor.u32 %v3200_v55, %v2396_v56  ;;  %v2463_v62 = vor.u32 %v3216_v57, %v2460_v4  ;;  %v2583_v16 = vor.u32 %v3246_v8, %v2580_v9  ;;  %v3192_v55 = vld [vmem:[#allocation2 + $0x204] sm:$0xf]  ;;  %v2364_v56 = vld [vmem:[#allocation2 + $0x208] sm:$0xf0]  ;;  %v2804_v8 = vld [vmem:[#allocation2 + $0x578] sm:$0xf0] }
  0xab   :  { %1929 = vmatpush.bf16.msrb.mxu3 %v2615_v22  ;;  %v3244_v22 = vld [vmem:[#allocation2 + $0x3a4] sm:$0xf]  ;;  %v2447_v34 = vor.u32 %v3212_v15, %v2444_v17  ;;  %v2439_v57 = vor.u32 %v3210_v40, %v2436_v47  ;;  %v2428_v59 = vld [vmem:[#allocation2 + $0x288] sm:$0xf0]  ;;  %v2367_v3 = vor.u32 %v3192_v55, %v2364_v56  ;;  %v2660_v47 = vld [vmem:[#allocation2 + $0x458] sm:$0xf0] }
  0xac   :  { %1891 = vmatpush.bf16.msrb.mxu0 %v2415_v36  ;;  %v2511_v36 = vor.u32 %v3228_v18, %v2508_v19  ;;  %v1665_v45 = vpop.f32.mrf.mxu2  ;;  %v3208_v4 = vld [vmem:[#allocation2 + $0x284] sm:$0xf]  ;;  %v2743_v18 = vor.u32 %v3286_v1, %v2740_v5  ;;  %v2807_v19 = vor.u32 %v3302_v7, %v2804_v8  ;;  %v2732_v32 = vld [vmem:[#allocation2 + $0x4e8] sm:$0xf0]  ;;  %v2644_v1 = vld [vmem:[#allocation2 + $0x438] sm:$0xf0] }
  0xad   :  { %1904 = vmatpush.bf16.msrb.mxu1 %v2479_v37  ;;  %v3194_v37 = vld [vmem:[#allocation2 + $0x214] sm:$0xf]  ;;  %v1678_v50 = vpop.f32.mrf.mxu3  ;;  %v1654_v9 = vpop.f32.mrf.mxu1  ;;  %v2708_v8 = vld [vmem:[#allocation2 + $0x4b8] sm:$0xf0] }
  0xae   :  { %1917 = vmatpush.bf16.msrb.mxu2 %v2543_v39  ;;  %v2372_v39 = vld [vmem:[#allocation2 + $0x218] sm:$0xf0]  ;;  %v3294_v9 = vld [vmem:[#allocation2 + $0x534] sm:$0xf] }
  0xaf   :  { %1930 = vmatpush.bf16.msrb.mxu3 %v2607_v46  ;;  %v2575_v46 = vor.u32 %v3244_v22, %v2572_v24  ;;  %v3268_v22 = vld [vmem:[#allocation2 + $0x464] sm:$0xf]  ;;  %v2668_v24 = vld [vmem:[#allocation2 + $0x468] sm:$0xf0] }
  0xb0   :  { %1892 = vmatpush.bf16.msrb.mxu0 %v2407_v52  ;;  %v2564_v52 = vld [vmem:[#allocation2 + $0x398] sm:$0xf0]  ;;  %v2671_v40 = vor.u32 %v3268_v22, %v2668_v24  ;;  %v2700_v24 = vld [vmem:[#allocation2 + $0x4a8] sm:$0xf0] }
  0xb1   :  { %1905 = vmatpush.bf16.msrb.mxu1 %v2471_v53  ;;  %v1666_v53 = vadd.f32 %v1665_v45, %v1653_v43  ;;  %v2567_v20 = vor.u32 %v3242_v51, %v2564_v52  ;;  %v2735_v43 = vor.u32 %v3284_v26, %v2732_v32  ;;  %v3298_v51 = vld [vmem:[#allocation2 + $0x554] sm:$0xf]  ;;  %v2788_v52 = vld [vmem:[#allocation2 + $0x558] sm:$0xf0]  ;;  %v3292_v26 = vld [vmem:[#allocation2 + $0x524] sm:$0xf] }
  0xb2   :  { %1918 = vmatpush.bf16.msrb.mxu2 %v2535_v54  ;;  %v2375_v54 = vor.u32 %v3194_v37, %v2372_v39  ;;  %v3316_v37 = vld [vmem:[#allocation2 + $0x5e4] sm:$0xf]  ;;  %v2860_v39 = vld [vmem:[#allocation2 + $0x5e8] sm:$0xf0] }
  0xb3   :  { %1931 = vmatpush.bf16.msrb.mxu3 %v2599_v58  ;;  %v2503_v58 = vor.u32 %v3226_v48, %v2500_v49  ;;  %v3520_v61 = vadd.f32 %v1678_v50, %v1666_v53  ;;  %v3282_v48 = vld [vmem:[#allocation2 + $0x4d4] sm:$0xf]  ;;  %v2863_v49 = vor.u32 %v3316_v37, %v2860_v39  ;;  %v2724_v50 = vld [vmem:[#allocation2 + $0x4d8] sm:$0xf0]  ;;  %v2828_v37 = vld [vmem:[#allocation2 + $0x5a8] sm:$0xf0] }
  0xb4   :  { %1893 = vmatpush.bf16.msrb.mxu0 %v2399_v6  ;;  %v2492_v6 = vld [vmem:[#allocation2 + $0x308] sm:$0xf0]  ;;  %v1667_v14 = vpop.f32.mrf.mxu2  ;;  %v3314_v53 = vld [vmem:[#allocation2 + $0x5d4] sm:$0xf]  ;;  %v2727_v56 = vor.u32 %v3282_v48, %v2724_v50  ;;  %v2628_v48 = vld [vmem:[#allocation2 + $0x418] sm:$0xf0] }
  0xb5   :  { %1906 = vmatpush.bf16.msrb.mxu1 %v2463_v62  ;;  %v3240_v62 = vld [vmem:[#allocation2 + $0x384] sm:$0xf]  ;;  %v1680_v17 = vpop.f32.mrf.mxu3 }
  0xb6   :  { %1919 = vmatpush.bf16.msrb.mxu2 %v2527_v21  ;;  %v2556_v21 = vld [vmem:[#allocation2 + $0x388] sm:$0xf0]  ;;  %v3260_v17 = vld [vmem:[#allocation2 + $0x424] sm:$0xf] }
  0xb7   :  { %1932 = vmatpush.bf16.msrb.mxu3 %v2591_v2  ;;  %v1641_v2 = vpop.f32.mrf.mxu0  ;;  %v2559_v15 = vor.u32 %v3240_v62, %v2556_v21 }
  0xb8   :  { %1894 = vmatpush.bf16.msrb.mxu0 %v2391_v10  ;;  %v2431_v10 = vor.u32 %v3208_v4, %v2428_v59  ;;  %v2652_v4 = vld [vmem:[#allocation2 + $0x448] sm:$0xf0]  ;;  %v3278_v2 = vld [vmem:[#allocation2 + $0x4b4] sm:$0xf] }
  0xb9   :  { %1907 = vmatpush.bf16.msrb.mxu1 %v2455_v11  ;;  %v2495_v11 = vor.u32 %v3224_v60, %v2492_v6  ;;  %v2716_v60 = vld [vmem:[#allocation2 + $0x4c8] sm:$0xf0]  ;;  %v3312_v6 = vld [vmem:[#allocation2 + $0x5c4] sm:$0xf] }
  0xba   :  { %1920 = vmatpush.bf16.msrb.mxu2 %v2519_v12  ;;  %v3318_v12 = vld [vmem:[#allocation2 + $0x5f4] sm:$0xf] }
  0xbb   :  { %1933 = vmatpush.bf16.msrb.mxu3 %v2583_v16  ;;  %v2679_v16 = vor.u32 %v3270_v63, %v2676_v0  ;;  %v3262_v0 = vld [vmem:[#allocation2 + $0x434] sm:$0xf] }
  0xbc   :  { %1895 = vmatpush.bf16.msrb.mxu0 %v2383_v27  ;;  %v2871_v27 = vor.u32 %v3318_v12, %v2868_v13  ;;  %v2836_v12 = vld [vmem:[#allocation2 + $0x5b8] sm:$0xf0]  ;;  %v2647_v14 = vor.u32 %v3262_v0, %v2644_v1  ;;  %v3334_v0 = vld [vmem:[#allocation2 + $0x674] sm:$0xf] }
  0xbd   :  { %1908 = vmatpush.bf16.msrb.mxu1 %v2447_v34  ;;  %v3300_v34 = vld [vmem:[#allocation2 + $0x564] sm:$0xf]  ;;  %v2932_v1 = vld [vmem:[#allocation2 + $0x678] sm:$0xf0] }
  0xbe   :  { %1921 = vmatpush.bf16.msrb.mxu2 %v2511_v36  ;;  %v2796_v36 = vld [vmem:[#allocation2 + $0x568] sm:$0xf0] }
  0xbf   :  { %1934 = vmatpush.bf16.msrb.mxu3 %v2575_v46  ;;  %v2799_v45 = vor.u32 %v3300_v34, %v2796_v36  ;;  %v3266_v46 = vld [vmem:[#allocation2 + $0x454] sm:$0xf]  ;;  %v3308_v36 = vld [vmem:[#allocation2 + $0x5a4] sm:$0xf] }
  0xc0   :  { %1896 = vmatpush.bf16.msrb.mxu0 %v2375_v54  ;;  %v2852_v54 = vld [vmem:[#allocation2 + $0x5d8] sm:$0xf0]  ;;  %v2663_v55 = vor.u32 %v3266_v46, %v2660_v47  ;;  %v3258_v47 = vld [vmem:[#allocation2 + $0x414] sm:$0xf] }
  0xc1   :  { %1909 = vmatpush.bf16.msrb.mxu1 %v2439_v57  ;;  %v2791_v57 = vor.u32 %v3298_v51, %v2788_v52  ;;  %v2855_v59 = vor.u32 %v3314_v53, %v2852_v54  ;;  %v2831_v51 = vor.u32 %v3308_v36, %v2828_v37  ;;  %v2692_v52 = vld [vmem:[#allocation2 + $0x498] sm:$0xf0]  ;;  %v3290_v53 = vld [vmem:[#allocation2 + $0x514] sm:$0xf] }
  0xc2   :  { %1922 = vmatpush.bf16.msrb.mxu2 %v2503_v58  ;;  %v3264_v58 = vld [vmem:[#allocation2 + $0x444] sm:$0xf]  ;;  %v2756_v54 = vld [vmem:[#allocation2 + $0x518] sm:$0xf0] }
  0xc3   :  { %1935 = vmatpush.bf16.msrb.mxu3 %v2567_v20  ;;  %v3296_v20 = vld [vmem:[#allocation2 + $0x544] sm:$0xf]  ;;  %v2655_v62 = vor.u32 %v3264_v58, %v2652_v4  ;;  %v2620_v4 = vld [vmem:[#allocation2 + $0x408] sm:$0xf0] }
  0xc4   :  { %1897 = vmatpush.bf16.msrb.mxu0 %v2367_v3  ;;  %v1691_v21 = vpop.f32.mrf.mxu0  ;;  %v3256_v58 = vld [vmem:[#allocation2 + $0x404] sm:$0xf] }
  0xc5   :  { %1910 = vmatpush.bf16.msrb.mxu1 %v2431_v10  ;;  %v1692_v3 = vadd.f32 %v1691_v21, %v3520_v61  ;;  %v1704_v5 = vpop.f32.mrf.mxu1  ;;  %v2772_v10 = vld [vmem:[#allocation2 + $0x538] sm:$0xf0]  ;;  %v3304_v21 = vld [vmem:[#allocation2 + $0x584] sm:$0xf] }
  0xc6   :  { %1923 = vmatpush.bf16.msrb.mxu2 %v2495_v11  ;;  %v3310_v11 = vld [vmem:[#allocation2 + $0x5b4] sm:$0xf] }
  0xc7   :  { %1936 = vmatpush.bf16.msrb.mxu3 %v2559_v15  ;;  %1898 = vmatmul.bf16.vlgmr.msrb.gmra.mxu0 %v3470_v41  ;;  %v2780_v41 = vld [vmem:[#allocation2 + $0x548] sm:$0xf0]  ;;  %v1705_v13 = vadd.f32 %v1704_v5, %v1692_v3  ;;  %v2711_v15 = vor.u32 %v3278_v2, %v2708_v8  ;;  %v2839_v61 = vor.u32 %v3310_v11, %v2836_v12  ;;  %v3350_v2 = vld [vmem:[#allocation2 + $0x6f4] sm:$0xf]  ;;  %v2996_v5 = vld [vmem:[#allocation2 + $0x6f8] sm:$0xf0] }
  0xc8   :  { %1942 = vmatpush.bf16.msra.mxu0 %v2679_v16  ;;  %1911 = vmatmul.bf16.vlgmr.msrb.gmra.mxu1 %v3474_v44  ;;  %v2783_v63 = vor.u32 %v3296_v20, %v2780_v41  ;;  %v2775_v16 = vor.u32 %v3294_v9, %v2772_v10  ;;  %v2684_v20 = vld [vmem:[#allocation2 + $0x488] sm:$0xf0]  ;;  %v3288_v41 = vld [vmem:[#allocation2 + $0x504] sm:$0xf]  ;;  %v2623_v3 = vor.u32 %v3256_v58, %v2620_v4  ;;  %v3060_v8 = vld [vmem:[#allocation2 + $0x778] sm:$0xf0] }
  0xc9   :  { %1955 = vmatpush.bf16.msra.mxu1 %v2743_v18  ;;  %1924 = vmatmul.bf16.vlgmr.msrb.gmra.mxu2 %v3468_v38  ;;  %v3280_v38 = vld [vmem:[#allocation2 + $0x4c4] sm:$0xf]  ;;  %v2636_v18 = vld [vmem:[#allocation2 + $0x428] sm:$0xf0]  ;;  %v3382_v11 = vld [vmem:[#allocation2 + $0x7f4] sm:$0xf] }
  0xca   :  { %1968 = vmatpush.bf16.msra.mxu2 %v2807_v19  ;;  %1937 = vmatmul.bf16.vlgmr.msrb.gmra.mxu3 %v3472_v42  ;;  %v2844_v42 = vld [vmem:[#allocation2 + $0x5c8] sm:$0xf0]  ;;  %v2719_v44 = vor.u32 %v3280_v38, %v2716_v60  ;;  %v3276_v19 = vld [vmem:[#allocation2 + $0x4a4] sm:$0xf]  ;;  %v2639_v39 = vor.u32 %v3260_v17, %v2636_v18  ;;  %v3124_v12 = vld [vmem:[#allocation2 + $0x7f8] sm:$0xf0] }
  0xcb   :  { %1981 = vmatpush.bf16.msra.mxu3 %v2871_v27  ;;  %v2847_v7 = vor.u32 %v3312_v6, %v2844_v42  ;;  %v2764_v27 = vld [vmem:[#allocation2 + $0x528] sm:$0xf0]  ;;  %v3272_v60 = vld [vmem:[#allocation2 + $0x484] sm:$0xf] }
  0xcc   :  { %1943 = vmatpush.bf16.msra.mxu0 %v2671_v40  ;;  %v1717_v22 = vpop.f32.mrf.mxu2  ;;  %v2767_v46 = vor.u32 %v3292_v26, %v2764_v27  ;;  %v2687_v9 = vor.u32 %v3272_v60, %v2684_v20  ;;  %v3332_v17 = vld [vmem:[#allocation2 + $0x664] sm:$0xf]  ;;  %v2924_v18 = vld [vmem:[#allocation2 + $0x668] sm:$0xf0] }
  0xcd   :  { %1956 = vmatpush.bf16.msra.mxu1 %v2735_v43  ;;  %v1718_v32 = vadd.f32 %v1717_v22, %v1705_v13  ;;  %v1730_v34 = vpop.f32.mrf.mxu3  ;;  %v1693_v43 = vpop.f32.mrf.mxu0  ;;  %v3127_v22 = vor.u32 %v3382_v11, %v3124_v12  ;;  %v3052_v26 = vld [vmem:[#allocation2 + $0x768] sm:$0xf0]  ;;  %v3380_v27 = vld [vmem:[#allocation2 + $0x7e4] sm:$0xf] }
  0xce   :  { %1969 = vmatpush.bf16.msra.mxu2 %v2799_v45  ;;  %v2703_v45 = vor.u32 %v3276_v19, %v2700_v24  ;;  %v1706_v50 = vpop.f32.mrf.mxu1  ;;  %v3348_v19 = vld [vmem:[#allocation2 + $0x6e4] sm:$0xf]  ;;  %v2916_v43 = vld [vmem:[#allocation2 + $0x658] sm:$0xf0]  ;;  %v2972_v58 = vld [vmem:[#allocation2 + $0x6c8] sm:$0xf0] }
  0xcf   :  { %1982 = vmatpush.bf16.msra.mxu3 %v2863_v49  ;;  %v3527_v40 = vadd.f32 %v1730_v34, %v1718_v32  ;;  %v3274_v49 = vld [vmem:[#allocation2 + $0x494] sm:$0xf]  ;;  %v3364_v24 = vld [vmem:[#allocation2 + $0x764] sm:$0xf]  ;;  %v3116_v32 = vld [vmem:[#allocation2 + $0x7e8] sm:$0xf0]  ;;  %v2927_v34 = vor.u32 %v3332_v17, %v2924_v18 }
  0xd0   :  { %1944 = vmatpush.bf16.msra.mxu0 %v2663_v55  ;;  %v3306_v55 = vld [vmem:[#allocation2 + $0x594] sm:$0xf]  ;;  %v2695_v38 = vor.u32 %v3274_v49, %v2692_v52  ;;  %v3055_v37 = vor.u32 %v3364_v24, %v3052_v26  ;;  %v3044_v49 = vld [vmem:[#allocation2 + $0x758] sm:$0xf0]  ;;  %v3360_v4 = vld [vmem:[#allocation2 + $0x744] sm:$0xf] }
  0xd1   :  { %1957 = vmatpush.bf16.msra.mxu1 %v2727_v56  ;;  %v2820_v56 = vld [vmem:[#allocation2 + $0x598] sm:$0xf0]  ;;  %v3378_v50 = vld [vmem:[#allocation2 + $0x7d4] sm:$0xf]  ;;  %v3340_v11 = vld [vmem:[#allocation2 + $0x6a4] sm:$0xf] }
  0xd2   :  { %1970 = vmatpush.bf16.msra.mxu2 %v2791_v57  ;;  %v2631_v57 = vor.u32 %v3258_v47, %v2628_v48  ;;  %v2823_v42 = vor.u32 %v3306_v55, %v2820_v56  ;;  %v2980_v47 = vld [vmem:[#allocation2 + $0x6d8] sm:$0xf0]  ;;  %v3362_v48 = vld [vmem:[#allocation2 + $0x754] sm:$0xf]  ;;  %v3328_v55 = vld [vmem:[#allocation2 + $0x644] sm:$0xf] }
  0xd3   :  { %1983 = vmatpush.bf16.msra.mxu3 %v2855_v59  ;;  %v2759_v59 = vor.u32 %v3290_v53, %v2756_v54  ;;  %v3047_v54 = vor.u32 %v3362_v48, %v3044_v49  ;;  %v3344_v56 = vld [vmem:[#allocation2 + $0x6c4] sm:$0xf]  ;;  %v3370_v48 = vld [vmem:[#allocation2 + $0x794] sm:$0xf]  ;;  %v3076_v49 = vld [vmem:[#allocation2 + $0x798] sm:$0xf0] }
  0xd4   :  { %1945 = vmatpush.bf16.msra.mxu0 %v2655_v62  ;;  %v1719_v6 = vpop.f32.mrf.mxu2  ;;  %v2748_v62 = vld [vmem:[#allocation2 + $0x508] sm:$0xf0] }
  0xd5   :  { %1958 = vmatpush.bf16.msra.mxu1 %v2719_v44  ;;  %v2812_v44 = vld [vmem:[#allocation2 + $0x588] sm:$0xf0]  ;;  %v2751_v10 = vor.u32 %v3288_v41, %v2748_v62  ;;  %v2975_v41 = vor.u32 %v3344_v56, %v2972_v58  ;;  %v2900_v62 = vld [vmem:[#allocation2 + $0x638] sm:$0xf0] }
  0xd6   :  { %1971 = vmatpush.bf16.msra.mxu2 %v2783_v63  ;;  %v1732_v63 = vpop.f32.mrf.mxu3  ;;  %v2815_v13 = vor.u32 %v3304_v21, %v2812_v44  ;;  %v3342_v21 = vld [vmem:[#allocation2 + $0x6b4] sm:$0xf]  ;;  %v2940_v56 = vld [vmem:[#allocation2 + $0x688] sm:$0xf0] }
  0xd7   :  { %1984 = vmatpush.bf16.msra.mxu3 %v2847_v7  ;;  %v3366_v7 = vld [vmem:[#allocation2 + $0x774] sm:$0xf]  ;;  %v3004_v58 = vld [vmem:[#allocation2 + $0x708] sm:$0xf0] }
  0xd8   :  { %1946 = vmatpush.bf16.msra.mxu0 %v2647_v14  ;;  %v2935_v14 = vor.u32 %v3334_v0, %v2932_v1  ;;  %v2964_v0 = vld [vmem:[#allocation2 + $0x6b8] sm:$0xf0]  ;;  %v3358_v1 = vld [vmem:[#allocation2 + $0x734] sm:$0xf] }
  0xd9   :  { %1959 = vmatpush.bf16.msra.mxu1 %v2711_v15  ;;  %v2999_v15 = vor.u32 %v3350_v2, %v2996_v5  ;;  %v3028_v2 = vld [vmem:[#allocation2 + $0x738] sm:$0xf0] }
  0xda   :  { %1972 = vmatpush.bf16.msra.mxu2 %v2775_v16  ;;  %v3063_v16 = vor.u32 %v3366_v7, %v3060_v8  ;;  %v3092_v5 = vld [vmem:[#allocation2 + $0x7b8] sm:$0xf0]  ;;  %v3031_v8 = vor.u32 %v3358_v1, %v3028_v2 }
  0xdb   :  { %1985 = vmatpush.bf16.msra.mxu3 %v2839_v61  ;;  %v2988_v61 = vld [vmem:[#allocation2 + $0x6e8] sm:$0xf0] }
  0xdc   :  { %1947 = vmatpush.bf16.msra.mxu0 %v2639_v39  ;;  %v2991_v36 = vor.u32 %v3348_v19, %v2988_v61  ;;  %v3330_v39 = vld [vmem:[#allocation2 + $0x654] sm:$0xf]  ;;  %v3372_v19 = vld [vmem:[#allocation2 + $0x7a4] sm:$0xf] }
  0xdd   :  { %1960 = vmatpush.bf16.msra.mxu1 %v2703_v45  ;;  %v3346_v45 = vld [vmem:[#allocation2 + $0x6d4] sm:$0xf]  ;;  %v2919_v52 = vor.u32 %v3330_v39, %v2916_v43 }
  0xde   :  { %1973 = vmatpush.bf16.msra.mxu2 %v2767_v46  ;;  %v3119_v46 = vor.u32 %v3380_v27, %v3116_v32  ;;  %v2983_v53 = vor.u32 %v3346_v45, %v2980_v47  ;;  %v3338_v39 = vld [vmem:[#allocation2 + $0x694] sm:$0xf]  ;;  %v2948_v45 = vld [vmem:[#allocation2 + $0x698] sm:$0xf0] }
  0xdf   :  { %1986 = vmatpush.bf16.msra.mxu3 %v2831_v51  ;;  %v3108_v51 = vld [vmem:[#allocation2 + $0x7d8] sm:$0xf0] }
  0xe0   :  { %1948 = vmatpush.bf16.msra.mxu0 %v2631_v57  ;;  %v3111_v57 = vor.u32 %v3378_v50, %v3108_v51  ;;  %v3012_v47 = vld [vmem:[#allocation2 + $0x718] sm:$0xf0]  ;;  %v2951_v51 = vor.u32 %v3338_v39, %v2948_v45 }
  0xe1   :  { %1961 = vmatpush.bf16.msra.mxu1 %v2695_v38 }
  0xe2   :  { %1974 = vmatpush.bf16.msra.mxu2 %v2759_v59  ;;  %v3100_v59 = vld [vmem:[#allocation2 + $0x7c8] sm:$0xf0] }
  0xe3   :  { %1987 = vmatpush.bf16.msra.mxu3 %v2823_v42  ;;  %v3326_v42 = vld [vmem:[#allocation2 + $0x634] sm:$0xf] }
  0xe4   :  { %1949 = vmatpush.bf16.msra.mxu0 %v2623_v3  ;;  %v1743_v38 = vpop.f32.mrf.mxu0  ;;  %v3374_v3 = vld [vmem:[#allocation2 + $0x7b4] sm:$0xf]  ;;  %v2903_v7 = vor.u32 %v3326_v42, %v2900_v62 }
  0xe5   :  { %1962 = vmatpush.bf16.msra.mxu1 %v2687_v9  ;;  %v1756_v20 = vpop.f32.mrf.mxu1  ;;  %v3324_v9 = vld [vmem:[#allocation2 + $0x624] sm:$0xf]  ;;  %v3095_v12 = vor.u32 %v3374_v3, %v3092_v5 }
  0xe6   :  { %1975 = vmatpush.bf16.msra.mxu2 %v2751_v10  ;;  %v2892_v10 = vld [vmem:[#allocation2 + $0x628] sm:$0xf0] }
  0xe7   :  { %1988 = vmatpush.bf16.msra.mxu3 %v2815_v13  ;;  %1950 = vmatmul.bf16.vlgmr.msra.gmra.mxu0 %v3486_v25  ;;  %v2908_v25 = vld [vmem:[#allocation2 + $0x648] sm:$0xf0]  ;;  %v2895_v24 = vor.u32 %v3324_v9, %v2892_v10 }
  0xe8   :  { %1994 = vmatpush.bf16.msrb.mxu0 %v2935_v14  ;;  %1963 = vmatmul.bf16.vlgmr.msra.gmra.mxu1 %v3490_v30  ;;  %v3376_v30 = vld [vmem:[#allocation2 + $0x7c4] sm:$0xf]  ;;  %v2911_v60 = vor.u32 %v3328_v55, %v2908_v25  ;;  %v2956_v14 = vld [vmem:[#allocation2 + $0x6a8] sm:$0xf0]  ;;  %v3079_v25 = vor.u32 %v3370_v48, %v3076_v49 }
  0xe9   :  { %2007 = vmatpush.bf16.msrb.mxu1 %v2999_v15  ;;  %1976 = vmatmul.bf16.vlgmr.msra.gmra.mxu2 %v3488_v29  ;;  %v3036_v29 = vld [vmem:[#allocation2 + $0x748] sm:$0xf0]  ;;  %v3103_v44 = vor.u32 %v3376_v30, %v3100_v59  ;;  %v3356_v15 = vld [vmem:[#allocation2 + $0x724] sm:$0xf]  ;;  %v2959_v32 = vor.u32 %v3340_v11, %v2956_v14 }
  0xea   :  { %2020 = vmatpush.bf16.msrb.mxu2 %v3063_v16  ;;  %1989 = vmatmul.bf16.vlgmr.msra.gmra.mxu3 %v3492_v33  ;;  %v1744_v33 = vadd.f32 %v1743_v38, %v3527_v40  ;;  %v3039_v6 = vor.u32 %v3360_v4, %v3036_v29  ;;  %v2967_v40 = vor.u32 %v3342_v21, %v2964_v0  ;;  %v3020_v16 = vld [vmem:[#allocation2 + $0x728] sm:$0xf0]  ;;  %v3336_v55 = vld [vmem:[#allocation2 + $0x684] sm:$0xf] }
  0xeb   :  { %2033 = vmatpush.bf16.msrb.mxu3 %v3127_v22  ;;  %v3084_v22 = vld [vmem:[#allocation2 + $0x7a8] sm:$0xf0]  ;;  %v3368_v29 = vld [vmem:[#allocation2 + $0x784] sm:$0xf] }
  0xec   :  { %1995 = vmatpush.bf16.msrb.mxu0 %v2927_v34  ;;  %v1757_v63 = vadd.f32 %v1756_v20, %v1744_v33  ;;  %v1769_v13 = vpop.f32.mrf.mxu2  ;;  %v1745_v61 = vpop.f32.mrf.mxu0  ;;  %v3023_v34 = vor.u32 %v3356_v15, %v3020_v16  ;;  %v3087_v43 = vor.u32 %v3372_v19, %v3084_v22  ;;  %v3068_v38 = vld [vmem:[#allocation2 + $0x788] sm:$0xf0]  ;;  %v2943_v33 = vor.u32 %v3336_v55, %v2940_v56 }
  0xed   :  { %2008 = vmatpush.bf16.msrb.mxu1 %v2991_v36  ;;  %v1782_v18 = vpop.f32.mrf.mxu3  ;;  %v1758_v26 = vpop.f32.mrf.mxu1  ;;  %v3322_v36 = vld [vmem:[#allocation2 + $0x614] sm:$0xf]  ;;  %v3071_v20 = vor.u32 %v3368_v29, %v3068_v38 }
  0xee   :  { %2021 = vmatpush.bf16.msrb.mxu2 %v3055_v37  ;;  %v1770_v17 = vadd.f32 %v1769_v13, %v1757_v63  ;;  %v2884_v37 = vld [vmem:[#allocation2 + $0x618] sm:$0xf0] }
  0xef   :  { %2034 = vmatpush.bf16.msrb.mxu3 %v3119_v46  ;;  %v3354_v46 = vld [vmem:[#allocation2 + $0x714] sm:$0xf]  ;;  %v2887_v50 = vor.u32 %v3322_v36, %v2884_v37 }
  0xf0   :  { %1996 = vmatpush.bf16.msrb.mxu0 %v2919_v52  ;;  %v1783_v27 = vadd.f32 %v1782_v18, %v1770_v17  ;;  %v3015_v52 = vor.u32 %v3354_v46, %v3012_v47 }
  0xf1   :  { %2009 = vmatpush.bf16.msrb.mxu1 %v2983_v53  ;;  %v3320_v53 = vld [vmem:[#allocation2 + $0x604] sm:$0xf] }
  0xf2   :  { %2022 = vmatpush.bf16.msrb.mxu2 %v3047_v54  ;;  %v2876_v54 = vld [vmem:[#allocation2 + $0x608] sm:$0xf0] }
  0xf3   :  { %2035 = vmatpush.bf16.msrb.mxu3 %v3111_v57  ;;  %v3352_v57 = vld [vmem:[#allocation2 + $0x704] sm:$0xf]  ;;  %v2879_v59 = vor.u32 %v3320_v53, %v2876_v54 }
  0xf4   :  { %1997 = vmatpush.bf16.msrb.mxu0 %v2911_v60  ;;  %v1771_v4 = vpop.f32.mrf.mxu2  ;;  %v3007_v60 = vor.u32 %v3352_v57, %v3004_v58 }
  0xf5   :  { %2010 = vmatpush.bf16.msrb.mxu1 %v2975_v41  ;;  %v1784_v30 = vpop.f32.mrf.mxu3 }
  0xf6   :  { %2023 = vmatpush.bf16.msrb.mxu2 %v3039_v6 }
  0xf7   :  { %2036 = vmatpush.bf16.msrb.mxu3 %v3103_v44 }
  0xf8   :  { %1998 = vmatpush.bf16.msrb.mxu0 %v2903_v7 }
  0xf9   :  { %2011 = vmatpush.bf16.msrb.mxu1 %v2967_v40 }
  0xfa   :  { %2024 = vmatpush.bf16.msrb.mxu2 %v3031_v8 }
  0xfb   :  { %2037 = vmatpush.bf16.msrb.mxu3 %v3095_v12 }
  0xfc   :  { %1999 = vmatpush.bf16.msrb.mxu0 %v2895_v24 }
  0xfd   :  { %2012 = vmatpush.bf16.msrb.mxu1 %v2959_v32 }
  0xfe   :  { %2025 = vmatpush.bf16.msrb.mxu2 %v3023_v34 }
  0xff   :  { %2038 = vmatpush.bf16.msrb.mxu3 %v3087_v43 }
 0x100   :  { %2000 = vmatpush.bf16.msrb.mxu0 %v2887_v50 }
 0x101   :  { %2013 = vmatpush.bf16.msrb.mxu1 %v2951_v51 }
 0x102   :  { %2026 = vmatpush.bf16.msrb.mxu2 %v3015_v52 }
 0x103   :  { %2039 = vmatpush.bf16.msrb.mxu3 %v3079_v25 }
 0x104   :  { %2001 = vmatpush.bf16.msrb.mxu0 %v2879_v59  ;;  %v1795_v41 = vpop.f32.mrf.mxu0 }
 0x105   :  { %2014 = vmatpush.bf16.msrb.mxu1 %v2943_v33  ;;  %v1796_v6 = vadd.f32 %v1795_v41, %v1783_v27  ;;  %v1808_v42 = vpop.f32.mrf.mxu1 }
 0x106   :  { %2027 = vmatpush.bf16.msrb.mxu2 %v3007_v60 }
 0x107   :  { %2040 = vmatpush.bf16.msrb.mxu3 %v3071_v20  ;;  %2002 = vmatmul.bf16.vlgmr.msrb.gmra.mxu0 %v3504_v23  ;;  %v1809_v62 = vadd.f32 %v1808_v42, %v1796_v6 }
 0x108   :  { %2015 = vmatmul.bf16.vlgmr.msrb.gmra.mxu1 %v3508_v31 }
 0x109   :  { %2028 = vmatmul.bf16.vlgmr.msrb.gmra.mxu2 %v3506_v28 }
 0x10a   :  { %2041 = vmatmul.bf16.vlgmr.msrb.gmra.mxu3 %v3510_v35 }
 0x10c   :  { %v1821_v21 = vpop.f32.mrf.mxu2  ;;  %v1797_v0 = vpop.f32.mrf.mxu0 }
 0x10d   :  { %v1822_v44 = vadd.f32 %v1821_v21, %v1809_v62  ;;  %v1834_v63 = vpop.f32.mrf.mxu3  ;;  %v1810_v1 = vpop.f32.mrf.mxu1 }
 0x10f   :  { %v1835_v2 = vadd.f32 %v1834_v63, %v1822_v44 }
 0x111   :  { %v2071_v53 = vmul.f32 %v1835_v2, %v1835_v2  ;;  %v2048_v55 = vrot.slane %v1835_v2, 4 }
 0x113   :  { %v2073_v25 = vrot.slane %v2071_v53, 4  ;;  %v2049_v58 = vadd.f32 %v2048_v55, %v1835_v2 }
 0x114   :  { %v1823_v3 = vpop.f32.mrf.mxu2 }
 0x115   :  { %v1836_v5 = vpop.f32.mrf.mxu3  ;;  %v2074_v59 = vadd.f32 %v2073_v25, %v2071_v53  ;;  %v2050_v60 = vrot.slane %v2049_v58, 2 }
 0x117   :  { %v2075_v42 = vrot.slane %v2074_v59, 2  ;;  %v2051_v63 = vadd.f32 %v2050_v60, %v2049_v58 }
 0x119   :  { %v2076_v5 = vadd.f32 %v2075_v42, %v2074_v59 }
 0x124   :  { %v1847_v7 = vpop.f32.mrf.mxu0 }
 0x125   :  { %v1860_v23 = vpop.f32.mrf.mxu1 }
 0x126   :  { %v1861_v40 = vadd.f32 %v1860_v23, %v1847_v7 }
 0x12c   :  { %v1873_v31 = vpop.f32.mrf.mxu2  ;;  %v1849_v35 = vpop.f32.mrf.mxu0 }
 0x12d   :  { %v1874_v8 = vadd.f32 %v1873_v31, %v1861_v40  ;;  %v1886_v28 = vpop.f32.mrf.mxu3  ;;  %v1862_v10 = vpop.f32.mrf.mxu1  ;;  %v2052_v40 = vrot.slane %v2051_v63, 1 }
 0x12f   :  { %v1887_v9 = vadd.f32 %v1886_v28, %v1874_v8  ;;  %v2077_v28 = vrot.slane %v2076_v5, 1  ;;  %v2053_v10 = vadd.f32 %v2052_v40, %v2051_v63 }
 0x134   :  { %v1875_v11 = vpop.f32.mrf.mxu2 }
 0x135   :  { %v1888_v12 = vpop.f32.mrf.mxu3 }
 0x144   :  { %v1899_v13 = vpop.f32.mrf.mxu0 }
 0x145   :  { %v1912_v14 = vpop.f32.mrf.mxu1  ;;  %v1900_v26 = vadd.f32 %v1899_v13, %v1887_v9  ;;  %v2078_v13 = vadd.f32 %v2077_v28, %v2076_v5 }
 0x147   :  { %v1913_v36 = vadd.f32 %v1912_v14, %v1900_v26 }
 0x14c   :  { %v1925_v15 = vpop.f32.mrf.mxu2  ;;  %v1901_v17 = vpop.f32.mrf.mxu0 }
 0x14d   :  { %v1938_v16 = vpop.f32.mrf.mxu3  ;;  %v1914_v18 = vpop.f32.mrf.mxu1  ;;  %v1926_v39 = vadd.f32 %v1925_v15, %v1913_v36 }
 0x14f   :  { %v1939_v46 = vadd.f32 %v1938_v16, %v1926_v39 }
 0x154   :  { %v1927_v19 = vpop.f32.mrf.mxu2 }
 0x155   :  { %v1940_v22 = vpop.f32.mrf.mxu3 }
 0x164   :  { %v1951_v61 = vpop.f32.mrf.mxu0 }
 0x165   :  { %v1964_v24 = vpop.f32.mrf.mxu1  ;;  %v1952_v47 = vadd.f32 %v1951_v61, %v1939_v46 }
 0x167   :  { %v1965_v48 = vadd.f32 %v1964_v24, %v1952_v47 }
 0x16c   :  { %v1977_v27 = vpop.f32.mrf.mxu2  ;;  %v1953_v34 = vpop.f32.mrf.mxu0 }
 0x16d   :  { %v1990_v32 = vpop.f32.mrf.mxu3  ;;  %v1966_v37 = vpop.f32.mrf.mxu1  ;;  %v1978_v49 = vadd.f32 %v1977_v27, %v1965_v48 }
 0x16f   :  { %v1991_v50 = vadd.f32 %v1990_v32, %v1978_v49 }
 0x174   :  { %v1979_v43 = vpop.f32.mrf.mxu2 }
 0x175   :  { %v1992_v45 = vpop.f32.mrf.mxu3 }
 0x184   :  { %v2003_v51 = vpop.f32.mrf.mxu0 }
 0x185   :  { %v2016_v52 = vpop.f32.mrf.mxu1  ;;  %v2004_v54 = vadd.f32 %v2003_v51, %v1991_v50 }
 0x187   :  { %v2017_v56 = vadd.f32 %v2016_v52, %v2004_v54 }
 0x18c   :  { %v2029_v57 = vpop.f32.mrf.mxu2  ;;  %v2005_v38 = vpop.f32.mrf.mxu0 }
 0x18d   :  { %v2030_v4 = vadd.f32 %v2029_v57, %v2017_v56  ;;  %v2042_v29 = vpop.f32.mrf.mxu3  ;;  %v2018_v30 = vpop.f32.mrf.mxu1 }
 0x18f   :  { %v2043_v33 = vadd.f32 %v2042_v29, %v2030_v4 }
 0x191   :  { %v2046_v20 = vpack.c.bf16 %v2043_v33, %v1835_v2  ;;  %v2054_v41 = vrot.slane %v2043_v33, 4  ;;  %v2072_v6 = vmul.f32 %v2043_v33, %v2043_v33  ;;  %v2066_v2 = vlaneseq }
 0x193   :  { %2047 = vst [vmem:[%s3549_s2] sm:$0xff] %v2046_v20  ;;  %v2055_v62 = vadd.f32 %v2054_v41, %v2043_v33  ;;  %v2079_v21 = vrot.slane %v2072_v6, 4  ;;  %vm2068_vm1 = vcmp.lt.s32.totalorder %v2066_v2, 256 }
 0x194   :  { %v2031_v44 = vpop.f32.mrf.mxu2 }
 0x195   :  { %v2056_v0 = vrot.slane %v2055_v62, 2  ;;  %v2080_v1 = vadd.f32 %v2079_v21, %v2072_v6  ;;  %v2044_v3 = vpop.f32.mrf.mxu3 }
 0x197   :  { %v2057_v7 = vadd.f32 %v2056_v0, %v2055_v62  ;;  %v2081_v23 = vrot.slane %v2080_v1, 2 }
 0x199   :  { %v2058_v31 = vrot.slane %v2057_v7, 1  ;;  %v2082_v8 = vadd.f32 %v2081_v23, %v2080_v1 }
 0x19b   :  { %v2059_v9 = vadd.f32 %v2058_v31, %v2057_v7  ;;  %v2083_v35 = vrot.slane %v2082_v8, 1 }
 0x19d   :  { %v2062_v11 = vrot.slane %v2059_v9, 7  ;;  %v2084_v12 = vadd.f32 %v2083_v35, %v2082_v8 }
 0x19f   :  { %v2064_v14 = vsel %vm2063_vm0, %v2053_v10, %v2062_v11  ;;  %v2087_v15 = vrot.slane %v2084_v12, 7 }
 0x1a0   :  { %2070 = vst.msk [vmem:[%s3550_s3] sm:$0x3] %vm2068_vm1, %v2064_v14 }
 0x1a1   :  { %v2088_v16 = vsel %vm2063_vm0, %v2078_v13, %v2087_v15 }
 0x1a2   :  { %2090 = vst.msk [vmem:[%s3551_s4] sm:$0x3] %vm2068_vm1, %v2088_v16 }
 0x1a3   :  { %2103 = vsyncpa [#allocation3], 1 }

// kernel: discriminator_forward.15
= control target key start
LH: loop header
LB: loop body
LE: loop exit
PB: predicated region body
PF: predicated region fallthrough
CT: control target
= control target key end

     0   :  { %s190_s0 = inlined_call_operand.vmem [shape: bf16[2,1,512], index: 0, kind: input, shape index: {}]   ;;  %s191_s1 = inlined_call_operand.hbm [shape: f32[1,512], index: 1, kind: input, shape index: {}]   ;;  %s192_s2 = inlined_call_operand.<no memory space> [shape: f32[1,1], index: 2, kind: input, shape index: {}]   ;;  %s193_s3 = inlined_call_operand.vmem [shape: f32[2,1], index: 3, kind: output, shape index: {}]  }
   0x1   :  { %v8_v0 = vstv %s192_s2 }
   0x2   :  { %9 = vst [vmem:[#allocation2] sm:$0x1] %v8_v0 }
   0x3   :  { %10 = vsyncpa [#allocation4], 0  ;;  %s18_s16 = sshll.u32 %s191_s1, 4  ;;  %s152_s17 = smov [#allocation3]   ;;  %s19_s16 = int_to_ptr.hbm [resolvable:$true] %s18_s16 }
   0x4   :  { %s20_s18 = sshll.u32 %s152_s17, 4  ;;  %s21_s18 = int_to_ptr.vmem [resolvable:$true] %s20_s18 }
   0x5   :  { %23 = dma.hbm_to_vmem [thread:$0]  %s19_s16, 64, %s21_s18, [#allocation4]  }
   0x6   :  { %150 = dma.done.wait [#allocation4], 64  }
   0x7   :  { %151 = vsyncadd [#allocation4], 4294967232  ;;  %v36_v1 = vld [vmem:[#allocation3] sm:$0xf]  ;;  %vm45_vm0 = vcmask 1041408   ;;  %vm47_vm1 = vcmask 1045508  }
   0x8   :  { %v117_v2 = vld [vmem:[%s190_s0] sm:$0xff]   ;;  %v38_v3 = vperm.slane %v36_v1, 0  ;;  %v39_v4 = vperm.slane %v36_v1, 1  ;;  %v40_v5 = vperm.slane %v36_v1, 2  ;;  %v41_v6 = vperm.slane %v36_v1, 3 }
   0x9   :  { %v118_v8 = vunpack.c.l.bf16 %v117_v2  ;;  %vm49_vm2 = vcmask 1043456   ;;  %v119_v12 = vunpack.c.h.bf16 %v117_v2  ;;  %vm66_vm3 = vcmask 1041409   ;;  %v121_v37 = vld [vmem:[#allocation2] ss:$0 sm:$0xff] }
   0xa   :  { %v42_v7 = vrot.slane %v39_v4, 6  ;;  %v43_v9 = vrot.slane %v40_v5, 4  ;;  %v44_v10 = vrot.slane %v41_v6, 2  ;;  %vm108_vm7 = vcmask 1024  }
   0xc   :  { %v46_v11 = vsel %vm45_vm0, %v38_v3, %v42_v7  ;;  %v48_v13 = vsel %vm47_vm1, %v43_v9, %v44_v10 }
   0xd   :  { %v50_v14 = vsel %vm49_vm2, %v46_v11, %v48_v13 }
   0xe   :  { %v51_v15 = vrot.slane %v50_v14, 1  ;;  %v54_v16 = vmul.f32 %v118_v8, %v50_v14 }
  0x10   :  { %v55_v17 = vmul.f32 %v119_v12, %v51_v15  ;;  %v58_v18 = vperm.slane %v54_v16, 0  ;;  %v59_v19 = vperm.slane %v54_v16, 2  ;;  %v60_v20 = vperm.slane %v54_v16, 4 }
  0x11   :  { %v61_v21 = vperm.slane %v54_v16, 6 }
  0x12   :  { %v62_v22 = vperm.slane %v55_v17, 0  ;;  %v63_v23 = vperm.slane %v55_v17, 2  ;;  %v64_v24 = vperm.slane %v55_v17, 4  ;;  %v65_v25 = vperm.slane %v55_v17, 6 }
  0x14   :  { %v67_v26 = vsel %vm66_vm3, %v62_v22, %v58_v18  ;;  %v68_v27 = vsel %vm66_vm3, %v63_v23, %v59_v19  ;;  %v69_v28 = vsel %vm66_vm3, %v64_v24, %v60_v20  ;;  %v70_v29 = vsel %vm66_vm3, %v65_v25, %v61_v21 }
  0x15   :  { %v75_v30 = vsel %vm45_vm0, %v67_v26, 0.0  ;;  %v76_v31 = vsel %vm45_vm0, %v68_v27, 0.0  ;;  %v78_v32 = vsel %vm45_vm0, %v69_v28, 0.0  ;;  %v80_v34 = vsel %vm45_vm0, %v70_v29, 0.0 }
  0x16   :  { %v77_v33 = vadd.f32 %v76_v31, %v75_v30 }
  0x18   :  { %v79_v35 = vadd.f32 %v78_v32, %v77_v33 }
  0x1a   :  { %v81_v36 = vadd.f32 %v80_v34, %v79_v35 }
  0x1c   :  { %82 = vadd.xlane.f32.xlu0 %v81_v36 }
  0x8f   :  { %v83_v38 = vpop.xlane.xlu0 %82 }
  0x90   :  { %v88_v39 = vadd.f32 %v121_v37, %v83_v38 }
  0x92   :  { %v115_v40 = vmul.f32 -1.442695, %v88_v39 }
  0x94   :  { %122 = vpow2.f32 %v115_v40 }
  0x9a   :  { %v123_v41 = vpop.eup %122 }
  0x9b   :  { %v92_v42 = vadd.f32 1.0, %v123_v41 }
  0x9d   :  { %124 = vrcp.f32 %v92_v42  ;;  %v104_v46 = vand.u32 2147483648, %v92_v42  ;;  %v102_v48 = vand.u32 2147483647, %v92_v42  ;;  %vm98_vm5 = vweird.f32 %v92_v42 }
  0x9f   :  { %v105_v50 = vor.u32 1.1754944e-38, %v104_v46  ;;  %vm103_vm8 = vcmp.eq.f32.partialorder %v102_v48, 8.507059e+37 }
  0xa3   :  { %v125_v43 = vpop.eup %124 }
  0xa4   :  { %v94_v44 = vmul.f32 %v125_v43, %v92_v42  ;;  %vm99_vm4 = vweird.f32 %v125_v43 }
  0xa5   :  { %vm100_vm6 = vmor %vm98_vm5, %vm99_vm4 }
  0xa6   :  { %v95_v45 = vsub.f32 1.0, %v94_v44 }
  0xa8   :  { %v96_v47 = vmul.f32 %v125_v43, %v95_v45 }
  0xaa   :  { %v97_v49 = vadd.f32 %v125_v43, %v96_v47 }
  0xac   :  { %v101_v51 = vsel %vm100_vm6, %v125_v43, %v97_v49 }
  0xad   :  { %v106_v52 = vsel %vm103_vm8, %v105_v50, %v101_v51 }
  0xae   :  { %109 = vst.msk [vmem:[%s193_s3] sm:$0x3] %vm108_vm7, %v106_v52 }
  0xaf   :  { %114 = vsyncpa [#allocation4], 1 }

// kernel: discriminator_forward.13
= control target key start
LH: loop header
LB: loop body
LE: loop exit
PB: predicated region body
PF: predicated region fallthrough
CT: control target
= control target key end

     0   :  { %10 = vsyncpa [#allocation3], 0  ;;  %s13215_s18 = smov [#allocation2]   ;;  %s13216_s20 = smov 256   ;;  %s13606_s0 = inlined_call_operand.vmem [shape: bf16[8,4096], index: 0, kind: input, shape index: {}]   ;;  %s13607_s1 = inlined_call_operand.hbm [shape: bf16[4096,512], index: 1, kind: input, shape index: {}]   ;;  %s13608_s2 = inlined_call_operand.vmem [shape: bf16[8,512], index: 2, kind: output, shape index: {0}]   ;;  %s13609_s3 = inlined_call_operand.vmem [shape: f32[1,1,512], index: 3, kind: output, shape index: {1}]   ;;  %s13610_s4 = inlined_call_operand.vmem [shape: f32[1,1,512], index: 4, kind: output, shape index: {2}]  }
   0x1   :  { %s17_s17 = sshll.u32 %s13607_s1, 4  ;;  %s19_s19 = sshll.u32 %s13215_s18, 4  ;;  %s18_s17 = int_to_ptr.hbm [resolvable:$true] %s17_s17  ;;  %s20_s19 = int_to_ptr.vmem [resolvable:$true] %s19_s19 }
   0x2   :  { %s13217_s21 = smov 16  }
   0x3   :  { %25 = dma.hbm_to_vmem [thread:$0]  %s18_s17, 131072, %s20_s19, [#allocation3], %s13216_s20, %s13216_s20, %s13217_s21  }
   0x4   :  { %13213 = dma.done.wait [#allocation3], 131072  }
   0x5   :  { %13214 = vsyncadd [#allocation3], 4294836224  ;;  %v8180_v0 = vld [vmem:[#allocation2 + $0xe0] sm:$0xf]  ;;  %v12192_v1 = vld [vmem:[#allocation2 + $0xec] sm:$0xf0] }
   0x6   :  { %v8308_v2 = vld [vmem:[#allocation2 + $0x1e0] sm:$0xf]  ;;  %v8181_v3 = vor.u32 %v12192_v1, %v8180_v0  ;;  %v12224_v4 = vld [vmem:[#allocation2 + $0x1ec] sm:$0xf0]  ;;  %vm8001_vm0 = vcmask 1040384   ;;  %vm8003_vm1 = vcmask 1042434  }
   0x7   :  { %v8436_v5 = vld [vmem:[#allocation2 + $0x2e0] sm:$0xf]  ;;  %v12256_v6 = vld [vmem:[#allocation2 + $0x2ec] sm:$0xf0]  ;;  %v8309_v7 = vor.u32 %v12224_v4, %v8308_v2  ;;  %vm8005_vm2 = vcmask 1041408  }
   0x8   :  { %v8437_v8 = vor.u32 %v12256_v6, %v8436_v5  ;;  %v8564_v9 = vld [vmem:[#allocation2 + $0x3e0] sm:$0xf]  ;;  %v12288_v10 = vld [vmem:[#allocation2 + $0x3ec] sm:$0xf0]  ;;  %6302 = vmatpush.bf16.msra.mxu0 %v8181_v3 }
   0x9   :  { %v8164_v11 = vld [vmem:[#allocation2 + $0xc0] sm:$0xf]  ;;  %v8565_v12 = vor.u32 %v12288_v10, %v8564_v9  ;;  %v12188_v13 = vld [vmem:[#allocation2 + $0xcc] sm:$0xf0]  ;;  %6315 = vmatpush.bf16.msra.mxu1 %v8309_v7 }
   0xa   :  { %v8292_v14 = vld [vmem:[#allocation2 + $0x1c0] sm:$0xf]  ;;  %v12220_v15 = vld [vmem:[#allocation2 + $0x1cc] sm:$0xf0]  ;;  %6328 = vmatpush.bf16.msra.mxu2 %v8437_v8  ;;  %v8165_v16 = vor.u32 %v12188_v13, %v8164_v11 }
   0xb   :  { %v8293_v17 = vor.u32 %v12220_v15, %v8292_v14  ;;  %v8420_v18 = vld [vmem:[#allocation2 + $0x2c0] sm:$0xf]  ;;  %v12252_v19 = vld [vmem:[#allocation2 + $0x2cc] sm:$0xf0]  ;;  %6341 = vmatpush.bf16.msra.mxu3 %v8565_v12 }
   0xc   :  { %v8548_v20 = vld [vmem:[#allocation2 + $0x3c0] sm:$0xf]  ;;  %v8421_v21 = vor.u32 %v12252_v19, %v8420_v18  ;;  %v12284_v22 = vld [vmem:[#allocation2 + $0x3cc] sm:$0xf0]  ;;  %6303 = vmatpush.bf16.msra.mxu0 %v8165_v16 }
   0xd   :  { %v8148_v23 = vld [vmem:[#allocation2 + $0xa0] sm:$0xf]  ;;  %v12184_v24 = vld [vmem:[#allocation2 + $0xac] sm:$0xf0]  ;;  %v8549_v25 = vor.u32 %v12284_v22, %v8548_v20  ;;  %6316 = vmatpush.bf16.msra.mxu1 %v8293_v17 }
   0xe   :  { %v8276_v26 = vld [vmem:[#allocation2 + $0x1a0] sm:$0xf]  ;;  %v12216_v27 = vld [vmem:[#allocation2 + $0x1ac] sm:$0xf0]  ;;  %v8149_v29 = vor.u32 %v12184_v24, %v8148_v23  ;;  %6329 = vmatpush.bf16.msra.mxu2 %v8421_v21 }
   0xf   :  { %v8404_v28 = vld [vmem:[#allocation2 + $0x2a0] sm:$0xf]  ;;  %v12248_v30 = vld [vmem:[#allocation2 + $0x2ac] sm:$0xf0]  ;;  %v8277_v33 = vor.u32 %v12216_v27, %v8276_v26  ;;  %6342 = vmatpush.bf16.msra.mxu3 %v8549_v25 }
  0x10   :  { %v8532_v31 = vld [vmem:[#allocation2 + $0x3a0] sm:$0xf]  ;;  %v12280_v32 = vld [vmem:[#allocation2 + $0x3ac] sm:$0xf0]  ;;  %v8405_v34 = vor.u32 %v12248_v30, %v8404_v28  ;;  %6304 = vmatpush.bf16.msra.mxu0 %v8149_v29 }
  0x11   :  { %v8132_v35 = vld [vmem:[#allocation2 + $0x80] sm:$0xf]  ;;  %v12180_v36 = vld [vmem:[#allocation2 + $0x8c] sm:$0xf0]  ;;  %v8533_v38 = vor.u32 %v12280_v32, %v8532_v31  ;;  %6317 = vmatpush.bf16.msra.mxu1 %v8277_v33 }
  0x12   :  { %v8260_v37 = vld [vmem:[#allocation2 + $0x180] sm:$0xf]  ;;  %v12212_v39 = vld [vmem:[#allocation2 + $0x18c] sm:$0xf0]  ;;  %v8133_v44 = vor.u32 %v12180_v36, %v8132_v35  ;;  %6330 = vmatpush.bf16.msra.mxu2 %v8405_v34 }
  0x13   :  { %v8388_v40 = vld [vmem:[#allocation2 + $0x280] sm:$0xf]  ;;  %v12244_v41 = vld [vmem:[#allocation2 + $0x28c] sm:$0xf0]  ;;  %v8261_v45 = vor.u32 %v12212_v39, %v8260_v37  ;;  %6343 = vmatpush.bf16.msra.mxu3 %v8533_v38 }
  0x14   :  { %v8516_v42 = vld [vmem:[#allocation2 + $0x380] sm:$0xf]  ;;  %v12276_v43 = vld [vmem:[#allocation2 + $0x38c] sm:$0xf0]  ;;  %v8389_v46 = vor.u32 %v12244_v41, %v8388_v40  ;;  %6305 = vmatpush.bf16.msra.mxu0 %v8133_v44 }
  0x15   :  { %v8116_v47 = vld [vmem:[#allocation2 + $0x60] sm:$0xf]  ;;  %v12176_v48 = vld [vmem:[#allocation2 + $0x6c] sm:$0xf0]  ;;  %v8517_v50 = vor.u32 %v12276_v43, %v8516_v42  ;;  %6318 = vmatpush.bf16.msra.mxu1 %v8261_v45 }
  0x16   :  { %v8244_v49 = vld [vmem:[#allocation2 + $0x160] sm:$0xf]  ;;  %v12208_v51 = vld [vmem:[#allocation2 + $0x16c] sm:$0xf0]  ;;  %v8117_v56 = vor.u32 %v12176_v48, %v8116_v47  ;;  %6331 = vmatpush.bf16.msra.mxu2 %v8389_v46 }
  0x17   :  { %v8372_v52 = vld [vmem:[#allocation2 + $0x260] sm:$0xf]  ;;  %v12240_v53 = vld [vmem:[#allocation2 + $0x26c] sm:$0xf0]  ;;  %v8245_v57 = vor.u32 %v12208_v51, %v8244_v49  ;;  %6344 = vmatpush.bf16.msra.mxu3 %v8517_v50 }
  0x18   :  { %v8500_v54 = vld [vmem:[#allocation2 + $0x360] sm:$0xf]  ;;  %v12272_v55 = vld [vmem:[#allocation2 + $0x36c] sm:$0xf0]  ;;  %v8373_v58 = vor.u32 %v12240_v53, %v8372_v52  ;;  %6306 = vmatpush.bf16.msra.mxu0 %v8117_v56 }
  0x19   :  { %v8100_v59 = vld [vmem:[#allocation2 + $0x40] sm:$0xf]  ;;  %v12172_v60 = vld [vmem:[#allocation2 + $0x4c] sm:$0xf0]  ;;  %v8501_v62 = vor.u32 %v12272_v55, %v8500_v54  ;;  %6319 = vmatpush.bf16.msra.mxu1 %v8245_v57 }
  0x1a   :  { %v8228_v61 = vld [vmem:[#allocation2 + $0x140] sm:$0xf]  ;;  %v12204_v63 = vld [vmem:[#allocation2 + $0x14c] sm:$0xf0]  ;;  %v8101_v4 = vor.u32 %v12172_v60, %v8100_v59  ;;  %6332 = vmatpush.bf16.msra.mxu2 %v8373_v58  ;;  %v31_v58 = vld [vmem:[%s13606_s0 + $0x8] sm:$0xff] }
  0x1b   :  { %v8356_v0 = vld [vmem:[#allocation2 + $0x240] sm:$0xf]  ;;  %v12236_v1 = vld [vmem:[#allocation2 + $0x24c] sm:$0xf0]  ;;  %v8229_v5 = vor.u32 %v12204_v63, %v8228_v61  ;;  %6345 = vmatpush.bf16.msra.mxu3 %v8501_v62  ;;  %v1088_v63 = vunpack.c.l.b16 %v31_v58 }
  0x1c   :  { %v8484_v2 = vld [vmem:[#allocation2 + $0x340] sm:$0xf]  ;;  %v12268_v3 = vld [vmem:[#allocation2 + $0x34c] sm:$0xf0]  ;;  %v8357_v6 = vor.u32 %v12236_v1, %v8356_v0  ;;  %6307 = vmatpush.bf16.msra.mxu0 %v8101_v4  ;;  %v1089_v0 = vunpack.c.h.b16 %v31_v58 }
  0x1d   :  { %v8084_v7 = vld [vmem:[#allocation2 + $0x20] sm:$0xf]  ;;  %v12168_v8 = vld [vmem:[#allocation2 + $0x2c] sm:$0xf0]  ;;  %v8485_v10 = vor.u32 %v12268_v3, %v8484_v2  ;;  %6320 = vmatpush.bf16.msra.mxu1 %v8229_v5  ;;  %v13249_v4 = vpack.c.b16 %v1088_v63, %v1088_v63 }
  0x1e   :  { %v8212_v9 = vld [vmem:[#allocation2 + $0x120] sm:$0xf]  ;;  %v12200_v11 = vld [vmem:[#allocation2 + $0x12c] sm:$0xf0]  ;;  %v8085_v16 = vor.u32 %v12168_v8, %v8084_v7  ;;  %6333 = vmatpush.bf16.msra.mxu2 %v8357_v6  ;;  %v13254_v6 = vpack.c.b16 %v1089_v0, %v1089_v0 }
  0x1f   :  { %v8340_v12 = vld [vmem:[#allocation2 + $0x220] sm:$0xf]  ;;  %v12232_v13 = vld [vmem:[#allocation2 + $0x22c] sm:$0xf0]  ;;  %v8213_v19 = vor.u32 %v12200_v11, %v8212_v9  ;;  %6346 = vmatpush.bf16.msra.mxu3 %v8485_v10 }
  0x20   :  { %v8468_v14 = vld [vmem:[#allocation2 + $0x320] sm:$0xf]  ;;  %v12264_v15 = vld [vmem:[#allocation2 + $0x32c] sm:$0xf0]  ;;  %v8341_v20 = vor.u32 %v12232_v13, %v8340_v12  ;;  %6308 = vmatpush.bf16.msra.mxu0 %v8085_v16 }
  0x21   :  { %v8068_v17 = vld [vmem:[#allocation2] sm:$0xf]  ;;  %v12164_v18 = vld [vmem:[#allocation2 + $0xc] sm:$0xf0]  ;;  %v8469_v24 = vor.u32 %v12264_v15, %v8468_v14  ;;  %6321 = vmatpush.bf16.msra.mxu1 %v8213_v19 }
  0x22   :  { %v8196_v21 = vld [vmem:[#allocation2 + $0x100] sm:$0xf]  ;;  %v12196_v22 = vld [vmem:[#allocation2 + $0x10c] sm:$0xf0]  ;;  %v8069_v31 = vor.u32 %v12164_v18, %v8068_v17  ;;  %6334 = vmatpush.bf16.msra.mxu2 %v8341_v20 }
  0x23   :  { %v8324_v23 = vld [vmem:[#allocation2 + $0x200] sm:$0xf]  ;;  %v12228_v25 = vld [vmem:[#allocation2 + $0x20c] sm:$0xf0]  ;;  %v8197_v35 = vor.u32 %v12196_v22, %v8196_v21  ;;  %6347 = vmatpush.bf16.msra.mxu3 %v8469_v24 }
  0x24   :  { %v8452_v26 = vld [vmem:[#allocation2 + $0x300] sm:$0xf]  ;;  %v12260_v27 = vld [vmem:[#allocation2 + $0x30c] sm:$0xf0]  ;;  %v8325_v36 = vor.u32 %v12228_v25, %v8324_v23  ;;  %6309 = vmatpush.bf16.msra.mxu0 %v8069_v31 }
  0x25   :  { %v8692_v28 = vld [vmem:[#allocation2 + $0x4e0] sm:$0xf]  ;;  %v12320_v29 = vld [vmem:[#allocation2 + $0x4ec] sm:$0xf0]  ;;  %v8453_v39 = vor.u32 %v12260_v27, %v8452_v26  ;;  %6322 = vmatpush.bf16.msra.mxu1 %v8197_v35 }
  0x26   :  { %v8820_v30 = vld [vmem:[#allocation2 + $0x5e0] sm:$0xf]  ;;  %v12352_v32 = vld [vmem:[#allocation2 + $0x5ec] sm:$0xf0]  ;;  %v8693_v40 = vor.u32 %v12320_v29, %v8692_v28  ;;  %6335 = vmatpush.bf16.msra.mxu2 %v8325_v36 }
  0x27   :  { %v8948_v33 = vld [vmem:[#allocation2 + $0x6e0] sm:$0xf]  ;;  %v12384_v34 = vld [vmem:[#allocation2 + $0x6ec] sm:$0xf0]  ;;  %v8821_v41 = vor.u32 %v12352_v32, %v8820_v30  ;;  %6348 = vmatpush.bf16.msra.mxu3 %v8453_v39 }
  0x28   :  { %v9076_v37 = vld [vmem:[#allocation2 + $0x7e0] sm:$0xf]  ;;  %v12416_v38 = vld [vmem:[#allocation2 + $0x7ec] sm:$0xf0]  ;;  %v8949_v42 = vor.u32 %v12384_v34, %v8948_v33  ;;  %6354 = vmatpush.bf16.msrb.mxu0 %v8693_v40 }
  0x29   :  { %v8676_v43 = vld [vmem:[#allocation2 + $0x4c0] sm:$0xf]  ;;  %v12316_v44 = vld [vmem:[#allocation2 + $0x4cc] sm:$0xf0]  ;;  %v9077_v46 = vor.u32 %v12416_v38, %v9076_v37  ;;  %6367 = vmatpush.bf16.msrb.mxu1 %v8821_v41  ;;  %6336 = vmatmul.bf16.vlgmr.msra.gmra.mxu2 %v13249_v4 }
  0x2a   :  { %v8804_v45 = vld [vmem:[#allocation2 + $0x5c0] sm:$0xf]  ;;  %v12348_v47 = vld [vmem:[#allocation2 + $0x5cc] sm:$0xf0]  ;;  %v8677_v52 = vor.u32 %v12316_v44, %v8676_v43  ;;  %6380 = vmatpush.bf16.msrb.mxu2 %v8949_v42  ;;  %6349 = vmatmul.bf16.vlgmr.msra.gmra.mxu3 %v13254_v6 }
  0x2b   :  { %v8932_v48 = vld [vmem:[#allocation2 + $0x6c0] sm:$0xf]  ;;  %v12380_v49 = vld [vmem:[#allocation2 + $0x6cc] sm:$0xf0]  ;;  %v8805_v54 = vor.u32 %v12348_v47, %v8804_v45  ;;  %6393 = vmatpush.bf16.msrb.mxu3 %v9077_v46 }
  0x2c   :  { %v9060_v50 = vld [vmem:[#allocation2 + $0x7c0] sm:$0xf]  ;;  %v12412_v51 = vld [vmem:[#allocation2 + $0x7cc] sm:$0xf0]  ;;  %v8933_v55 = vor.u32 %v12380_v49, %v8932_v48  ;;  %6355 = vmatpush.bf16.msrb.mxu0 %v8677_v52 }
  0x2d   :  { %v8660_v53 = vld [vmem:[#allocation2 + $0x4a0] sm:$0xf]  ;;  %v12312_v56 = vld [vmem:[#allocation2 + $0x4ac] sm:$0xf0]  ;;  %v9061_v59 = vor.u32 %v12412_v51, %v9060_v50  ;;  %6368 = vmatpush.bf16.msrb.mxu1 %v8805_v54 }
  0x2e   :  { %v8788_v57 = vld [vmem:[#allocation2 + $0x5a0] sm:$0xf]  ;;  %v12344_v60 = vld [vmem:[#allocation2 + $0x5ac] sm:$0xf0]  ;;  %v8661_v3 = vor.u32 %v12312_v56, %v8660_v53  ;;  %6381 = vmatpush.bf16.msrb.mxu2 %v8933_v55 }
  0x2f   :  { %v8916_v61 = vld [vmem:[#allocation2 + $0x6a0] sm:$0xf]  ;;  %v12376_v62 = vld [vmem:[#allocation2 + $0x6ac] sm:$0xf0]  ;;  %v8789_v7 = vor.u32 %v12344_v60, %v8788_v57  ;;  %6394 = vmatpush.bf16.msrb.mxu3 %v9061_v59 }
  0x30   :  { %v9044_v1 = vld [vmem:[#allocation2 + $0x7a0] sm:$0xf]  ;;  %v12408_v2 = vld [vmem:[#allocation2 + $0x7ac] sm:$0xf0]  ;;  %v8917_v8 = vor.u32 %v12376_v62, %v8916_v61  ;;  %6356 = vmatpush.bf16.msrb.mxu0 %v8661_v3  ;;  %v33_v3 = vld [vmem:[%s13606_s0 + $0x18] sm:$0xff] }
  0x31   :  { %v30_v5 = vld [vmem:[%s13606_s0] sm:$0xff]  ;;  %v12308_v10 = vld [vmem:[#allocation2 + $0x48c] sm:$0xf0]  ;;  %v9045_v14 = vor.u32 %v12408_v2, %v9044_v1  ;;  %6369 = vmatpush.bf16.msrb.mxu1 %v8789_v7 }
  0x32   :  { %v8644_v9 = vld [vmem:[#allocation2 + $0x480] sm:$0xf]  ;;  %v1086_v12 = vunpack.c.l.b16 %v30_v5  ;;  %v1087_v13 = vunpack.c.h.b16 %v30_v5  ;;  %v12340_v15 = vld [vmem:[#allocation2 + $0x58c] sm:$0xf0]  ;;  %6382 = vmatpush.bf16.msrb.mxu2 %v8917_v8 }
  0x33   :  { %v8772_v11 = vld [vmem:[#allocation2 + $0x580] sm:$0xf]  ;;  %v12372_v17 = vld [vmem:[#allocation2 + $0x68c] sm:$0xf0]  ;;  %v8645_v22 = vor.u32 %v12308_v10, %v8644_v9  ;;  %6395 = vmatpush.bf16.msrb.mxu3 %v9045_v14 }
  0x34   :  { %v8900_v16 = vld [vmem:[#allocation2 + $0x680] sm:$0xf]  ;;  %v12404_v19 = vld [vmem:[#allocation2 + $0x78c] sm:$0xf0]  ;;  %v13257_v20 = vpack.c.b16 %v1086_v12, %v1086_v12  ;;  %v13260_v21 = vpack.c.b16 %v1087_v13, %v1087_v13  ;;  %v8773_v23 = vor.u32 %v12340_v15, %v8772_v11 }
  0x35   :  { %v9028_v18 = vld [vmem:[#allocation2 + $0x780] sm:$0xf]  ;;  %v8901_v24 = vor.u32 %v12372_v17, %v8900_v16  ;;  %v12304_v26 = vld [vmem:[#allocation2 + $0x46c] sm:$0xf0]  ;;  %6357 = vmatpush.bf16.msrb.mxu0 %v8645_v22  ;;  %v1092_v17 = vunpack.c.l.b16 %v33_v3 }
  0x36   :  { %v8628_v25 = vld [vmem:[#allocation2 + $0x460] sm:$0xf]  ;;  %v9029_v28 = vor.u32 %v12404_v19, %v9028_v18  ;;  %v12336_v29 = vld [vmem:[#allocation2 + $0x56c] sm:$0xf0]  ;;  %6310 = vmatmul.bf16.vlgmr.msra.gmra.mxu0 %v13257_v20  ;;  %6323 = vmatmul.bf16.vlgmr.msra.gmra.mxu1 %v13260_v21 }
  0x37   :  { %v8756_v27 = vld [vmem:[#allocation2 + $0x560] sm:$0xf]  ;;  %v12368_v31 = vld [vmem:[#allocation2 + $0x66c] sm:$0xf0]  ;;  %v8629_v34 = vor.u32 %v12304_v26, %v8628_v25  ;;  %6370 = vmatpush.bf16.msrb.mxu1 %v8773_v23  ;;  %6383 = vmatpush.bf16.msrb.mxu2 %v8901_v24  ;;  %v1093_v25 = vunpack.c.h.b16 %v33_v3 }
  0x38   :  { %v8884_v30 = vld [vmem:[#allocation2 + $0x660] sm:$0xf]  ;;  %v12400_v33 = vld [vmem:[#allocation2 + $0x76c] sm:$0xf0]  ;;  %v8757_v35 = vor.u32 %v12336_v29, %v8756_v27  ;;  %6396 = vmatpush.bf16.msrb.mxu3 %v9029_v28 }
  0x39   :  { %v9012_v32 = vld [vmem:[#allocation2 + $0x760] sm:$0xf]  ;;  %v8885_v36 = vor.u32 %v12368_v31, %v8884_v30  ;;  %v12300_v38 = vld [vmem:[#allocation2 + $0x44c] sm:$0xf0]  ;;  %6358 = vmatpush.bf16.msrb.mxu0 %v8629_v34 }
  0x3a   :  { %v8612_v37 = vld [vmem:[#allocation2 + $0x440] sm:$0xf]  ;;  %v9013_v40 = vor.u32 %v12400_v33, %v9012_v32  ;;  %v12332_v41 = vld [vmem:[#allocation2 + $0x54c] sm:$0xf0] }
  0x3b   :  { %v8740_v39 = vld [vmem:[#allocation2 + $0x540] sm:$0xf]  ;;  %v12364_v43 = vld [vmem:[#allocation2 + $0x64c] sm:$0xf0]  ;;  %v8613_v46 = vor.u32 %v12300_v38, %v8612_v37  ;;  %6371 = vmatpush.bf16.msrb.mxu1 %v8757_v35  ;;  %6384 = vmatpush.bf16.msrb.mxu2 %v8885_v36  ;;  %v13270_v38 = vpack.c.b16 %v1092_v17, %v1092_v17 }
  0x3c   :  { %v8868_v42 = vld [vmem:[#allocation2 + $0x640] sm:$0xf]  ;;  %v12396_v45 = vld [vmem:[#allocation2 + $0x74c] sm:$0xf0]  ;;  %v8741_v47 = vor.u32 %v12332_v41, %v8740_v39  ;;  %6397 = vmatpush.bf16.msrb.mxu3 %v9013_v40 }
  0x3d   :  { %v8996_v44 = vld [vmem:[#allocation2 + $0x740] sm:$0xf]  ;;  %v8869_v48 = vor.u32 %v12364_v43, %v8868_v42  ;;  %v12296_v50 = vld [vmem:[#allocation2 + $0x42c] sm:$0xf0]  ;;  %6359 = vmatpush.bf16.msrb.mxu0 %v8613_v46  ;;  %13618 = vst [vmem:[#allocation5_spill] sm:$0xff] %v13270_v38  ;;  %v13274_v42 = vpack.c.b16 %v1093_v25, %v1093_v25 }
  0x3e   :  { %v8596_v49 = vld [vmem:[#allocation2 + $0x420] sm:$0xf]  ;;  %v8997_v52 = vor.u32 %v12396_v45, %v8996_v44  ;;  %v12328_v53 = vld [vmem:[#allocation2 + $0x52c] sm:$0xf0] }
  0x3f   :  { %v8724_v51 = vld [vmem:[#allocation2 + $0x520] sm:$0xf]  ;;  %v12360_v55 = vld [vmem:[#allocation2 + $0x62c] sm:$0xf0]  ;;  %v8597_v59 = vor.u32 %v12296_v50, %v8596_v49  ;;  %6372 = vmatpush.bf16.msrb.mxu1 %v8741_v47  ;;  %6385 = vmatpush.bf16.msrb.mxu2 %v8869_v48  ;;  %13620 = vst [vmem:[#allocation7_spill] sm:$0xff] %v13274_v42 }
  0x40   :  { %v8852_v54 = vld [vmem:[#allocation2 + $0x620] sm:$0xf]  ;;  %v12392_v57 = vld [vmem:[#allocation2 + $0x72c] sm:$0xf0]  ;;  %v8725_v63 = vor.u32 %v12328_v53, %v8724_v51  ;;  %6398 = vmatpush.bf16.msrb.mxu3 %v8997_v52 }
  0x41   :  { %v8980_v56 = vld [vmem:[#allocation2 + $0x720] sm:$0xf]  ;;  %v12292_v60 = vld [vmem:[#allocation2 + $0x40c] sm:$0xf0]  ;;  %v8853_v0 = vor.u32 %v12360_v55, %v8852_v54  ;;  %6360 = vmatpush.bf16.msrb.mxu0 %v8597_v59 }
  0x42   :  { %v8580_v58 = vld [vmem:[#allocation2 + $0x400] sm:$0xf]  ;;  %v12324_v62 = vld [vmem:[#allocation2 + $0x50c] sm:$0xf0]  ;;  %v8981_v5 = vor.u32 %v12392_v57, %v8980_v56 }
  0x43   :  { %v8708_v61 = vld [vmem:[#allocation2 + $0x500] sm:$0xf]  ;;  %v12356_v2 = vld [vmem:[#allocation2 + $0x60c] sm:$0xf0]  ;;  %v8581_v13 = vor.u32 %v12292_v60, %v8580_v58  ;;  %6373 = vmatpush.bf16.msrb.mxu1 %v8725_v63  ;;  %6386 = vmatpush.bf16.msrb.mxu2 %v8853_v0 }
  0x44   :  { %v8836_v1 = vld [vmem:[#allocation2 + $0x600] sm:$0xf]  ;;  %v12388_v8 = vld [vmem:[#allocation2 + $0x70c] sm:$0xf0]  ;;  %v8709_v18 = vor.u32 %v12324_v62, %v8708_v61  ;;  %6399 = vmatpush.bf16.msrb.mxu3 %v8981_v5 }
  0x45   :  { %v8964_v7 = vld [vmem:[#allocation2 + $0x700] sm:$0xf]  ;;  %v32_v9 = vld [vmem:[%s13606_s0 + $0x10] sm:$0xff]  ;;  %v8837_v19 = vor.u32 %v12356_v2, %v8836_v1  ;;  %6361 = vmatpush.bf16.msrb.mxu0 %v8581_v13 }
  0x46   :  { %v9204_v10 = vld [vmem:[#allocation2 + $0x8e0] sm:$0xf]  ;;  %v12448_v11 = vld [vmem:[#allocation2 + $0x8ec] sm:$0xf0]  ;;  %v1090_v24 = vunpack.c.l.b16 %v32_v9  ;;  %v8965_v26 = vor.u32 %v12388_v8, %v8964_v7  ;;  %v1091_v28 = vunpack.c.h.b16 %v32_v9 }
  0x47   :  { %v9332_v12 = vld [vmem:[#allocation2 + $0x9e0] sm:$0xf]  ;;  %v12480_v14 = vld [vmem:[#allocation2 + $0x9ec] sm:$0xf0]  ;;  %v9205_v27 = vor.u32 %v12448_v11, %v9204_v10  ;;  %6374 = vmatpush.bf16.msrb.mxu1 %v8709_v18  ;;  %6387 = vmatpush.bf16.msrb.mxu2 %v8837_v19 }
  0x48   :  { %v9460_v15 = vld [vmem:[#allocation2 + $0xae0] sm:$0xf]  ;;  %v12512_v16 = vld [vmem:[#allocation2 + $0xaec] sm:$0xf0]  ;;  %v9333_v29 = vor.u32 %v12480_v14, %v9332_v12  ;;  %v13272_v41 = vpack.c.b16 %v1090_v24, %v1090_v24  ;;  %6400 = vmatpush.bf16.msrb.mxu3 %v8965_v26  ;;  %v13276_v44 = vpack.c.b16 %v1091_v28, %v1091_v28 }
  0x49   :  { %v9588_v22 = vld [vmem:[#allocation2 + $0xbe0] sm:$0xf]  ;;  %v12544_v23 = vld [vmem:[#allocation2 + $0xbec] sm:$0xf0]  ;;  %v9461_v30 = vor.u32 %v12512_v16, %v9460_v15  ;;  %6406 = vmatpush.bf16.msra.mxu0 %v9205_v27 }
  0x4a   :  { %v9188_v31 = vld [vmem:[#allocation2 + $0x8c0] sm:$0xf]  ;;  %v12444_v32 = vld [vmem:[#allocation2 + $0x8cc] sm:$0xf0]  ;;  %v9589_v34 = vor.u32 %v12544_v23, %v9588_v22  ;;  %13619 = vst [vmem:[#allocation6_spill] sm:$0xff] %v13272_v41  ;;  %6388 = vmatmul.bf16.vlgmr.msrb.gmra.mxu2 %v13270_v38  ;;  %6362 = vmatmul.bf16.vlgmr.msrb.gmra.mxu0 %v13272_v41 }
  0x4b   :  { %v9316_v33 = vld [vmem:[#allocation2 + $0x9c0] sm:$0xf]  ;;  %v12476_v35 = vld [vmem:[#allocation2 + $0x9cc] sm:$0xf0]  ;;  %v9189_v43 = vor.u32 %v12444_v32, %v9188_v31  ;;  %13621 = vst [vmem:[#allocation8_spill] sm:$0xff] %v13276_v44  ;;  %6419 = vmatpush.bf16.msra.mxu1 %v9333_v29  ;;  %6432 = vmatpush.bf16.msra.mxu2 %v9461_v30 }
  0x4c   :  { %v9444_v36 = vld [vmem:[#allocation2 + $0xac0] sm:$0xf]  ;;  %v12508_v37 = vld [vmem:[#allocation2 + $0xacc] sm:$0xf0]  ;;  %v9317_v45 = vor.u32 %v12476_v35, %v9316_v33  ;;  %6445 = vmatpush.bf16.msra.mxu3 %v9589_v34  ;;  %6375 = vmatmul.bf16.vlgmr.msrb.gmra.mxu1 %v13276_v44 }
  0x4d   :  { %v9572_v39 = vld [vmem:[#allocation2 + $0xbc0] sm:$0xf]  ;;  %v12540_v40 = vld [vmem:[#allocation2 + $0xbcc] sm:$0xf0]  ;;  %v9445_v46 = vor.u32 %v12508_v37, %v9444_v36  ;;  %6401 = vmatmul.bf16.vlgmr.msrb.gmra.mxu3 %v13274_v42  ;;  %6407 = vmatpush.bf16.msra.mxu0 %v9189_v43 }
  0x4e   :  { %v9172_v47 = vld [vmem:[#allocation2 + $0x8a0] sm:$0xf]  ;;  %v12440_v48 = vld [vmem:[#allocation2 + $0x8ac] sm:$0xf0]  ;;  %v9573_v50 = vor.u32 %v12540_v40, %v9572_v39 }
  0x4f   :  { %v9300_v49 = vld [vmem:[#allocation2 + $0x9a0] sm:$0xf]  ;;  %v12472_v51 = vld [vmem:[#allocation2 + $0x9ac] sm:$0xf0]  ;;  %v9173_v56 = vor.u32 %v12440_v48, %v9172_v47  ;;  %6420 = vmatpush.bf16.msra.mxu1 %v9317_v45  ;;  %6433 = vmatpush.bf16.msra.mxu2 %v9445_v46 }
  0x50   :  { %v9428_v52 = vld [vmem:[#allocation2 + $0xaa0] sm:$0xf]  ;;  %v12504_v53 = vld [vmem:[#allocation2 + $0xaac] sm:$0xf0]  ;;  %v9301_v57 = vor.u32 %v12472_v51, %v9300_v49  ;;  %6446 = vmatpush.bf16.msra.mxu3 %v9573_v50 }
  0x51   :  { %v9556_v54 = vld [vmem:[#allocation2 + $0xba0] sm:$0xf]  ;;  %v12536_v55 = vld [vmem:[#allocation2 + $0xbac] sm:$0xf0]  ;;  %v9429_v58 = vor.u32 %v12504_v53, %v9428_v52  ;;  %6408 = vmatpush.bf16.msra.mxu0 %v9173_v56 }
  0x52   :  { %v9156_v59 = vld [vmem:[#allocation2 + $0x880] sm:$0xf]  ;;  %v12436_v60 = vld [vmem:[#allocation2 + $0x88c] sm:$0xf0]  ;;  %v9557_v62 = vor.u32 %v12536_v55, %v9556_v54 }
  0x53   :  { %v9284_v61 = vld [vmem:[#allocation2 + $0x980] sm:$0xf]  ;;  %v12468_v63 = vld [vmem:[#allocation2 + $0x98c] sm:$0xf0]  ;;  %v9157_v5 = vor.u32 %v12436_v60, %v9156_v59  ;;  %6421 = vmatpush.bf16.msra.mxu1 %v9301_v57  ;;  %6434 = vmatpush.bf16.msra.mxu2 %v9429_v58 }
  0x54   :  { %v9412_v0 = vld [vmem:[#allocation2 + $0xa80] sm:$0xf]  ;;  %v12500_v1 = vld [vmem:[#allocation2 + $0xa8c] sm:$0xf0]  ;;  %v9285_v7 = vor.u32 %v12468_v63, %v9284_v61  ;;  %6447 = vmatpush.bf16.msra.mxu3 %v9557_v62  ;;  %v35_v61 = vld [vmem:[%s13606_s0 + $0x28] sm:$0xff] }
  0x55   :  { %v9540_v2 = vld [vmem:[#allocation2 + $0xb80] sm:$0xf]  ;;  %v12532_v3 = vld [vmem:[#allocation2 + $0xb8c] sm:$0xf0]  ;;  %v9413_v8 = vor.u32 %v12500_v1, %v9412_v0  ;;  %6409 = vmatpush.bf16.msra.mxu0 %v9157_v5 }
  0x56   :  { %v9140_v9 = vld [vmem:[#allocation2 + $0x860] sm:$0xf]  ;;  %v12432_v10 = vld [vmem:[#allocation2 + $0x86c] sm:$0xf0]  ;;  %v9541_v12 = vor.u32 %v12532_v3, %v9540_v2 }
  0x57   :  { %v9268_v11 = vld [vmem:[#allocation2 + $0x960] sm:$0xf]  ;;  %v12464_v13 = vld [vmem:[#allocation2 + $0x96c] sm:$0xf0]  ;;  %v9141_v18 = vor.u32 %v12432_v10, %v9140_v9  ;;  %6422 = vmatpush.bf16.msra.mxu1 %v9285_v7  ;;  %6435 = vmatpush.bf16.msra.mxu2 %v9413_v8 }
  0x58   :  { %v9396_v14 = vld [vmem:[#allocation2 + $0xa60] sm:$0xf]  ;;  %v12496_v15 = vld [vmem:[#allocation2 + $0xa6c] sm:$0xf0]  ;;  %v9269_v19 = vor.u32 %v12464_v13, %v9268_v11  ;;  %6448 = vmatpush.bf16.msra.mxu3 %v9541_v12  ;;  %v1096_v12 = vunpack.c.l.b16 %v35_v61 }
  0x59   :  { %v9524_v16 = vld [vmem:[#allocation2 + $0xb60] sm:$0xf]  ;;  %v12528_v17 = vld [vmem:[#allocation2 + $0xb6c] sm:$0xf0]  ;;  %v9397_v22 = vor.u32 %v12496_v15, %v9396_v14  ;;  %6410 = vmatpush.bf16.msra.mxu0 %v9141_v18 }
  0x5a   :  { %v9124_v23 = vld [vmem:[#allocation2 + $0x840] sm:$0xf]  ;;  %v12428_v24 = vld [vmem:[#allocation2 + $0x84c] sm:$0xf0]  ;;  %v9525_v26 = vor.u32 %v12528_v17, %v9524_v16  ;;  %v1097_v16 = vunpack.c.h.b16 %v35_v61 }
  0x5b   :  { %v9252_v25 = vld [vmem:[#allocation2 + $0x940] sm:$0xf]  ;;  %v12460_v27 = vld [vmem:[#allocation2 + $0x94c] sm:$0xf0]  ;;  %v9125_v32 = vor.u32 %v12428_v24, %v9124_v23  ;;  %6423 = vmatpush.bf16.msra.mxu1 %v9269_v19  ;;  %6436 = vmatpush.bf16.msra.mxu2 %v9397_v22 }
  0x5c   :  { %v9380_v28 = vld [vmem:[#allocation2 + $0xa40] sm:$0xf]  ;;  %v12492_v29 = vld [vmem:[#allocation2 + $0xa4c] sm:$0xf0]  ;;  %v9253_v33 = vor.u32 %v12460_v27, %v9252_v25  ;;  %6449 = vmatpush.bf16.msra.mxu3 %v9525_v26 }
  0x5d   :  { %v9508_v30 = vld [vmem:[#allocation2 + $0xb40] sm:$0xf]  ;;  %v12524_v31 = vld [vmem:[#allocation2 + $0xb4c] sm:$0xf0]  ;;  %v9381_v34 = vor.u32 %v12492_v29, %v9380_v28  ;;  %6411 = vmatpush.bf16.msra.mxu0 %v9125_v32  ;;  %v13290_v29 = vpack.c.b16 %v1096_v12, %v1096_v12 }
  0x5e   :  { %v9108_v35 = vld [vmem:[#allocation2 + $0x820] sm:$0xf]  ;;  %v12424_v36 = vld [vmem:[#allocation2 + $0x82c] sm:$0xf0]  ;;  %v9509_v39 = vor.u32 %v12524_v31, %v9508_v30 }
  0x5f   :  { %v9236_v37 = vld [vmem:[#allocation2 + $0x920] sm:$0xf]  ;;  %v12456_v40 = vld [vmem:[#allocation2 + $0x92c] sm:$0xf0]  ;;  %v9109_v49 = vor.u32 %v12424_v36, %v9108_v35  ;;  %6424 = vmatpush.bf16.msra.mxu1 %v9253_v33  ;;  %6437 = vmatpush.bf16.msra.mxu2 %v9381_v34  ;;  %v13294_v33 = vpack.c.b16 %v1097_v16, %v1097_v16 }
  0x60   :  { %v9364_v43 = vld [vmem:[#allocation2 + $0xa20] sm:$0xf]  ;;  %v12488_v45 = vld [vmem:[#allocation2 + $0xa2c] sm:$0xf0]  ;;  %v9237_v53 = vor.u32 %v12456_v40, %v9236_v37  ;;  %6450 = vmatpush.bf16.msra.mxu3 %v9509_v39 }
  0x61   :  { %v9492_v46 = vld [vmem:[#allocation2 + $0xb20] sm:$0xf]  ;;  %v12520_v47 = vld [vmem:[#allocation2 + $0xb2c] sm:$0xf0]  ;;  %v9365_v54 = vor.u32 %v12488_v45, %v9364_v43  ;;  %6412 = vmatpush.bf16.msra.mxu0 %v9109_v49  ;;  %13622 = vst [vmem:[#allocation9_spill] sm:$0xff] %v13294_v33 }
  0x62   :  { %v9092_v48 = vld [vmem:[#allocation2 + $0x800] sm:$0xf]  ;;  %v12420_v50 = vld [vmem:[#allocation2 + $0x80c] sm:$0xf0]  ;;  %v9493_v58 = vor.u32 %v12520_v47, %v9492_v46 }
  0x63   :  { %v9220_v51 = vld [vmem:[#allocation2 + $0x900] sm:$0xf]  ;;  %v12452_v52 = vld [vmem:[#allocation2 + $0x90c] sm:$0xf0]  ;;  %v9093_v1 = vor.u32 %v12420_v50, %v9092_v48  ;;  %6425 = vmatpush.bf16.msra.mxu1 %v9237_v53  ;;  %6438 = vmatpush.bf16.msra.mxu2 %v9365_v54 }
  0x64   :  { %v9348_v55 = vld [vmem:[#allocation2 + $0xa00] sm:$0xf]  ;;  %v12484_v56 = vld [vmem:[#allocation2 + $0xa0c] sm:$0xf0]  ;;  %v9221_v8 = vor.u32 %v12452_v52, %v9220_v51  ;;  %6451 = vmatpush.bf16.msra.mxu3 %v9493_v58 }
  0x65   :  { %v34_v57 = vld [vmem:[%s13606_s0 + $0x20] sm:$0xff]  ;;  %v12516_v60 = vld [vmem:[#allocation2 + $0xb0c] sm:$0xf0]  ;;  %v9349_v9 = vor.u32 %v12484_v56, %v9348_v55  ;;  %6413 = vmatpush.bf16.msra.mxu0 %v9093_v1 }
  0x66   :  { %v9476_v59 = vld [vmem:[#allocation2 + $0xb00] sm:$0xf]  ;;  %v12576_v63 = vld [vmem:[#allocation2 + $0xcec] sm:$0xf0]  ;;  %v1094_v7 = vunpack.c.l.b16 %v34_v57  ;;  %v1095_v13 = vunpack.c.h.b16 %v34_v57 }
  0x67   :  { %v9716_v62 = vld [vmem:[#allocation2 + $0xce0] sm:$0xf]  ;;  %v12608_v2 = vld [vmem:[#allocation2 + $0xdec] sm:$0xf0]  ;;  %v9477_v14 = vor.u32 %v12516_v60, %v9476_v59  ;;  %6426 = vmatpush.bf16.msra.mxu1 %v9221_v8  ;;  %6439 = vmatpush.bf16.msra.mxu2 %v9349_v9 }
  0x68   :  { %v9844_v0 = vld [vmem:[#allocation2 + $0xde0] sm:$0xf]  ;;  %v12640_v5 = vld [vmem:[#allocation2 + $0xeec] sm:$0xf0]  ;;  %v9717_v15 = vor.u32 %v12576_v63, %v9716_v62  ;;  %v13288_v25 = vpack.c.b16 %v1094_v7, %v1094_v7  ;;  %v13292_v30 = vpack.c.b16 %v1095_v13, %v1095_v13 }
  0x69   :  { %v9972_v3 = vld [vmem:[#allocation2 + $0xee0] sm:$0xf]  ;;  %v12672_v11 = vld [vmem:[#allocation2 + $0xfec] sm:$0xf0]  ;;  %v9845_v17 = vor.u32 %v12608_v2, %v9844_v0  ;;  %6452 = vmatpush.bf16.msra.mxu3 %v9477_v14 }
  0x6a   :  { %v10100_v10 = vld [vmem:[#allocation2 + $0xfe0] sm:$0xf]  ;;  %v9973_v18 = vor.u32 %v12640_v5, %v9972_v3  ;;  %v12572_v22 = vld [vmem:[#allocation2 + $0xccc] sm:$0xf0]  ;;  %6458 = vmatpush.bf16.msrb.mxu0 %v9717_v15  ;;  %6440 = vmatmul.bf16.vlgmr.msra.gmra.mxu2 %v13290_v29 }
  0x6b   :  { %v9700_v19 = vld [vmem:[#allocation2 + $0xcc0] sm:$0xf]  ;;  %v10101_v24 = vor.u32 %v12672_v11, %v10100_v10  ;;  %v12604_v26 = vld [vmem:[#allocation2 + $0xdcc] sm:$0xf0]  ;;  %6471 = vmatpush.bf16.msrb.mxu1 %v9845_v17  ;;  %6414 = vmatmul.bf16.vlgmr.msra.gmra.mxu0 %v13288_v25 }
  0x6c   :  { %v9828_v23 = vld [vmem:[#allocation2 + $0xdc0] sm:$0xf]  ;;  %v12636_v28 = vld [vmem:[#allocation2 + $0xecc] sm:$0xf0]  ;;  %v9701_v34 = vor.u32 %v12572_v22, %v9700_v19  ;;  %6484 = vmatpush.bf16.msrb.mxu2 %v9973_v18  ;;  %6427 = vmatmul.bf16.vlgmr.msra.gmra.mxu1 %v13292_v30 }
  0x6d   :  { %v9956_v27 = vld [vmem:[#allocation2 + $0xec0] sm:$0xf]  ;;  %v12668_v32 = vld [vmem:[#allocation2 + $0xfcc] sm:$0xf0]  ;;  %v9829_v35 = vor.u32 %v12604_v26, %v9828_v23  ;;  %6497 = vmatpush.bf16.msrb.mxu3 %v10101_v24 }
  0x6e   :  { %v10084_v31 = vld [vmem:[#allocation2 + $0xfc0] sm:$0xf]  ;;  %v9957_v36 = vor.u32 %v12636_v28, %v9956_v27  ;;  %v12568_v39 = vld [vmem:[#allocation2 + $0xcac] sm:$0xf0]  ;;  %6453 = vmatmul.bf16.vlgmr.msra.gmra.mxu3 %v13294_v33  ;;  %6459 = vmatpush.bf16.msrb.mxu0 %v9701_v34 }
  0x6f   :  { %v9684_v37 = vld [vmem:[#allocation2 + $0xca0] sm:$0xf]  ;;  %v10085_v43 = vor.u32 %v12668_v32, %v10084_v31  ;;  %v12600_v45 = vld [vmem:[#allocation2 + $0xdac] sm:$0xf0]  ;;  %6472 = vmatpush.bf16.msrb.mxu1 %v9829_v35 }
  0x70   :  { %v9812_v40 = vld [vmem:[#allocation2 + $0xda0] sm:$0xf]  ;;  %v12632_v47 = vld [vmem:[#allocation2 + $0xeac] sm:$0xf0]  ;;  %v9685_v50 = vor.u32 %v12568_v39, %v9684_v37  ;;  %6485 = vmatpush.bf16.msrb.mxu2 %v9957_v36 }
  0x71   :  { %v9940_v46 = vld [vmem:[#allocation2 + $0xea0] sm:$0xf]  ;;  %v12664_v49 = vld [vmem:[#allocation2 + $0xfac] sm:$0xf0]  ;;  %v9813_v51 = vor.u32 %v12600_v45, %v9812_v40  ;;  %6498 = vmatpush.bf16.msrb.mxu3 %v10085_v43 }
  0x72   :  { %v10068_v48 = vld [vmem:[#allocation2 + $0xfa0] sm:$0xf]  ;;  %v9941_v52 = vor.u32 %v12632_v47, %v9940_v46  ;;  %v12564_v54 = vld [vmem:[#allocation2 + $0xc8c] sm:$0xf0]  ;;  %6460 = vmatpush.bf16.msrb.mxu0 %v9685_v50 }
  0x73   :  { %v9668_v53 = vld [vmem:[#allocation2 + $0xc80] sm:$0xf]  ;;  %v10069_v56 = vor.u32 %v12664_v49, %v10068_v48  ;;  %v12596_v57 = vld [vmem:[#allocation2 + $0xd8c] sm:$0xf0]  ;;  %6473 = vmatpush.bf16.msrb.mxu1 %v9813_v51 }
  0x74   :  { %v9796_v55 = vld [vmem:[#allocation2 + $0xd80] sm:$0xf]  ;;  %v12628_v59 = vld [vmem:[#allocation2 + $0xe8c] sm:$0xf0]  ;;  %v9669_v62 = vor.u32 %v12564_v54, %v9668_v53  ;;  %6486 = vmatpush.bf16.msrb.mxu2 %v9941_v52 }
  0x75   :  { %v9924_v58 = vld [vmem:[#allocation2 + $0xe80] sm:$0xf]  ;;  %v12660_v61 = vld [vmem:[#allocation2 + $0xf8c] sm:$0xf0]  ;;  %v9797_v63 = vor.u32 %v12596_v57, %v9796_v55  ;;  %6499 = vmatpush.bf16.msrb.mxu3 %v10069_v56 }
  0x76   :  { %v10052_v60 = vld [vmem:[#allocation2 + $0xf80] sm:$0xf]  ;;  %v9925_v0 = vor.u32 %v12628_v59, %v9924_v58  ;;  %v12560_v2 = vld [vmem:[#allocation2 + $0xc6c] sm:$0xf0]  ;;  %6461 = vmatpush.bf16.msrb.mxu0 %v9669_v62  ;;  %v37_v59 = vld [vmem:[%s13606_s0 + $0x38] sm:$0xff] }
  0x77   :  { %v9652_v1 = vld [vmem:[#allocation2 + $0xc60] sm:$0xf]  ;;  %v10053_v5 = vor.u32 %v12660_v61, %v10052_v60  ;;  %v12592_v7 = vld [vmem:[#allocation2 + $0xd6c] sm:$0xf0]  ;;  %6474 = vmatpush.bf16.msrb.mxu1 %v9797_v63 }
  0x78   :  { %v9780_v3 = vld [vmem:[#allocation2 + $0xd60] sm:$0xf]  ;;  %v12624_v9 = vld [vmem:[#allocation2 + $0xe6c] sm:$0xf0]  ;;  %v9653_v12 = vor.u32 %v12560_v2, %v9652_v1  ;;  %6487 = vmatpush.bf16.msrb.mxu2 %v9925_v0 }
  0x79   :  { %v9908_v8 = vld [vmem:[#allocation2 + $0xe60] sm:$0xf]  ;;  %v12656_v11 = vld [vmem:[#allocation2 + $0xf6c] sm:$0xf0]  ;;  %v9781_v13 = vor.u32 %v12592_v7, %v9780_v3  ;;  %6500 = vmatpush.bf16.msrb.mxu3 %v10053_v5 }
  0x7a   :  { %v10036_v10 = vld [vmem:[#allocation2 + $0xf60] sm:$0xf]  ;;  %v9909_v14 = vor.u32 %v12624_v9, %v9908_v8  ;;  %v12556_v16 = vld [vmem:[#allocation2 + $0xc4c] sm:$0xf0]  ;;  %6462 = vmatpush.bf16.msrb.mxu0 %v9653_v12 }
  0x7b   :  { %v9636_v15 = vld [vmem:[#allocation2 + $0xc40] sm:$0xf]  ;;  %v10037_v18 = vor.u32 %v12656_v11, %v10036_v10  ;;  %v12588_v19 = vld [vmem:[#allocation2 + $0xd4c] sm:$0xf0]  ;;  %6475 = vmatpush.bf16.msrb.mxu1 %v9781_v13  ;;  %v1100_v10 = vunpack.c.l.b16 %v37_v59 }
  0x7c   :  { %v9764_v17 = vld [vmem:[#allocation2 + $0xd40] sm:$0xf]  ;;  %v12620_v23 = vld [vmem:[#allocation2 + $0xe4c] sm:$0xf0]  ;;  %v9637_v27 = vor.u32 %v12556_v16, %v9636_v15  ;;  %6488 = vmatpush.bf16.msrb.mxu2 %v9909_v14  ;;  %v1101_v14 = vunpack.c.h.b16 %v37_v59 }
  0x7d   :  { %v9892_v22 = vld [vmem:[#allocation2 + $0xe40] sm:$0xf]  ;;  %v12652_v26 = vld [vmem:[#allocation2 + $0xf4c] sm:$0xf0]  ;;  %v9765_v28 = vor.u32 %v12588_v19, %v9764_v17  ;;  %6501 = vmatpush.bf16.msrb.mxu3 %v10037_v18 }
  0x7e   :  { %v10020_v24 = vld [vmem:[#allocation2 + $0xf40] sm:$0xf]  ;;  %v9893_v31 = vor.u32 %v12620_v23, %v9892_v22  ;;  %v12552_v34 = vld [vmem:[#allocation2 + $0xc2c] sm:$0xf0]  ;;  %6463 = vmatpush.bf16.msrb.mxu0 %v9637_v27 }
  0x7f   :  { %v9620_v32 = vld [vmem:[#allocation2 + $0xc20] sm:$0xf]  ;;  %v10021_v36 = vor.u32 %v12652_v26, %v10020_v24  ;;  %v12584_v37 = vld [vmem:[#allocation2 + $0xd2c] sm:$0xf0]  ;;  %6476 = vmatpush.bf16.msrb.mxu1 %v9765_v28  ;;  %v13308_v28 = vpack.c.b16 %v1100_v10, %v1100_v10 }
  0x80   :  { %v9748_v35 = vld [vmem:[#allocation2 + $0xd20] sm:$0xf]  ;;  %v12616_v40 = vld [vmem:[#allocation2 + $0xe2c] sm:$0xf0]  ;;  %v9621_v47 = vor.u32 %v12552_v34, %v9620_v32  ;;  %6489 = vmatpush.bf16.msrb.mxu2 %v9893_v31 }
  0x81   :  { %v9876_v39 = vld [vmem:[#allocation2 + $0xe20] sm:$0xf]  ;;  %v12648_v45 = vld [vmem:[#allocation2 + $0xf2c] sm:$0xf0]  ;;  %v9749_v51 = vor.u32 %v12584_v37, %v9748_v35  ;;  %6502 = vmatpush.bf16.msrb.mxu3 %v10021_v36  ;;  %v13312_v35 = vpack.c.b16 %v1101_v14, %v1101_v14 }
  0x82   :  { %v10004_v43 = vld [vmem:[#allocation2 + $0xf20] sm:$0xf]  ;;  %v12548_v48 = vld [vmem:[#allocation2 + $0xc0c] sm:$0xf0]  ;;  %v9877_v52 = vor.u32 %v12616_v40, %v9876_v39  ;;  %6464 = vmatpush.bf16.msrb.mxu0 %v9621_v47 }
  0x83   :  { %v9604_v46 = vld [vmem:[#allocation2 + $0xc00] sm:$0xf]  ;;  %v12580_v50 = vld [vmem:[#allocation2 + $0xd0c] sm:$0xf0]  ;;  %v10005_v56 = vor.u32 %v12648_v45, %v10004_v43  ;;  %6477 = vmatpush.bf16.msrb.mxu1 %v9749_v51 }
  0x84   :  { %v9732_v49 = vld [vmem:[#allocation2 + $0xd00] sm:$0xf]  ;;  %v12612_v54 = vld [vmem:[#allocation2 + $0xe0c] sm:$0xf0]  ;;  %v9605_v63 = vor.u32 %v12548_v48, %v9604_v46  ;;  %6490 = vmatpush.bf16.msrb.mxu2 %v9877_v52 }
  0x85   :  { %v9860_v53 = vld [vmem:[#allocation2 + $0xe00] sm:$0xf]  ;;  %v36_v55 = vld [vmem:[%s13606_s0 + $0x30] sm:$0xff]  ;;  %v9733_v5 = vor.u32 %v12580_v50, %v9732_v49  ;;  %6503 = vmatpush.bf16.msrb.mxu3 %v10005_v56 }
  0x86   :  { %v9988_v57 = vld [vmem:[#allocation2 + $0xf00] sm:$0xf]  ;;  %v12644_v58 = vld [vmem:[#allocation2 + $0xf0c] sm:$0xf0]  ;;  %v1098_v3 = vunpack.c.l.b16 %v36_v55  ;;  %v9861_v7 = vor.u32 %v12612_v54, %v9860_v53  ;;  %v1099_v11 = vunpack.c.h.b16 %v36_v55  ;;  %6465 = vmatpush.bf16.msrb.mxu0 %v9605_v63 }
  0x87   :  { %v10228_v60 = vld [vmem:[#allocation2 + $0x10e0] sm:$0xf]  ;;  %v12704_v61 = vld [vmem:[#allocation2 + $0x10ec] sm:$0xf0]  ;;  %v9989_v12 = vor.u32 %v12644_v58, %v9988_v57  ;;  %6478 = vmatpush.bf16.msrb.mxu1 %v9733_v5 }
  0x88   :  { %v10356_v62 = vld [vmem:[#allocation2 + $0x11e0] sm:$0xf]  ;;  %v12736_v0 = vld [vmem:[#allocation2 + $0x11ec] sm:$0xf0]  ;;  %v10229_v13 = vor.u32 %v12704_v61, %v10228_v60  ;;  %v13306_v23 = vpack.c.b16 %v1098_v3, %v1098_v3  ;;  %6491 = vmatpush.bf16.msrb.mxu2 %v9861_v7  ;;  %v13310_v31 = vpack.c.b16 %v1099_v11, %v1099_v11 }
  0x89   :  { %v10484_v1 = vld [vmem:[#allocation2 + $0x12e0] sm:$0xf]  ;;  %v12768_v2 = vld [vmem:[#allocation2 + $0x12ec] sm:$0xf0]  ;;  %v10357_v15 = vor.u32 %v12736_v0, %v10356_v62  ;;  %6504 = vmatpush.bf16.msrb.mxu3 %v9989_v12 }
  0x8a   :  { %v10612_v8 = vld [vmem:[#allocation2 + $0x13e0] sm:$0xf]  ;;  %v12800_v9 = vld [vmem:[#allocation2 + $0x13ec] sm:$0xf0]  ;;  %v10485_v16 = vor.u32 %v12768_v2, %v10484_v1  ;;  %6510 = vmatpush.bf16.msra.mxu0 %v10229_v13  ;;  %6479 = vmatmul.bf16.vlgmr.msrb.gmra.mxu1 %v13310_v31 }
  0x8b   :  { %v10212_v17 = vld [vmem:[#allocation2 + $0x10c0] sm:$0xf]  ;;  %v12700_v18 = vld [vmem:[#allocation2 + $0x10cc] sm:$0xf0]  ;;  %v10613_v22 = vor.u32 %v12800_v9, %v10612_v8  ;;  %6523 = vmatpush.bf16.msra.mxu1 %v10357_v15  ;;  %6466 = vmatmul.bf16.vlgmr.msrb.gmra.mxu0 %v13306_v23 }
  0x8c   :  { %v10340_v19 = vld [vmem:[#allocation2 + $0x11c0] sm:$0xf]  ;;  %v12732_v24 = vld [vmem:[#allocation2 + $0x11cc] sm:$0xf0]  ;;  %v10213_v36 = vor.u32 %v12700_v18, %v10212_v17  ;;  %6536 = vmatpush.bf16.msra.mxu2 %v10485_v16  ;;  %6505 = vmatmul.bf16.vlgmr.msrb.gmra.mxu3 %v13312_v35 }
  0x8d   :  { %v10468_v26 = vld [vmem:[#allocation2 + $0x12c0] sm:$0xf]  ;;  %v12764_v27 = vld [vmem:[#allocation2 + $0x12cc] sm:$0xf0]  ;;  %v10341_v37 = vor.u32 %v12732_v24, %v10340_v19  ;;  %6549 = vmatpush.bf16.msra.mxu3 %v10613_v22  ;;  %6492 = vmatmul.bf16.vlgmr.msrb.gmra.mxu2 %v13308_v28 }
  0x8e   :  { %v10596_v32 = vld [vmem:[#allocation2 + $0x13c0] sm:$0xf]  ;;  %v12796_v34 = vld [vmem:[#allocation2 + $0x13cc] sm:$0xf0]  ;;  %v10469_v39 = vor.u32 %v12764_v27, %v10468_v26  ;;  %6511 = vmatpush.bf16.msra.mxu0 %v10213_v36 }
  0x8f   :  { %v10196_v40 = vld [vmem:[#allocation2 + $0x10a0] sm:$0xf]  ;;  %v12696_v43 = vld [vmem:[#allocation2 + $0x10ac] sm:$0xf0]  ;;  %v10597_v46 = vor.u32 %v12796_v34, %v10596_v32  ;;  %6524 = vmatpush.bf16.msra.mxu1 %v10341_v37 }
  0x90   :  { %v10324_v45 = vld [vmem:[#allocation2 + $0x11a0] sm:$0xf]  ;;  %v12728_v47 = vld [vmem:[#allocation2 + $0x11ac] sm:$0xf0]  ;;  %v10197_v52 = vor.u32 %v12696_v43, %v10196_v40  ;;  %6537 = vmatpush.bf16.msra.mxu2 %v10469_v39 }
  0x91   :  { %v10452_v48 = vld [vmem:[#allocation2 + $0x12a0] sm:$0xf]  ;;  %v12760_v49 = vld [vmem:[#allocation2 + $0x12ac] sm:$0xf0]  ;;  %v10325_v53 = vor.u32 %v12728_v47, %v10324_v45  ;;  %6550 = vmatpush.bf16.msra.mxu3 %v10597_v46 }
  0x92   :  { %v10580_v50 = vld [vmem:[#allocation2 + $0x13a0] sm:$0xf]  ;;  %v12792_v51 = vld [vmem:[#allocation2 + $0x13ac] sm:$0xf0]  ;;  %v10453_v54 = vor.u32 %v12760_v49, %v10452_v48  ;;  %6512 = vmatpush.bf16.msra.mxu0 %v10197_v52 }
  0x93   :  { %v10180_v55 = vld [vmem:[#allocation2 + $0x1080] sm:$0xf]  ;;  %v12692_v56 = vld [vmem:[#allocation2 + $0x108c] sm:$0xf0]  ;;  %v10581_v58 = vor.u32 %v12792_v51, %v10580_v50  ;;  %6525 = vmatpush.bf16.msra.mxu1 %v10325_v53 }
  0x94   :  { %v10308_v57 = vld [vmem:[#allocation2 + $0x1180] sm:$0xf]  ;;  %v12724_v59 = vld [vmem:[#allocation2 + $0x118c] sm:$0xf0]  ;;  %v10181_v0 = vor.u32 %v12692_v56, %v10180_v55  ;;  %6538 = vmatpush.bf16.msra.mxu2 %v10453_v54 }
  0x95   :  { %v10436_v60 = vld [vmem:[#allocation2 + $0x1280] sm:$0xf]  ;;  %v12756_v61 = vld [vmem:[#allocation2 + $0x128c] sm:$0xf0]  ;;  %v10309_v1 = vor.u32 %v12724_v59, %v10308_v57  ;;  %6551 = vmatpush.bf16.msra.mxu3 %v10581_v58 }
  0x96   :  { %v10564_v62 = vld [vmem:[#allocation2 + $0x1380] sm:$0xf]  ;;  %v12788_v63 = vld [vmem:[#allocation2 + $0x138c] sm:$0xf0]  ;;  %v10437_v2 = vor.u32 %v12756_v61, %v10436_v60  ;;  %6513 = vmatpush.bf16.msra.mxu0 %v10181_v0 }
  0x97   :  { %v10164_v3 = vld [vmem:[#allocation2 + $0x1060] sm:$0xf]  ;;  %v12688_v5 = vld [vmem:[#allocation2 + $0x106c] sm:$0xf0]  ;;  %v10565_v8 = vor.u32 %v12788_v63, %v10564_v62  ;;  %6526 = vmatpush.bf16.msra.mxu1 %v10309_v1  ;;  %v39_v1 = vld [vmem:[%s13606_s0 + $0x48] sm:$0xff] }
  0x98   :  { %v10292_v7 = vld [vmem:[#allocation2 + $0x1160] sm:$0xf]  ;;  %v12720_v9 = vld [vmem:[#allocation2 + $0x116c] sm:$0xf0]  ;;  %v10165_v14 = vor.u32 %v12688_v5, %v10164_v3  ;;  %6539 = vmatpush.bf16.msra.mxu2 %v10437_v2 }
  0x99   :  { %v10420_v10 = vld [vmem:[#allocation2 + $0x1260] sm:$0xf]  ;;  %v12752_v11 = vld [vmem:[#allocation2 + $0x126c] sm:$0xf0]  ;;  %v10293_v15 = vor.u32 %v12720_v9, %v10292_v7  ;;  %6552 = vmatpush.bf16.msra.mxu3 %v10565_v8 }
  0x9a   :  { %v10548_v12 = vld [vmem:[#allocation2 + $0x1360] sm:$0xf]  ;;  %v12784_v13 = vld [vmem:[#allocation2 + $0x136c] sm:$0xf0]  ;;  %v10421_v16 = vor.u32 %v12752_v11, %v10420_v10  ;;  %6514 = vmatpush.bf16.msra.mxu0 %v10165_v14 }
  0x9b   :  { %v10148_v17 = vld [vmem:[#allocation2 + $0x1040] sm:$0xf]  ;;  %v12684_v18 = vld [vmem:[#allocation2 + $0x104c] sm:$0xf0]  ;;  %v10549_v22 = vor.u32 %v12784_v13, %v10548_v12  ;;  %6527 = vmatpush.bf16.msra.mxu1 %v10293_v15 }
  0x9c   :  { %v10276_v19 = vld [vmem:[#allocation2 + $0x1140] sm:$0xf]  ;;  %v12716_v24 = vld [vmem:[#allocation2 + $0x114c] sm:$0xf0]  ;;  %v10149_v36 = vor.u32 %v12684_v18, %v10148_v17  ;;  %6540 = vmatpush.bf16.msra.mxu2 %v10421_v16  ;;  %v1104_v16 = vunpack.c.l.b16 %v39_v1 }
  0x9d   :  { %v10404_v26 = vld [vmem:[#allocation2 + $0x1240] sm:$0xf]  ;;  %v12748_v27 = vld [vmem:[#allocation2 + $0x124c] sm:$0xf0]  ;;  %v10277_v37 = vor.u32 %v12716_v24, %v10276_v19  ;;  %6553 = vmatpush.bf16.msra.mxu3 %v10549_v22  ;;  %v1105_v22 = vunpack.c.h.b16 %v39_v1 }
  0x9e   :  { %v10532_v32 = vld [vmem:[#allocation2 + $0x1340] sm:$0xf]  ;;  %v12780_v34 = vld [vmem:[#allocation2 + $0x134c] sm:$0xf0]  ;;  %v10405_v39 = vor.u32 %v12748_v27, %v10404_v26  ;;  %6515 = vmatpush.bf16.msra.mxu0 %v10149_v36 }
  0x9f   :  { %v10132_v40 = vld [vmem:[#allocation2 + $0x1020] sm:$0xf]  ;;  %v12680_v43 = vld [vmem:[#allocation2 + $0x102c] sm:$0xf0]  ;;  %v10533_v46 = vor.u32 %v12780_v34, %v10532_v32  ;;  %6528 = vmatpush.bf16.msra.mxu1 %v10277_v37 }
  0xa0   :  { %v10260_v45 = vld [vmem:[#allocation2 + $0x1120] sm:$0xf]  ;;  %v12712_v47 = vld [vmem:[#allocation2 + $0x112c] sm:$0xf0]  ;;  %v10133_v53 = vor.u32 %v12680_v43, %v10132_v40  ;;  %6541 = vmatpush.bf16.msra.mxu2 %v10405_v39 }
  0xa1   :  { %v10388_v48 = vld [vmem:[#allocation2 + $0x1220] sm:$0xf]  ;;  %v12744_v49 = vld [vmem:[#allocation2 + $0x122c] sm:$0xf0]  ;;  %v10261_v57 = vor.u32 %v12712_v47, %v10260_v45  ;;  %6554 = vmatpush.bf16.msra.mxu3 %v10533_v46  ;;  %v13326_v45 = vpack.c.b16 %v1104_v16, %v1104_v16 }
  0xa2   :  { %v10516_v50 = vld [vmem:[#allocation2 + $0x1320] sm:$0xf]  ;;  %v12776_v51 = vld [vmem:[#allocation2 + $0x132c] sm:$0xf0]  ;;  %v10389_v58 = vor.u32 %v12744_v49, %v10388_v48  ;;  %6516 = vmatpush.bf16.msra.mxu0 %v10133_v53  ;;  %v13330_v49 = vpack.c.b16 %v1105_v22, %v1105_v22 }
  0xa3   :  { %v10116_v52 = vld [vmem:[#allocation2 + $0x1000] sm:$0xf]  ;;  %v12676_v54 = vld [vmem:[#allocation2 + $0x100c] sm:$0xf0]  ;;  %v10517_v62 = vor.u32 %v12776_v51, %v10516_v50  ;;  %6529 = vmatpush.bf16.msra.mxu1 %v10261_v57 }
  0xa4   :  { %v10244_v55 = vld [vmem:[#allocation2 + $0x1100] sm:$0xf]  ;;  %v12708_v56 = vld [vmem:[#allocation2 + $0x110c] sm:$0xf0]  ;;  %v10117_v7 = vor.u32 %v12676_v54, %v10116_v52  ;;  %6542 = vmatpush.bf16.msra.mxu2 %v10389_v58  ;;  %13623 = vst [vmem:[#allocation10_spill] sm:$0xff] %v13330_v49 }
  0xa5   :  { %v10372_v59 = vld [vmem:[#allocation2 + $0x1200] sm:$0xf]  ;;  %v12740_v60 = vld [vmem:[#allocation2 + $0x120c] sm:$0xf0]  ;;  %v10245_v12 = vor.u32 %v12708_v56, %v10244_v55  ;;  %6555 = vmatpush.bf16.msra.mxu3 %v10517_v62 }
  0xa6   :  { %v38_v61 = vld [vmem:[%s13606_s0 + $0x40] sm:$0xff]  ;;  %v12772_v0 = vld [vmem:[#allocation2 + $0x130c] sm:$0xf0]  ;;  %v10373_v13 = vor.u32 %v12740_v60, %v10372_v59  ;;  %6517 = vmatpush.bf16.msra.mxu0 %v10117_v7 }
  0xa7   :  { %v10500_v63 = vld [vmem:[#allocation2 + $0x1300] sm:$0xf]  ;;  %v12832_v3 = vld [vmem:[#allocation2 + $0x14ec] sm:$0xf0]  ;;  %v1102_v11 = vunpack.c.l.b16 %v38_v61  ;;  %v1103_v17 = vunpack.c.h.b16 %v38_v61  ;;  %6530 = vmatpush.bf16.msra.mxu1 %v10245_v12 }
  0xa8   :  { %v10740_v2 = vld [vmem:[#allocation2 + $0x14e0] sm:$0xf]  ;;  %v12864_v8 = vld [vmem:[#allocation2 + $0x15ec] sm:$0xf0]  ;;  %v10501_v18 = vor.u32 %v12772_v0, %v10500_v63  ;;  %6543 = vmatpush.bf16.msra.mxu2 %v10373_v13 }
  0xa9   :  { %v10868_v5 = vld [vmem:[#allocation2 + $0x15e0] sm:$0xf]  ;;  %v12896_v10 = vld [vmem:[#allocation2 + $0x16ec] sm:$0xf0]  ;;  %v10741_v19 = vor.u32 %v12832_v3, %v10740_v2  ;;  %v13324_v37 = vpack.c.b16 %v1102_v11, %v1102_v11  ;;  %v13328_v46 = vpack.c.b16 %v1103_v17, %v1103_v17 }
  0xaa   :  { %v10996_v9 = vld [vmem:[#allocation2 + $0x16e0] sm:$0xf]  ;;  %v12928_v15 = vld [vmem:[#allocation2 + $0x17ec] sm:$0xf0]  ;;  %v10869_v24 = vor.u32 %v12864_v8, %v10868_v5  ;;  %6556 = vmatpush.bf16.msra.mxu3 %v10501_v18 }
  0xab   :  { %v11124_v14 = vld [vmem:[#allocation2 + $0x17e0] sm:$0xf]  ;;  %v10997_v26 = vor.u32 %v12896_v10, %v10996_v9  ;;  %v12828_v32 = vld [vmem:[#allocation2 + $0x14cc] sm:$0xf0]  ;;  %6562 = vmatpush.bf16.msrb.mxu0 %v10741_v19  ;;  %6544 = vmatmul.bf16.vlgmr.msra.gmra.mxu2 %v13326_v45 }
  0xac   :  { %v10724_v27 = vld [vmem:[#allocation2 + $0x14c0] sm:$0xf]  ;;  %v11125_v36 = vor.u32 %v12928_v15, %v11124_v14  ;;  %v12860_v39 = vld [vmem:[#allocation2 + $0x15cc] sm:$0xf0]  ;;  %6575 = vmatpush.bf16.msrb.mxu1 %v10869_v24  ;;  %6518 = vmatmul.bf16.vlgmr.msra.gmra.mxu0 %v13324_v37 }
  0xad   :  { %v10852_v34 = vld [vmem:[#allocation2 + $0x15c0] sm:$0xf]  ;;  %v12892_v43 = vld [vmem:[#allocation2 + $0x16cc] sm:$0xf0]  ;;  %v10725_v50 = vor.u32 %v12828_v32, %v10724_v27  ;;  %6588 = vmatpush.bf16.msrb.mxu2 %v10997_v26  ;;  %6531 = vmatmul.bf16.vlgmr.msra.gmra.mxu1 %v13328_v46 }
  0xae   :  { %v10980_v40 = vld [vmem:[#allocation2 + $0x16c0] sm:$0xf]  ;;  %v12924_v48 = vld [vmem:[#allocation2 + $0x17cc] sm:$0xf0]  ;;  %v10853_v51 = vor.u32 %v12860_v39, %v10852_v34  ;;  %6601 = vmatpush.bf16.msrb.mxu3 %v11125_v36 }
  0xaf   :  { %v11108_v47 = vld [vmem:[#allocation2 + $0x17c0] sm:$0xf]  ;;  %v10981_v52 = vor.u32 %v12892_v43, %v10980_v40  ;;  %v12824_v54 = vld [vmem:[#allocation2 + $0x14ac] sm:$0xf0]  ;;  %6557 = vmatmul.bf16.vlgmr.msra.gmra.mxu3 %v13330_v49  ;;  %6563 = vmatpush.bf16.msrb.mxu0 %v10725_v50 }
  0xb0   :  { %v10708_v53 = vld [vmem:[#allocation2 + $0x14a0] sm:$0xf]  ;;  %v11109_v56 = vor.u32 %v12924_v48, %v11108_v47  ;;  %v12856_v57 = vld [vmem:[#allocation2 + $0x15ac] sm:$0xf0]  ;;  %6576 = vmatpush.bf16.msrb.mxu1 %v10853_v51 }
  0xb1   :  { %v10836_v55 = vld [vmem:[#allocation2 + $0x15a0] sm:$0xf]  ;;  %v12888_v59 = vld [vmem:[#allocation2 + $0x16ac] sm:$0xf0]  ;;  %v10709_v62 = vor.u32 %v12824_v54, %v10708_v53  ;;  %6589 = vmatpush.bf16.msrb.mxu2 %v10981_v52 }
  0xb2   :  { %v10964_v58 = vld [vmem:[#allocation2 + $0x16a0] sm:$0xf]  ;;  %v12920_v61 = vld [vmem:[#allocation2 + $0x17ac] sm:$0xf0]  ;;  %v10837_v63 = vor.u32 %v12856_v57, %v10836_v55  ;;  %6602 = vmatpush.bf16.msrb.mxu3 %v11109_v56 }
  0xb3   :  { %v11092_v60 = vld [vmem:[#allocation2 + $0x17a0] sm:$0xf]  ;;  %v10965_v0 = vor.u32 %v12888_v59, %v10964_v58  ;;  %v12820_v2 = vld [vmem:[#allocation2 + $0x148c] sm:$0xf0]  ;;  %6564 = vmatpush.bf16.msrb.mxu0 %v10709_v62  ;;  %v6311_v54 = vpop.f32.mrf.mxu0  ;;  %v6324_v56 = vpop.f32.mrf.mxu1 }
  0xb4   :  { %v10692_v1 = vld [vmem:[#allocation2 + $0x1480] sm:$0xf]  ;;  %v11093_v5 = vor.u32 %v12920_v61, %v11092_v60  ;;  %v12852_v7 = vld [vmem:[#allocation2 + $0x158c] sm:$0xf0]  ;;  %6577 = vmatpush.bf16.msrb.mxu1 %v10837_v63  ;;  %v6325_v62 = vadd.f32 %v6324_v56, %v6311_v54  ;;  %v6337_v63 = vpop.f32.mrf.mxu2 }
  0xb5   :  { %v10820_v3 = vld [vmem:[#allocation2 + $0x1580] sm:$0xf]  ;;  %v12884_v9 = vld [vmem:[#allocation2 + $0x168c] sm:$0xf0]  ;;  %v10693_v12 = vor.u32 %v12820_v2, %v10692_v1  ;;  %6590 = vmatpush.bf16.msrb.mxu2 %v10965_v0 }
  0xb6   :  { %v10948_v8 = vld [vmem:[#allocation2 + $0x1680] sm:$0xf]  ;;  %v12916_v11 = vld [vmem:[#allocation2 + $0x178c] sm:$0xf0]  ;;  %v10821_v13 = vor.u32 %v12852_v7, %v10820_v3  ;;  %6603 = vmatpush.bf16.msrb.mxu3 %v11093_v5  ;;  %v6350_v5 = vpop.f32.mrf.mxu3 }
  0xb7   :  { %v11076_v10 = vld [vmem:[#allocation2 + $0x1780] sm:$0xf]  ;;  %v10949_v14 = vor.u32 %v12884_v9, %v10948_v8  ;;  %v12816_v16 = vld [vmem:[#allocation2 + $0x146c] sm:$0xf0]  ;;  %6565 = vmatpush.bf16.msrb.mxu0 %v10693_v12 }
  0xb8   :  { %v10676_v15 = vld [vmem:[#allocation2 + $0x1460] sm:$0xf]  ;;  %v11077_v18 = vor.u32 %v12916_v11, %v11076_v10  ;;  %v12848_v19 = vld [vmem:[#allocation2 + $0x156c] sm:$0xf0]  ;;  %6578 = vmatpush.bf16.msrb.mxu1 %v10821_v13  ;;  %v6338_v10 = vadd.f32 %v6337_v63, %v6325_v62 }
  0xb9   :  { %v10804_v17 = vld [vmem:[#allocation2 + $0x1560] sm:$0xf]  ;;  %v12880_v24 = vld [vmem:[#allocation2 + $0x166c] sm:$0xf0]  ;;  %v10677_v32 = vor.u32 %v12816_v16, %v10676_v15  ;;  %6591 = vmatpush.bf16.msrb.mxu2 %v10949_v14 }
  0xba   :  { %v10932_v22 = vld [vmem:[#allocation2 + $0x1660] sm:$0xf]  ;;  %v12912_v27 = vld [vmem:[#allocation2 + $0x176c] sm:$0xf0]  ;;  %v10805_v34 = vor.u32 %v12848_v19, %v10804_v17  ;;  %6604 = vmatpush.bf16.msrb.mxu3 %v11077_v18 }
  0xbb   :  { %v11060_v26 = vld [vmem:[#allocation2 + $0x1760] sm:$0xf]  ;;  %v10933_v36 = vor.u32 %v12880_v24, %v10932_v22  ;;  %v12812_v40 = vld [vmem:[#allocation2 + $0x144c] sm:$0xf0]  ;;  %6566 = vmatpush.bf16.msrb.mxu0 %v10677_v32  ;;  %v13339_v22 = vadd.f32 %v6350_v5, %v6338_v10  ;;  %v41_v32 = vld [vmem:[%s13606_s0 + $0x58] sm:$0xff] }
  0xbc   :  { %v10660_v39 = vld [vmem:[#allocation2 + $0x1440] sm:$0xf]  ;;  %v11061_v47 = vor.u32 %v12912_v27, %v11060_v26  ;;  %v12844_v48 = vld [vmem:[#allocation2 + $0x154c] sm:$0xf0]  ;;  %6579 = vmatpush.bf16.msrb.mxu1 %v10805_v34  ;;  %v1109_v62 = vunpack.c.h.b16 %v41_v32 }
  0xbd   :  { %v10788_v43 = vld [vmem:[#allocation2 + $0x1540] sm:$0xf]  ;;  %v12876_v51 = vld [vmem:[#allocation2 + $0x164c] sm:$0xf0]  ;;  %v10661_v55 = vor.u32 %v12812_v40, %v10660_v39  ;;  %6592 = vmatpush.bf16.msrb.mxu2 %v10933_v36  ;;  %v6313_v40 = vpop.f32.mrf.mxu0 }
  0xbe   :  { %v10916_v50 = vld [vmem:[#allocation2 + $0x1640] sm:$0xf]  ;;  %v12908_v53 = vld [vmem:[#allocation2 + $0x174c] sm:$0xf0]  ;;  %v10789_v57 = vor.u32 %v12844_v48, %v10788_v43  ;;  %6605 = vmatpush.bf16.msrb.mxu3 %v11061_v47  ;;  %v6352_v63 = vpop.f32.mrf.mxu3 }
  0xbf   :  { %v11044_v52 = vld [vmem:[#allocation2 + $0x1740] sm:$0xf]  ;;  %v10917_v58 = vor.u32 %v12876_v51, %v10916_v50  ;;  %v12808_v60 = vld [vmem:[#allocation2 + $0x142c] sm:$0xf0]  ;;  %6567 = vmatpush.bf16.msrb.mxu0 %v10661_v55 }
  0xc0   :  { %v10644_v59 = vld [vmem:[#allocation2 + $0x1420] sm:$0xf]  ;;  %v11045_v0 = vor.u32 %v12908_v53, %v11044_v52  ;;  %v12840_v1 = vld [vmem:[#allocation2 + $0x152c] sm:$0xf0]  ;;  %6580 = vmatpush.bf16.msrb.mxu1 %v10789_v57  ;;  %v6326_v52 = vpop.f32.mrf.mxu1  ;;  %v1108_v57 = vunpack.c.l.b16 %v41_v32 }
  0xc1   :  { %v10772_v61 = vld [vmem:[#allocation2 + $0x1520] sm:$0xf]  ;;  %v12872_v3 = vld [vmem:[#allocation2 + $0x162c] sm:$0xf0]  ;;  %v10645_v11 = vor.u32 %v12808_v60, %v10644_v59  ;;  %6593 = vmatpush.bf16.msrb.mxu2 %v10917_v58  ;;  %v6339_v59 = vpop.f32.mrf.mxu2 }
  0xc2   :  { %v10900_v2 = vld [vmem:[#allocation2 + $0x1620] sm:$0xf]  ;;  %v12904_v8 = vld [vmem:[#allocation2 + $0x172c] sm:$0xf0]  ;;  %v10773_v15 = vor.u32 %v12840_v1, %v10772_v61  ;;  %6606 = vmatpush.bf16.msrb.mxu3 %v11045_v0 }
  0xc3   :  { %v11028_v7 = vld [vmem:[#allocation2 + $0x1720] sm:$0xf]  ;;  %v12804_v12 = vld [vmem:[#allocation2 + $0x140c] sm:$0xf0]  ;;  %v10901_v16 = vor.u32 %v12872_v3, %v10900_v2  ;;  %6568 = vmatpush.bf16.msrb.mxu0 %v10645_v11 }
  0xc4   :  { %v10628_v9 = vld [vmem:[#allocation2 + $0x1400] sm:$0xf]  ;;  %v12836_v14 = vld [vmem:[#allocation2 + $0x150c] sm:$0xf0]  ;;  %v11029_v24 = vor.u32 %v12904_v8, %v11028_v7  ;;  %6581 = vmatpush.bf16.msrb.mxu1 %v10773_v15 }
  0xc5   :  { %v10756_v13 = vld [vmem:[#allocation2 + $0x1500] sm:$0xf]  ;;  %v12868_v18 = vld [vmem:[#allocation2 + $0x160c] sm:$0xf0]  ;;  %v10629_v43 = vor.u32 %v12804_v12, %v10628_v9  ;;  %6594 = vmatpush.bf16.msrb.mxu2 %v10901_v16  ;;  %v13346_v12 = vpack.c.b16 %v1108_v57, %v1108_v57  ;;  %v13350_v16 = vpack.c.b16 %v1109_v62, %v1109_v62 }
  0xc6   :  { %v10884_v17 = vld [vmem:[#allocation2 + $0x1600] sm:$0xf]  ;;  %v40_v19 = vld [vmem:[%s13606_s0 + $0x50] sm:$0xff]  ;;  %v10757_v53 = vor.u32 %v12836_v14, %v10756_v13  ;;  %6607 = vmatpush.bf16.msrb.mxu3 %v11029_v24 }
  0xc7   :  { %v11012_v26 = vld [vmem:[#allocation2 + $0x1700] sm:$0xf]  ;;  %v12900_v27 = vld [vmem:[#allocation2 + $0x170c] sm:$0xf0]  ;;  %v1106_v51 = vunpack.c.l.b16 %v40_v19  ;;  %v10885_v54 = vor.u32 %v12868_v18, %v10884_v17  ;;  %v1107_v58 = vunpack.c.h.b16 %v40_v19  ;;  %6569 = vmatpush.bf16.msrb.mxu0 %v10629_v43 }
  0xc8   :  { %v11252_v34 = vld [vmem:[#allocation2 + $0x18e0] sm:$0xf]  ;;  %v12960_v36 = vld [vmem:[#allocation2 + $0x18ec] sm:$0xf0]  ;;  %v11013_v60 = vor.u32 %v12900_v27, %v11012_v26  ;;  %6582 = vmatpush.bf16.msrb.mxu1 %v10757_v53 }
  0xc9   :  { %v11380_v39 = vld [vmem:[#allocation2 + $0x19e0] sm:$0xf]  ;;  %v12992_v47 = vld [vmem:[#allocation2 + $0x19ec] sm:$0xf0]  ;;  %v11253_v61 = vor.u32 %v12960_v36, %v11252_v34  ;;  %v13344_v8 = vpack.c.b16 %v1106_v51, %v1106_v51  ;;  %6595 = vmatpush.bf16.msrb.mxu2 %v10885_v54  ;;  %v13348_v13 = vpack.c.b16 %v1107_v58, %v1107_v58 }
  0xca   :  { %v11508_v48 = vld [vmem:[#allocation2 + $0x1ae0] sm:$0xf]  ;;  %v13024_v50 = vld [vmem:[#allocation2 + $0x1aec] sm:$0xf0]  ;;  %v11381_v0 = vor.u32 %v12992_v47, %v11380_v39  ;;  %6608 = vmatpush.bf16.msrb.mxu3 %v11013_v60 }
  0xcb   :  { %v11636_v55 = vld [vmem:[#allocation2 + $0x1be0] sm:$0xf]  ;;  %v13056_v56 = vld [vmem:[#allocation2 + $0x1bec] sm:$0xf0]  ;;  %v11509_v1 = vor.u32 %v13024_v50, %v11508_v48  ;;  %6614 = vmatpush.bf16.msra.mxu0 %v11253_v61  ;;  %6583 = vmatmul.bf16.vlgmr.msrb.gmra.mxu1 %v13348_v13  ;;  %v6363_v61 = vpop.f32.mrf.mxu0 }
  0xcc   :  { %v11236_v2 = vld [vmem:[#allocation2 + $0x18c0] sm:$0xf]  ;;  %v12956_v3 = vld [vmem:[#allocation2 + $0x18cc] sm:$0xf0]  ;;  %v11637_v7 = vor.u32 %v13056_v56, %v11636_v55  ;;  %6627 = vmatpush.bf16.msra.mxu1 %v11381_v0  ;;  %6570 = vmatmul.bf16.vlgmr.msrb.gmra.mxu0 %v13344_v8 }
  0xcd   :  { %v11364_v5 = vld [vmem:[#allocation2 + $0x19c0] sm:$0xf]  ;;  %v12988_v9 = vld [vmem:[#allocation2 + $0x19cc] sm:$0xf0]  ;;  %v11237_v17 = vor.u32 %v12956_v3, %v11236_v2  ;;  %6640 = vmatpush.bf16.msra.mxu2 %v11509_v1  ;;  %6609 = vmatmul.bf16.vlgmr.msrb.gmra.mxu3 %v13350_v16  ;;  %v6364_v3 = vadd.f32 %v6363_v61, %v13339_v22 }
  0xce   :  { %v11492_v10 = vld [vmem:[#allocation2 + $0x1ac0] sm:$0xf]  ;;  %v13020_v11 = vld [vmem:[#allocation2 + $0x1acc] sm:$0xf0]  ;;  %v11365_v18 = vor.u32 %v12988_v9, %v11364_v5  ;;  %6653 = vmatpush.bf16.msra.mxu3 %v11637_v7  ;;  %6596 = vmatmul.bf16.vlgmr.msrb.gmra.mxu2 %v13346_v12  ;;  %v6376_v5 = vpop.f32.mrf.mxu1 }
  0xcf   :  { %v11620_v14 = vld [vmem:[#allocation2 + $0x1bc0] sm:$0xf]  ;;  %v13052_v15 = vld [vmem:[#allocation2 + $0x1bcc] sm:$0xf0]  ;;  %v11493_v19 = vor.u32 %v13020_v11, %v11492_v10  ;;  %6615 = vmatpush.bf16.msra.mxu0 %v11237_v17  ;;  %v6377_v17 = vadd.f32 %v6376_v5, %v6364_v3 }
  0xd0   :  { %v11220_v24 = vld [vmem:[#allocation2 + $0x18a0] sm:$0xf]  ;;  %v12952_v26 = vld [vmem:[#allocation2 + $0x18ac] sm:$0xf0]  ;;  %v11621_v32 = vor.u32 %v13052_v15, %v11620_v14  ;;  %6628 = vmatpush.bf16.msra.mxu1 %v11365_v18 }
  0xd1   :  { %v11348_v27 = vld [vmem:[#allocation2 + $0x19a0] sm:$0xf]  ;;  %v12984_v34 = vld [vmem:[#allocation2 + $0x19ac] sm:$0xf0]  ;;  %v11221_v47 = vor.u32 %v12952_v26, %v11220_v24  ;;  %6641 = vmatpush.bf16.msra.mxu2 %v11493_v19 }
  0xd2   :  { %v11476_v36 = vld [vmem:[#allocation2 + $0x1aa0] sm:$0xf]  ;;  %v13016_v39 = vld [vmem:[#allocation2 + $0x1aac] sm:$0xf0]  ;;  %v11349_v48 = vor.u32 %v12984_v34, %v11348_v27  ;;  %6654 = vmatpush.bf16.msra.mxu3 %v11621_v32  ;;  %v6389_v34 = vpop.f32.mrf.mxu2 }
  0xd3   :  { %v11604_v40 = vld [vmem:[#allocation2 + $0x1ba0] sm:$0xf]  ;;  %v13048_v43 = vld [vmem:[#allocation2 + $0x1bac] sm:$0xf0]  ;;  %v11477_v50 = vor.u32 %v13016_v39, %v11476_v36  ;;  %6616 = vmatpush.bf16.msra.mxu0 %v11221_v47  ;;  %v6402_v47 = vpop.f32.mrf.mxu3 }
  0xd4   :  { %v11204_v51 = vld [vmem:[#allocation2 + $0x1880] sm:$0xf]  ;;  %v12948_v52 = vld [vmem:[#allocation2 + $0x188c] sm:$0xf0]  ;;  %v11605_v54 = vor.u32 %v13048_v43, %v11604_v40  ;;  %6629 = vmatpush.bf16.msra.mxu1 %v11349_v48  ;;  %v6390_v43 = vadd.f32 %v6389_v34, %v6377_v17 }
  0xd5   :  { %v11332_v53 = vld [vmem:[#allocation2 + $0x1980] sm:$0xf]  ;;  %v12980_v55 = vld [vmem:[#allocation2 + $0x198c] sm:$0xf0]  ;;  %v11205_v60 = vor.u32 %v12948_v52, %v11204_v51  ;;  %6642 = vmatpush.bf16.msra.mxu2 %v11477_v50 }
  0xd6   :  { %v11460_v56 = vld [vmem:[#allocation2 + $0x1a80] sm:$0xf]  ;;  %v13012_v57 = vld [vmem:[#allocation2 + $0x1a8c] sm:$0xf0]  ;;  %v11333_v62 = vor.u32 %v12980_v55, %v11332_v53  ;;  %6655 = vmatpush.bf16.msra.mxu3 %v11605_v54  ;;  %v13357_v52 = vadd.f32 %v6402_v47, %v6390_v43  ;;  %v6365_v53 = vpop.f32.mrf.mxu0 }
  0xd7   :  { %v11588_v58 = vld [vmem:[#allocation2 + $0x1b80] sm:$0xf]  ;;  %v13044_v59 = vld [vmem:[#allocation2 + $0x1b8c] sm:$0xf0]  ;;  %v11461_v63 = vor.u32 %v13012_v57, %v11460_v56  ;;  %6617 = vmatpush.bf16.msra.mxu0 %v11205_v60 }
  0xd8   :  { %v11188_v0 = vld [vmem:[#allocation2 + $0x1860] sm:$0xf]  ;;  %v12944_v1 = vld [vmem:[#allocation2 + $0x186c] sm:$0xf0]  ;;  %v11589_v7 = vor.u32 %v13044_v59, %v11588_v58  ;;  %6630 = vmatpush.bf16.msra.mxu1 %v11333_v62  ;;  %v6378_v59 = vpop.f32.mrf.mxu1 }
  0xd9   :  { %v11316_v2 = vld [vmem:[#allocation2 + $0x1960] sm:$0xf]  ;;  %v12976_v9 = vld [vmem:[#allocation2 + $0x196c] sm:$0xf0]  ;;  %v11189_v18 = vor.u32 %v12944_v1, %v11188_v0  ;;  %6643 = vmatpush.bf16.msra.mxu2 %v11461_v63 }
  0xda   :  { %v11444_v10 = vld [vmem:[#allocation2 + $0x1a60] sm:$0xf]  ;;  %v13008_v11 = vld [vmem:[#allocation2 + $0x1a6c] sm:$0xf0]  ;;  %v11317_v19 = vor.u32 %v12976_v9, %v11316_v2  ;;  %6656 = vmatpush.bf16.msra.mxu3 %v11589_v7 }
  0xdb   :  { %v11572_v14 = vld [vmem:[#allocation2 + $0x1b60] sm:$0xf]  ;;  %v13040_v15 = vld [vmem:[#allocation2 + $0x1b6c] sm:$0xf0]  ;;  %v11445_v24 = vor.u32 %v13008_v11, %v11444_v10  ;;  %6618 = vmatpush.bf16.msra.mxu0 %v11189_v18  ;;  %v6391_v18 = vpop.f32.mrf.mxu2 }
  0xdc   :  { %v11172_v26 = vld [vmem:[#allocation2 + $0x1840] sm:$0xf]  ;;  %v12940_v27 = vld [vmem:[#allocation2 + $0x184c] sm:$0xf0]  ;;  %v11573_v22 = vor.u32 %v13040_v15, %v11572_v14  ;;  %6631 = vmatpush.bf16.msra.mxu1 %v11317_v19 }
  0xdd   :  { %v11300_v32 = vld [vmem:[#allocation2 + $0x1940] sm:$0xf]  ;;  %v12972_v36 = vld [vmem:[#allocation2 + $0x194c] sm:$0xf0]  ;;  %v11173_v51 = vor.u32 %v12940_v27, %v11172_v26  ;;  %6644 = vmatpush.bf16.msra.mxu2 %v11445_v24  ;;  %v43_v27 = vld [vmem:[%s13606_s0 + $0x68] sm:$0xff] }
  0xde   :  { %v11428_v39 = vld [vmem:[#allocation2 + $0x1a40] sm:$0xf]  ;;  %v13004_v40 = vld [vmem:[#allocation2 + $0x1a4c] sm:$0xf0]  ;;  %v11301_v54 = vor.u32 %v12972_v36, %v11300_v32  ;;  %6657 = vmatpush.bf16.msra.mxu3 %v11573_v22  ;;  %v6404_v32 = vpop.f32.mrf.mxu3  ;;  %v1113_v59 = vunpack.c.h.b16 %v43_v27 }
  0xdf   :  { %v11556_v48 = vld [vmem:[#allocation2 + $0x1b40] sm:$0xf]  ;;  %v13036_v50 = vld [vmem:[#allocation2 + $0x1b4c] sm:$0xf0]  ;;  %v11429_v55 = vor.u32 %v13004_v40, %v11428_v39  ;;  %6619 = vmatpush.bf16.msra.mxu0 %v11173_v51 }
  0xe0   :  { %v11156_v56 = vld [vmem:[#allocation2 + $0x1820] sm:$0xf]  ;;  %v12936_v57 = vld [vmem:[#allocation2 + $0x182c] sm:$0xf0]  ;;  %v11557_v60 = vor.u32 %v13036_v50, %v11556_v48  ;;  %6632 = vmatpush.bf16.msra.mxu1 %v11301_v54 }
  0xe1   :  { %v11284_v58 = vld [vmem:[#allocation2 + $0x1920] sm:$0xf]  ;;  %v12968_v61 = vld [vmem:[#allocation2 + $0x192c] sm:$0xf0]  ;;  %v11157_v3 = vor.u32 %v12936_v57, %v11156_v56  ;;  %6645 = vmatpush.bf16.msra.mxu2 %v11429_v55  ;;  %v1112_v55 = vunpack.c.l.b16 %v43_v27 }
  0xe2   :  { %v11412_v62 = vld [vmem:[#allocation2 + $0x1a20] sm:$0xf]  ;;  %v13000_v63 = vld [vmem:[#allocation2 + $0x1a2c] sm:$0xf0]  ;;  %v11285_v10 = vor.u32 %v12968_v61, %v11284_v58  ;;  %6658 = vmatpush.bf16.msra.mxu3 %v11557_v60 }
  0xe3   :  { %v11540_v0 = vld [vmem:[#allocation2 + $0x1b20] sm:$0xf]  ;;  %v13032_v1 = vld [vmem:[#allocation2 + $0x1b2c] sm:$0xf0]  ;;  %v11413_v11 = vor.u32 %v13000_v63, %v11412_v62  ;;  %6620 = vmatpush.bf16.msra.mxu0 %v11157_v3 }
  0xe4   :  { %v11140_v2 = vld [vmem:[#allocation2 + $0x1800] sm:$0xf]  ;;  %v12932_v5 = vld [vmem:[#allocation2 + $0x180c] sm:$0xf0]  ;;  %v11541_v19 = vor.u32 %v13032_v1, %v11540_v0  ;;  %6633 = vmatpush.bf16.msra.mxu1 %v11285_v10 }
  0xe5   :  { %v11268_v7 = vld [vmem:[#allocation2 + $0x1900] sm:$0xf]  ;;  %v12964_v9 = vld [vmem:[#allocation2 + $0x190c] sm:$0xf0]  ;;  %v11141_v39 = vor.u32 %v12932_v5, %v11140_v2  ;;  %6646 = vmatpush.bf16.msra.mxu2 %v11413_v11 }
  0xe6   :  { %v11396_v14 = vld [vmem:[#allocation2 + $0x1a00] sm:$0xf]  ;;  %v12996_v15 = vld [vmem:[#allocation2 + $0x1a0c] sm:$0xf0]  ;;  %v11269_v50 = vor.u32 %v12964_v9, %v11268_v7  ;;  %6659 = vmatpush.bf16.msra.mxu3 %v11541_v19  ;;  %v13367_v9 = vpack.c.b16 %v1112_v55, %v1112_v55 }
  0xe7   :  { %v42_v17 = vld [vmem:[%s13606_s0 + $0x60] sm:$0xff]  ;;  %v13028_v26 = vld [vmem:[#allocation2 + $0x1b0c] sm:$0xf0]  ;;  %v11397_v51 = vor.u32 %v12996_v15, %v11396_v14  ;;  %6621 = vmatpush.bf16.msra.mxu0 %v11141_v39  ;;  %v13371_v15 = vpack.c.b16 %v1113_v59, %v1113_v59 }
  0xe8   :  { %v11524_v24 = vld [vmem:[#allocation2 + $0x1b00] sm:$0xf]  ;;  %v13088_v22 = vld [vmem:[#allocation2 + $0x1cec] sm:$0xf0]  ;;  %v1110_v48 = vunpack.c.l.b16 %v42_v17  ;;  %v1111_v56 = vunpack.c.h.b16 %v42_v17  ;;  %6634 = vmatpush.bf16.msra.mxu1 %v11269_v50 }
  0xe9   :  { %v11764_v34 = vld [vmem:[#allocation2 + $0x1ce0] sm:$0xf]  ;;  %v13120_v40 = vld [vmem:[#allocation2 + $0x1dec] sm:$0xf0]  ;;  %v11525_v57 = vor.u32 %v13028_v26, %v11524_v24  ;;  %6647 = vmatpush.bf16.msra.mxu2 %v11397_v51 }
  0xea   :  { %v11892_v36 = vld [vmem:[#allocation2 + $0x1de0] sm:$0xf]  ;;  %v13152_v47 = vld [vmem:[#allocation2 + $0x1eec] sm:$0xf0]  ;;  %v11765_v58 = vor.u32 %v13088_v22, %v11764_v34  ;;  %v13365_v2 = vpack.c.b16 %v1110_v48, %v1110_v48  ;;  %v13369_v10 = vpack.c.b16 %v1111_v56, %v1111_v56 }
  0xeb   :  { %v12020_v43 = vld [vmem:[#allocation2 + $0x1ee0] sm:$0xf]  ;;  %v13184_v54 = vld [vmem:[#allocation2 + $0x1fec] sm:$0xf0]  ;;  %v11893_v60 = vor.u32 %v13120_v40, %v11892_v36  ;;  %6660 = vmatpush.bf16.msra.mxu3 %v11525_v57 }
  0xec   :  { %v12148_v53 = vld [vmem:[#allocation2 + $0x1fe0] sm:$0xf]  ;;  %v12021_v61 = vor.u32 %v13152_v47, %v12020_v43  ;;  %v13084_v63 = vld [vmem:[#allocation2 + $0x1ccc] sm:$0xf0]  ;;  %6666 = vmatpush.bf16.msrb.mxu0 %v11765_v58  ;;  %6648 = vmatmul.bf16.vlgmr.msra.gmra.mxu2 %v13367_v9  ;;  %v6415_v58 = vpop.f32.mrf.mxu0 }
  0xed   :  { %v11748_v62 = vld [vmem:[#allocation2 + $0x1cc0] sm:$0xf]  ;;  %v12149_v1 = vor.u32 %v13184_v54, %v12148_v53  ;;  %v13116_v3 = vld [vmem:[#allocation2 + $0x1dcc] sm:$0xf0]  ;;  %6679 = vmatpush.bf16.msrb.mxu1 %v11893_v60  ;;  %6622 = vmatmul.bf16.vlgmr.msra.gmra.mxu0 %v13365_v2 }
  0xee   :  { %v11876_v0 = vld [vmem:[#allocation2 + $0x1dc0] sm:$0xf]  ;;  %v13148_v7 = vld [vmem:[#allocation2 + $0x1ecc] sm:$0xf0]  ;;  %v11749_v17 = vor.u32 %v13084_v63, %v11748_v62  ;;  %6692 = vmatpush.bf16.msrb.mxu2 %v12021_v61  ;;  %6635 = vmatmul.bf16.vlgmr.msra.gmra.mxu1 %v13369_v10  ;;  %v6416_v61 = vadd.f32 %v6415_v58, %v13357_v52  ;;  %v6428_v63 = vpop.f32.mrf.mxu1 }
  0xef   :  { %v12004_v5 = vld [vmem:[#allocation2 + $0x1ec0] sm:$0xf]  ;;  %v13180_v14 = vld [vmem:[#allocation2 + $0x1fcc] sm:$0xf0]  ;;  %v11877_v18 = vor.u32 %v13116_v3, %v11876_v0  ;;  %6705 = vmatpush.bf16.msrb.mxu3 %v12149_v1 }
  0xf0   :  { %v12132_v11 = vld [vmem:[#allocation2 + $0x1fc0] sm:$0xf]  ;;  %v12005_v19 = vor.u32 %v13148_v7, %v12004_v5  ;;  %v13080_v26 = vld [vmem:[#allocation2 + $0x1cac] sm:$0xf0]  ;;  %6661 = vmatmul.bf16.vlgmr.msra.gmra.mxu3 %v13371_v15  ;;  %6667 = vmatpush.bf16.msrb.mxu0 %v11749_v17 }
  0xf1   :  { %v11732_v24 = vld [vmem:[#allocation2 + $0x1ca0] sm:$0xf]  ;;  %v12133_v32 = vor.u32 %v13180_v14, %v12132_v11  ;;  %v13112_v34 = vld [vmem:[#allocation2 + $0x1dac] sm:$0xf0]  ;;  %6680 = vmatpush.bf16.msrb.mxu1 %v11877_v18  ;;  %v6429_v14 = vadd.f32 %v6428_v63, %v6416_v61 }
  0xf2   :  { %v11860_v27 = vld [vmem:[#allocation2 + $0x1da0] sm:$0xf]  ;;  %v13144_v36 = vld [vmem:[#allocation2 + $0x1eac] sm:$0xf0]  ;;  %v11733_v43 = vor.u32 %v13080_v26, %v11732_v24  ;;  %6693 = vmatpush.bf16.msrb.mxu2 %v12005_v19 }
  0xf3   :  { %v11988_v22 = vld [vmem:[#allocation2 + $0x1ea0] sm:$0xf]  ;;  %v13176_v40 = vld [vmem:[#allocation2 + $0x1fac] sm:$0xf0]  ;;  %v11861_v47 = vor.u32 %v13112_v34, %v11860_v27  ;;  %6706 = vmatpush.bf16.msrb.mxu3 %v12133_v32 }
  0xf4   :  { %v12116_v39 = vld [vmem:[#allocation2 + $0x1fa0] sm:$0xf]  ;;  %v11989_v48 = vor.u32 %v13144_v36, %v11988_v22  ;;  %v13076_v51 = vld [vmem:[#allocation2 + $0x1c8c] sm:$0xf0]  ;;  %6668 = vmatpush.bf16.msrb.mxu0 %v11733_v43 }
  0xf5   :  { %v11716_v50 = vld [vmem:[#allocation2 + $0x1c80] sm:$0xf]  ;;  %v12117_v54 = vor.u32 %v13176_v40, %v12116_v39  ;;  %v13108_v55 = vld [vmem:[#allocation2 + $0x1d8c] sm:$0xf0]  ;;  %6681 = vmatpush.bf16.msrb.mxu1 %v11861_v47  ;;  %v6441_v40 = vpop.f32.mrf.mxu2 }
  0xf6   :  { %v11844_v53 = vld [vmem:[#allocation2 + $0x1d80] sm:$0xf]  ;;  %v13140_v57 = vld [vmem:[#allocation2 + $0x1e8c] sm:$0xf0]  ;;  %v11717_v62 = vor.u32 %v13076_v51, %v11716_v50  ;;  %6694 = vmatpush.bf16.msrb.mxu2 %v11989_v48  ;;  %v6442_v50 = vadd.f32 %v6441_v40, %v6429_v14  ;;  %v6454_v51 = vpop.f32.mrf.mxu3  ;;  %v45_v40 = vld [vmem:[%s13606_s0 + $0x78] sm:$0xff] }
  0xf7   :  { %v11972_v56 = vld [vmem:[#allocation2 + $0x1e80] sm:$0xf]  ;;  %v13172_v60 = vld [vmem:[#allocation2 + $0x1f8c] sm:$0xf0]  ;;  %v11845_v0 = vor.u32 %v13108_v55, %v11844_v53  ;;  %6707 = vmatpush.bf16.msrb.mxu3 %v12117_v54  ;;  %v6417_v55 = vpop.f32.mrf.mxu0 }
  0xf8   :  { %v12100_v59 = vld [vmem:[#allocation2 + $0x1f80] sm:$0xf]  ;;  %v11973_v1 = vor.u32 %v13140_v57, %v11972_v56  ;;  %v13072_v5 = vld [vmem:[#allocation2 + $0x1c6c] sm:$0xf0]  ;;  %6669 = vmatpush.bf16.msrb.mxu0 %v11717_v62  ;;  %v6430_v57 = vpop.f32.mrf.mxu1  ;;  %v13378_v58 = vadd.f32 %v6454_v51, %v6442_v50  ;;  %v12222_v50 = vld [vmem:[#allocation2 + $0x1e4] sm:$0xf] }
  0xf9   :  { %v11700_v3 = vld [vmem:[#allocation2 + $0x1c60] sm:$0xf]  ;;  %v12101_v11 = vor.u32 %v13172_v60, %v12100_v59  ;;  %v13104_v17 = vld [vmem:[#allocation2 + $0x1d6c] sm:$0xf0]  ;;  %6682 = vmatpush.bf16.msrb.mxu1 %v11845_v0  ;;  %v12254_v55 = vld [vmem:[#allocation2 + $0x2e4] sm:$0xf] }
  0xfa   :  { %v11828_v7 = vld [vmem:[#allocation2 + $0x1d60] sm:$0xf]  ;;  %v13136_v19 = vld [vmem:[#allocation2 + $0x1e6c] sm:$0xf0]  ;;  %v11701_v27 = vor.u32 %v13072_v5, %v11700_v3  ;;  %6695 = vmatpush.bf16.msrb.mxu2 %v11973_v1 }
  0xfb   :  { %v11956_v18 = vld [vmem:[#allocation2 + $0x1e60] sm:$0xf]  ;;  %v13168_v26 = vld [vmem:[#allocation2 + $0x1f6c] sm:$0xf0]  ;;  %v11829_v52 = vor.u32 %v13104_v17, %v11828_v7  ;;  %6708 = vmatpush.bf16.msrb.mxu3 %v12101_v11 }
  0xfc   :  { %v12084_v24 = vld [vmem:[#allocation2 + $0x1f60] sm:$0xf]  ;;  %v11957_v32 = vor.u32 %v13136_v19, %v11956_v18  ;;  %v13068_v22 = vld [vmem:[#allocation2 + $0x1c4c] sm:$0xf0]  ;;  %6670 = vmatpush.bf16.msrb.mxu0 %v11701_v27 }
  0xfd   :  { %v11684_v34 = vld [vmem:[#allocation2 + $0x1c40] sm:$0xf]  ;;  %v12085_v39 = vor.u32 %v13168_v26, %v12084_v24  ;;  %v13100_v43 = vld [vmem:[#allocation2 + $0x1d4c] sm:$0xf0]  ;;  %6683 = vmatpush.bf16.msrb.mxu1 %v11829_v52 }
  0xfe   :  { %v11812_v36 = vld [vmem:[#allocation2 + $0x1d40] sm:$0xf]  ;;  %v13132_v48 = vld [vmem:[#allocation2 + $0x1e4c] sm:$0xf0]  ;;  %v11685_v56 = vor.u32 %v13068_v22, %v11684_v34  ;;  %6696 = vmatpush.bf16.msrb.mxu2 %v11957_v32  ;;  %v6456_v51 = vpop.f32.mrf.mxu3 }
  0xff   :  { %v11940_v47 = vld [vmem:[#allocation2 + $0x1e40] sm:$0xf]  ;;  %v13164_v54 = vld [vmem:[#allocation2 + $0x1f4c] sm:$0xf0]  ;;  %v11813_v59 = vor.u32 %v13100_v43, %v11812_v36  ;;  %6709 = vmatpush.bf16.msrb.mxu3 %v12085_v39  ;;  %v6443_v43 = vpop.f32.mrf.mxu2 }
 0x100   :  { %v12068_v53 = vld [vmem:[#allocation2 + $0x1f40] sm:$0xf]  ;;  %v11941_v60 = vor.u32 %v13132_v48, %v11940_v47  ;;  %v13064_v62 = vld [vmem:[#allocation2 + $0x1c2c] sm:$0xf0]  ;;  %6671 = vmatpush.bf16.msrb.mxu0 %v11685_v56  ;;  %v12190_v47 = vld [vmem:[#allocation2 + $0xe4] sm:$0xf] }
 0x101   :  { %v11668_v61 = vld [vmem:[#allocation2 + $0x1c20] sm:$0xf]  ;;  %v12069_v0 = vor.u32 %v13164_v54, %v12068_v53  ;;  %v13096_v1 = vld [vmem:[#allocation2 + $0x1d2c] sm:$0xf0]  ;;  %6684 = vmatpush.bf16.msrb.mxu1 %v11813_v59  ;;  %v8182_v48 = vld [vmem:[#allocation2 + $0xf0] sm:$0xf0] }
 0x102   :  { %v11796_v63 = vld [vmem:[#allocation2 + $0x1d20] sm:$0xf]  ;;  %v13128_v5 = vld [vmem:[#allocation2 + $0x1e2c] sm:$0xf0]  ;;  %v11669_v17 = vor.u32 %v13064_v62, %v11668_v61  ;;  %6697 = vmatpush.bf16.msrb.mxu2 %v11941_v60  ;;  %v8310_v54 = vld [vmem:[#allocation2 + $0x1f0] sm:$0xf0] }
 0x103   :  { %v11924_v3 = vld [vmem:[#allocation2 + $0x1e20] sm:$0xf]  ;;  %v13160_v11 = vld [vmem:[#allocation2 + $0x1f2c] sm:$0xf0]  ;;  %v11797_v26 = vor.u32 %v13096_v1, %v11796_v63  ;;  %6710 = vmatpush.bf16.msrb.mxu3 %v12069_v0  ;;  %v8438_v56 = vld [vmem:[#allocation2 + $0x2f0] sm:$0xf0]  ;;  %v1116_v63 = vunpack.c.l.b16 %v45_v40 }
 0x104   :  { %v12052_v7 = vld [vmem:[#allocation2 + $0x1f20] sm:$0xf]  ;;  %v13060_v18 = vld [vmem:[#allocation2 + $0x1c0c] sm:$0xf0]  ;;  %v11925_v27 = vor.u32 %v13128_v5, %v11924_v3  ;;  %6672 = vmatpush.bf16.msrb.mxu0 %v11669_v17  ;;  %v12286_v61 = vld [vmem:[#allocation2 + $0x3e4] sm:$0xf]  ;;  %v8185_v3 = vor.u32 %v12190_v47, %v8182_v48  ;;  %v1117_v5 = vunpack.c.h.b16 %v45_v40 }
 0x105   :  { %v11652_v14 = vld [vmem:[#allocation2 + $0x1c00] sm:$0xf]  ;;  %v13092_v24 = vld [vmem:[#allocation2 + $0x1d0c] sm:$0xf0]  ;;  %v12053_v22 = vor.u32 %v13160_v11, %v12052_v7  ;;  %6685 = vmatpush.bf16.msrb.mxu1 %v11797_v26  ;;  %v8566_v62 = vld [vmem:[#allocation2 + $0x3f0] sm:$0xf0]  ;;  %v8313_v7 = vor.u32 %v12222_v50, %v8310_v54  ;;  %v8441_v11 = vor.u32 %v12254_v55, %v8438_v56 }
 0x106   :  { %v11780_v19 = vld [vmem:[#allocation2 + $0x1d00] sm:$0xf]  ;;  %v13124_v32 = vld [vmem:[#allocation2 + $0x1e0c] sm:$0xf0]  ;;  %v11653_v53 = vor.u32 %v13060_v18, %v11652_v14  ;;  %6698 = vmatpush.bf16.msrb.mxu2 %v11925_v27  ;;  %v12186_v17 = vld [vmem:[#allocation2 + $0xc4] sm:$0xf]  ;;  %v8569_v43 = vor.u32 %v12286_v61, %v8566_v62  ;;  %v13388_v27 = vpack.c.b16 %v1116_v63, %v1116_v63 }
 0x107   :  { %v11908_v52 = vld [vmem:[#allocation2 + $0x1e00] sm:$0xf]  ;;  %v44_v34 = vld [vmem:[%s13606_s0 + $0x70] sm:$0xff]  ;;  %v11781_v59 = vor.u32 %v13092_v24, %v11780_v19  ;;  %6711 = vmatpush.bf16.msrb.mxu3 %v12053_v22  ;;  %v12218_v18 = vld [vmem:[#allocation2 + $0x1c4] sm:$0xf]  ;;  %v13392_v22 = vpack.c.b16 %v1117_v5, %v1117_v5 }
 0x108   :  { %v12036_v36 = vld [vmem:[#allocation2 + $0x1f00] sm:$0xf]  ;;  %v13156_v39 = vld [vmem:[#allocation2 + $0x1f0c] sm:$0xf0]  ;;  %v1114_v57 = vunpack.c.l.b16 %v44_v34  ;;  %v11909_v60 = vor.u32 %v13124_v32, %v11908_v52  ;;  %v1115_v0 = vunpack.c.h.b16 %v44_v34  ;;  %v8166_v14 = vld [vmem:[#allocation2 + $0xd0] sm:$0xf0]  ;;  %6673 = vmatpush.bf16.msrb.mxu0 %v11653_v53 }
 0x109   :  { %v12037_v1 = vor.u32 %v13156_v39, %v12036_v36  ;;  %v8294_v26 = vld [vmem:[#allocation2 + $0x1d0] sm:$0xf0]  ;;  %v12250_v19 = vld [vmem:[#allocation2 + $0x2c4] sm:$0xf]  ;;  %6686 = vmatpush.bf16.msrb.mxu1 %v11781_v59  ;;  %v8169_v36 = vor.u32 %v12186_v17, %v8166_v14  ;;  %v6467_v17 = vpop.f32.mrf.mxu0 }
 0x10a   :  { %v13386_v51 = vpack.c.b16 %v1114_v57, %v1114_v57  ;;  %v8422_v24 = vld [vmem:[#allocation2 + $0x2d0] sm:$0xf0]  ;;  %6699 = vmatpush.bf16.msrb.mxu2 %v11909_v60  ;;  %v13390_v52 = vpack.c.b16 %v1115_v0, %v1115_v0  ;;  %v12282_v32 = vld [vmem:[#allocation2 + $0x3c4] sm:$0xf]  ;;  %v8297_v39 = vor.u32 %v12218_v18, %v8294_v26 }
 0x10b   :  { %v8550_v34 = vld [vmem:[#allocation2 + $0x3d0] sm:$0xf0]  ;;  %6712 = vmatpush.bf16.msrb.mxu3 %v12037_v1  ;;  %v8425_v40 = vor.u32 %v12250_v19, %v8422_v24  ;;  %v12182_v47 = vld [vmem:[#allocation2 + $0xa4] sm:$0xf]  ;;  %v6480_v19 = vpop.f32.mrf.mxu1 }
 0x10c   :  { %6718 = vmatpush.bf16.msra.mxu0 %v8185_v3  ;;  %v8150_v48 = vld [vmem:[#allocation2 + $0xb0] sm:$0xf0]  ;;  %v12214_v50 = vld [vmem:[#allocation2 + $0x1a4] sm:$0xf]  ;;  %v8553_v53 = vor.u32 %v12282_v32, %v8550_v34  ;;  %6687 = vmatmul.bf16.vlgmr.msrb.gmra.mxu1 %v13390_v52 }
 0x10d   :  { %6731 = vmatpush.bf16.msra.mxu1 %v8313_v7  ;;  %6674 = vmatmul.bf16.vlgmr.msrb.gmra.mxu0 %v13386_v51  ;;  %v8278_v54 = vld [vmem:[#allocation2 + $0x1b0] sm:$0xf0]  ;;  %v12246_v55 = vld [vmem:[#allocation2 + $0x2a4] sm:$0xf]  ;;  %v8153_v60 = vor.u32 %v12182_v47, %v8150_v48 }
 0x10e   :  { %6744 = vmatpush.bf16.msra.mxu2 %v8441_v11  ;;  %v8406_v56 = vld [vmem:[#allocation2 + $0x2b0] sm:$0xf0]  ;;  %v12278_v57 = vld [vmem:[#allocation2 + $0x3a4] sm:$0xf]  ;;  %6713 = vmatmul.bf16.vlgmr.msrb.gmra.mxu3 %v13392_v22  ;;  %v8281_v61 = vor.u32 %v12214_v50, %v8278_v54 }
 0x10f   :  { %6757 = vmatpush.bf16.msra.mxu3 %v8569_v43  ;;  %6700 = vmatmul.bf16.vlgmr.msrb.gmra.mxu2 %v13388_v27  ;;  %v8534_v59 = vld [vmem:[#allocation2 + $0x3b0] sm:$0xf0]  ;;  %v8409_v62 = vor.u32 %v12246_v55, %v8406_v56  ;;  %v12178_v63 = vld [vmem:[#allocation2 + $0x84] sm:$0xf]  ;;  %v6468_v43 = vadd.f32 %v6467_v17, %v13378_v58 }
 0x110   :  { %6719 = vmatpush.bf16.msra.mxu0 %v8169_v36  ;;  %v8134_v0 = vld [vmem:[#allocation2 + $0x90] sm:$0xf0]  ;;  %v12210_v1 = vld [vmem:[#allocation2 + $0x184] sm:$0xf]  ;;  %v8537_v3 = vor.u32 %v12278_v57, %v8534_v59 }
 0x111   :  { %6732 = vmatpush.bf16.msra.mxu1 %v8297_v39  ;;  %v8262_v5 = vld [vmem:[#allocation2 + $0x190] sm:$0xf0]  ;;  %v12242_v7 = vld [vmem:[#allocation2 + $0x284] sm:$0xf]  ;;  %v8137_v26 = vor.u32 %v12178_v63, %v8134_v0  ;;  %v6481_v47 = vadd.f32 %v6480_v19, %v6468_v43  ;;  %v6493_v63 = vpop.f32.mrf.mxu2 }
 0x112   :  { %6745 = vmatpush.bf16.msra.mxu2 %v8425_v40  ;;  %v8390_v11 = vld [vmem:[#allocation2 + $0x290] sm:$0xf0]  ;;  %v12274_v14 = vld [vmem:[#allocation2 + $0x384] sm:$0xf]  ;;  %v8265_v24 = vor.u32 %v12210_v1, %v8262_v5 }
 0x113   :  { %6758 = vmatpush.bf16.msra.mxu3 %v8553_v53  ;;  %v8518_v18 = vld [vmem:[#allocation2 + $0x390] sm:$0xf0]  ;;  %v8393_v32 = vor.u32 %v12242_v7, %v8390_v11  ;;  %v12174_v34 = vld [vmem:[#allocation2 + $0x64] sm:$0xf]  ;;  %v6494_v5 = vadd.f32 %v6493_v63, %v6481_v47  ;;  %v6506_v7 = vpop.f32.mrf.mxu3  ;;  %v6482_v43 = vpop.f32.mrf.mxu1 }
 0x114   :  { %6720 = vmatpush.bf16.msra.mxu0 %v8153_v60  ;;  %v8118_v36 = vld [vmem:[#allocation2 + $0x70] sm:$0xf0]  ;;  %v12206_v39 = vld [vmem:[#allocation2 + $0x164] sm:$0xf]  ;;  %v8521_v40 = vor.u32 %v12274_v14, %v8518_v18  ;;  %v6469_v14 = vpop.f32.mrf.mxu0 }
 0x115   :  { %6733 = vmatpush.bf16.msra.mxu1 %v8281_v61  ;;  %v8246_v48 = vld [vmem:[#allocation2 + $0x170] sm:$0xf0]  ;;  %v12238_v50 = vld [vmem:[#allocation2 + $0x264] sm:$0xf]  ;;  %v8121_v56 = vor.u32 %v12174_v34, %v8118_v36 }
 0x116   :  { %6746 = vmatpush.bf16.msra.mxu2 %v8409_v62  ;;  %v8374_v53 = vld [vmem:[#allocation2 + $0x270] sm:$0xf0]  ;;  %v12270_v54 = vld [vmem:[#allocation2 + $0x364] sm:$0xf]  ;;  %v8249_v58 = vor.u32 %v12206_v39, %v8246_v48 }
 0x117   :  { %6759 = vmatpush.bf16.msra.mxu3 %v8537_v3  ;;  %v8502_v55 = vld [vmem:[#allocation2 + $0x370] sm:$0xf0]  ;;  %v8377_v57 = vor.u32 %v12238_v50, %v8374_v53  ;;  %v12170_v59 = vld [vmem:[#allocation2 + $0x44] sm:$0xf] }
 0x118   :  { %6721 = vmatpush.bf16.msra.mxu0 %v8137_v26  ;;  %v8102_v60 = vld [vmem:[#allocation2 + $0x50] sm:$0xf0]  ;;  %v12202_v61 = vld [vmem:[#allocation2 + $0x144] sm:$0xf]  ;;  %v8505_v62 = vor.u32 %v12270_v54, %v8502_v55  ;;  %v13399_v26 = vadd.f32 %v6506_v7, %v6494_v5 }
 0x119   :  { %6734 = vmatpush.bf16.msra.mxu1 %v8265_v24  ;;  %v8230_v0 = vld [vmem:[#allocation2 + $0x150] sm:$0xf0]  ;;  %v12234_v1 = vld [vmem:[#allocation2 + $0x244] sm:$0xf]  ;;  %v8105_v18 = vor.u32 %v12170_v59, %v8102_v60 }
 0x11a   :  { %6747 = vmatpush.bf16.msra.mxu2 %v8393_v32  ;;  %v8358_v3 = vld [vmem:[#allocation2 + $0x250] sm:$0xf0]  ;;  %v12266_v11 = vld [vmem:[#allocation2 + $0x344] sm:$0xf]  ;;  %v8233_v19 = vor.u32 %v12202_v61, %v8230_v0 }
 0x11b   :  { %6760 = vmatpush.bf16.msra.mxu3 %v8521_v40  ;;  %v8486_v17 = vld [vmem:[#allocation2 + $0x350] sm:$0xf0]  ;;  %v8361_v24 = vor.u32 %v12234_v1, %v8358_v3  ;;  %v12166_v32 = vld [vmem:[#allocation2 + $0x24] sm:$0xf]  ;;  %v6495_v3 = vpop.f32.mrf.mxu2 }
 0x11c   :  { %6722 = vmatpush.bf16.msra.mxu0 %v8121_v56  ;;  %v8086_v34 = vld [vmem:[#allocation2 + $0x30] sm:$0xf0]  ;;  %v12198_v36 = vld [vmem:[#allocation2 + $0x124] sm:$0xf]  ;;  %v8489_v39 = vor.u32 %v12266_v11, %v8486_v17  ;;  %v6508_v17 = vpop.f32.mrf.mxu3 }
 0x11d   :  { %6735 = vmatpush.bf16.msra.mxu1 %v8249_v58  ;;  %v8214_v40 = vld [vmem:[#allocation2 + $0x130] sm:$0xf0]  ;;  %v12230_v47 = vld [vmem:[#allocation2 + $0x224] sm:$0xf]  ;;  %v8089_v54 = vor.u32 %v12166_v32, %v8086_v34 }
 0x11e   :  { %6748 = vmatpush.bf16.msra.mxu2 %v8377_v57  ;;  %v8342_v48 = vld [vmem:[#allocation2 + $0x230] sm:$0xf0]  ;;  %v12262_v50 = vld [vmem:[#allocation2 + $0x324] sm:$0xf]  ;;  %v8217_v58 = vor.u32 %v12198_v36, %v8214_v40 }
 0x11f   :  { %6761 = vmatpush.bf16.msra.mxu3 %v8505_v62  ;;  %v8470_v53 = vld [vmem:[#allocation2 + $0x330] sm:$0xf0]  ;;  %v12162_v55 = vld [vmem:[#allocation2 + $0x4] sm:$0xf]  ;;  %v8345_v57 = vor.u32 %v12230_v47, %v8342_v48 }
 0x120   :  { %6723 = vmatpush.bf16.msra.mxu0 %v8105_v18  ;;  %v8070_v56 = vld [vmem:[#allocation2 + $0x10] sm:$0xf0]  ;;  %v12194_v59 = vld [vmem:[#allocation2 + $0x104] sm:$0xf]  ;;  %v8473_v63 = vor.u32 %v12262_v50, %v8470_v53 }
 0x121   :  { %6736 = vmatpush.bf16.msra.mxu1 %v8233_v19  ;;  %v8198_v60 = vld [vmem:[#allocation2 + $0x110] sm:$0xf0]  ;;  %v12226_v61 = vld [vmem:[#allocation2 + $0x204] sm:$0xf]  ;;  %v8073_v14 = vor.u32 %v12162_v55, %v8070_v56 }
 0x122   :  { %6749 = vmatpush.bf16.msra.mxu2 %v8361_v24  ;;  %v8326_v62 = vld [vmem:[#allocation2 + $0x210] sm:$0xf0]  ;;  %v12258_v0 = vld [vmem:[#allocation2 + $0x304] sm:$0xf]  ;;  %v8201_v24 = vor.u32 %v12194_v59, %v8198_v60 }
 0x123   :  { %6762 = vmatpush.bf16.msra.mxu3 %v8489_v39  ;;  %v8454_v1 = vld [vmem:[#allocation2 + $0x310] sm:$0xf0]  ;;  %v12318_v5 = vld [vmem:[#allocation2 + $0x4e4] sm:$0xf]  ;;  %v8329_v32 = vor.u32 %v12226_v61, %v8326_v62 }
 0x124   :  { %v8694_v7 = vld [vmem:[#allocation2 + $0x4f0] sm:$0xf0]  ;;  %v12350_v11 = vld [vmem:[#allocation2 + $0x5e4] sm:$0xf]  ;;  %6724 = vmatpush.bf16.msra.mxu0 %v8089_v54  ;;  %v8457_v39 = vor.u32 %v12258_v0, %v8454_v1 }
 0x125   :  { %v8822_v18 = vld [vmem:[#allocation2 + $0x5f0] sm:$0xf0]  ;;  %v12382_v43 = vld [vmem:[#allocation2 + $0x6e4] sm:$0xf]  ;;  %6737 = vmatpush.bf16.msra.mxu1 %v8217_v58  ;;  %v8697_v40 = vor.u32 %v12318_v5, %v8694_v7 }
 0x126   :  { %v8950_v19 = vld [vmem:[#allocation2 + $0x6f0] sm:$0xf0]  ;;  %6750 = vmatpush.bf16.msra.mxu2 %v8345_v57  ;;  %v12414_v34 = vld [vmem:[#allocation2 + $0x7e4] sm:$0xf]  ;;  %v8825_v47 = vor.u32 %v12350_v11, %v8822_v18 }
 0x127   :  { %v9078_v36 = vld [vmem:[#allocation2 + $0x7f0] sm:$0xf0]  ;;  %6763 = vmatpush.bf16.msra.mxu3 %v8473_v63  ;;  %v8953_v48 = vor.u32 %v12382_v43, %v8950_v19  ;;  %v12314_v50 = vld [vmem:[#allocation2 + $0x4c4] sm:$0xf] }
 0x128   :  { %v8678_v53 = vld [vmem:[#allocation2 + $0x4d0] sm:$0xf0]  ;;  %v12346_v3 = vld [vmem:[#allocation2 + $0x5c4] sm:$0xf]  ;;  %6725 = vmatpush.bf16.msra.mxu0 %v8073_v14  ;;  %v9081_v54 = vor.u32 %v12414_v34, %v9078_v36 }
 0x129   :  { %v8806_v55 = vld [vmem:[#allocation2 + $0x5d0] sm:$0xf0]  ;;  %v12378_v56 = vld [vmem:[#allocation2 + $0x6c4] sm:$0xf]  ;;  %6738 = vmatpush.bf16.msra.mxu1 %v8201_v24  ;;  %v8681_v59 = vor.u32 %v12314_v50, %v8678_v53  ;;  %v6519_v50 = vpop.f32.mrf.mxu0 }
 0x12a   :  { %v8934_v17 = vld [vmem:[#allocation2 + $0x6d0] sm:$0xf0]  ;;  %6751 = vmatpush.bf16.msra.mxu2 %v8329_v32  ;;  %v12410_v58 = vld [vmem:[#allocation2 + $0x7c4] sm:$0xf]  ;;  %v8809_v60 = vor.u32 %v12346_v3, %v8806_v55 }
 0x12b   :  { %v9062_v57 = vld [vmem:[#allocation2 + $0x7d0] sm:$0xf0]  ;;  %6764 = vmatpush.bf16.msra.mxu3 %v8457_v39  ;;  %v8937_v61 = vor.u32 %v12378_v56, %v8934_v17  ;;  %v12310_v63 = vld [vmem:[#allocation2 + $0x4a4] sm:$0xf]  ;;  %6726 = vmatmul.bf16.vlgmr.msra.gmra.mxu0 %v13257_v20  ;;  %v6532_v56 = vpop.f32.mrf.mxu1 }
 0x12c   :  { %6770 = vmatpush.bf16.msrb.mxu0 %v8697_v40  ;;  %v8662_v62 = vld [vmem:[#allocation2 + $0x4b0] sm:$0xf0]  ;;  %v12342_v0 = vld [vmem:[#allocation2 + $0x5a4] sm:$0xf]  ;;  %v9065_v1 = vor.u32 %v12410_v58, %v9062_v57  ;;  %6739 = vmatmul.bf16.vlgmr.msra.gmra.mxu1 %v13260_v21 }
 0x12d   :  { %6783 = vmatpush.bf16.msrb.mxu1 %v8825_v47  ;;  %v8790_v5 = vld [vmem:[#allocation2 + $0x5b0] sm:$0xf0]  ;;  %v12374_v7 = vld [vmem:[#allocation2 + $0x6a4] sm:$0xf]  ;;  %6752 = vmatmul.bf16.vlgmr.msra.gmra.mxu2 %v13249_v4  ;;  %v8665_v43 = vor.u32 %v12310_v63, %v8662_v62 }
 0x12e   :  { %6796 = vmatpush.bf16.msrb.mxu2 %v8953_v48  ;;  %v8918_v11 = vld [vmem:[#allocation2 + $0x6b0] sm:$0xf0]  ;;  %v12406_v14 = vld [vmem:[#allocation2 + $0x7a4] sm:$0xf]  ;;  %6765 = vmatmul.bf16.vlgmr.msra.gmra.mxu3 %v13254_v6  ;;  %v8793_v19 = vor.u32 %v12342_v0, %v8790_v5 }
 0x12f   :  { %6809 = vmatpush.bf16.msrb.mxu3 %v9081_v54  ;;  %v9046_v18 = vld [vmem:[#allocation2 + $0x7b0] sm:$0xf0]  ;;  %v8921_v24 = vor.u32 %v12374_v7, %v8918_v11  ;;  %v12306_v32 = vld [vmem:[#allocation2 + $0x484] sm:$0xf]  ;;  %v6520_v54 = vadd.f32 %v6519_v50, %v13399_v26 }
 0x130   :  { %6771 = vmatpush.bf16.msrb.mxu0 %v8681_v59  ;;  %v8646_v34 = vld [vmem:[#allocation2 + $0x490] sm:$0xf0]  ;;  %v12338_v36 = vld [vmem:[#allocation2 + $0x584] sm:$0xf]  ;;  %v9049_v39 = vor.u32 %v12406_v14, %v9046_v18 }
 0x131   :  { %6784 = vmatpush.bf16.msrb.mxu1 %v8809_v60  ;;  %v8774_v40 = vld [vmem:[#allocation2 + $0x590] sm:$0xf0]  ;;  %v12370_v47 = vld [vmem:[#allocation2 + $0x684] sm:$0xf]  ;;  %v8649_v55 = vor.u32 %v12306_v32, %v8646_v34  ;;  %v6533_v63 = vadd.f32 %v6532_v56, %v6520_v54  ;;  %v6545_v32 = vpop.f32.mrf.mxu2 }
 0x132   :  { %6797 = vmatpush.bf16.msrb.mxu2 %v8937_v61  ;;  %v8902_v48 = vld [vmem:[#allocation2 + $0x690] sm:$0xf0]  ;;  %v12402_v53 = vld [vmem:[#allocation2 + $0x784] sm:$0xf]  ;;  %v8777_v17 = vor.u32 %v12338_v36, %v8774_v40 }
 0x133   :  { %6810 = vmatpush.bf16.msrb.mxu3 %v9065_v1  ;;  %v9030_v3 = vld [vmem:[#allocation2 + $0x790] sm:$0xf0]  ;;  %v8905_v58 = vor.u32 %v12370_v47, %v8902_v48  ;;  %v12302_v57 = vld [vmem:[#allocation2 + $0x464] sm:$0xf]  ;;  %v6546_v40 = vadd.f32 %v6545_v32, %v6533_v63  ;;  %v6558_v47 = vpop.f32.mrf.mxu3  ;;  %v6534_v54 = vpop.f32.mrf.mxu1 }
 0x134   :  { %6772 = vmatpush.bf16.msrb.mxu0 %v8665_v43  ;;  %v8630_v59 = vld [vmem:[#allocation2 + $0x470] sm:$0xf0]  ;;  %v12334_v60 = vld [vmem:[#allocation2 + $0x564] sm:$0xf]  ;;  %v9033_v61 = vor.u32 %v12402_v53, %v9030_v3  ;;  %v6521_v53 = vpop.f32.mrf.mxu0 }
 0x135   :  { %6785 = vmatpush.bf16.msrb.mxu1 %v8793_v19  ;;  %v8758_v62 = vld [vmem:[#allocation2 + $0x570] sm:$0xf0]  ;;  %v12366_v0 = vld [vmem:[#allocation2 + $0x664] sm:$0xf]  ;;  %v8633_v11 = vor.u32 %v12302_v57, %v8630_v59 }
 0x136   :  { %6798 = vmatpush.bf16.msrb.mxu2 %v8921_v24  ;;  %v8886_v1 = vld [vmem:[#allocation2 + $0x670] sm:$0xf0]  ;;  %v12398_v5 = vld [vmem:[#allocation2 + $0x764] sm:$0xf]  ;;  %v8761_v26 = vor.u32 %v12334_v60, %v8758_v62 }
 0x137   :  { %6811 = vmatpush.bf16.msrb.mxu3 %v9049_v39  ;;  %v9014_v7 = vld [vmem:[#allocation2 + $0x770] sm:$0xf0]  ;;  %v8889_v14 = vor.u32 %v12366_v0, %v8886_v1  ;;  %v12298_v18 = vld [vmem:[#allocation2 + $0x444] sm:$0xf] }
 0x138   :  { %6773 = vmatpush.bf16.msrb.mxu0 %v8649_v55  ;;  %v8614_v43 = vld [vmem:[#allocation2 + $0x450] sm:$0xf0]  ;;  %v12330_v19 = vld [vmem:[#allocation2 + $0x544] sm:$0xf]  ;;  %v9017_v24 = vor.u32 %v12398_v5, %v9014_v7  ;;  %v13406_v55 = vadd.f32 %v6558_v47, %v6546_v40 }
 0x139   :  { %6786 = vmatpush.bf16.msrb.mxu1 %v8777_v17  ;;  %v8742_v34 = vld [vmem:[#allocation2 + $0x550] sm:$0xf0]  ;;  %v12362_v36 = vld [vmem:[#allocation2 + $0x644] sm:$0xf]  ;;  %v8617_v3 = vor.u32 %v12298_v18, %v8614_v43 }
 0x13a   :  { %6799 = vmatpush.bf16.msrb.mxu2 %v8905_v58  ;;  %v8870_v39 = vld [vmem:[#allocation2 + $0x650] sm:$0xf0]  ;;  %v12394_v48 = vld [vmem:[#allocation2 + $0x744] sm:$0xf]  ;;  %v8745_v56 = vor.u32 %v12330_v19, %v8742_v34 }
 0x13b   :  { %6812 = vmatpush.bf16.msrb.mxu3 %v9033_v61  ;;  %v8998_v50 = vld [vmem:[#allocation2 + $0x750] sm:$0xf0]  ;;  %v8873_v17 = vor.u32 %v12362_v36, %v8870_v39  ;;  %v12294_v58 = vld [vmem:[#allocation2 + $0x424] sm:$0xf]  ;;  %v6547_v39 = vpop.f32.mrf.mxu2 }
 0x13c   :  { %6774 = vmatpush.bf16.msrb.mxu0 %v8633_v11  ;;  %v8598_v57 = vld [vmem:[#allocation2 + $0x430] sm:$0xf0]  ;;  %v12326_v59 = vld [vmem:[#allocation2 + $0x524] sm:$0xf]  ;;  %v9001_v60 = vor.u32 %v12394_v48, %v8998_v50  ;;  %v6560_v50 = vpop.f32.mrf.mxu3 }
 0x13d   :  { %6787 = vmatpush.bf16.msrb.mxu1 %v8761_v26  ;;  %v8726_v61 = vld [vmem:[#allocation2 + $0x530] sm:$0xf0]  ;;  %v12358_v63 = vld [vmem:[#allocation2 + $0x624] sm:$0xf]  ;;  %v8601_v5 = vor.u32 %v12294_v58, %v8598_v57 }
 0x13e   :  { %6800 = vmatpush.bf16.msrb.mxu2 %v8889_v14  ;;  %v8854_v62 = vld [vmem:[#allocation2 + $0x630] sm:$0xf0]  ;;  %v12390_v0 = vld [vmem:[#allocation2 + $0x724] sm:$0xf]  ;;  %v8729_v26 = vor.u32 %v12326_v59, %v8726_v61 }
 0x13f   :  { %6813 = vmatpush.bf16.msrb.mxu3 %v9017_v24  ;;  %v8982_v1 = vld [vmem:[#allocation2 + $0x730] sm:$0xf0]  ;;  %v12290_v7 = vld [vmem:[#allocation2 + $0x404] sm:$0xf]  ;;  %v8857_v14 = vor.u32 %v12358_v63, %v8854_v62 }
 0x140   :  { %6775 = vmatpush.bf16.msrb.mxu0 %v8617_v3  ;;  %v8582_v11 = vld [vmem:[#allocation2 + $0x410] sm:$0xf0]  ;;  %v12322_v18 = vld [vmem:[#allocation2 + $0x504] sm:$0xf]  ;;  %v8985_v32 = vor.u32 %v12390_v0, %v8982_v1 }
 0x141   :  { %6788 = vmatpush.bf16.msrb.mxu1 %v8745_v56  ;;  %v8710_v43 = vld [vmem:[#allocation2 + $0x510] sm:$0xf0]  ;;  %v12354_v19 = vld [vmem:[#allocation2 + $0x604] sm:$0xf]  ;;  %v8585_v53 = vor.u32 %v12290_v7, %v8582_v11 }
 0x142   :  { %6801 = vmatpush.bf16.msrb.mxu2 %v8873_v17  ;;  %v8838_v24 = vld [vmem:[#allocation2 + $0x610] sm:$0xf0]  ;;  %v12386_v34 = vld [vmem:[#allocation2 + $0x704] sm:$0xf]  ;;  %v8713_v17 = vor.u32 %v12322_v18, %v8710_v43 }
 0x143   :  { %6814 = vmatpush.bf16.msrb.mxu3 %v9001_v60  ;;  %v8966_v36 = vld [vmem:[#allocation2 + $0x710] sm:$0xf0]  ;;  %v12446_v40 = vld [vmem:[#allocation2 + $0x8e4] sm:$0xf]  ;;  %v8841_v58 = vor.u32 %v12354_v19, %v8838_v24 }
 0x144   :  { %v9206_v47 = vld [vmem:[#allocation2 + $0x8f0] sm:$0xf0]  ;;  %v12478_v48 = vld [vmem:[#allocation2 + $0x9e4] sm:$0xf]  ;;  %6776 = vmatpush.bf16.msrb.mxu0 %v8601_v5  ;;  %v8969_v60 = vor.u32 %v12386_v34, %v8966_v36 }
 0x145   :  { %v9334_v3 = vld [vmem:[#allocation2 + $0x9f0] sm:$0xf0]  ;;  %v12510_v54 = vld [vmem:[#allocation2 + $0xae4] sm:$0xf]  ;;  %6789 = vmatpush.bf16.msrb.mxu1 %v8729_v26  ;;  %v9209_v61 = vor.u32 %v12446_v40, %v9206_v47 }
 0x146   :  { %v9462_v56 = vld [vmem:[#allocation2 + $0xaf0] sm:$0xf0]  ;;  %6802 = vmatpush.bf16.msrb.mxu2 %v8857_v14  ;;  %v12542_v57 = vld [vmem:[#allocation2 + $0xbe4] sm:$0xf]  ;;  %v9337_v63 = vor.u32 %v12478_v48, %v9334_v3 }
 0x147   :  { %v9590_v59 = vld [vmem:[#allocation2 + $0xbf0] sm:$0xf0]  ;;  %6815 = vmatpush.bf16.msrb.mxu3 %v8985_v32  ;;  %v9465_v62 = vor.u32 %v12510_v54, %v9462_v56  ;;  %v12442_v0 = vld [vmem:[#allocation2 + $0x8c4] sm:$0xf] }
 0x148   :  { %v9190_v1 = vld [vmem:[#allocation2 + $0x8d0] sm:$0xf0]  ;;  %v12474_v39 = vld [vmem:[#allocation2 + $0x9c4] sm:$0xf]  ;;  %6777 = vmatpush.bf16.msrb.mxu0 %v8585_v53  ;;  %v9593_v5 = vor.u32 %v12542_v57, %v9590_v59 }
 0x149   :  { %v9318_v7 = vld [vmem:[#allocation2 + $0x9d0] sm:$0xf0]  ;;  %v12506_v11 = vld [vmem:[#allocation2 + $0xac4] sm:$0xf]  ;;  %6790 = vmatpush.bf16.msrb.mxu1 %v8713_v17  ;;  %v9193_v18 = vor.u32 %v12442_v0, %v9190_v1  ;;  %v6571_v0 = vpop.f32.mrf.mxu0 }
 0x14a   :  { %v9446_v50 = vld [vmem:[#allocation2 + $0xad0] sm:$0xf0]  ;;  %6803 = vmatpush.bf16.msrb.mxu2 %v8841_v58  ;;  %v12538_v26 = vld [vmem:[#allocation2 + $0xbc4] sm:$0xf]  ;;  %v9321_v43 = vor.u32 %v12474_v39, %v9318_v7 }
 0x14b   :  { %v9574_v14 = vld [vmem:[#allocation2 + $0xbd0] sm:$0xf0]  ;;  %6816 = vmatpush.bf16.msrb.mxu3 %v8969_v60  ;;  %v9449_v19 = vor.u32 %v12506_v11, %v9446_v50  ;;  %v12438_v32 = vld [vmem:[#allocation2 + $0x8a4] sm:$0xf]  ;;  %6778 = vmatmul.bf16.vlgmr.msrb.gmra.mxu0 %v13272_v41  ;;  %v6584_v11 = vpop.f32.mrf.mxu1 }
 0x14c   :  { %6822 = vmatpush.bf16.msra.mxu0 %v9209_v61  ;;  %v9174_v24 = vld [vmem:[#allocation2 + $0x8b0] sm:$0xf0]  ;;  %v12470_v34 = vld [vmem:[#allocation2 + $0x9a4] sm:$0xf]  ;;  %v9577_v36 = vor.u32 %v12538_v26, %v9574_v14  ;;  %6791 = vmatmul.bf16.vlgmr.msrb.gmra.mxu1 %v13276_v44 }
 0x14d   :  { %6835 = vmatpush.bf16.msra.mxu1 %v9337_v63  ;;  %6804 = vmatmul.bf16.vlgmr.msrb.gmra.mxu2 %v13270_v38  ;;  %v9302_v40 = vld [vmem:[#allocation2 + $0x9b0] sm:$0xf0]  ;;  %v12502_v47 = vld [vmem:[#allocation2 + $0xaa4] sm:$0xf]  ;;  %v9177_v54 = vor.u32 %v12438_v32, %v9174_v24 }
 0x14e   :  { %6848 = vmatpush.bf16.msra.mxu2 %v9465_v62  ;;  %v9430_v48 = vld [vmem:[#allocation2 + $0xab0] sm:$0xf0]  ;;  %6817 = vmatmul.bf16.vlgmr.msrb.gmra.mxu3 %v13274_v42  ;;  %v12534_v53 = vld [vmem:[#allocation2 + $0xba4] sm:$0xf]  ;;  %v9305_v56 = vor.u32 %v12470_v34, %v9302_v40 }
 0x14f   :  { %6861 = vmatpush.bf16.msra.mxu3 %v9593_v5  ;;  %v9558_v3 = vld [vmem:[#allocation2 + $0xbb0] sm:$0xf0]  ;;  %v9433_v17 = vor.u32 %v12502_v47, %v9430_v48  ;;  %v12434_v58 = vld [vmem:[#allocation2 + $0x884] sm:$0xf]  ;;  %v6572_v5 = vadd.f32 %v6571_v0, %v13406_v55 }
 0x150   :  { %6823 = vmatpush.bf16.msra.mxu0 %v9193_v18  ;;  %v9158_v57 = vld [vmem:[#allocation2 + $0x890] sm:$0xf0]  ;;  %v12466_v59 = vld [vmem:[#allocation2 + $0x984] sm:$0xf]  ;;  %v9561_v60 = vor.u32 %v12534_v53, %v9558_v3 }
 0x151   :  { %6836 = vmatpush.bf16.msra.mxu1 %v9321_v43  ;;  %v9286_v61 = vld [vmem:[#allocation2 + $0x990] sm:$0xf0]  ;;  %v12498_v63 = vld [vmem:[#allocation2 + $0xa84] sm:$0xf]  ;;  %v9161_v7 = vor.u32 %v12434_v58, %v9158_v57  ;;  %v6585_v32 = vadd.f32 %v6584_v11, %v6572_v5  ;;  %v6597_v58 = vpop.f32.mrf.mxu2 }
 0x152   :  { %6849 = vmatpush.bf16.msra.mxu2 %v9449_v19  ;;  %v9414_v62 = vld [vmem:[#allocation2 + $0xa90] sm:$0xf0]  ;;  %v12530_v1 = vld [vmem:[#allocation2 + $0xb84] sm:$0xf]  ;;  %v9289_v50 = vor.u32 %v12466_v59, %v9286_v61 }
 0x153   :  { %6862 = vmatpush.bf16.msra.mxu3 %v9577_v36  ;;  %v9542_v39 = vld [vmem:[#allocation2 + $0xb90] sm:$0xf0]  ;;  %v9417_v26 = vor.u32 %v12498_v63, %v9414_v62  ;;  %v12430_v14 = vld [vmem:[#allocation2 + $0x864] sm:$0xf]  ;;  %v6598_v61 = vadd.f32 %v6597_v58, %v6585_v32  ;;  %v6610_v63 = vpop.f32.mrf.mxu3  ;;  %v6586_v5 = vpop.f32.mrf.mxu1 }
 0x154   :  { %6824 = vmatpush.bf16.msra.mxu0 %v9177_v54  ;;  %v9142_v18 = vld [vmem:[#allocation2 + $0x870] sm:$0xf0]  ;;  %v12462_v43 = vld [vmem:[#allocation2 + $0x964] sm:$0xf]  ;;  %v9545_v19 = vor.u32 %v12530_v1, %v9542_v39  ;;  %v6573_v1 = vpop.f32.mrf.mxu0 }
 0x155   :  { %6837 = vmatpush.bf16.msra.mxu1 %v9305_v56  ;;  %v9270_v24 = vld [vmem:[#allocation2 + $0x970] sm:$0xf0]  ;;  %v12494_v34 = vld [vmem:[#allocation2 + $0xa64] sm:$0xf]  ;;  %v9145_v48 = vor.u32 %v12430_v14, %v9142_v18 }
 0x156   :  { %6850 = vmatpush.bf16.msra.mxu2 %v9433_v17  ;;  %v9398_v36 = vld [vmem:[#allocation2 + $0xa70] sm:$0xf0]  ;;  %v12526_v40 = vld [vmem:[#allocation2 + $0xb64] sm:$0xf]  ;;  %v9273_v55 = vor.u32 %v12462_v43, %v9270_v24 }
 0x157   :  { %6863 = vmatpush.bf16.msra.mxu3 %v9561_v60  ;;  %v9526_v47 = vld [vmem:[#allocation2 + $0xb70] sm:$0xf0]  ;;  %v9401_v53 = vor.u32 %v12494_v34, %v9398_v36  ;;  %v12426_v3 = vld [vmem:[#allocation2 + $0x844] sm:$0xf] }
 0x158   :  { %6825 = vmatpush.bf16.msra.mxu0 %v9161_v7  ;;  %v9126_v54 = vld [vmem:[#allocation2 + $0x850] sm:$0xf0]  ;;  %v12458_v56 = vld [vmem:[#allocation2 + $0x944] sm:$0xf]  ;;  %v9529_v17 = vor.u32 %v12526_v40, %v9526_v47  ;;  %v13413_v7 = vadd.f32 %v6610_v63, %v6598_v61 }
 0x159   :  { %6838 = vmatpush.bf16.msra.mxu1 %v9289_v50  ;;  %v9254_v57 = vld [vmem:[#allocation2 + $0x950] sm:$0xf0]  ;;  %v12490_v59 = vld [vmem:[#allocation2 + $0xa44] sm:$0xf]  ;;  %v9129_v39 = vor.u32 %v12426_v3, %v9126_v54 }
 0x15a   :  { %6851 = vmatpush.bf16.msra.mxu2 %v9417_v26  ;;  %v9382_v60 = vld [vmem:[#allocation2 + $0xa50] sm:$0xf0]  ;;  %v12522_v62 = vld [vmem:[#allocation2 + $0xb44] sm:$0xf]  ;;  %v9257_v11 = vor.u32 %v12458_v56, %v9254_v57 }
 0x15b   :  { %6864 = vmatpush.bf16.msra.mxu3 %v9545_v19  ;;  %v9510_v0 = vld [vmem:[#allocation2 + $0xb50] sm:$0xf0]  ;;  %v9385_v50 = vor.u32 %v12490_v59, %v9382_v60  ;;  %v12422_v26 = vld [vmem:[#allocation2 + $0x824] sm:$0xf]  ;;  %v6599_v60 = vpop.f32.mrf.mxu2 }
 0x15c   :  { %6826 = vmatpush.bf16.msra.mxu0 %v9145_v48  ;;  %v9110_v14 = vld [vmem:[#allocation2 + $0x830] sm:$0xf0]  ;;  %v12454_v18 = vld [vmem:[#allocation2 + $0x924] sm:$0xf]  ;;  %v9513_v43 = vor.u32 %v12522_v62, %v9510_v0  ;;  %v6612_v0 = vpop.f32.mrf.mxu3 }
 0x15d   :  { %6839 = vmatpush.bf16.msra.mxu1 %v9273_v55  ;;  %v9238_v19 = vld [vmem:[#allocation2 + $0x930] sm:$0xf0]  ;;  %v12486_v32 = vld [vmem:[#allocation2 + $0xa24] sm:$0xf]  ;;  %v9113_v40 = vor.u32 %v12422_v26, %v9110_v14 }
 0x15e   :  { %6852 = vmatpush.bf16.msra.mxu2 %v9401_v53  ;;  %v9366_v24 = vld [vmem:[#allocation2 + $0xa30] sm:$0xf0]  ;;  %v12518_v34 = vld [vmem:[#allocation2 + $0xb24] sm:$0xf]  ;;  %v9241_v55 = vor.u32 %v12454_v18, %v9238_v19 }
 0x15f   :  { %6865 = vmatpush.bf16.msra.mxu3 %v9529_v17  ;;  %v9494_v36 = vld [vmem:[#allocation2 + $0xb30] sm:$0xf0]  ;;  %v12418_v47 = vld [vmem:[#allocation2 + $0x804] sm:$0xf]  ;;  %v9369_v53 = vor.u32 %v12486_v32, %v9366_v24 }
 0x160   :  { %6827 = vmatpush.bf16.msra.mxu0 %v9129_v39  ;;  %v9094_v48 = vld [vmem:[#allocation2 + $0x810] sm:$0xf0]  ;;  %v12450_v3 = vld [vmem:[#allocation2 + $0x904] sm:$0xf]  ;;  %v9497_v58 = vor.u32 %v12518_v34, %v9494_v36 }
 0x161   :  { %6840 = vmatpush.bf16.msra.mxu1 %v9257_v11  ;;  %v9222_v54 = vld [vmem:[#allocation2 + $0x910] sm:$0xf0]  ;;  %v12482_v56 = vld [vmem:[#allocation2 + $0xa04] sm:$0xf]  ;;  %v9097_v1 = vor.u32 %v12418_v47, %v9094_v48 }
 0x162   :  { %6853 = vmatpush.bf16.msra.mxu2 %v9385_v50  ;;  %v9350_v17 = vld [vmem:[#allocation2 + $0xa10] sm:$0xf0]  ;;  %v12514_v57 = vld [vmem:[#allocation2 + $0xb04] sm:$0xf]  ;;  %v9225_v50 = vor.u32 %v12450_v3, %v9222_v54 }
 0x163   :  { %6866 = vmatpush.bf16.msra.mxu3 %v9513_v43  ;;  %v9478_v59 = vld [vmem:[#allocation2 + $0xb10] sm:$0xf0]  ;;  %v12574_v61 = vld [vmem:[#allocation2 + $0xce4] sm:$0xf]  ;;  %v9353_v26 = vor.u32 %v12482_v56, %v9350_v17 }
 0x164   :  { %v9718_v63 = vld [vmem:[#allocation2 + $0xcf0] sm:$0xf0]  ;;  %v12606_v62 = vld [vmem:[#allocation2 + $0xde4] sm:$0xf]  ;;  %6828 = vmatpush.bf16.msra.mxu0 %v9113_v40  ;;  %v9481_v43 = vor.u32 %v12514_v57, %v9478_v59 }
 0x165   :  { %v9846_v39 = vld [vmem:[#allocation2 + $0xdf0] sm:$0xf0]  ;;  %v12638_v5 = vld [vmem:[#allocation2 + $0xee4] sm:$0xf]  ;;  %6841 = vmatpush.bf16.msra.mxu1 %v9241_v55  ;;  %v9721_v19 = vor.u32 %v12574_v61, %v9718_v63 }
 0x166   :  { %v9974_v11 = vld [vmem:[#allocation2 + $0xef0] sm:$0xf0]  ;;  %6854 = vmatpush.bf16.msra.mxu2 %v9369_v53  ;;  %v12670_v14 = vld [vmem:[#allocation2 + $0xfe4] sm:$0xf]  ;;  %v9849_v32 = vor.u32 %v12606_v62, %v9846_v39 }
 0x167   :  { %v10102_v18 = vld [vmem:[#allocation2 + $0xff0] sm:$0xf0]  ;;  %6867 = vmatpush.bf16.msra.mxu3 %v9497_v58  ;;  %v9977_v24 = vor.u32 %v12638_v5, %v9974_v11  ;;  %v12570_v34 = vld [vmem:[#allocation2 + $0xcc4] sm:$0xf] }
 0x168   :  { %v9702_v36 = vld [vmem:[#allocation2 + $0xcd0] sm:$0xf0]  ;;  %v12602_v60 = vld [vmem:[#allocation2 + $0xdc4] sm:$0xf]  ;;  %6829 = vmatpush.bf16.msra.mxu0 %v9097_v1  ;;  %v10105_v40 = vor.u32 %v12670_v14, %v10102_v18 }
 0x169   :  { %v9830_v47 = vld [vmem:[#allocation2 + $0xdd0] sm:$0xf0]  ;;  %v12634_v48 = vld [vmem:[#allocation2 + $0xec4] sm:$0xf]  ;;  %6842 = vmatpush.bf16.msra.mxu1 %v9225_v50  ;;  %v9705_v3 = vor.u32 %v12570_v34, %v9702_v36 }
 0x16a   :  { %v9958_v0 = vld [vmem:[#allocation2 + $0xed0] sm:$0xf0]  ;;  %6855 = vmatpush.bf16.msra.mxu2 %v9353_v26  ;;  %v12666_v55 = vld [vmem:[#allocation2 + $0xfc4] sm:$0xf]  ;;  %v9833_v54 = vor.u32 %v12602_v60, %v9830_v47  ;;  %v6623_v34 = vpop.f32.mrf.mxu0 }
 0x16b   :  { %v10086_v53 = vld [vmem:[#allocation2 + $0xfd0] sm:$0xf0]  ;;  %6868 = vmatpush.bf16.msra.mxu3 %v9481_v43  ;;  %v9961_v56 = vor.u32 %v12634_v48, %v9958_v0  ;;  %v12566_v58 = vld [vmem:[#allocation2 + $0xca4] sm:$0xf]  ;;  %6830 = vmatmul.bf16.vlgmr.msra.gmra.mxu0 %v13288_v25  ;;  %v6636_v48 = vpop.f32.mrf.mxu1 }
 0x16c   :  { %6874 = vmatpush.bf16.msrb.mxu0 %v9721_v19  ;;  %v9686_v17 = vld [vmem:[#allocation2 + $0xcb0] sm:$0xf0]  ;;  %v12598_v57 = vld [vmem:[#allocation2 + $0xda4] sm:$0xf]  ;;  %v10089_v59 = vor.u32 %v12666_v55, %v10086_v53  ;;  %6843 = vmatmul.bf16.vlgmr.msra.gmra.mxu1 %v13292_v30 }
 0x16d   :  { %6887 = vmatpush.bf16.msrb.mxu1 %v9849_v32  ;;  %v9814_v61 = vld [vmem:[#allocation2 + $0xdb0] sm:$0xf0]  ;;  %v12630_v63 = vld [vmem:[#allocation2 + $0xea4] sm:$0xf]  ;;  %6856 = vmatmul.bf16.vlgmr.msra.gmra.mxu2 %v13290_v29  ;;  %v9689_v5 = vor.u32 %v12566_v58, %v9686_v17 }
 0x16e   :  { %6900 = vmatpush.bf16.msrb.mxu2 %v9977_v24  ;;  %v9942_v62 = vld [vmem:[#allocation2 + $0xeb0] sm:$0xf0]  ;;  %v12662_v1 = vld [vmem:[#allocation2 + $0xfa4] sm:$0xf]  ;;  %6869 = vmatmul.bf16.vlgmr.msra.gmra.mxu3 %v13294_v33  ;;  %v9817_v11 = vor.u32 %v12598_v57, %v9814_v61 }
 0x16f   :  { %6913 = vmatpush.bf16.msrb.mxu3 %v10105_v40  ;;  %v10070_v39 = vld [vmem:[#allocation2 + $0xfb0] sm:$0xf0]  ;;  %v9945_v50 = vor.u32 %v12630_v63, %v9942_v62  ;;  %v12562_v26 = vld [vmem:[#allocation2 + $0xc84] sm:$0xf]  ;;  %v6624_v40 = vadd.f32 %v6623_v34, %v13413_v7 }
 0x170   :  { %6875 = vmatpush.bf16.msrb.mxu0 %v9705_v3  ;;  %v9670_v14 = vld [vmem:[#allocation2 + $0xc90] sm:$0xf0]  ;;  %v12594_v18 = vld [vmem:[#allocation2 + $0xd84] sm:$0xf]  ;;  %v10073_v43 = vor.u32 %v12662_v1, %v10070_v39 }
 0x171   :  { %6888 = vmatpush.bf16.msrb.mxu1 %v9833_v54  ;;  %v9798_v19 = vld [vmem:[#allocation2 + $0xd90] sm:$0xf0]  ;;  %v12626_v32 = vld [vmem:[#allocation2 + $0xe84] sm:$0xf]  ;;  %v9673_v47 = vor.u32 %v12562_v26, %v9670_v14  ;;  %v6637_v58 = vadd.f32 %v6636_v48, %v6624_v40  ;;  %v6649_v26 = vpop.f32.mrf.mxu2 }
 0x172   :  { %6901 = vmatpush.bf16.msrb.mxu2 %v9961_v56  ;;  %v9926_v24 = vld [vmem:[#allocation2 + $0xe90] sm:$0xf0]  ;;  %v12658_v36 = vld [vmem:[#allocation2 + $0xf84] sm:$0xf]  ;;  %v9801_v0 = vor.u32 %v12594_v18, %v9798_v19 }
 0x173   :  { %6914 = vmatpush.bf16.msrb.mxu3 %v10089_v59  ;;  %v10054_v60 = vld [vmem:[#allocation2 + $0xf90] sm:$0xf0]  ;;  %v9929_v55 = vor.u32 %v12626_v32, %v9926_v24  ;;  %v12558_v53 = vld [vmem:[#allocation2 + $0xc64] sm:$0xf]  ;;  %v6650_v19 = vadd.f32 %v6649_v26, %v6637_v58  ;;  %v6662_v32 = vpop.f32.mrf.mxu3  ;;  %v6638_v40 = vpop.f32.mrf.mxu1 }
 0x174   :  { %6876 = vmatpush.bf16.msrb.mxu0 %v9689_v5  ;;  %v9654_v3 = vld [vmem:[#allocation2 + $0xc70] sm:$0xf0]  ;;  %v12590_v54 = vld [vmem:[#allocation2 + $0xd64] sm:$0xf]  ;;  %v10057_v56 = vor.u32 %v12658_v36, %v10054_v60  ;;  %v6625_v36 = vpop.f32.mrf.mxu0 }
 0x175   :  { %6889 = vmatpush.bf16.msrb.mxu1 %v9817_v11  ;;  %v9782_v17 = vld [vmem:[#allocation2 + $0xd70] sm:$0xf0]  ;;  %v12622_v57 = vld [vmem:[#allocation2 + $0xe64] sm:$0xf]  ;;  %v9657_v62 = vor.u32 %v12558_v53, %v9654_v3 }
 0x176   :  { %6902 = vmatpush.bf16.msrb.mxu2 %v9945_v50  ;;  %v9910_v59 = vld [vmem:[#allocation2 + $0xe70] sm:$0xf0]  ;;  %v12654_v61 = vld [vmem:[#allocation2 + $0xf64] sm:$0xf]  ;;  %v9785_v7 = vor.u32 %v12590_v54, %v9782_v17 }
 0x177   :  { %6915 = vmatpush.bf16.msrb.mxu3 %v10073_v43  ;;  %v10038_v63 = vld [vmem:[#allocation2 + $0xf70] sm:$0xf0]  ;;  %v9913_v1 = vor.u32 %v12622_v57, %v9910_v59  ;;  %v12554_v39 = vld [vmem:[#allocation2 + $0xc44] sm:$0xf] }
 0x178   :  { %6877 = vmatpush.bf16.msrb.mxu0 %v9673_v47  ;;  %v9638_v5 = vld [vmem:[#allocation2 + $0xc50] sm:$0xf0]  ;;  %v12586_v11 = vld [vmem:[#allocation2 + $0xd44] sm:$0xf]  ;;  %v10041_v50 = vor.u32 %v12654_v61, %v10038_v63  ;;  %v13420_v47 = vadd.f32 %v6662_v32, %v6650_v19 }
 0x179   :  { %6890 = vmatpush.bf16.msrb.mxu1 %v9801_v0  ;;  %v9766_v14 = vld [vmem:[#allocation2 + $0xd50] sm:$0xf0]  ;;  %v12618_v18 = vld [vmem:[#allocation2 + $0xe44] sm:$0xf]  ;;  %v9641_v60 = vor.u32 %v12554_v39, %v9638_v5 }
 0x17a   :  { %6903 = vmatpush.bf16.msrb.mxu2 %v9929_v55  ;;  %v9894_v43 = vld [vmem:[#allocation2 + $0xe50] sm:$0xf0]  ;;  %v12650_v24 = vld [vmem:[#allocation2 + $0xf44] sm:$0xf]  ;;  %v9769_v48 = vor.u32 %v12586_v11, %v9766_v14 }
 0x17b   :  { %6916 = vmatpush.bf16.msrb.mxu3 %v10057_v56  ;;  %v10022_v34 = vld [vmem:[#allocation2 + $0xf50] sm:$0xf0]  ;;  %v9897_v0 = vor.u32 %v12618_v18, %v9894_v43  ;;  %v12550_v55 = vld [vmem:[#allocation2 + $0xc24] sm:$0xf]  ;;  %v6651_v43 = vpop.f32.mrf.mxu2 }
 0x17c   :  { %6878 = vmatpush.bf16.msrb.mxu0 %v9657_v62  ;;  %v9622_v53 = vld [vmem:[#allocation2 + $0xc30] sm:$0xf0]  ;;  %v12582_v3 = vld [vmem:[#allocation2 + $0xd24] sm:$0xf]  ;;  %v10025_v54 = vor.u32 %v12650_v24, %v10022_v34  ;;  %v6664_v34 = vpop.f32.mrf.mxu3 }
 0x17d   :  { %6891 = vmatpush.bf16.msrb.mxu1 %v9785_v7  ;;  %v9750_v56 = vld [vmem:[#allocation2 + $0xd30] sm:$0xf0]  ;;  %v12614_v58 = vld [vmem:[#allocation2 + $0xe24] sm:$0xf]  ;;  %v9625_v61 = vor.u32 %v12550_v55, %v9622_v53 }
 0x17e   :  { %6904 = vmatpush.bf16.msrb.mxu2 %v9913_v1  ;;  %v9878_v17 = vld [vmem:[#allocation2 + $0xe30] sm:$0xf0]  ;;  %v12646_v57 = vld [vmem:[#allocation2 + $0xf24] sm:$0xf]  ;;  %v9753_v7 = vor.u32 %v12582_v3, %v9750_v56 }
 0x17f   :  { %6917 = vmatpush.bf16.msrb.mxu3 %v10041_v50  ;;  %v10006_v59 = vld [vmem:[#allocation2 + $0xf30] sm:$0xf0]  ;;  %v12546_v63 = vld [vmem:[#allocation2 + $0xc04] sm:$0xf]  ;;  %v9881_v1 = vor.u32 %v12614_v58, %v9878_v17 }
 0x180   :  { %6879 = vmatpush.bf16.msrb.mxu0 %v9641_v60  ;;  %v9606_v62 = vld [vmem:[#allocation2 + $0xc10] sm:$0xf0]  ;;  %v12578_v39 = vld [vmem:[#allocation2 + $0xd04] sm:$0xf]  ;;  %v10009_v26 = vor.u32 %v12646_v57, %v10006_v59 }
 0x181   :  { %6892 = vmatpush.bf16.msrb.mxu1 %v9769_v48  ;;  %v9734_v5 = vld [vmem:[#allocation2 + $0xd10] sm:$0xf0]  ;;  %v12610_v11 = vld [vmem:[#allocation2 + $0xe04] sm:$0xf]  ;;  %v9609_v36 = vor.u32 %v12546_v63, %v9606_v62 }
 0x182   :  { %6905 = vmatpush.bf16.msrb.mxu2 %v9897_v0  ;;  %v9862_v50 = vld [vmem:[#allocation2 + $0xe10] sm:$0xf0]  ;;  %v12642_v14 = vld [vmem:[#allocation2 + $0xf04] sm:$0xf]  ;;  %v9737_v0 = vor.u32 %v12578_v39, %v9734_v5 }
 0x183   :  { %6918 = vmatpush.bf16.msrb.mxu3 %v10025_v54  ;;  %v9990_v18 = vld [vmem:[#allocation2 + $0xf10] sm:$0xf0]  ;;  %v12702_v19 = vld [vmem:[#allocation2 + $0x10e4] sm:$0xf]  ;;  %v9865_v55 = vor.u32 %v12610_v11, %v9862_v50 }
 0x184   :  { %v10230_v32 = vld [vmem:[#allocation2 + $0x10f0] sm:$0xf0]  ;;  %v12734_v24 = vld [vmem:[#allocation2 + $0x11e4] sm:$0xf]  ;;  %6880 = vmatpush.bf16.msrb.mxu0 %v9625_v61  ;;  %v9993_v54 = vor.u32 %v12642_v14, %v9990_v18 }
 0x185   :  { %v10358_v60 = vld [vmem:[#allocation2 + $0x11f0] sm:$0xf0]  ;;  %v12766_v40 = vld [vmem:[#allocation2 + $0x12e4] sm:$0xf]  ;;  %6893 = vmatpush.bf16.msrb.mxu1 %v9753_v7  ;;  %v10233_v56 = vor.u32 %v12702_v19, %v10230_v32 }
 0x186   :  { %v10486_v48 = vld [vmem:[#allocation2 + $0x12f0] sm:$0xf0]  ;;  %6906 = vmatpush.bf16.msrb.mxu2 %v9881_v1  ;;  %v12798_v53 = vld [vmem:[#allocation2 + $0x13e4] sm:$0xf]  ;;  %v10361_v58 = vor.u32 %v12734_v24, %v10358_v60 }
 0x187   :  { %v10614_v3 = vld [vmem:[#allocation2 + $0x13f0] sm:$0xf0]  ;;  %6919 = vmatpush.bf16.msrb.mxu3 %v10009_v26  ;;  %v10489_v17 = vor.u32 %v12766_v40, %v10486_v48  ;;  %v12698_v57 = vld [vmem:[#allocation2 + $0x10c4] sm:$0xf] }
 0x188   :  { %v10214_v59 = vld [vmem:[#allocation2 + $0x10d0] sm:$0xf0]  ;;  %v12730_v43 = vld [vmem:[#allocation2 + $0x11c4] sm:$0xf]  ;;  %6881 = vmatpush.bf16.msrb.mxu0 %v9609_v36  ;;  %v10617_v61 = vor.u32 %v12798_v53, %v10614_v3 }
 0x189   :  { %v10342_v63 = vld [vmem:[#allocation2 + $0x11d0] sm:$0xf0]  ;;  %v12762_v62 = vld [vmem:[#allocation2 + $0x12c4] sm:$0xf]  ;;  %6894 = vmatpush.bf16.msrb.mxu1 %v9737_v0  ;;  %v10217_v39 = vor.u32 %v12698_v57, %v10214_v59 }
 0x18a   :  { %v10470_v34 = vld [vmem:[#allocation2 + $0x12d0] sm:$0xf0]  ;;  %6907 = vmatpush.bf16.msrb.mxu2 %v9865_v55  ;;  %v12794_v7 = vld [vmem:[#allocation2 + $0x13c4] sm:$0xf]  ;;  %v10345_v5 = vor.u32 %v12730_v43, %v10342_v63  ;;  %v6675_v57 = vpop.f32.mrf.mxu0 }
 0x18b   :  { %v10598_v1 = vld [vmem:[#allocation2 + $0x13d0] sm:$0xf0]  ;;  %6920 = vmatpush.bf16.msrb.mxu3 %v9993_v54  ;;  %v10473_v11 = vor.u32 %v12762_v62, %v10470_v34  ;;  %v12694_v26 = vld [vmem:[#allocation2 + $0x10a4] sm:$0xf]  ;;  %6882 = vmatmul.bf16.vlgmr.msrb.gmra.mxu0 %v13306_v23  ;;  %v6688_v62 = vpop.f32.mrf.mxu1 }
 0x18c   :  { %6926 = vmatpush.bf16.msra.mxu0 %v10233_v56  ;;  %v10198_v50 = vld [vmem:[#allocation2 + $0x10b0] sm:$0xf0]  ;;  %v12726_v14 = vld [vmem:[#allocation2 + $0x11a4] sm:$0xf]  ;;  %v10601_v18 = vor.u32 %v12794_v7, %v10598_v1  ;;  %6895 = vmatmul.bf16.vlgmr.msrb.gmra.mxu1 %v13310_v31 }
 0x18d   :  { %6939 = vmatpush.bf16.msra.mxu1 %v10361_v58  ;;  %v10326_v19 = vld [vmem:[#allocation2 + $0x11b0] sm:$0xf0]  ;;  %v12758_v32 = vld [vmem:[#allocation2 + $0x12a4] sm:$0xf]  ;;  %6908 = vmatmul.bf16.vlgmr.msrb.gmra.mxu2 %v13308_v28  ;;  %v10201_v40 = vor.u32 %v12694_v26, %v10198_v50 }
 0x18e   :  { %6952 = vmatpush.bf16.msra.mxu2 %v10489_v17  ;;  %v10454_v24 = vld [vmem:[#allocation2 + $0x12b0] sm:$0xf0]  ;;  %v12790_v36 = vld [vmem:[#allocation2 + $0x13a4] sm:$0xf]  ;;  %6921 = vmatmul.bf16.vlgmr.msrb.gmra.mxu3 %v13312_v35  ;;  %v10329_v48 = vor.u32 %v12726_v14, %v10326_v19 }
 0x18f   :  { %6965 = vmatpush.bf16.msra.mxu3 %v10617_v61  ;;  %v10582_v60 = vld [vmem:[#allocation2 + $0x13b0] sm:$0xf0]  ;;  %v10457_v0 = vor.u32 %v12758_v32, %v10454_v24  ;;  %v12690_v55 = vld [vmem:[#allocation2 + $0x1084] sm:$0xf]  ;;  %v6676_v61 = vadd.f32 %v6675_v57, %v13420_v47 }
 0x190   :  { %6927 = vmatpush.bf16.msra.mxu0 %v10217_v39  ;;  %v10182_v53 = vld [vmem:[#allocation2 + $0x1090] sm:$0xf0]  ;;  %v12722_v3 = vld [vmem:[#allocation2 + $0x1184] sm:$0xf]  ;;  %v10585_v54 = vor.u32 %v12790_v36, %v10582_v60 }
 0x191   :  { %6940 = vmatpush.bf16.msra.mxu1 %v10345_v5  ;;  %v10310_v56 = vld [vmem:[#allocation2 + $0x1190] sm:$0xf0]  ;;  %v12754_v58 = vld [vmem:[#allocation2 + $0x1284] sm:$0xf]  ;;  %v10185_v63 = vor.u32 %v12690_v55, %v10182_v53  ;;  %v6689_v26 = vadd.f32 %v6688_v62, %v6676_v61 }
 0x192   :  { %6953 = vmatpush.bf16.msra.mxu2 %v10473_v11  ;;  %v10438_v17 = vld [vmem:[#allocation2 + $0x1290] sm:$0xf0]  ;;  %v12786_v59 = vld [vmem:[#allocation2 + $0x1384] sm:$0xf]  ;;  %v10313_v34 = vor.u32 %v12722_v3, %v10310_v56  ;;  %v6701_v55 = vpop.f32.mrf.mxu2 }
 0x193   :  { %6966 = vmatpush.bf16.msra.mxu3 %v10601_v18  ;;  %v10566_v43 = vld [vmem:[#allocation2 + $0x1390] sm:$0xf0]  ;;  %v10441_v7 = vor.u32 %v12754_v58, %v10438_v17  ;;  %v12686_v1 = vld [vmem:[#allocation2 + $0x1064] sm:$0xf]  ;;  %v6702_v56 = vadd.f32 %v6701_v55, %v6689_v26  ;;  %v6714_v58 = vpop.f32.mrf.mxu3  ;;  %v6690_v61 = vpop.f32.mrf.mxu1 }
 0x194   :  { %6928 = vmatpush.bf16.msra.mxu0 %v10201_v40  ;;  %v10166_v39 = vld [vmem:[#allocation2 + $0x1070] sm:$0xf0]  ;;  %v12718_v5 = vld [vmem:[#allocation2 + $0x1164] sm:$0xf]  ;;  %v10569_v11 = vor.u32 %v12786_v59, %v10566_v43  ;;  %v6677_v59 = vpop.f32.mrf.mxu0 }
 0x195   :  { %6941 = vmatpush.bf16.msra.mxu1 %v10329_v48  ;;  %v10294_v50 = vld [vmem:[#allocation2 + $0x1170] sm:$0xf0]  ;;  %v12750_v14 = vld [vmem:[#allocation2 + $0x1264] sm:$0xf]  ;;  %v10169_v24 = vor.u32 %v12686_v1, %v10166_v39 }
 0x196   :  { %6954 = vmatpush.bf16.msra.mxu2 %v10457_v0  ;;  %v10422_v18 = vld [vmem:[#allocation2 + $0x1270] sm:$0xf0]  ;;  %v12782_v19 = vld [vmem:[#allocation2 + $0x1364] sm:$0xf]  ;;  %v10297_v47 = vor.u32 %v12718_v5, %v10294_v50 }
 0x197   :  { %6967 = vmatpush.bf16.msra.mxu3 %v10585_v54  ;;  %v10550_v32 = vld [vmem:[#allocation2 + $0x1370] sm:$0xf0]  ;;  %v10425_v36 = vor.u32 %v12750_v14, %v10422_v18  ;;  %v12682_v60 = vld [vmem:[#allocation2 + $0x1044] sm:$0xf] }
 0x198   :  { %6929 = vmatpush.bf16.msra.mxu0 %v10185_v63  ;;  %v10150_v40 = vld [vmem:[#allocation2 + $0x1050] sm:$0xf0]  ;;  %v12714_v48 = vld [vmem:[#allocation2 + $0x1144] sm:$0xf]  ;;  %v10553_v0 = vor.u32 %v12782_v19, %v10550_v32  ;;  %v13427_v63 = vadd.f32 %v6714_v58, %v6702_v56 }
 0x199   :  { %6942 = vmatpush.bf16.msra.mxu1 %v10313_v34  ;;  %v10278_v53 = vld [vmem:[#allocation2 + $0x1150] sm:$0xf0]  ;;  %v12746_v3 = vld [vmem:[#allocation2 + $0x1244] sm:$0xf]  ;;  %v10153_v43 = vor.u32 %v12682_v60, %v10150_v40 }
 0x19a   :  { %6955 = vmatpush.bf16.msra.mxu2 %v10441_v7  ;;  %v10406_v54 = vld [vmem:[#allocation2 + $0x1250] sm:$0xf0]  ;;  %v12778_v17 = vld [vmem:[#allocation2 + $0x1344] sm:$0xf]  ;;  %v10281_v62 = vor.u32 %v12714_v48, %v10278_v53 }
 0x19b   :  { %6968 = vmatpush.bf16.msra.mxu3 %v10569_v11  ;;  %v10534_v57 = vld [vmem:[#allocation2 + $0x1350] sm:$0xf0]  ;;  %v10409_v34 = vor.u32 %v12746_v3, %v10406_v54  ;;  %v12678_v7 = vld [vmem:[#allocation2 + $0x1024] sm:$0xf]  ;;  %v6703_v54 = vpop.f32.mrf.mxu2 }
 0x19c   :  { %6930 = vmatpush.bf16.msra.mxu0 %v10169_v24  ;;  %v10134_v1 = vld [vmem:[#allocation2 + $0x1030] sm:$0xf0]  ;;  %v12710_v39 = vld [vmem:[#allocation2 + $0x1124] sm:$0xf]  ;;  %v10537_v5 = vor.u32 %v12778_v17, %v10534_v57  ;;  %v6716_v57 = vpop.f32.mrf.mxu3 }
 0x19d   :  { %6943 = vmatpush.bf16.msra.mxu1 %v10297_v47  ;;  %v10262_v11 = vld [vmem:[#allocation2 + $0x1130] sm:$0xf0]  ;;  %v12742_v26 = vld [vmem:[#allocation2 + $0x1224] sm:$0xf]  ;;  %v10137_v19 = vor.u32 %v12678_v7, %v10134_v1 }
 0x19e   :  { %6956 = vmatpush.bf16.msra.mxu2 %v10425_v36  ;;  %v10390_v50 = vld [vmem:[#allocation2 + $0x1230] sm:$0xf0]  ;;  %v12774_v14 = vld [vmem:[#allocation2 + $0x1324] sm:$0xf]  ;;  %v10265_v47 = vor.u32 %v12710_v39, %v10262_v11 }
 0x19f   :  { %6969 = vmatpush.bf16.msra.mxu3 %v10553_v0  ;;  %v10518_v18 = vld [vmem:[#allocation2 + $0x1330] sm:$0xf0]  ;;  %v12674_v32 = vld [vmem:[#allocation2 + $0x1004] sm:$0xf]  ;;  %v10393_v36 = vor.u32 %v12742_v26, %v10390_v50 }
 0x1a0   :  { %6931 = vmatpush.bf16.msra.mxu0 %v10153_v43  ;;  %v10118_v24 = vld [vmem:[#allocation2 + $0x1010] sm:$0xf0]  ;;  %v12706_v60 = vld [vmem:[#allocation2 + $0x1104] sm:$0xf]  ;;  %v10521_v55 = vor.u32 %v12774_v14, %v10518_v18 }
 0x1a1   :  { %6944 = vmatpush.bf16.msra.mxu1 %v10281_v62  ;;  %v10246_v40 = vld [vmem:[#allocation2 + $0x1110] sm:$0xf0]  ;;  %v12738_v48 = vld [vmem:[#allocation2 + $0x1204] sm:$0xf]  ;;  %v10121_v59 = vor.u32 %v12674_v32, %v10118_v24 }
 0x1a2   :  { %6957 = vmatpush.bf16.msra.mxu2 %v10409_v34  ;;  %v10374_v0 = vld [vmem:[#allocation2 + $0x1210] sm:$0xf0]  ;;  %v12770_v53 = vld [vmem:[#allocation2 + $0x1304] sm:$0xf]  ;;  %v10249_v34 = vor.u32 %v12706_v60, %v10246_v40 }
 0x1a3   :  { %6970 = vmatpush.bf16.msra.mxu3 %v10537_v5  ;;  %v10502_v3 = vld [vmem:[#allocation2 + $0x1310] sm:$0xf0]  ;;  %v12830_v56 = vld [vmem:[#allocation2 + $0x14e4] sm:$0xf]  ;;  %v10377_v7 = vor.u32 %v12738_v48, %v10374_v0 }
 0x1a4   :  { %v10742_v58 = vld [vmem:[#allocation2 + $0x14f0] sm:$0xf0]  ;;  %v12862_v17 = vld [vmem:[#allocation2 + $0x15e4] sm:$0xf]  ;;  %6932 = vmatpush.bf16.msra.mxu0 %v10137_v19  ;;  %v10505_v5 = vor.u32 %v12770_v53, %v10502_v3 }
 0x1a5   :  { %v10870_v43 = vld [vmem:[#allocation2 + $0x15f0] sm:$0xf0]  ;;  %v12894_v61 = vld [vmem:[#allocation2 + $0x16e4] sm:$0xf]  ;;  %6945 = vmatpush.bf16.msra.mxu1 %v10265_v47  ;;  %v10745_v11 = vor.u32 %v12830_v56, %v10742_v58 }
 0x1a6   :  { %v10998_v62 = vld [vmem:[#allocation2 + $0x16f0] sm:$0xf0]  ;;  %6958 = vmatpush.bf16.msra.mxu2 %v10393_v36  ;;  %v12926_v1 = vld [vmem:[#allocation2 + $0x17e4] sm:$0xf]  ;;  %v10873_v26 = vor.u32 %v12862_v17, %v10870_v43 }
 0x1a7   :  { %v11126_v39 = vld [vmem:[#allocation2 + $0x17f0] sm:$0xf0]  ;;  %6971 = vmatpush.bf16.msra.mxu3 %v10521_v55  ;;  %v11001_v50 = vor.u32 %v12894_v61, %v10998_v62  ;;  %v12826_v14 = vld [vmem:[#allocation2 + $0x14c4] sm:$0xf] }
 0x1a8   :  { %v10726_v18 = vld [vmem:[#allocation2 + $0x14d0] sm:$0xf0]  ;;  %v12858_v54 = vld [vmem:[#allocation2 + $0x15c4] sm:$0xf]  ;;  %6933 = vmatpush.bf16.msra.mxu0 %v10121_v59  ;;  %v11129_v19 = vor.u32 %v12926_v1, %v11126_v39 }
 0x1a9   :  { %v10854_v32 = vld [vmem:[#allocation2 + $0x15d0] sm:$0xf0]  ;;  %v12890_v24 = vld [vmem:[#allocation2 + $0x16c4] sm:$0xf]  ;;  %6946 = vmatpush.bf16.msra.mxu1 %v10249_v34  ;;  %v10729_v60 = vor.u32 %v12826_v14, %v10726_v18 }
 0x1aa   :  { %v10982_v57 = vld [vmem:[#allocation2 + $0x16d0] sm:$0xf0]  ;;  %6959 = vmatpush.bf16.msra.mxu2 %v10377_v7  ;;  %v12922_v47 = vld [vmem:[#allocation2 + $0x17c4] sm:$0xf]  ;;  %v10857_v40 = vor.u32 %v12858_v54, %v10854_v32 }
 0x1ab   :  { %v11110_v36 = vld [vmem:[#allocation2 + $0x17d0] sm:$0xf0]  ;;  %6972 = vmatpush.bf16.msra.mxu3 %v10505_v5  ;;  %v10985_v48 = vor.u32 %v12890_v24, %v10982_v57  ;;  %v12822_v55 = vld [vmem:[#allocation2 + $0x14a4] sm:$0xf]  ;;  %6934 = vmatmul.bf16.vlgmr.msra.gmra.mxu0 %v13324_v37 }
 0x1ac   :  { %6978 = vmatpush.bf16.msrb.mxu0 %v10745_v11  ;;  %v10710_v0 = vld [vmem:[#allocation2 + $0x14b0] sm:$0xf0]  ;;  %v12854_v53 = vld [vmem:[#allocation2 + $0x15a4] sm:$0xf]  ;;  %v11113_v3 = vor.u32 %v12922_v47, %v11110_v36  ;;  %6947 = vmatmul.bf16.vlgmr.msra.gmra.mxu1 %v13328_v46 }
 0x1ad   :  { %6991 = vmatpush.bf16.msrb.mxu1 %v10873_v26  ;;  %v10838_v56 = vld [vmem:[#allocation2 + $0x15b0] sm:$0xf0]  ;;  %v12886_v58 = vld [vmem:[#allocation2 + $0x16a4] sm:$0xf]  ;;  %6960 = vmatmul.bf16.vlgmr.msra.gmra.mxu2 %v13326_v45  ;;  %v10713_v61 = vor.u32 %v12822_v55, %v10710_v0 }
 0x1ae   :  { %7004 = vmatpush.bf16.msrb.mxu2 %v11001_v50  ;;  %v10966_v17 = vld [vmem:[#allocation2 + $0x16b0] sm:$0xf0]  ;;  %v12918_v59 = vld [vmem:[#allocation2 + $0x17a4] sm:$0xf]  ;;  %6973 = vmatmul.bf16.vlgmr.msra.gmra.mxu3 %v13330_v49  ;;  %v10841_v62 = vor.u32 %v12854_v53, %v10838_v56 }
 0x1af   :  { %7017 = vmatpush.bf16.msrb.mxu3 %v11129_v19  ;;  %v11094_v43 = vld [vmem:[#allocation2 + $0x17b0] sm:$0xf0]  ;;  %v10969_v34 = vor.u32 %v12886_v58, %v10966_v17  ;;  %v12818_v7 = vld [vmem:[#allocation2 + $0x1484] sm:$0xf]  ;;  %v6727_v19 = vpop.f32.mrf.mxu0 }
 0x1b0   :  { %6979 = vmatpush.bf16.msrb.mxu0 %v10729_v60  ;;  %v10694_v1 = vld [vmem:[#allocation2 + $0x1490] sm:$0xf0]  ;;  %v12850_v39 = vld [vmem:[#allocation2 + $0x1584] sm:$0xf]  ;;  %v11097_v5 = vor.u32 %v12918_v59, %v11094_v43  ;;  %v6740_v60 = vpop.f32.mrf.mxu1 }
 0x1b1   :  { %6992 = vmatpush.bf16.msrb.mxu1 %v10857_v40  ;;  %v10822_v11 = vld [vmem:[#allocation2 + $0x1590] sm:$0xf0]  ;;  %v12882_v26 = vld [vmem:[#allocation2 + $0x1684] sm:$0xf]  ;;  %v10697_v54 = vor.u32 %v12818_v7, %v10694_v1  ;;  %v6741_v53 = vadd.f32 %v6740_v60, %v6727_v19 }
 0x1b2   :  { %7005 = vmatpush.bf16.msrb.mxu2 %v10985_v48  ;;  %v10950_v50 = vld [vmem:[#allocation2 + $0x1690] sm:$0xf0]  ;;  %v12914_v14 = vld [vmem:[#allocation2 + $0x1784] sm:$0xf]  ;;  %v10825_v32 = vor.u32 %v12850_v39, %v10822_v11 }
 0x1b3   :  { %7018 = vmatpush.bf16.msrb.mxu3 %v11113_v3  ;;  %v11078_v18 = vld [vmem:[#allocation2 + $0x1790] sm:$0xf0]  ;;  %v10953_v24 = vor.u32 %v12882_v26, %v10950_v50  ;;  %v12814_v57 = vld [vmem:[#allocation2 + $0x1464] sm:$0xf]  ;;  %v6766_v26 = vpop.f32.mrf.mxu3 }
 0x1b4   :  { %6980 = vmatpush.bf16.msrb.mxu0 %v10713_v61  ;;  %v10678_v47 = vld [vmem:[#allocation2 + $0x1470] sm:$0xf0]  ;;  %v12846_v36 = vld [vmem:[#allocation2 + $0x1564] sm:$0xf]  ;;  %v11081_v40 = vor.u32 %v12914_v14, %v11078_v18 }
 0x1b5   :  { %6993 = vmatpush.bf16.msrb.mxu1 %v10841_v62  ;;  %v10806_v48 = vld [vmem:[#allocation2 + $0x1570] sm:$0xf0]  ;;  %v12878_v55 = vld [vmem:[#allocation2 + $0x1664] sm:$0xf]  ;;  %v10681_v58 = vor.u32 %v12814_v57, %v10678_v47 }
 0x1b6   :  { %7006 = vmatpush.bf16.msrb.mxu2 %v10969_v34  ;;  %v10934_v0 = vld [vmem:[#allocation2 + $0x1670] sm:$0xf0]  ;;  %v12910_v3 = vld [vmem:[#allocation2 + $0x1764] sm:$0xf]  ;;  %v10809_v17 = vor.u32 %v12846_v36, %v10806_v48  ;;  %v6753_v34 = vpop.f32.mrf.mxu2 }
 0x1b7   :  { %7019 = vmatpush.bf16.msrb.mxu3 %v11097_v5  ;;  %v11062_v56 = vld [vmem:[#allocation2 + $0x1770] sm:$0xf0]  ;;  %v10937_v59 = vor.u32 %v12878_v55, %v10934_v0  ;;  %v12810_v43 = vld [vmem:[#allocation2 + $0x1444] sm:$0xf]  ;;  %v6754_v11 = vadd.f32 %v6753_v34, %v6741_v53  ;;  %v6729_v19 = vpop.f32.mrf.mxu0 }
 0x1b8   :  { %6981 = vmatpush.bf16.msrb.mxu0 %v10697_v54  ;;  %v10662_v61 = vld [vmem:[#allocation2 + $0x1450] sm:$0xf0]  ;;  %v12842_v62 = vld [vmem:[#allocation2 + $0x1544] sm:$0xf]  ;;  %v11065_v7 = vor.u32 %v12910_v3, %v11062_v56  ;;  %v6742_v60 = vpop.f32.mrf.mxu1 }
 0x1b9   :  { %6994 = vmatpush.bf16.msrb.mxu1 %v10825_v32  ;;  %v10790_v1 = vld [vmem:[#allocation2 + $0x1550] sm:$0xf0]  ;;  %v12874_v39 = vld [vmem:[#allocation2 + $0x1644] sm:$0xf]  ;;  %v10665_v18 = vor.u32 %v12810_v43, %v10662_v61  ;;  %v13433_v54 = vadd.f32 %v6766_v26, %v6754_v11 }
 0x1ba   :  { %7007 = vmatpush.bf16.msrb.mxu2 %v10953_v24  ;;  %v10918_v5 = vld [vmem:[#allocation2 + $0x1650] sm:$0xf0]  ;;  %v12906_v50 = vld [vmem:[#allocation2 + $0x1744] sm:$0xf]  ;;  %v10793_v32 = vor.u32 %v12842_v62, %v10790_v1 }
 0x1bb   :  { %7020 = vmatpush.bf16.msrb.mxu3 %v11081_v40  ;;  %v11046_v14 = vld [vmem:[#allocation2 + $0x1750] sm:$0xf0]  ;;  %v10921_v24 = vor.u32 %v12874_v39, %v10918_v5  ;;  %v12806_v57 = vld [vmem:[#allocation2 + $0x1424] sm:$0xf]  ;;  %v6768_v26 = vpop.f32.mrf.mxu3 }
 0x1bc   :  { %6982 = vmatpush.bf16.msrb.mxu0 %v10681_v58  ;;  %v10646_v47 = vld [vmem:[#allocation2 + $0x1430] sm:$0xf0]  ;;  %v12838_v36 = vld [vmem:[#allocation2 + $0x1524] sm:$0xf]  ;;  %v11049_v40 = vor.u32 %v12906_v50, %v11046_v14 }
 0x1bd   :  { %6995 = vmatpush.bf16.msrb.mxu1 %v10809_v17  ;;  %v10774_v48 = vld [vmem:[#allocation2 + $0x1530] sm:$0xf0]  ;;  %v12870_v55 = vld [vmem:[#allocation2 + $0x1624] sm:$0xf]  ;;  %v10649_v56 = vor.u32 %v12806_v57, %v10646_v47 }
 0x1be   :  { %7008 = vmatpush.bf16.msrb.mxu2 %v10937_v59  ;;  %v10902_v0 = vld [vmem:[#allocation2 + $0x1630] sm:$0xf0]  ;;  %v12902_v53 = vld [vmem:[#allocation2 + $0x1724] sm:$0xf]  ;;  %v10777_v17 = vor.u32 %v12838_v36, %v10774_v48  ;;  %v6755_v1 = vpop.f32.mrf.mxu2 }
 0x1bf   :  { %7021 = vmatpush.bf16.msrb.mxu3 %v11065_v7  ;;  %v11030_v3 = vld [vmem:[#allocation2 + $0x1730] sm:$0xf0]  ;;  %v12802_v58 = vld [vmem:[#allocation2 + $0x1404] sm:$0xf]  ;;  %v10905_v59 = vor.u32 %v12870_v55, %v10902_v0 }
 0x1c0   :  { %6983 = vmatpush.bf16.msrb.mxu0 %v10665_v18  ;;  %v10630_v43 = vld [vmem:[#allocation2 + $0x1410] sm:$0xf0]  ;;  %v12834_v61 = vld [vmem:[#allocation2 + $0x1504] sm:$0xf]  ;;  %v11033_v7 = vor.u32 %v12902_v53, %v11030_v3 }
 0x1c1   :  { %6996 = vmatpush.bf16.msrb.mxu1 %v10793_v32  ;;  %v10758_v62 = vld [vmem:[#allocation2 + $0x1510] sm:$0xf0]  ;;  %v12866_v34 = vld [vmem:[#allocation2 + $0x1604] sm:$0xf]  ;;  %v10633_v19 = vor.u32 %v12802_v58, %v10630_v43 }
 0x1c2   :  { %7009 = vmatpush.bf16.msrb.mxu2 %v10921_v24  ;;  %v10886_v39 = vld [vmem:[#allocation2 + $0x1610] sm:$0xf0]  ;;  %v12898_v5 = vld [vmem:[#allocation2 + $0x1704] sm:$0xf]  ;;  %v10761_v47 = vor.u32 %v12834_v61, %v10758_v62 }
 0x1c3   :  { %7022 = vmatpush.bf16.msrb.mxu3 %v11049_v40  ;;  %v11014_v11 = vld [vmem:[#allocation2 + $0x1710] sm:$0xf0]  ;;  %v12958_v50 = vld [vmem:[#allocation2 + $0x18e4] sm:$0xf]  ;;  %v10889_v36 = vor.u32 %v12866_v34, %v10886_v39 }
 0x1c4   :  { %v11254_v14 = vld [vmem:[#allocation2 + $0x18f0] sm:$0xf0]  ;;  %v12990_v18 = vld [vmem:[#allocation2 + $0x19e4] sm:$0xf]  ;;  %6984 = vmatpush.bf16.msrb.mxu0 %v10649_v56  ;;  %v11017_v40 = vor.u32 %v12898_v5, %v11014_v11 }
 0x1c5   :  { %v11382_v57 = vld [vmem:[#allocation2 + $0x19f0] sm:$0xf0]  ;;  %v13022_v32 = vld [vmem:[#allocation2 + $0x1ae4] sm:$0xf]  ;;  %6997 = vmatpush.bf16.msrb.mxu1 %v10777_v17  ;;  %v11257_v55 = vor.u32 %v12958_v50, %v11254_v14 }
 0x1c6   :  { %v11510_v24 = vld [vmem:[#allocation2 + $0x1af0] sm:$0xf0]  ;;  %7010 = vmatpush.bf16.msrb.mxu2 %v10905_v59  ;;  %v13054_v60 = vld [vmem:[#allocation2 + $0x1be4] sm:$0xf]  ;;  %v11385_v0 = vor.u32 %v12990_v18, %v11382_v57 }
 0x1c7   :  { %v11638_v48 = vld [vmem:[#allocation2 + $0x1bf0] sm:$0xf0]  ;;  %7023 = vmatpush.bf16.msrb.mxu3 %v11033_v7  ;;  %v11513_v53 = vor.u32 %v13022_v32, %v11510_v24  ;;  %v12954_v3 = vld [vmem:[#allocation2 + $0x18c4] sm:$0xf] }
 0x1c8   :  { %v11238_v1 = vld [vmem:[#allocation2 + $0x18d0] sm:$0xf0]  ;;  %v12986_v26 = vld [vmem:[#allocation2 + $0x19c4] sm:$0xf]  ;;  %6985 = vmatpush.bf16.msrb.mxu0 %v10633_v19  ;;  %v11641_v56 = vor.u32 %v13054_v60, %v11638_v48 }
 0x1c9   :  { %v11366_v58 = vld [vmem:[#allocation2 + $0x19d0] sm:$0xf0]  ;;  %v13018_v43 = vld [vmem:[#allocation2 + $0x1ac4] sm:$0xf]  ;;  %6998 = vmatpush.bf16.msrb.mxu1 %v10761_v47  ;;  %v11241_v61 = vor.u32 %v12954_v3, %v11238_v1 }
 0x1ca   :  { %v11494_v49 = vld [vmem:[#allocation2 + $0x1ad0] sm:$0xf0]  ;;  %7011 = vmatpush.bf16.msrb.mxu2 %v10889_v36  ;;  %v13050_v17 = vld [vmem:[#allocation2 + $0x1bc4] sm:$0xf]  ;;  %v11369_v62 = vor.u32 %v12986_v26, %v11366_v58  ;;  %v6779_v26 = vpop.f32.mrf.mxu0 }
 0x1cb   :  { %v11622_v59 = vld [vmem:[#allocation2 + $0x1bd0] sm:$0xf0]  ;;  %7024 = vmatpush.bf16.msrb.mxu3 %v11017_v40  ;;  %v11497_v34 = vor.u32 %v13018_v43, %v11494_v49  ;;  %v12950_v7 = vld [vmem:[#allocation2 + $0x18a4] sm:$0xf]  ;;  %6986 = vmatmul.bf16.vlgmr.msrb.gmra.mxu0 %v13344_v8 }
 0x1cc   :  { %7030 = vmatpush.bf16.msra.mxu0 %v11257_v55  ;;  %v11222_v39 = vld [vmem:[#allocation2 + $0x18b0] sm:$0xf0]  ;;  %v12982_v5 = vld [vmem:[#allocation2 + $0x19a4] sm:$0xf]  ;;  %v11625_v11 = vor.u32 %v13050_v17, %v11622_v59  ;;  %6999 = vmatmul.bf16.vlgmr.msrb.gmra.mxu1 %v13348_v13 }
 0x1cd   :  { %7043 = vmatpush.bf16.msra.mxu1 %v11385_v0  ;;  %v11350_v50 = vld [vmem:[#allocation2 + $0x19b0] sm:$0xf0]  ;;  %v13014_v14 = vld [vmem:[#allocation2 + $0x1aa4] sm:$0xf]  ;;  %7012 = vmatmul.bf16.vlgmr.msrb.gmra.mxu2 %v13346_v12  ;;  %v11225_v49 = vor.u32 %v12950_v7, %v11222_v39 }
 0x1ce   :  { %7056 = vmatpush.bf16.msra.mxu2 %v11513_v53  ;;  %v11478_v18 = vld [vmem:[#allocation2 + $0x1ab0] sm:$0xf0]  ;;  %v13046_v19 = vld [vmem:[#allocation2 + $0x1ba4] sm:$0xf]  ;;  %7025 = vmatmul.bf16.vlgmr.msrb.gmra.mxu3 %v13350_v16  ;;  %v11353_v32 = vor.u32 %v12982_v5, %v11350_v50 }
 0x1cf   :  { %7069 = vmatpush.bf16.msra.mxu3 %v11641_v56  ;;  %v11606_v57 = vld [vmem:[#allocation2 + $0x1bb0] sm:$0xf0]  ;;  %v11481_v24 = vor.u32 %v13014_v14, %v11478_v18  ;;  %v12946_v47 = vld [vmem:[#allocation2 + $0x1884] sm:$0xf] }
 0x1d0   :  { %7031 = vmatpush.bf16.msra.mxu0 %v11241_v61  ;;  %v11206_v36 = vld [vmem:[#allocation2 + $0x1890] sm:$0xf0]  ;;  %v12978_v60 = vld [vmem:[#allocation2 + $0x1984] sm:$0xf]  ;;  %v11609_v48 = vor.u32 %v13046_v19, %v11606_v57  ;;  %v6780_v61 = vadd.f32 %v6779_v26, %v13433_v54 }
 0x1d1   :  { %7044 = vmatpush.bf16.msra.mxu1 %v11369_v62  ;;  %v11334_v40 = vld [vmem:[#allocation2 + $0x1990] sm:$0xf0]  ;;  %v13010_v55 = vld [vmem:[#allocation2 + $0x1a84] sm:$0xf]  ;;  %v11209_v1 = vor.u32 %v12946_v47, %v11206_v36  ;;  %v6792_v62 = vpop.f32.mrf.mxu1  ;;  %v6805_v47 = vpop.f32.mrf.mxu2 }
 0x1d2   :  { %7057 = vmatpush.bf16.msra.mxu2 %v11497_v34  ;;  %v11462_v0 = vld [vmem:[#allocation2 + $0x1a90] sm:$0xf0]  ;;  %v13042_v53 = vld [vmem:[#allocation2 + $0x1b84] sm:$0xf]  ;;  %v11337_v56 = vor.u32 %v12978_v60, %v11334_v40  ;;  %v6793_v14 = vadd.f32 %v6792_v62, %v6780_v61  ;;  %v6781_v26 = vpop.f32.mrf.mxu0 }
 0x1d3   :  { %7070 = vmatpush.bf16.msra.mxu3 %v11625_v11  ;;  %v11590_v3 = vld [vmem:[#allocation2 + $0x1b90] sm:$0xf0]  ;;  %v11465_v58 = vor.u32 %v13010_v55, %v11462_v0  ;;  %v12942_v43 = vld [vmem:[#allocation2 + $0x1864] sm:$0xf]  ;;  %v6818_v55 = vpop.f32.mrf.mxu3 }
 0x1d4   :  { %7032 = vmatpush.bf16.msra.mxu0 %v11225_v49  ;;  %v11190_v17 = vld [vmem:[#allocation2 + $0x1870] sm:$0xf0]  ;;  %v12974_v59 = vld [vmem:[#allocation2 + $0x1964] sm:$0xf]  ;;  %v11593_v34 = vor.u32 %v13042_v53, %v11590_v3  ;;  %v6806_v40 = vadd.f32 %v6805_v47, %v6793_v14 }
 0x1d5   :  { %7045 = vmatpush.bf16.msra.mxu1 %v11353_v32  ;;  %v11318_v7 = vld [vmem:[#allocation2 + $0x1970] sm:$0xf0]  ;;  %v13006_v39 = vld [vmem:[#allocation2 + $0x1a64] sm:$0xf]  ;;  %v11193_v18 = vor.u32 %v12942_v43, %v11190_v17 }
 0x1d6   :  { %7058 = vmatpush.bf16.msra.mxu2 %v11481_v24  ;;  %v11446_v5 = vld [vmem:[#allocation2 + $0x1a70] sm:$0xf0]  ;;  %v13038_v11 = vld [vmem:[#allocation2 + $0x1b64] sm:$0xf]  ;;  %v11321_v19 = vor.u32 %v12974_v59, %v11318_v7 }
 0x1d7   :  { %7071 = vmatpush.bf16.msra.mxu3 %v11609_v48  ;;  %v11574_v50 = vld [vmem:[#allocation2 + $0x1b70] sm:$0xf0]  ;;  %v11449_v57 = vor.u32 %v13006_v39, %v11446_v5  ;;  %v12938_v49 = vld [vmem:[#allocation2 + $0x1844] sm:$0xf] }
 0x1d8   :  { %7033 = vmatpush.bf16.msra.mxu0 %v11209_v1  ;;  %v11174_v32 = vld [vmem:[#allocation2 + $0x1850] sm:$0xf0]  ;;  %v12970_v24 = vld [vmem:[#allocation2 + $0x1944] sm:$0xf]  ;;  %v11577_v54 = vor.u32 %v13038_v11, %v11574_v50  ;;  %v13440_v1 = vadd.f32 %v6818_v55, %v6806_v40 }
 0x1d9   :  { %7046 = vmatpush.bf16.msra.mxu1 %v11337_v56  ;;  %v11302_v36 = vld [vmem:[#allocation2 + $0x1950] sm:$0xf0]  ;;  %v13002_v60 = vld [vmem:[#allocation2 + $0x1a44] sm:$0xf]  ;;  %v11177_v3 = vor.u32 %v12938_v49, %v11174_v32  ;;  %v6794_v61 = vpop.f32.mrf.mxu1  ;;  %v6807_v47 = vpop.f32.mrf.mxu2 }
 0x1da   :  { %7059 = vmatpush.bf16.msra.mxu2 %v11465_v58  ;;  %v11430_v48 = vld [vmem:[#allocation2 + $0x1a50] sm:$0xf0]  ;;  %v13034_v0 = vld [vmem:[#allocation2 + $0x1b44] sm:$0xf]  ;;  %v11305_v56 = vor.u32 %v12970_v24, %v11302_v36 }
 0x1db   :  { %7072 = vmatpush.bf16.msra.mxu3 %v11593_v34  ;;  %v11558_v53 = vld [vmem:[#allocation2 + $0x1b50] sm:$0xf0]  ;;  %v11433_v58 = vor.u32 %v13002_v60, %v11430_v48  ;;  %v12934_v43 = vld [vmem:[#allocation2 + $0x1824] sm:$0xf]  ;;  %v6820_v40 = vpop.f32.mrf.mxu3 }
 0x1dc   :  { %7034 = vmatpush.bf16.msra.mxu0 %v11193_v18  ;;  %v11158_v17 = vld [vmem:[#allocation2 + $0x1830] sm:$0xf0]  ;;  %v12966_v59 = vld [vmem:[#allocation2 + $0x1924] sm:$0xf]  ;;  %v11561_v62 = vor.u32 %v13034_v0, %v11558_v53 }
 0x1dd   :  { %7047 = vmatpush.bf16.msra.mxu1 %v11321_v19  ;;  %v11286_v34 = vld [vmem:[#allocation2 + $0x1930] sm:$0xf0]  ;;  %v12998_v7 = vld [vmem:[#allocation2 + $0x1a24] sm:$0xf]  ;;  %v11161_v50 = vor.u32 %v12934_v43, %v11158_v17 }
 0x1de   :  { %7060 = vmatpush.bf16.msra.mxu2 %v11449_v57  ;;  %v11414_v39 = vld [vmem:[#allocation2 + $0x1a30] sm:$0xf0]  ;;  %v13030_v5 = vld [vmem:[#allocation2 + $0x1b24] sm:$0xf]  ;;  %v11289_v19 = vor.u32 %v12966_v59, %v11286_v34 }
 0x1df   :  { %7073 = vmatpush.bf16.msra.mxu3 %v11577_v54  ;;  %v11542_v11 = vld [vmem:[#allocation2 + $0x1b30] sm:$0xf0]  ;;  %v12930_v14 = vld [vmem:[#allocation2 + $0x1804] sm:$0xf]  ;;  %v11417_v57 = vor.u32 %v12998_v7, %v11414_v39 }
 0x1e0   :  { %7035 = vmatpush.bf16.msra.mxu0 %v11177_v3  ;;  %v11142_v18 = vld [vmem:[#allocation2 + $0x1810] sm:$0xf0]  ;;  %v12962_v49 = vld [vmem:[#allocation2 + $0x1904] sm:$0xf]  ;;  %v11545_v54 = vor.u32 %v13030_v5, %v11542_v11 }
 0x1e1   :  { %7048 = vmatpush.bf16.msra.mxu1 %v11305_v56  ;;  %v11270_v32 = vld [vmem:[#allocation2 + $0x1910] sm:$0xf0]  ;;  %v12994_v24 = vld [vmem:[#allocation2 + $0x1a04] sm:$0xf]  ;;  %v11145_v3 = vor.u32 %v12930_v14, %v11142_v18 }
 0x1e2   :  { %7061 = vmatpush.bf16.msra.mxu2 %v11433_v58  ;;  %v11398_v36 = vld [vmem:[#allocation2 + $0x1a10] sm:$0xf0]  ;;  %v13026_v60 = vld [vmem:[#allocation2 + $0x1b04] sm:$0xf]  ;;  %v11273_v43 = vor.u32 %v12962_v49, %v11270_v32 }
 0x1e3   :  { %7074 = vmatpush.bf16.msra.mxu3 %v11561_v62  ;;  %v11526_v48 = vld [vmem:[#allocation2 + $0x1b10] sm:$0xf0]  ;;  %v13086_v55 = vld [vmem:[#allocation2 + $0x1ce4] sm:$0xf]  ;;  %v11401_v17 = vor.u32 %v12994_v24, %v11398_v36 }
 0x1e4   :  { %v11766_v0 = vld [vmem:[#allocation2 + $0x1cf0] sm:$0xf0]  ;;  %v13118_v53 = vld [vmem:[#allocation2 + $0x1de4] sm:$0xf]  ;;  %7036 = vmatpush.bf16.msra.mxu0 %v11161_v50  ;;  %v11529_v62 = vor.u32 %v13026_v60, %v11526_v48 }
 0x1e5   :  { %v11894_v26 = vld [vmem:[#allocation2 + $0x1df0] sm:$0xf0]  ;;  %v13150_v56 = vld [vmem:[#allocation2 + $0x1ee4] sm:$0xf]  ;;  %7049 = vmatpush.bf16.msra.mxu1 %v11289_v19  ;;  %v11769_v34 = vor.u32 %v13086_v55, %v11766_v0 }
 0x1e6   :  { %v12022_v58 = vld [vmem:[#allocation2 + $0x1ef0] sm:$0xf0]  ;;  %7062 = vmatpush.bf16.msra.mxu2 %v11417_v57  ;;  %v13182_v59 = vld [vmem:[#allocation2 + $0x1fe4] sm:$0xf]  ;;  %v11897_v7 = vor.u32 %v13118_v53, %v11894_v26 }
 0x1e7   :  { %v12150_v61 = vld [vmem:[#allocation2 + $0x1ff0] sm:$0xf0]  ;;  %7075 = vmatpush.bf16.msra.mxu3 %v11545_v54  ;;  %v12025_v39 = vor.u32 %v13150_v56, %v12022_v58  ;;  %v13082_v5 = vld [vmem:[#allocation2 + $0x1cc4] sm:$0xf] }
 0x1e8   :  { %v11750_v11 = vld [vmem:[#allocation2 + $0x1cd0] sm:$0xf0]  ;;  %v13114_v47 = vld [vmem:[#allocation2 + $0x1dc4] sm:$0xf]  ;;  %7037 = vmatpush.bf16.msra.mxu0 %v11145_v3  ;;  %v12153_v50 = vor.u32 %v13182_v59, %v12150_v61 }
 0x1e9   :  { %v11878_v14 = vld [vmem:[#allocation2 + $0x1dd0] sm:$0xf0]  ;;  %v13146_v18 = vld [vmem:[#allocation2 + $0x1ec4] sm:$0xf]  ;;  %7050 = vmatpush.bf16.msra.mxu1 %v11273_v43  ;;  %v11753_v49 = vor.u32 %v13082_v5, %v11750_v11  ;;  %v6831_v5 = vpop.f32.mrf.mxu0 }
 0x1ea   :  { %v12006_v40 = vld [vmem:[#allocation2 + $0x1ed0] sm:$0xf0]  ;;  %7063 = vmatpush.bf16.msra.mxu2 %v11401_v17  ;;  %v13178_v19 = vld [vmem:[#allocation2 + $0x1fc4] sm:$0xf]  ;;  %v11881_v32 = vor.u32 %v13114_v47, %v11878_v14 }
 0x1eb   :  { %v12134_v57 = vld [vmem:[#allocation2 + $0x1fd0] sm:$0xf0]  ;;  %7076 = vmatpush.bf16.msra.mxu3 %v11529_v62  ;;  %v12009_v24 = vor.u32 %v13146_v18, %v12006_v40  ;;  %v13078_v54 = vld [vmem:[#allocation2 + $0x1ca4] sm:$0xf]  ;;  %7038 = vmatmul.bf16.vlgmr.msra.gmra.mxu0 %v13365_v2  ;;  %v6844_v18 = vpop.f32.mrf.mxu1 }
 0x1ec   :  { %7082 = vmatpush.bf16.msrb.mxu0 %v11769_v34  ;;  %v11734_v36 = vld [vmem:[#allocation2 + $0x1cb0] sm:$0xf0]  ;;  %v13110_v60 = vld [vmem:[#allocation2 + $0x1da4] sm:$0xf]  ;;  %v12137_v48 = vor.u32 %v13178_v19, %v12134_v57  ;;  %7051 = vmatmul.bf16.vlgmr.msra.gmra.mxu1 %v13369_v10 }
 0x1ed   :  { %7095 = vmatpush.bf16.msrb.mxu1 %v11897_v7  ;;  %v11862_v55 = vld [vmem:[#allocation2 + $0x1db0] sm:$0xf0]  ;;  %v13142_v0 = vld [vmem:[#allocation2 + $0x1ea4] sm:$0xf]  ;;  %7064 = vmatmul.bf16.vlgmr.msra.gmra.mxu2 %v13367_v9  ;;  %v11737_v56 = vor.u32 %v13078_v54, %v11734_v36 }
 0x1ee   :  { %7108 = vmatpush.bf16.msrb.mxu2 %v12025_v39  ;;  %v11990_v53 = vld [vmem:[#allocation2 + $0x1eb0] sm:$0xf0]  ;;  %v13174_v3 = vld [vmem:[#allocation2 + $0x1fa4] sm:$0xf]  ;;  %7077 = vmatmul.bf16.vlgmr.msra.gmra.mxu3 %v13371_v15  ;;  %v11865_v58 = vor.u32 %v13110_v60, %v11862_v55 }
 0x1ef   :  { %7121 = vmatpush.bf16.msrb.mxu3 %v12153_v50  ;;  %v12118_v26 = vld [vmem:[#allocation2 + $0x1fb0] sm:$0xf0]  ;;  %v11993_v43 = vor.u32 %v13142_v0, %v11990_v53  ;;  %v13074_v17 = vld [vmem:[#allocation2 + $0x1c84] sm:$0xf]  ;;  %v6832_v50 = vadd.f32 %v6831_v5, %v13440_v1 }
 0x1f0   :  { %7083 = vmatpush.bf16.msrb.mxu0 %v11753_v49  ;;  %v11718_v59 = vld [vmem:[#allocation2 + $0x1c90] sm:$0xf0]  ;;  %v13106_v61 = vld [vmem:[#allocation2 + $0x1d84] sm:$0xf]  ;;  %v12121_v62 = vor.u32 %v13174_v3, %v12118_v26 }
 0x1f1   :  { %7096 = vmatpush.bf16.msrb.mxu1 %v11881_v32  ;;  %v11846_v34 = vld [vmem:[#allocation2 + $0x1d90] sm:$0xf0]  ;;  %v13138_v7 = vld [vmem:[#allocation2 + $0x1e84] sm:$0xf]  ;;  %v11721_v14 = vor.u32 %v13074_v17, %v11718_v59  ;;  %v6845_v54 = vadd.f32 %v6844_v18, %v6832_v50  ;;  %v6857_v17 = vpop.f32.mrf.mxu2 }
 0x1f2   :  { %7109 = vmatpush.bf16.msrb.mxu2 %v12009_v24  ;;  %v11974_v39 = vld [vmem:[#allocation2 + $0x1e90] sm:$0xf0]  ;;  %v13170_v11 = vld [vmem:[#allocation2 + $0x1f84] sm:$0xf]  ;;  %v11849_v40 = vor.u32 %v13106_v61, %v11846_v34 }
 0x1f3   :  { %7122 = vmatpush.bf16.msrb.mxu3 %v12137_v48  ;;  %v12102_v47 = vld [vmem:[#allocation2 + $0x1f90] sm:$0xf0]  ;;  %v11977_v19 = vor.u32 %v13138_v7, %v11974_v39  ;;  %v13070_v57 = vld [vmem:[#allocation2 + $0x1c64] sm:$0xf]  ;;  %v6858_v34 = vadd.f32 %v6857_v17, %v6845_v54  ;;  %v6870_v7 = vpop.f32.mrf.mxu3  ;;  %v6846_v50 = vpop.f32.mrf.mxu1 }
 0x1f4   :  { %7084 = vmatpush.bf16.msrb.mxu0 %v11737_v56  ;;  %v11702_v49 = vld [vmem:[#allocation2 + $0x1c70] sm:$0xf0]  ;;  %v13102_v32 = vld [vmem:[#allocation2 + $0x1d64] sm:$0xf]  ;;  %v12105_v24 = vor.u32 %v13170_v11, %v12102_v47  ;;  %v6833_v11 = vpop.f32.mrf.mxu0  ;;  %v8444_v50 = vld [vmem:[#allocation2 + $0x2e8] sm:$0xf] }
 0x1f5   :  { %7097 = vmatpush.bf16.msrb.mxu1 %v11865_v58  ;;  %v11830_v36 = vld [vmem:[#allocation2 + $0x1d70] sm:$0xf0]  ;;  %v13134_v60 = vld [vmem:[#allocation2 + $0x1e64] sm:$0xf]  ;;  %v11705_v53 = vor.u32 %v13070_v57, %v11702_v49 }
 0x1f6   :  { %7110 = vmatpush.bf16.msrb.mxu2 %v11993_v43  ;;  %v11958_v48 = vld [vmem:[#allocation2 + $0x1e70] sm:$0xf0]  ;;  %v13166_v55 = vld [vmem:[#allocation2 + $0x1f64] sm:$0xf]  ;;  %v11833_v1 = vor.u32 %v13102_v32, %v11830_v36 }
 0x1f7   :  { %7123 = vmatpush.bf16.msrb.mxu3 %v12121_v62  ;;  %v12086_v0 = vld [vmem:[#allocation2 + $0x1f70] sm:$0xf0]  ;;  %v11961_v3 = vor.u32 %v13134_v60, %v11958_v48  ;;  %v13066_v26 = vld [vmem:[#allocation2 + $0x1c44] sm:$0xf] }
 0x1f8   :  { %7085 = vmatpush.bf16.msrb.mxu0 %v11721_v14  ;;  %v11686_v56 = vld [vmem:[#allocation2 + $0x1c50] sm:$0xf0]  ;;  %v13098_v58 = vld [vmem:[#allocation2 + $0x1d44] sm:$0xf]  ;;  %v12089_v43 = vor.u32 %v13166_v55, %v12086_v0  ;;  %v13447_v14 = vadd.f32 %v6870_v7, %v6858_v34  ;;  %v8188_v34 = vld [vmem:[#allocation2 + $0xe8] sm:$0xf] }
 0x1f9   :  { %7098 = vmatpush.bf16.msrb.mxu1 %v11849_v40  ;;  %v11814_v59 = vld [vmem:[#allocation2 + $0x1d50] sm:$0xf0]  ;;  %v13130_v61 = vld [vmem:[#allocation2 + $0x1e44] sm:$0xf]  ;;  %v11689_v47 = vor.u32 %v13066_v26, %v11686_v56  ;;  %v12193_v7 = vld [vmem:[#allocation2 + $0xf4] sm:$0xf0] }
 0x1fa   :  { %7111 = vmatpush.bf16.msrb.mxu2 %v11977_v19  ;;  %v11942_v62 = vld [vmem:[#allocation2 + $0x1e50] sm:$0xf0]  ;;  %v13162_v39 = vld [vmem:[#allocation2 + $0x1f44] sm:$0xf]  ;;  %v11817_v18 = vor.u32 %v13098_v58, %v11814_v59 }
 0x1fb   :  { %7124 = vmatpush.bf16.msrb.mxu3 %v12105_v24  ;;  %v12070_v5 = vld [vmem:[#allocation2 + $0x1f50] sm:$0xf0]  ;;  %v11945_v40 = vor.u32 %v13130_v61, %v11942_v62  ;;  %v13062_v19 = vld [vmem:[#allocation2 + $0x1c24] sm:$0xf]  ;;  %v6859_v62 = vpop.f32.mrf.mxu2 }
 0x1fc   :  { %7086 = vmatpush.bf16.msrb.mxu0 %v11705_v53  ;;  %v11670_v57 = vld [vmem:[#allocation2 + $0x1c30] sm:$0xf0]  ;;  %v13094_v49 = vld [vmem:[#allocation2 + $0x1d24] sm:$0xf]  ;;  %v12073_v32 = vor.u32 %v13162_v39, %v12070_v5  ;;  %v8316_v39 = vld [vmem:[#allocation2 + $0x1e8] sm:$0xf]  ;;  %v6872_v5 = vpop.f32.mrf.mxu3 }
 0x1fd   :  { %7099 = vmatpush.bf16.msrb.mxu1 %v11833_v1  ;;  %v11798_v24 = vld [vmem:[#allocation2 + $0x1d30] sm:$0xf0]  ;;  %v13126_v54 = vld [vmem:[#allocation2 + $0x1e24] sm:$0xf]  ;;  %v11673_v55 = vor.u32 %v13062_v19, %v11670_v57  ;;  %v8572_v57 = vld [vmem:[#allocation2 + $0x3e8] sm:$0xf] }
 0x1fe   :  { %7112 = vmatpush.bf16.msrb.mxu2 %v11961_v3  ;;  %v11926_v36 = vld [vmem:[#allocation2 + $0x1e30] sm:$0xf0]  ;;  %v13158_v60 = vld [vmem:[#allocation2 + $0x1f24] sm:$0xf]  ;;  %v11801_v1 = vor.u32 %v13094_v49, %v11798_v24  ;;  %v12289_v49 = vld [vmem:[#allocation2 + $0x3f4] sm:$0xf0]  ;;  %v8189_v24 = vor.u32 %v12193_v7, %v8188_v34 }
 0x1ff   :  { %7125 = vmatpush.bf16.msrb.mxu3 %v12089_v43  ;;  %v12054_v48 = vld [vmem:[#allocation2 + $0x1f30] sm:$0xf0]  ;;  %v13058_v0 = vld [vmem:[#allocation2 + $0x1c04] sm:$0xf]  ;;  %v11929_v3 = vor.u32 %v13126_v54, %v11926_v36  ;;  %v8300_v62 = vld [vmem:[#allocation2 + $0x1c8] sm:$0xf] }
 0x200   :  { %7087 = vmatpush.bf16.msrb.mxu0 %v11689_v47  ;;  %v11654_v53 = vld [vmem:[#allocation2 + $0x1c10] sm:$0xf0]  ;;  %v13090_v26 = vld [vmem:[#allocation2 + $0x1d04] sm:$0xf]  ;;  %v12057_v17 = vor.u32 %v13158_v60, %v12054_v48  ;;  %v12225_v47 = vld [vmem:[#allocation2 + $0x1f4] sm:$0xf0] }
 0x201   :  { %7100 = vmatpush.bf16.msrb.mxu1 %v11817_v18  ;;  %v11782_v56 = vld [vmem:[#allocation2 + $0x1d10] sm:$0xf0]  ;;  %v13122_v58 = vld [vmem:[#allocation2 + $0x1e04] sm:$0xf]  ;;  %v11657_v11 = vor.u32 %v13058_v0, %v11654_v53  ;;  %v12257_v18 = vld [vmem:[#allocation2 + $0x2f4] sm:$0xf0]  ;;  %v8317_v54 = vor.u32 %v12225_v47, %v8316_v39 }
 0x202   :  { %7113 = vmatpush.bf16.msrb.mxu2 %v11945_v40  ;;  %v11910_v43 = vld [vmem:[#allocation2 + $0x1e10] sm:$0xf0]  ;;  %v13154_v59 = vld [vmem:[#allocation2 + $0x1f04] sm:$0xf]  ;;  %v11785_v40 = vor.u32 %v13090_v26, %v11782_v56  ;;  %v8445_v36 = vor.u32 %v12257_v18, %v8444_v50  ;;  %v8172_v60 = vld [vmem:[#allocation2 + $0xc8] sm:$0xf] }
 0x203   :  { %7126 = vmatpush.bf16.msrb.mxu3 %v12073_v32  ;;  %v12038_v61 = vld [vmem:[#allocation2 + $0x1f10] sm:$0xf0]  ;;  %v11913_v19 = vor.u32 %v13122_v58, %v11910_v43  ;;  %v12189_v48 = vld [vmem:[#allocation2 + $0xd4] sm:$0xf0]  ;;  %v8428_v53 = vld [vmem:[#allocation2 + $0x2c8] sm:$0xf] }
 0x204   :  { %7088 = vmatpush.bf16.msrb.mxu0 %v11673_v55  ;;  %v12041_v32 = vor.u32 %v13154_v59, %v12038_v61  ;;  %v8573_v55 = vor.u32 %v12289_v49, %v8572_v57  ;;  %v12221_v0 = vld [vmem:[#allocation2 + $0x1d4] sm:$0xf0]  ;;  %v8173_v26 = vor.u32 %v12189_v48, %v8172_v60  ;;  %v8284_v59 = vld [vmem:[#allocation2 + $0x1a8] sm:$0xf] }
 0x205   :  { %7101 = vmatpush.bf16.msrb.mxu1 %v11801_v1  ;;  %v12253_v5 = vld [vmem:[#allocation2 + $0x2d4] sm:$0xf0]  ;;  %v8556_v1 = vld [vmem:[#allocation2 + $0x3c8] sm:$0xf]  ;;  %v8301_v56 = vor.u32 %v12221_v0, %v8300_v62 }
 0x206   :  { %7114 = vmatpush.bf16.msrb.mxu2 %v11929_v3  ;;  %v12285_v3 = vld [vmem:[#allocation2 + $0x3d4] sm:$0xf0]  ;;  %v8429_v58 = vor.u32 %v12253_v5, %v8428_v53  ;;  %v8412_v7 = vld [vmem:[#allocation2 + $0x2a8] sm:$0xf] }
 0x207   :  { %7127 = vmatpush.bf16.msrb.mxu3 %v12057_v17  ;;  %v8156_v17 = vld [vmem:[#allocation2 + $0xa8] sm:$0xf]  ;;  %v12185_v43 = vld [vmem:[#allocation2 + $0xb4] sm:$0xf0]  ;;  %v8557_v61 = vor.u32 %v12285_v3, %v8556_v1 }
 0x208   :  { %7089 = vmatpush.bf16.msrb.mxu0 %v11657_v11  ;;  %v12217_v34 = vld [vmem:[#allocation2 + $0x1b4] sm:$0xf0]  ;;  %v8540_v11 = vld [vmem:[#allocation2 + $0x3a8] sm:$0xf]  ;;  %v8157_v50 = vor.u32 %v12185_v43, %v8156_v17  ;;  %v6883_v60 = vpop.f32.mrf.mxu0 }
 0x209   :  { %7102 = vmatpush.bf16.msrb.mxu1 %v11785_v40  ;;  %v12249_v39 = vld [vmem:[#allocation2 + $0x2b4] sm:$0xf0]  ;;  %v8285_v18 = vor.u32 %v12217_v34, %v8284_v59  ;;  %v8268_v49 = vld [vmem:[#allocation2 + $0x188] sm:$0xf]  ;;  %v6896_v53 = vpop.f32.mrf.mxu1 }
 0x20a   :  { %7115 = vmatpush.bf16.msrb.mxu2 %v11913_v19  ;;  %v12281_v47 = vld [vmem:[#allocation2 + $0x3b4] sm:$0xf0]  ;;  %v8413_v40 = vor.u32 %v12249_v39, %v8412_v7  ;;  %v8140_v19 = vld [vmem:[#allocation2 + $0x88] sm:$0xf] }
 0x20b   :  { %7128 = vmatpush.bf16.msrb.mxu3 %v12041_v32  ;;  %7090 = vmatmul.bf16.vlgmr.msrb.gmra.mxu0 %v13386_v51  ;;  %v12181_v57 = vld [vmem:[#allocation2 + $0x94] sm:$0xf0]  ;;  %v8541_v32 = vor.u32 %v12281_v47, %v8540_v11  ;;  %v8524_v48 = vld [vmem:[#allocation2 + $0x388] sm:$0xf] }
 0x20c   :  { %7134 = vmatpush.bf16.msra.mxu0 %v8189_v24  ;;  %7103 = vmatmul.bf16.vlgmr.msrb.gmra.mxu1 %v13390_v52  ;;  %v12213_v24 = vld [vmem:[#allocation2 + $0x194] sm:$0xf0]  ;;  %v8141_v0 = vor.u32 %v12181_v57, %v8140_v19  ;;  %v8124_v3 = vld [vmem:[#allocation2 + $0x68] sm:$0xf] }
 0x20d   :  { %7147 = vmatpush.bf16.msra.mxu1 %v8317_v54  ;;  %7116 = vmatmul.bf16.vlgmr.msrb.gmra.mxu2 %v13388_v27  ;;  %v8396_v54 = vld [vmem:[#allocation2 + $0x288] sm:$0xf]  ;;  %v12277_v62 = vld [vmem:[#allocation2 + $0x394] sm:$0xf0]  ;;  %v8269_v5 = vor.u32 %v12213_v24, %v8268_v49 }
 0x20e   :  { %7160 = vmatpush.bf16.msra.mxu2 %v8445_v36  ;;  %7129 = vmatmul.bf16.vlgmr.msrb.gmra.mxu3 %v13392_v22  ;;  %v12245_v36 = vld [vmem:[#allocation2 + $0x294] sm:$0xf0]  ;;  %v8380_v59 = vld [vmem:[#allocation2 + $0x268] sm:$0xf] }
 0x20f   :  { %7173 = vmatpush.bf16.msra.mxu3 %v8573_v55  ;;  %v6884_v55 = vadd.f32 %v6883_v60, %v13447_v14  ;;  %v8397_v1 = vor.u32 %v12245_v36, %v8396_v54  ;;  %v12209_v43 = vld [vmem:[#allocation2 + $0x174] sm:$0xf0]  ;;  %v8508_v34 = vld [vmem:[#allocation2 + $0x368] sm:$0xf] }
 0x210   :  { %7135 = vmatpush.bf16.msra.mxu0 %v8173_v26  ;;  %v12177_v26 = vld [vmem:[#allocation2 + $0x74] sm:$0xf0]  ;;  %v8108_v47 = vld [vmem:[#allocation2 + $0x48] sm:$0xf]  ;;  %v6909_v19 = vpop.f32.mrf.mxu2 }
 0x211   :  { %7148 = vmatpush.bf16.msra.mxu1 %v8301_v56  ;;  %v8252_v56 = vld [vmem:[#allocation2 + $0x168] sm:$0xf]  ;;  %v6897_v17 = vadd.f32 %v6896_v53, %v6884_v55  ;;  %v12273_v7 = vld [vmem:[#allocation2 + $0x374] sm:$0xf0]  ;;  %v8125_v39 = vor.u32 %v12177_v26, %v8124_v3  ;;  %v6922_v54 = vpop.f32.mrf.mxu3  ;;  %v6898_v55 = vpop.f32.mrf.mxu1 }
 0x212   :  { %7161 = vmatpush.bf16.msra.mxu2 %v8429_v58  ;;  %v8525_v58 = vor.u32 %v12277_v62, %v8524_v48  ;;  %v8253_v14 = vor.u32 %v12209_v43, %v8252_v56  ;;  %v12205_v57 = vld [vmem:[#allocation2 + $0x154] sm:$0xf0]  ;;  %v8364_v49 = vld [vmem:[#allocation2 + $0x248] sm:$0xf]  ;;  %v6885_v48 = vpop.f32.mrf.mxu0 }
 0x213   :  { %7174 = vmatpush.bf16.msra.mxu3 %v8557_v61  ;;  %v12241_v61 = vld [vmem:[#allocation2 + $0x274] sm:$0xf0]  ;;  %v6910_v24 = vadd.f32 %v6909_v19, %v6897_v17  ;;  %v8492_v36 = vld [vmem:[#allocation2 + $0x348] sm:$0xf] }
 0x214   :  { %7136 = vmatpush.bf16.msra.mxu0 %v8157_v50  ;;  %v8381_v11 = vor.u32 %v12241_v61, %v8380_v59  ;;  %v12173_v50 = vld [vmem:[#allocation2 + $0x54] sm:$0xf0]  ;;  %v8220_v26 = vld [vmem:[#allocation2 + $0x128] sm:$0xf] }
 0x215   :  { %7149 = vmatpush.bf16.msra.mxu1 %v8285_v18  ;;  %v8236_v18 = vld [vmem:[#allocation2 + $0x148] sm:$0xf]  ;;  %v12269_v60 = vld [vmem:[#allocation2 + $0x354] sm:$0xf0]  ;;  %v8109_v62 = vor.u32 %v12173_v50, %v8108_v47 }
 0x216   :  { %7162 = vmatpush.bf16.msra.mxu2 %v8413_v40  ;;  %v8509_v40 = vor.u32 %v12273_v7, %v8508_v34  ;;  %v8237_v53 = vor.u32 %v12205_v57, %v8236_v18  ;;  %v12169_v3 = vld [vmem:[#allocation2 + $0x34] sm:$0xf0]  ;;  %v8493_v56 = vor.u32 %v12269_v60, %v8492_v36  ;;  %v8348_v17 = vld [vmem:[#allocation2 + $0x228] sm:$0xf] }
 0x217   :  { %7175 = vmatpush.bf16.msra.mxu3 %v8541_v32  ;;  %v12237_v32 = vld [vmem:[#allocation2 + $0x254] sm:$0xf0]  ;;  %v8476_v59 = vld [vmem:[#allocation2 + $0x328] sm:$0xf] }
 0x218   :  { %7137 = vmatpush.bf16.msra.mxu0 %v8141_v0  ;;  %v13454_v0 = vadd.f32 %v6922_v54, %v6910_v24  ;;  %v12233_v43 = vld [vmem:[#allocation2 + $0x234] sm:$0xf0]  ;;  %v8076_v7 = vld [vmem:[#allocation2 + $0x8] sm:$0xf] }
 0x219   :  { %7150 = vmatpush.bf16.msra.mxu1 %v8269_v5  ;;  %v8365_v5 = vor.u32 %v12237_v32, %v8364_v49  ;;  %v12265_v61 = vld [vmem:[#allocation2 + $0x334] sm:$0xf0]  ;;  %v8204_v47 = vld [vmem:[#allocation2 + $0x108] sm:$0xf]  ;;  %v6911_v32 = vpop.f32.mrf.mxu2  ;;  %v6924_v60 = vpop.f32.mrf.mxu3 }
 0x21a   :  { %7163 = vmatpush.bf16.msra.mxu2 %v8397_v1  ;;  %v8092_v1 = vld [vmem:[#allocation2 + $0x28] sm:$0xf]  ;;  %v12197_v50 = vld [vmem:[#allocation2 + $0x114] sm:$0xf0]  ;;  %v8477_v19 = vor.u32 %v12265_v61, %v8476_v59 }
 0x21b   :  { %7176 = vmatpush.bf16.msra.mxu3 %v8525_v58  ;;  %v12201_v58 = vld [vmem:[#allocation2 + $0x134] sm:$0xf0]  ;;  %v8093_v34 = vor.u32 %v12169_v3, %v8092_v1  ;;  %v8332_v18 = vld [vmem:[#allocation2 + $0x208] sm:$0xf] }
 0x21c   :  { %7138 = vmatpush.bf16.msra.mxu0 %v8125_v39  ;;  %v12165_v39 = vld [vmem:[#allocation2 + $0x14] sm:$0xf0]  ;;  %v8460_v57 = vld [vmem:[#allocation2 + $0x308] sm:$0xf] }
 0x21d   :  { %7151 = vmatpush.bf16.msra.mxu1 %v8253_v14  ;;  %v8221_v14 = vor.u32 %v12201_v58, %v8220_v26  ;;  %v12261_v49 = vld [vmem:[#allocation2 + $0x314] sm:$0xf0]  ;;  %v8700_v24 = vld [vmem:[#allocation2 + $0x4e8] sm:$0xf]  ;;  %v8077_v48 = vor.u32 %v12165_v39, %v8076_v7 }
 0x21e   :  { %7164 = vmatpush.bf16.msra.mxu2 %v8381_v11  ;;  %v8349_v11 = vor.u32 %v12233_v43, %v8348_v17  ;;  %v12321_v54 = vld [vmem:[#allocation2 + $0x4f4] sm:$0xf0]  ;;  %v8828_v36 = vld [vmem:[#allocation2 + $0x5e8] sm:$0xf] }
 0x21f   :  { %7177 = vmatpush.bf16.msra.mxu3 %v8509_v40  ;;  %v12229_v40 = vld [vmem:[#allocation2 + $0x214] sm:$0xf0]  ;;  %v8956_v55 = vld [vmem:[#allocation2 + $0x6e8] sm:$0xf]  ;;  %v8701_v58 = vor.u32 %v12321_v54, %v8700_v24 }
 0x220   :  { %7139 = vmatpush.bf16.msra.mxu0 %v8109_v62  ;;  %v12353_v62 = vld [vmem:[#allocation2 + $0x5f4] sm:$0xf0]  ;;  %v8333_v1 = vor.u32 %v12229_v40, %v8332_v18  ;;  %v9084_v3 = vld [vmem:[#allocation2 + $0x7e8] sm:$0xf] }
 0x221   :  { %7152 = vmatpush.bf16.msra.mxu1 %v8237_v53  ;;  %v12385_v53 = vld [vmem:[#allocation2 + $0x6f4] sm:$0xf0]  ;;  %v8829_v17 = vor.u32 %v12353_v62, %v8828_v36  ;;  %v8684_v59 = vld [vmem:[#allocation2 + $0x4c8] sm:$0xf] }
 0x222   :  { %7165 = vmatpush.bf16.msra.mxu2 %v8365_v5  ;;  %v8205_v5 = vor.u32 %v12197_v50, %v8204_v47  ;;  %v12417_v26 = vld [vmem:[#allocation2 + $0x7f4] sm:$0xf0]  ;;  %v8957_v43 = vor.u32 %v12385_v53, %v8956_v55  ;;  %v8812_v32 = vld [vmem:[#allocation2 + $0x5c8] sm:$0xf] }
 0x223   :  { %7178 = vmatpush.bf16.msra.mxu3 %v8493_v56  ;;  %v8461_v56 = vor.u32 %v12261_v49, %v8460_v57  ;;  %v12317_v61 = vld [vmem:[#allocation2 + $0x4d4] sm:$0xf0]  ;;  %v8940_v39 = vld [vmem:[#allocation2 + $0x6c8] sm:$0xf] }
 0x224   :  { %7140 = vmatpush.bf16.msra.mxu0 %v8093_v34  ;;  %v9085_v34 = vor.u32 %v12417_v26, %v9084_v3  ;;  %v12349_v7 = vld [vmem:[#allocation2 + $0x5d4] sm:$0xf0]  ;;  %v8685_v47 = vor.u32 %v12317_v61, %v8684_v59  ;;  %v8796_v57 = vld [vmem:[#allocation2 + $0x5a8] sm:$0xf] }
 0x225   :  { %7153 = vmatpush.bf16.msra.mxu1 %v8221_v14  ;;  %v12381_v60 = vld [vmem:[#allocation2 + $0x6d4] sm:$0xf0]  ;;  %v9068_v14 = vld [vmem:[#allocation2 + $0x7c8] sm:$0xf]  ;;  %v8813_v50 = vor.u32 %v12349_v7, %v8812_v32 }
 0x226   :  { %7166 = vmatpush.bf16.msra.mxu2 %v8349_v11  ;;  %v12413_v11 = vld [vmem:[#allocation2 + $0x7d4] sm:$0xf0]  ;;  %v8941_v18 = vor.u32 %v12381_v60, %v8940_v39  ;;  %v8924_v54 = vld [vmem:[#allocation2 + $0x6a8] sm:$0xf] }
 0x227   :  { %7179 = vmatpush.bf16.msra.mxu3 %v8477_v19  ;;  %v8668_v19 = vld [vmem:[#allocation2 + $0x4a8] sm:$0xf]  ;;  %v12313_v40 = vld [vmem:[#allocation2 + $0x4b4] sm:$0xf0]  ;;  %v9069_v49 = vor.u32 %v12413_v11, %v9068_v14 }
 0x228   :  { %7141 = vmatpush.bf16.msra.mxu0 %v8077_v48  ;;  %v12345_v24 = vld [vmem:[#allocation2 + $0x5b4] sm:$0xf0]  ;;  %v9052_v48 = vld [vmem:[#allocation2 + $0x7a8] sm:$0xf]  ;;  %v8669_v55 = vor.u32 %v12313_v40, %v8668_v19  ;;  %v6935_v59 = vpop.f32.mrf.mxu0 }
 0x229   :  { %7154 = vmatpush.bf16.msra.mxu1 %v8205_v5  ;;  %v12377_v36 = vld [vmem:[#allocation2 + $0x6b4] sm:$0xf0]  ;;  %v8797_v53 = vor.u32 %v12345_v24, %v8796_v57  ;;  %v8780_v26 = vld [vmem:[#allocation2 + $0x588] sm:$0xf]  ;;  %v6948_v39 = vpop.f32.mrf.mxu1 }
 0x22a   :  { %7167 = vmatpush.bf16.msra.mxu2 %v8333_v1  ;;  %v12409_v62 = vld [vmem:[#allocation2 + $0x7b4] sm:$0xf0]  ;;  %v8925_v5 = vor.u32 %v12377_v36, %v8924_v54  ;;  %v8652_v1 = vld [vmem:[#allocation2 + $0x488] sm:$0xf] }
 0x22b   :  { %7180 = vmatpush.bf16.msra.mxu3 %v8461_v56  ;;  %7142 = vmatmul.bf16.vlgmr.msra.gmra.mxu0 %v13257_v20  ;;  %v12309_v3 = vld [vmem:[#allocation2 + $0x494] sm:$0xf0]  ;;  %v9053_v56 = vor.u32 %v12409_v62, %v9052_v48  ;;  %v9036_v61 = vld [vmem:[#allocation2 + $0x788] sm:$0xf] }
 0x22c   :  { %7186 = vmatpush.bf16.msrb.mxu0 %v8701_v58  ;;  %7155 = vmatmul.bf16.vlgmr.msra.gmra.mxu1 %v13260_v21  ;;  %v12341_v58 = vld [vmem:[#allocation2 + $0x594] sm:$0xf0]  ;;  %v8653_v7 = vor.u32 %v12309_v3, %v8652_v1  ;;  %v8636_v11 = vld [vmem:[#allocation2 + $0x468] sm:$0xf] }
 0x22d   :  { %7199 = vmatpush.bf16.msrb.mxu1 %v8829_v17  ;;  %7168 = vmatmul.bf16.vlgmr.msra.gmra.mxu2 %v13249_v4  ;;  %v8908_v17 = vld [vmem:[#allocation2 + $0x688] sm:$0xf]  ;;  %v12405_v32 = vld [vmem:[#allocation2 + $0x794] sm:$0xf0]  ;;  %v8781_v60 = vor.u32 %v12341_v58, %v8780_v26 }
 0x22e   :  { %7212 = vmatpush.bf16.msrb.mxu2 %v8957_v43  ;;  %7181 = vmatmul.bf16.vlgmr.msra.gmra.mxu3 %v13254_v6  ;;  %v12373_v43 = vld [vmem:[#allocation2 + $0x694] sm:$0xf0]  ;;  %v8892_v57 = vld [vmem:[#allocation2 + $0x668] sm:$0xf] }
 0x22f   :  { %7225 = vmatpush.bf16.msrb.mxu3 %v9085_v34  ;;  %v6936_v34 = vadd.f32 %v6935_v59, %v13454_v0  ;;  %v8909_v14 = vor.u32 %v12373_v43, %v8908_v17  ;;  %v12337_v40 = vld [vmem:[#allocation2 + $0x574] sm:$0xf0]  ;;  %v9020_v24 = vld [vmem:[#allocation2 + $0x768] sm:$0xf] }
 0x230   :  { %7187 = vmatpush.bf16.msrb.mxu0 %v8685_v47  ;;  %v12305_v47 = vld [vmem:[#allocation2 + $0x474] sm:$0xf0]  ;;  %v8620_v62 = vld [vmem:[#allocation2 + $0x448] sm:$0xf]  ;;  %v6961_v1 = vpop.f32.mrf.mxu2 }
 0x231   :  { %7200 = vmatpush.bf16.msrb.mxu1 %v8813_v50  ;;  %v8764_v50 = vld [vmem:[#allocation2 + $0x568] sm:$0xf]  ;;  %v6949_v19 = vadd.f32 %v6948_v39, %v6936_v34  ;;  %v12401_v54 = vld [vmem:[#allocation2 + $0x774] sm:$0xf0]  ;;  %v8637_v36 = vor.u32 %v12305_v47, %v8636_v11  ;;  %v6974_v17 = vpop.f32.mrf.mxu3  ;;  %v6950_v34 = vpop.f32.mrf.mxu1 }
 0x232   :  { %7213 = vmatpush.bf16.msrb.mxu2 %v8941_v18  ;;  %v9037_v18 = vor.u32 %v12405_v32, %v9036_v61  ;;  %v8765_v0 = vor.u32 %v12337_v40, %v8764_v50  ;;  %v12333_v3 = vld [vmem:[#allocation2 + $0x554] sm:$0xf0]  ;;  %v8876_v26 = vld [vmem:[#allocation2 + $0x648] sm:$0xf]  ;;  %v6937_v61 = vpop.f32.mrf.mxu0 }
 0x233   :  { %7226 = vmatpush.bf16.msrb.mxu3 %v9069_v49  ;;  %v12369_v49 = vld [vmem:[#allocation2 + $0x674] sm:$0xf0]  ;;  %v6962_v58 = vadd.f32 %v6961_v1, %v6949_v19  ;;  %v9004_v43 = vld [vmem:[#allocation2 + $0x748] sm:$0xf] }
 0x234   :  { %7188 = vmatpush.bf16.msrb.mxu0 %v8669_v55  ;;  %v8893_v48 = vor.u32 %v12369_v49, %v8892_v57  ;;  %v12301_v55 = vld [vmem:[#allocation2 + $0x454] sm:$0xf0]  ;;  %v8732_v47 = vld [vmem:[#allocation2 + $0x528] sm:$0xf] }
 0x235   :  { %7201 = vmatpush.bf16.msrb.mxu1 %v8797_v53  ;;  %v8748_v53 = vld [vmem:[#allocation2 + $0x548] sm:$0xf]  ;;  %v12397_v59 = vld [vmem:[#allocation2 + $0x754] sm:$0xf0]  ;;  %v8621_v32 = vor.u32 %v12301_v55, %v8620_v62 }
 0x236   :  { %7214 = vmatpush.bf16.msrb.mxu2 %v8925_v5  ;;  %v9021_v5 = vor.u32 %v12401_v54, %v9020_v24  ;;  %v8749_v39 = vor.u32 %v12333_v3, %v8748_v53  ;;  %v12297_v11 = vld [vmem:[#allocation2 + $0x434] sm:$0xf0]  ;;  %v9005_v50 = vor.u32 %v12397_v59, %v9004_v43  ;;  %v8860_v19 = vld [vmem:[#allocation2 + $0x628] sm:$0xf] }
 0x237   :  { %7227 = vmatpush.bf16.msrb.mxu3 %v9053_v56  ;;  %v12365_v56 = vld [vmem:[#allocation2 + $0x654] sm:$0xf0]  ;;  %v8988_v57 = vld [vmem:[#allocation2 + $0x728] sm:$0xf] }
 0x238   :  { %7189 = vmatpush.bf16.msrb.mxu0 %v8653_v7  ;;  %v13461_v7 = vadd.f32 %v6974_v17, %v6962_v58  ;;  %v12361_v40 = vld [vmem:[#allocation2 + $0x634] sm:$0xf0]  ;;  %v8588_v54 = vld [vmem:[#allocation2 + $0x408] sm:$0xf] }
 0x239   :  { %7202 = vmatpush.bf16.msrb.mxu1 %v8781_v60  ;;  %v8877_v60 = vor.u32 %v12365_v56, %v8876_v26  ;;  %v12393_v49 = vld [vmem:[#allocation2 + $0x734] sm:$0xf0]  ;;  %v8716_v62 = vld [vmem:[#allocation2 + $0x508] sm:$0xf]  ;;  %v6963_v56 = vpop.f32.mrf.mxu2  ;;  %v6976_v59 = vpop.f32.mrf.mxu3 }
 0x23a   :  { %7215 = vmatpush.bf16.msrb.mxu2 %v8909_v14  ;;  %v8604_v14 = vld [vmem:[#allocation2 + $0x428] sm:$0xf]  ;;  %v12325_v55 = vld [vmem:[#allocation2 + $0x514] sm:$0xf0]  ;;  %v8989_v1 = vor.u32 %v12393_v49, %v8988_v57 }
 0x23b   :  { %7228 = vmatpush.bf16.msrb.mxu3 %v9037_v18  ;;  %v12329_v18 = vld [vmem:[#allocation2 + $0x534] sm:$0xf0]  ;;  %v8605_v24 = vor.u32 %v12297_v11, %v8604_v14  ;;  %v8844_v53 = vld [vmem:[#allocation2 + $0x608] sm:$0xf] }
 0x23c   :  { %7190 = vmatpush.bf16.msrb.mxu0 %v8637_v36  ;;  %v12293_v36 = vld [vmem:[#allocation2 + $0x414] sm:$0xf0]  ;;  %v8972_v3 = vld [vmem:[#allocation2 + $0x708] sm:$0xf] }
 0x23d   :  { %7203 = vmatpush.bf16.msrb.mxu1 %v8765_v0  ;;  %v8733_v0 = vor.u32 %v12329_v18, %v8732_v47  ;;  %v12389_v26 = vld [vmem:[#allocation2 + $0x714] sm:$0xf0]  ;;  %v9212_v58 = vld [vmem:[#allocation2 + $0x8e8] sm:$0xf]  ;;  %v8589_v61 = vor.u32 %v12293_v36, %v8588_v54 }
 0x23e   :  { %7216 = vmatpush.bf16.msrb.mxu2 %v8893_v48  ;;  %v8861_v48 = vor.u32 %v12361_v40, %v8860_v19  ;;  %v12449_v17 = vld [vmem:[#allocation2 + $0x8f4] sm:$0xf0]  ;;  %v9340_v43 = vld [vmem:[#allocation2 + $0x9e8] sm:$0xf] }
 0x23f   :  { %7229 = vmatpush.bf16.msrb.mxu3 %v9021_v5  ;;  %v12357_v5 = vld [vmem:[#allocation2 + $0x614] sm:$0xf0]  ;;  %v9468_v34 = vld [vmem:[#allocation2 + $0xae8] sm:$0xf]  ;;  %v9213_v18 = vor.u32 %v12449_v17, %v9212_v58 }
 0x240   :  { %7191 = vmatpush.bf16.msrb.mxu0 %v8621_v32  ;;  %v12481_v32 = vld [vmem:[#allocation2 + $0x9f4] sm:$0xf0]  ;;  %v8845_v14 = vor.u32 %v12357_v5, %v8844_v53  ;;  %v9596_v11 = vld [vmem:[#allocation2 + $0xbe8] sm:$0xf] }
 0x241   :  { %7204 = vmatpush.bf16.msrb.mxu1 %v8749_v39  ;;  %v12513_v39 = vld [vmem:[#allocation2 + $0xaf4] sm:$0xf0]  ;;  %v9341_v19 = vor.u32 %v12481_v32, %v9340_v43  ;;  %v9196_v57 = vld [vmem:[#allocation2 + $0x8c8] sm:$0xf] }
 0x242   :  { %7217 = vmatpush.bf16.msrb.mxu2 %v8877_v60  ;;  %v8717_v60 = vor.u32 %v12325_v55, %v8716_v62  ;;  %v12545_v47 = vld [vmem:[#allocation2 + $0xbf4] sm:$0xf0]  ;;  %v9469_v40 = vor.u32 %v12513_v39, %v9468_v34  ;;  %v9324_v56 = vld [vmem:[#allocation2 + $0x9c8] sm:$0xf] }
 0x243   :  { %7230 = vmatpush.bf16.msrb.mxu3 %v9005_v50  ;;  %v8973_v50 = vor.u32 %v12389_v26, %v8972_v3  ;;  %v12445_v49 = vld [vmem:[#allocation2 + $0x8d4] sm:$0xf0]  ;;  %v9452_v36 = vld [vmem:[#allocation2 + $0xac8] sm:$0xf] }
 0x244   :  { %7192 = vmatpush.bf16.msrb.mxu0 %v8605_v24  ;;  %v9597_v24 = vor.u32 %v12545_v47, %v9596_v11  ;;  %v12477_v54 = vld [vmem:[#allocation2 + $0x9d4] sm:$0xf0]  ;;  %v9197_v62 = vor.u32 %v12445_v49, %v9196_v57  ;;  %v9308_v3 = vld [vmem:[#allocation2 + $0x9a8] sm:$0xf] }
 0x245   :  { %7205 = vmatpush.bf16.msrb.mxu1 %v8733_v0  ;;  %v12509_v59 = vld [vmem:[#allocation2 + $0xad4] sm:$0xf0]  ;;  %v9580_v0 = vld [vmem:[#allocation2 + $0xbc8] sm:$0xf]  ;;  %v9325_v55 = vor.u32 %v12477_v54, %v9324_v56 }
 0x246   :  { %7218 = vmatpush.bf16.msrb.mxu2 %v8861_v48  ;;  %v12541_v48 = vld [vmem:[#allocation2 + $0xbd4] sm:$0xf0]  ;;  %v9453_v53 = vor.u32 %v12509_v59, %v9452_v36  ;;  %v9436_v17 = vld [vmem:[#allocation2 + $0xaa8] sm:$0xf] }
 0x247   :  { %7231 = vmatpush.bf16.msrb.mxu3 %v8989_v1  ;;  %v9180_v1 = vld [vmem:[#allocation2 + $0x8a8] sm:$0xf]  ;;  %v12441_v5 = vld [vmem:[#allocation2 + $0x8b4] sm:$0xf0]  ;;  %v9581_v26 = vor.u32 %v12541_v48, %v9580_v0 }
 0x248   :  { %7193 = vmatpush.bf16.msrb.mxu0 %v8589_v61  ;;  %v12473_v58 = vld [vmem:[#allocation2 + $0x9b4] sm:$0xf0]  ;;  %v9564_v61 = vld [vmem:[#allocation2 + $0xba8] sm:$0xf]  ;;  %v9181_v34 = vor.u32 %v12441_v5, %v9180_v1  ;;  %v13467_v57 = vpop.f32.mrf.mxu0 }
 0x249   :  { %7206 = vmatpush.bf16.msrb.mxu1 %v8717_v60  ;;  %v12505_v43 = vld [vmem:[#allocation2 + $0xab4] sm:$0xf0]  ;;  %v9309_v39 = vor.u32 %v12473_v58, %v9308_v3  ;;  %v9292_v47 = vld [vmem:[#allocation2 + $0x988] sm:$0xf]  ;;  %v13469_v54 = vpop.f32.mrf.mxu1 }
 0x24a   :  { %7219 = vmatpush.bf16.msrb.mxu2 %v8845_v14  ;;  %v12537_v32 = vld [vmem:[#allocation2 + $0xbb4] sm:$0xf0]  ;;  %v9437_v60 = vor.u32 %v12505_v43, %v9436_v17  ;;  %v9164_v14 = vld [vmem:[#allocation2 + $0x888] sm:$0xf] }
 0x24b   :  { %7232 = vmatpush.bf16.msrb.mxu3 %v8973_v50  ;;  %7194 = vmatmul.bf16.vlgmr.msrb.gmra.mxu0 %v13272_v41  ;;  %v12437_v11 = vld [vmem:[#allocation2 + $0x894] sm:$0xf0]  ;;  %v9565_v50 = vor.u32 %v12537_v32, %v9564_v61  ;;  %v9548_v49 = vld [vmem:[#allocation2 + $0xb88] sm:$0xf] }
 0x24c   :  { %7238 = vmatpush.bf16.msra.mxu0 %v9213_v18  ;;  %7207 = vmatmul.bf16.vlgmr.msrb.gmra.mxu1 %v13276_v44  ;;  %v12469_v18 = vld [vmem:[#allocation2 + $0x994] sm:$0xf0]  ;;  %v9148_v0 = vld [vmem:[#allocation2 + $0x868] sm:$0xf] }
 0x24d   :  { %7251 = vmatpush.bf16.msra.mxu1 %v9341_v19  ;;  %7220 = vmatmul.bf16.vlgmr.msrb.gmra.mxu2 %v13270_v38  ;;  %v9420_v19 = vld [vmem:[#allocation2 + $0xa88] sm:$0xf]  ;;  %v12533_v56 = vld [vmem:[#allocation2 + $0xb94] sm:$0xf0]  ;;  %v9293_v36 = vor.u32 %v12469_v18, %v9292_v47 }
 0x24e   :  { %7264 = vmatpush.bf16.msra.mxu2 %v9469_v40  ;;  %7233 = vmatmul.bf16.vlgmr.msrb.gmra.mxu3 %v13274_v42  ;;  %v12501_v40 = vld [vmem:[#allocation2 + $0xa94] sm:$0xf0]  ;;  %v9404_v1 = vld [vmem:[#allocation2 + $0xa68] sm:$0xf] }
 0x24f   :  { %7277 = vmatpush.bf16.msra.mxu3 %v9597_v24  ;;  %v9165_v24 = vor.u32 %v12437_v11, %v9164_v14  ;;  %v9421_v59 = vor.u32 %v12501_v40, %v9420_v19  ;;  %v12433_v48 = vld [vmem:[#allocation2 + $0x874] sm:$0xf0]  ;;  %v9532_v3 = vld [vmem:[#allocation2 + $0xb68] sm:$0xf] }
 0x250   :  { %7239 = vmatpush.bf16.msra.mxu0 %v9197_v62  ;;  %v9276_v62 = vld [vmem:[#allocation2 + $0x968] sm:$0xf]  ;;  %v12497_v5 = vld [vmem:[#allocation2 + $0xa74] sm:$0xf0]  ;;  %v9149_v58 = vor.u32 %v12433_v48, %v9148_v0  ;;  %v6989_v40 = vpop.f32.mrf.mxu0 }
 0x251   :  { %7252 = vmatpush.bf16.msra.mxu1 %v9325_v55  ;;  %v9549_v55 = vor.u32 %v12533_v56, %v9548_v49  ;;  %v9405_v43 = vor.u32 %v12497_v5, %v9404_v1  ;;  %v9132_v61 = vld [vmem:[#allocation2 + $0x848] sm:$0xf]  ;;  %v12429_v32 = vld [vmem:[#allocation2 + $0x854] sm:$0xf0]  ;;  %v7002_v56 = vpop.f32.mrf.mxu1 }
 0x252   :  { %7265 = vmatpush.bf16.msra.mxu2 %v9453_v53  ;;  %v12465_v53 = vld [vmem:[#allocation2 + $0x974] sm:$0xf0]  ;;  %v9388_v11 = vld [vmem:[#allocation2 + $0xa48] sm:$0xf]  ;;  %v9133_v49 = vor.u32 %v12429_v32, %v9132_v61 }
 0x253   :  { %7278 = vmatpush.bf16.msra.mxu3 %v9581_v26  ;;  %v12529_v26 = vld [vmem:[#allocation2 + $0xb74] sm:$0xf0]  ;;  %v9277_v17 = vor.u32 %v12465_v53, %v9276_v62  ;;  %v9516_v18 = vld [vmem:[#allocation2 + $0xb48] sm:$0xf] }
 0x254   :  { %7240 = vmatpush.bf16.msra.mxu0 %v9181_v34  ;;  %v9260_v34 = vld [vmem:[#allocation2 + $0x948] sm:$0xf]  ;;  %v12461_v14 = vld [vmem:[#allocation2 + $0x954] sm:$0xf0] }
 0x255   :  { %7253 = vmatpush.bf16.msra.mxu1 %v9309_v39  ;;  %v9533_v39 = vor.u32 %v12529_v26, %v9532_v3  ;;  %v12493_v47 = vld [vmem:[#allocation2 + $0xa54] sm:$0xf0]  ;;  %v9244_v48 = vld [vmem:[#allocation2 + $0x928] sm:$0xf] }
 0x256   :  { %7266 = vmatpush.bf16.msra.mxu2 %v9437_v60  ;;  %v13471_v60 = vpop.f32.mrf.mxu2  ;;  %v12525_v19 = vld [vmem:[#allocation2 + $0xb54] sm:$0xf0]  ;;  %v9372_v53 = vld [vmem:[#allocation2 + $0xa28] sm:$0xf] }
 0x257   :  { %7279 = vmatpush.bf16.msra.mxu3 %v9565_v50  ;;  %v13473_v50 = vpop.f32.mrf.mxu3  ;;  %v12425_v0 = vld [vmem:[#allocation2 + $0x834] sm:$0xf0]  ;;  %v9517_v62 = vor.u32 %v12525_v19, %v9516_v18  ;;  %v9500_v5 = vld [vmem:[#allocation2 + $0xb28] sm:$0xf] }
 0x258   :  { %7241 = vmatpush.bf16.msra.mxu0 %v9165_v24  ;;  %v9261_v24 = vor.u32 %v12461_v14, %v9260_v34  ;;  %v12489_v1 = vld [vmem:[#allocation2 + $0xa34] sm:$0xf0]  ;;  %v9100_v40 = vld [vmem:[#allocation2 + $0x808] sm:$0xf] }
 0x259   :  { %7254 = vmatpush.bf16.msra.mxu1 %v9293_v36  ;;  %v9389_v36 = vor.u32 %v12493_v47, %v9388_v11  ;;  %v12521_v3 = vld [vmem:[#allocation2 + $0xb34] sm:$0xf0]  ;;  %v9228_v61 = vld [vmem:[#allocation2 + $0x908] sm:$0xf] }
 0x25a   :  { %7267 = vmatpush.bf16.msra.mxu2 %v9421_v59  ;;  %v9116_v59 = vld [vmem:[#allocation2 + $0x828] sm:$0xf]  ;;  %v12453_v32 = vld [vmem:[#allocation2 + $0x914] sm:$0xf0]  ;;  %v9501_v14 = vor.u32 %v12521_v3, %v9500_v5 }
 0x25b   :  { %7280 = vmatpush.bf16.msra.mxu3 %v9549_v55  ;;  %v12457_v55 = vld [vmem:[#allocation2 + $0x934] sm:$0xf0]  ;;  %v9117_v26 = vor.u32 %v12425_v0, %v9116_v59  ;;  %v9356_v34 = vld [vmem:[#allocation2 + $0xa08] sm:$0xf] }
 0x25c   :  { %7242 = vmatpush.bf16.msra.mxu0 %v9149_v58  ;;  %v12421_v58 = vld [vmem:[#allocation2 + $0x814] sm:$0xf0]  ;;  %v9484_v11 = vld [vmem:[#allocation2 + $0xb08] sm:$0xf] }
 0x25d   :  { %7255 = vmatpush.bf16.msra.mxu1 %v9277_v17  ;;  %v9245_v17 = vor.u32 %v12457_v55, %v9244_v48  ;;  %v12517_v47 = vld [vmem:[#allocation2 + $0xb14] sm:$0xf0]  ;;  %v9724_v19 = vld [vmem:[#allocation2 + $0xce8] sm:$0xf]  ;;  %v9101_v59 = vor.u32 %v12421_v58, %v9100_v40  ;;  %v9229_v48 = vor.u32 %v12453_v32, %v9228_v61 }
 0x25e   :  { %7268 = vmatpush.bf16.msra.mxu2 %v9405_v43  ;;  %v9373_v43 = vor.u32 %v12489_v1, %v9372_v53  ;;  %v7015_v18 = vpop.f32.mrf.mxu2  ;;  %v12577_v56 = vld [vmem:[#allocation2 + $0xcf4] sm:$0xf0]  ;;  %v9852_v44 = vld [vmem:[#allocation2 + $0xde8] sm:$0xf]  ;;  %v9485_v1 = vor.u32 %v12517_v47, %v9484_v11 }
 0x25f   :  { %7281 = vmatpush.bf16.msra.mxu3 %v9533_v39  ;;  %v12485_v39 = vld [vmem:[#allocation2 + $0xa14] sm:$0xf0]  ;;  %v10108_v53 = vld [vmem:[#allocation2 + $0xfe8] sm:$0xf]  ;;  %v9725_v5 = vor.u32 %v12577_v56, %v9724_v19 }
 0x260   :  { %7243 = vmatpush.bf16.msra.mxu0 %v9133_v49  ;;  %v7028_v49 = vpop.f32.mrf.mxu3  ;;  %v12609_v0 = vld [vmem:[#allocation2 + $0xdf4] sm:$0xf0]  ;;  %v9357_v55 = vor.u32 %v12485_v39, %v9356_v34  ;;  %v9708_v42 = vld [vmem:[#allocation2 + $0xcc8] sm:$0xf] }
 0x261   :  { %7256 = vmatpush.bf16.msra.mxu1 %v9261_v24  ;;  %v9980_v24 = vld [vmem:[#allocation2 + $0xee8] sm:$0xf]  ;;  %v9853_v3 = vor.u32 %v12609_v0, %v9852_v44  ;;  %v12573_v41 = vld [vmem:[#allocation2 + $0xcd4] sm:$0xf0] }
 0x262   :  { %7269 = vmatpush.bf16.msra.mxu2 %v9389_v36  ;;  %v12641_v36 = vld [vmem:[#allocation2 + $0xef4] sm:$0xf0]  ;;  %v9836_v38 = vld [vmem:[#allocation2 + $0xdc8] sm:$0xf]  ;;  %v9709_v61 = vor.u32 %v12573_v41, %v9708_v42 }
 0x263   :  { %7282 = vmatpush.bf16.msra.mxu3 %v9517_v62  ;;  %v12673_v62 = vld [vmem:[#allocation2 + $0xff4] sm:$0xf0]  ;;  %v9981_v18 = vor.u32 %v12641_v36, %v9980_v24  ;;  %v9964_v58 = vld [vmem:[#allocation2 + $0xec8] sm:$0xf] }
 0x264   :  { %7244 = vmatpush.bf16.msra.mxu0 %v9117_v26  ;;  %v10109_v26 = vor.u32 %v12673_v62, %v10108_v53  ;;  %v12605_v40 = vld [vmem:[#allocation2 + $0xdd4] sm:$0xf0]  ;;  %v9692_v34 = vld [vmem:[#allocation2 + $0xca8] sm:$0xf] }
 0x265   :  { %7257 = vmatpush.bf16.msra.mxu1 %v9245_v17  ;;  %v12637_v49 = vld [vmem:[#allocation2 + $0xed4] sm:$0xf0]  ;;  %v10092_v17 = vld [vmem:[#allocation2 + $0xfc8] sm:$0xf]  ;;  %v9837_v32 = vor.u32 %v12605_v40, %v9836_v38 }
 0x266   :  { %7270 = vmatpush.bf16.msra.mxu2 %v9373_v43  ;;  %v12669_v43 = vld [vmem:[#allocation2 + $0xfd4] sm:$0xf0]  ;;  %v9965_v44 = vor.u32 %v12637_v49, %v9964_v58  ;;  %v9820_v39 = vld [vmem:[#allocation2 + $0xda8] sm:$0xf] }
 0x267   :  { %7283 = vmatpush.bf16.msra.mxu3 %v9501_v14  ;;  %v12569_v14 = vld [vmem:[#allocation2 + $0xcb4] sm:$0xf0]  ;;  %v10093_v11 = vor.u32 %v12669_v43, %v10092_v17  ;;  %v9948_v19 = vld [vmem:[#allocation2 + $0xea8] sm:$0xf] }
 0x268   :  { %7245 = vmatpush.bf16.msra.mxu0 %v9101_v59  ;;  %v12601_v47 = vld [vmem:[#allocation2 + $0xdb4] sm:$0xf0]  ;;  %v10076_v59 = vld [vmem:[#allocation2 + $0xfa8] sm:$0xf]  ;;  %v9693_v38 = vor.u32 %v12569_v14, %v9692_v34 }
 0x269   :  { %7258 = vmatpush.bf16.msra.mxu1 %v9229_v48  ;;  %v12633_v56 = vld [vmem:[#allocation2 + $0xeb4] sm:$0xf0]  ;;  %v9821_v42 = vor.u32 %v12601_v47, %v9820_v39  ;;  %v9676_v24 = vld [vmem:[#allocation2 + $0xc88] sm:$0xf]  ;;  %v13481_v40 = vpop.f32.mrf.mxu1 }
 0x26a   :  { %7271 = vmatpush.bf16.msra.mxu2 %v9357_v55  ;;  %v12665_v41 = vld [vmem:[#allocation2 + $0xfb4] sm:$0xf0]  ;;  %v9949_v0 = vor.u32 %v12633_v56, %v9948_v19  ;;  %v9804_v48 = vld [vmem:[#allocation2 + $0xd88] sm:$0xf] }
 0x26b   :  { %7284 = vmatpush.bf16.msra.mxu3 %v9485_v1  ;;  %7246 = vmatmul.bf16.vlgmr.msra.gmra.mxu0 %v13288_v25  ;;  %v12565_v36 = vld [vmem:[#allocation2 + $0xc94] sm:$0xf0]  ;;  %v10077_v55 = vor.u32 %v12665_v41, %v10076_v59  ;;  %v9932_v62 = vld [vmem:[#allocation2 + $0xe88] sm:$0xf] }
 0x26c   :  { %7290 = vmatpush.bf16.msrb.mxu0 %v9725_v5  ;;  %7259 = vmatmul.bf16.vlgmr.msra.gmra.mxu1 %v13292_v30  ;;  %v12597_v53 = vld [vmem:[#allocation2 + $0xd94] sm:$0xf0]  ;;  %v13479_v5 = vpop.f32.mrf.mxu0  ;;  %v9660_v17 = vld [vmem:[#allocation2 + $0xc68] sm:$0xf] }
 0x26d   :  { %7303 = vmatpush.bf16.msrb.mxu1 %v9853_v3  ;;  %7272 = vmatmul.bf16.vlgmr.msra.gmra.mxu2 %v13290_v29  ;;  %v12629_v1 = vld [vmem:[#allocation2 + $0xe94] sm:$0xf0]  ;;  %v10060_v3 = vld [vmem:[#allocation2 + $0xf88] sm:$0xf]  ;;  %v9805_v58 = vor.u32 %v12597_v53, %v9804_v48 }
 0x26e   :  { %7316 = vmatpush.bf16.msrb.mxu2 %v9981_v18  ;;  %7285 = vmatmul.bf16.vlgmr.msra.gmra.mxu3 %v13294_v33  ;;  %v12661_v18 = vld [vmem:[#allocation2 + $0xf94] sm:$0xf0]  ;;  %v9933_v49 = vor.u32 %v12629_v1, %v9932_v62  ;;  %v9916_v34 = vld [vmem:[#allocation2 + $0xe68] sm:$0xf] }
 0x26f   :  { %7329 = vmatpush.bf16.msrb.mxu3 %v10109_v26  ;;  %v9677_v26 = vor.u32 %v12565_v36, %v9676_v24  ;;  %v12561_v43 = vld [vmem:[#allocation2 + $0xc74] sm:$0xf0]  ;;  %v10044_v39 = vld [vmem:[#allocation2 + $0xf68] sm:$0xf] }
 0x270   :  { %7291 = vmatpush.bf16.msrb.mxu0 %v9709_v61  ;;  %v9788_v61 = vld [vmem:[#allocation2 + $0xd68] sm:$0xf]  ;;  %v12625_v14 = vld [vmem:[#allocation2 + $0xe74] sm:$0xf0]  ;;  %v9661_v47 = vor.u32 %v12561_v43, %v9660_v17 }
 0x271   :  { %7304 = vmatpush.bf16.msrb.mxu1 %v9837_v32  ;;  %v10061_v32 = vor.u32 %v12661_v18, %v10060_v3  ;;  %v9917_v56 = vor.u32 %v12625_v14, %v9916_v34  ;;  %v9644_v59 = vld [vmem:[#allocation2 + $0xc48] sm:$0xf]  ;;  %v12557_v41 = vld [vmem:[#allocation2 + $0xc54] sm:$0xf0]  ;;  %v13487_v53 = vpop.f32.mrf.mxu3 }
 0x272   :  { %7317 = vmatpush.bf16.msrb.mxu2 %v9965_v44  ;;  %v12593_v44 = vld [vmem:[#allocation2 + $0xd74] sm:$0xf0]  ;;  %v9900_v36 = vld [vmem:[#allocation2 + $0xe48] sm:$0xf]  ;;  %v9645_v18 = vor.u32 %v12557_v41, %v9644_v59 }
 0x273   :  { %7330 = vmatpush.bf16.msrb.mxu3 %v10093_v11  ;;  %v12657_v11 = vld [vmem:[#allocation2 + $0xf74] sm:$0xf0]  ;;  %v9789_v19 = vor.u32 %v12593_v44, %v9788_v61  ;;  %v10028_v62 = vld [vmem:[#allocation2 + $0xf48] sm:$0xf] }
 0x274   :  { %7292 = vmatpush.bf16.msrb.mxu0 %v9693_v38  ;;  %v9772_v38 = vld [vmem:[#allocation2 + $0xd48] sm:$0xf]  ;;  %v12589_v24 = vld [vmem:[#allocation2 + $0xd54] sm:$0xf0]  ;;  %v7041_v3 = vpop.f32.mrf.mxu0 }
 0x275   :  { %7305 = vmatpush.bf16.msrb.mxu1 %v9821_v42  ;;  %v10045_v42 = vor.u32 %v12657_v11, %v10044_v39  ;;  %v12621_v48 = vld [vmem:[#allocation2 + $0xe54] sm:$0xf0]  ;;  %v9628_v17 = vld [vmem:[#allocation2 + $0xc28] sm:$0xf] }
 0x276   :  { %7318 = vmatpush.bf16.msrb.mxu2 %v9949_v0  ;;  %v13483_v0 = vpop.f32.mrf.mxu2  ;;  %v12653_v1 = vld [vmem:[#allocation2 + $0xf54] sm:$0xf0]  ;;  %v9756_v61 = vld [vmem:[#allocation2 + $0xd28] sm:$0xf] }
 0x277   :  { %7331 = vmatpush.bf16.msrb.mxu3 %v10077_v55  ;;  %v6988_v55 = vadd.f32 %v13467_v57, %v13461_v7  ;;  %v12553_v43 = vld [vmem:[#allocation2 + $0xc34] sm:$0xf0]  ;;  %v9884_v34 = vld [vmem:[#allocation2 + $0xe28] sm:$0xf] }
 0x278   :  { %7293 = vmatpush.bf16.msrb.mxu0 %v9677_v26  ;;  %v7054_v26 = vpop.f32.mrf.mxu1  ;;  %v12585_v44 = vld [vmem:[#allocation2 + $0xd34] sm:$0xf0]  ;;  %v10012_v14 = vld [vmem:[#allocation2 + $0xf28] sm:$0xf]  ;;  %v9629_v11 = vor.u32 %v12553_v43, %v9628_v17 }
 0x279   :  { %7306 = vmatpush.bf16.msrb.mxu1 %v9805_v58  ;;  %v9773_v58 = vor.u32 %v12589_v24, %v9772_v38  ;;  %v12617_v7 = vld [vmem:[#allocation2 + $0xe34] sm:$0xf0]  ;;  %v7001_v57 = vadd.f32 %v13469_v54, %v6988_v55  ;;  %v9740_v38 = vld [vmem:[#allocation2 + $0xd08] sm:$0xf]  ;;  %v7080_v26 = vpop.f32.mrf.mxu3 }
 0x27a   :  { %7319 = vmatpush.bf16.msrb.mxu2 %v9933_v49  ;;  %v9901_v49 = vor.u32 %v12621_v48, %v9900_v36  ;;  %v12649_v39 = vld [vmem:[#allocation2 + $0xf34] sm:$0xf0]  ;;  %v9885_v41 = vor.u32 %v12617_v7, %v9884_v34  ;;  %v9868_v24 = vld [vmem:[#allocation2 + $0xe08] sm:$0xf] }
 0x27b   :  { %7332 = vmatpush.bf16.msrb.mxu3 %v10061_v32  ;;  %v10029_v32 = vor.u32 %v12653_v1, %v10028_v62  ;;  %v12549_v59 = vld [vmem:[#allocation2 + $0xc14] sm:$0xf0]  ;;  %v10013_v36 = vor.u32 %v12649_v39, %v10012_v14  ;;  %v9996_v62 = vld [vmem:[#allocation2 + $0xf08] sm:$0xf] }
 0x27c   :  { %7294 = vmatpush.bf16.msrb.mxu0 %v9661_v47  ;;  %v9612_v47 = vld [vmem:[#allocation2 + $0xc08] sm:$0xf]  ;;  %v12613_v48 = vld [vmem:[#allocation2 + $0xe14] sm:$0xf0] }
 0x27d   :  { %7307 = vmatpush.bf16.msrb.mxu1 %v9789_v19  ;;  %v7014_v19 = vadd.f32 %v13471_v60, %v7001_v57  ;;  %v12645_v54 = vld [vmem:[#allocation2 + $0xf14] sm:$0xf0]  ;;  %v10236_v1 = vld [vmem:[#allocation2 + $0x10e8] sm:$0xf]  ;;  %v9613_v17 = vor.u32 %v12549_v59, %v9612_v47 }
 0x27e   :  { %7320 = vmatpush.bf16.msrb.mxu2 %v9917_v56  ;;  %v9757_v56 = vor.u32 %v12585_v44, %v9756_v61  ;;  %v7067_v55 = vpop.f32.mrf.mxu2  ;;  %v12705_v3 = vld [vmem:[#allocation2 + $0x10f4] sm:$0xf0]  ;;  %v10620_v44 = vld [vmem:[#allocation2 + $0x13e8] sm:$0xf]  ;;  %v9997_v7 = vor.u32 %v12645_v54, %v9996_v62 }
 0x27f   :  { %7333 = vmatpush.bf16.msrb.mxu3 %v10045_v42  ;;  %v12581_v42 = vld [vmem:[#allocation2 + $0xd14] sm:$0xf0]  ;;  %v7027_v43 = vadd.f32 %v13473_v50, %v7014_v19  ;;  %v10237_v57 = vor.u32 %v12705_v3, %v10236_v1  ;;  %v10348_v59 = vld [vmem:[#allocation2 + $0x11c8] sm:$0xf] }
 0x280   :  { %7295 = vmatpush.bf16.msrb.mxu0 %v9645_v18  ;;  %v10364_v18 = vld [vmem:[#allocation2 + $0x11e8] sm:$0xf]  ;;  %v12737_v60 = vld [vmem:[#allocation2 + $0x11f4] sm:$0xf0]  ;;  %v9741_v61 = vor.u32 %v12581_v42, %v9740_v38 }
 0x281   :  { %7308 = vmatpush.bf16.msrb.mxu1 %v9773_v58  ;;  %v10492_v58 = vld [vmem:[#allocation2 + $0x12e8] sm:$0xf]  ;;  %v12801_v34 = vld [vmem:[#allocation2 + $0x13f4] sm:$0xf0]  ;;  %v7040_v14 = vadd.f32 %v13479_v5, %v7027_v43  ;;  %v10365_v39 = vor.u32 %v12737_v60, %v10364_v18 }
 0x282   :  { %7321 = vmatpush.bf16.msrb.mxu2 %v9901_v49  ;;  %v12769_v49 = vld [vmem:[#allocation2 + $0x12f4] sm:$0xf0]  ;;  %v10621_v26 = vor.u32 %v12801_v34, %v10620_v44  ;;  %v10476_v50 = vld [vmem:[#allocation2 + $0x12c8] sm:$0xf] }
 0x283   :  { %7334 = vmatpush.bf16.msrb.mxu3 %v10029_v32  ;;  %v9869_v32 = vor.u32 %v12613_v48, %v9868_v24  ;;  %v10493_v55 = vor.u32 %v12769_v49, %v10492_v58  ;;  %v12701_v47 = vld [vmem:[#allocation2 + $0x10d4] sm:$0xf0]  ;;  %v7053_v42 = vadd.f32 %v13481_v40, %v7040_v14  ;;  %v10332_v62 = vld [vmem:[#allocation2 + $0x11a8] sm:$0xf] }
 0x284   :  { %7296 = vmatpush.bf16.msrb.mxu0 %v9629_v11  ;;  %v10220_v11 = vld [vmem:[#allocation2 + $0x10c8] sm:$0xf]  ;;  %v12733_v33 = vld [vmem:[#allocation2 + $0x11d4] sm:$0xf0] }
 0x285   :  { %7309 = vmatpush.bf16.msrb.mxu1 %v9757_v56  ;;  %v12765_v19 = vld [vmem:[#allocation2 + $0x12d4] sm:$0xf0]  ;;  %v10604_v56 = vld [vmem:[#allocation2 + $0x13c8] sm:$0xf]  ;;  %v10221_v38 = vor.u32 %v12701_v47, %v10220_v11  ;;  %v10349_v5 = vor.u32 %v12733_v33, %v10348_v59 }
 0x286   :  { %7322 = vmatpush.bf16.msrb.mxu2 %v9885_v41  ;;  %v12797_v41 = vld [vmem:[#allocation2 + $0x13d4] sm:$0xf0]  ;;  %v10477_v24 = vor.u32 %v12765_v19, %v10476_v50  ;;  %v10460_v3 = vld [vmem:[#allocation2 + $0x12a8] sm:$0xf] }
 0x287   :  { %7335 = vmatpush.bf16.msrb.mxu3 %v10013_v36  ;;  %v10204_v36 = vld [vmem:[#allocation2 + $0x10a8] sm:$0xf]  ;;  %v12697_v48 = vld [vmem:[#allocation2 + $0x10b4] sm:$0xf0]  ;;  %v10605_v54 = vor.u32 %v12797_v41, %v10604_v56 }
 0x288   :  { %7297 = vmatpush.bf16.msrb.mxu0 %v9613_v17  ;;  %v12729_v1 = vld [vmem:[#allocation2 + $0x11b4] sm:$0xf0]  ;;  %v7066_v17 = vadd.f32 %v13483_v0, %v7053_v42  ;;  %v10588_v40 = vld [vmem:[#allocation2 + $0x13a8] sm:$0xf]  ;;  %v10205_v33 = vor.u32 %v12697_v48, %v10204_v36  ;;  %v7091_v14 = vpop.f32.mrf.mxu0 }
 0x289   :  { %7310 = vmatpush.bf16.msrb.mxu1 %v9741_v61  ;;  %v12761_v18 = vld [vmem:[#allocation2 + $0x12b4] sm:$0xf0]  ;;  %v10333_v58 = vor.u32 %v12729_v1, %v10332_v62  ;;  %v10188_v43 = vld [vmem:[#allocation2 + $0x1088] sm:$0xf]  ;;  %v7104_v47 = vpop.f32.mrf.mxu1 }
 0x28a   :  { %7323 = vmatpush.bf16.msrb.mxu2 %v9869_v32  ;;  %v12793_v60 = vld [vmem:[#allocation2 + $0x13b4] sm:$0xf0]  ;;  %v10461_v49 = vor.u32 %v12761_v18, %v10460_v3  ;;  %v10316_v32 = vld [vmem:[#allocation2 + $0x1188] sm:$0xf] }
 0x28b   :  { %7336 = vmatpush.bf16.msrb.mxu3 %v9997_v7  ;;  %7298 = vmatmul.bf16.vlgmr.msrb.gmra.mxu0 %v13306_v23  ;;  %v12693_v61 = vld [vmem:[#allocation2 + $0x1094] sm:$0xf0]  ;;  %v10589_v44 = vor.u32 %v12793_v60, %v10588_v40  ;;  %v10444_v34 = vld [vmem:[#allocation2 + $0x1288] sm:$0xf] }
 0x28c   :  { %7342 = vmatpush.bf16.msra.mxu0 %v10237_v57  ;;  %7311 = vmatmul.bf16.vlgmr.msrb.gmra.mxu1 %v13310_v31  ;;  %v12725_v0 = vld [vmem:[#allocation2 + $0x1194] sm:$0xf0]  ;;  %v7079_v57 = vadd.f32 %v13487_v53, %v7066_v17  ;;  %v10189_v11 = vor.u32 %v12693_v61, %v10188_v43  ;;  %v10172_v19 = vld [vmem:[#allocation2 + $0x1068] sm:$0xf] }
 0x28d   :  { %7355 = vmatpush.bf16.msra.mxu1 %v10365_v39  ;;  %7324 = vmatmul.bf16.vlgmr.msrb.gmra.mxu2 %v13308_v28  ;;  %v12757_v7 = vld [vmem:[#allocation2 + $0x1294] sm:$0xf0]  ;;  %v10572_v39 = vld [vmem:[#allocation2 + $0x1388] sm:$0xf] }
 0x28e   :  { %7368 = vmatpush.bf16.msra.mxu2 %v10493_v55  ;;  %7337 = vmatmul.bf16.vlgmr.msrb.gmra.mxu3 %v13312_v35  ;;  %v12789_v55 = vld [vmem:[#allocation2 + $0x1394] sm:$0xf0]  ;;  %v7092_v59 = vadd.f32 %v7091_v14, %v7079_v57  ;;  %v10445_v50 = vor.u32 %v12757_v7, %v10444_v34  ;;  %v10300_v41 = vld [vmem:[#allocation2 + $0x1168] sm:$0xf] }
 0x28f   :  { %7381 = vmatpush.bf16.msra.mxu3 %v10621_v26  ;;  %v10317_v26 = vor.u32 %v12725_v0, %v10316_v32  ;;  %v12689_v56 = vld [vmem:[#allocation2 + $0x1074] sm:$0xf0]  ;;  %v10556_v53 = vld [vmem:[#allocation2 + $0x1368] sm:$0xf] }
 0x290   :  { %7343 = vmatpush.bf16.msra.mxu0 %v10221_v38  ;;  %v10573_v38 = vor.u32 %v12789_v55, %v10572_v39  ;;  %v12721_v42 = vld [vmem:[#allocation2 + $0x1174] sm:$0xf0]  ;;  %v10173_v48 = vor.u32 %v12689_v56, %v10172_v19  ;;  %v7105_v62 = vadd.f32 %v7104_v47, %v7092_v59  ;;  %v10156_v3 = vld [vmem:[#allocation2 + $0x1048] sm:$0xf]  ;;  %v7117_v60 = vpop.f32.mrf.mxu2  ;;  %v7093_v0 = vpop.f32.mrf.mxu0 }
 0x291   :  { %7356 = vmatpush.bf16.msra.mxu1 %v10349_v5  ;;  %v10428_v5 = vld [vmem:[#allocation2 + $0x1268] sm:$0xf]  ;;  %v12785_v36 = vld [vmem:[#allocation2 + $0x1374] sm:$0xf0]  ;;  %v7130_v61 = vpop.f32.mrf.mxu3  ;;  %v7106_v7 = vpop.f32.mrf.mxu1 }
 0x292   :  { %7369 = vmatpush.bf16.msra.mxu2 %v10477_v24  ;;  %v12753_v24 = vld [vmem:[#allocation2 + $0x1274] sm:$0xf0]  ;;  %v10284_v17 = vld [vmem:[#allocation2 + $0x1148] sm:$0xf]  ;;  %v10557_v40 = vor.u32 %v12785_v36, %v10556_v53  ;;  %v7118_v43 = vadd.f32 %v7117_v60, %v7105_v62 }
 0x293   :  { %7382 = vmatpush.bf16.msra.mxu3 %v10605_v54  ;;  %v10301_v54 = vor.u32 %v12721_v42, %v10300_v41  ;;  %v10429_v1 = vor.u32 %v12753_v24, %v10428_v5  ;;  %v12685_v18 = vld [vmem:[#allocation2 + $0x1054] sm:$0xf0]  ;;  %v10540_v32 = vld [vmem:[#allocation2 + $0x1348] sm:$0xf] }
 0x294   :  { %7344 = vmatpush.bf16.msra.mxu0 %v10205_v33  ;;  %v12717_v33 = vld [vmem:[#allocation2 + $0x1154] sm:$0xf0]  ;;  %v10157_v34 = vor.u32 %v12685_v18, %v10156_v3  ;;  %v13500_v57 = vadd.f32 %v7130_v61, %v7118_v43  ;;  %v10140_v55 = vld [vmem:[#allocation2 + $0x1028] sm:$0xf] }
 0x295   :  { %7357 = vmatpush.bf16.msra.mxu1 %v10333_v58  ;;  %v10412_v58 = vld [vmem:[#allocation2 + $0x1248] sm:$0xf]  ;;  %v10285_v14 = vor.u32 %v12717_v33, %v10284_v17  ;;  %v12745_v19 = vld [vmem:[#allocation2 + $0x1234] sm:$0xf0] }
 0x296   :  { %7370 = vmatpush.bf16.msra.mxu2 %v10461_v49  ;;  %v12749_v49 = vld [vmem:[#allocation2 + $0x1254] sm:$0xf0]  ;;  %v10268_v47 = vld [vmem:[#allocation2 + $0x1128] sm:$0xf]  ;;  %v7966_v56 = vpack.c.bf16 %v13500_v57, %v13427_v63 }
 0x297   :  { %7383 = vmatpush.bf16.msra.mxu3 %v10589_v44  ;;  %v12781_v44 = vld [vmem:[#allocation2 + $0x1354] sm:$0xf0]  ;;  %v10413_v39 = vor.u32 %v12749_v49, %v10412_v58  ;;  %v10524_v41 = vld [vmem:[#allocation2 + $0x1328] sm:$0xf] }
 0x298   :  { %7345 = vmatpush.bf16.msra.mxu0 %v10189_v11  ;;  %v12681_v11 = vld [vmem:[#allocation2 + $0x1034] sm:$0xf0]  ;;  %v10541_v59 = vor.u32 %v12781_v44, %v10540_v32  ;;  %v10124_v5 = vld [vmem:[#allocation2 + $0x1008] sm:$0xf]  ;;  %7968 = vst [vmem:[%s13608_s2] sm:$0xff] %v7966_v56 }
 0x299   :  { %7358 = vmatpush.bf16.msra.mxu1 %v10317_v26  ;;  %v12713_v26 = vld [vmem:[#allocation2 + $0x1134] sm:$0xf0]  ;;  %v10141_v42 = vor.u32 %v12681_v11, %v10140_v55  ;;  %v10508_v18 = vld [vmem:[#allocation2 + $0x1308] sm:$0xf]  ;;  %v7132_v49 = vpop.f32.mrf.mxu3 }
 0x29a   :  { %7371 = vmatpush.bf16.msra.mxu2 %v10445_v50  ;;  %v10396_v50 = vld [vmem:[#allocation2 + $0x1228] sm:$0xf]  ;;  %v12677_v24 = vld [vmem:[#allocation2 + $0x1014] sm:$0xf0]  ;;  %v10269_v53 = vor.u32 %v12713_v26, %v10268_v47 }
 0x29b   :  { %7384 = vmatpush.bf16.msra.mxu3 %v10573_v38  ;;  %v12777_v38 = vld [vmem:[#allocation2 + $0x1334] sm:$0xf0]  ;;  %v10397_v36 = vor.u32 %v12745_v19, %v10396_v50  ;;  %v10748_v60 = vld [vmem:[#allocation2 + $0x14e8] sm:$0xf]  ;;  %v10125_v43 = vor.u32 %v12677_v24, %v10124_v5 }
 0x29c   :  { %7346 = vmatpush.bf16.msra.mxu0 %v10173_v48  ;;  %v10252_v48 = vld [vmem:[#allocation2 + $0x1108] sm:$0xf]  ;;  %v12709_v62 = vld [vmem:[#allocation2 + $0x1114] sm:$0xf0] }
 0x29d   :  { %7359 = vmatpush.bf16.msra.mxu1 %v10301_v54  ;;  %v10380_v54 = vld [vmem:[#allocation2 + $0x1208] sm:$0xf]  ;;  %v12741_v3 = vld [vmem:[#allocation2 + $0x1214] sm:$0xf0]  ;;  %v10253_v0 = vor.u32 %v12709_v62, %v10252_v48 }
 0x29e   :  { %7372 = vmatpush.bf16.msra.mxu2 %v10429_v1  ;;  %v10525_v1 = vor.u32 %v12777_v38, %v10524_v41  ;;  %v12773_v17 = vld [vmem:[#allocation2 + $0x1314] sm:$0xf0]  ;;  %v10876_v58 = vld [vmem:[#allocation2 + $0x15e8] sm:$0xf] }
 0x29f   :  { %7385 = vmatpush.bf16.msra.mxu3 %v10557_v40  ;;  %v7119_v40 = vpop.f32.mrf.mxu2  ;;  %v12833_v33 = vld [vmem:[#allocation2 + $0x14f4] sm:$0xf0]  ;;  %v11004_v32 = vld [vmem:[#allocation2 + $0x16e8] sm:$0xf] }
 0x2a0   :  { %7347 = vmatpush.bf16.msra.mxu0 %v10157_v34  ;;  %v12865_v61 = vld [vmem:[#allocation2 + $0x15f4] sm:$0xf0]  ;;  %v10381_v34 = vor.u32 %v12741_v3, %v10380_v54  ;;  %v11132_v7 = vld [vmem:[#allocation2 + $0x17e8] sm:$0xf]  ;;  %v10749_v55 = vor.u32 %v12833_v33, %v10748_v60 }
 0x2a1   :  { %7360 = vmatpush.bf16.msra.mxu1 %v10285_v14  ;;  %v12897_v44 = vld [vmem:[#allocation2 + $0x16f4] sm:$0xf0]  ;;  %v10877_v11 = vor.u32 %v12865_v61, %v10876_v58  ;;  %v10860_v50 = vld [vmem:[#allocation2 + $0x15c8] sm:$0xf] }
 0x2a2   :  { %7373 = vmatpush.bf16.msra.mxu2 %v10413_v39  ;;  %v12929_v14 = vld [vmem:[#allocation2 + $0x17f4] sm:$0xf0]  ;;  %v10509_v39 = vor.u32 %v12773_v17, %v10508_v18  ;;  %v11005_v47 = vor.u32 %v12897_v44, %v11004_v32  ;;  %v10988_v41 = vld [vmem:[#allocation2 + $0x16c8] sm:$0xf] }
 0x2a3   :  { %7386 = vmatpush.bf16.msra.mxu3 %v10541_v59  ;;  %v10732_v59 = vld [vmem:[#allocation2 + $0x14c8] sm:$0xf]  ;;  %v12829_v26 = vld [vmem:[#allocation2 + $0x14d4] sm:$0xf0]  ;;  %v11133_v19 = vor.u32 %v12929_v14, %v11132_v7 }
 0x2a4   :  { %7348 = vmatpush.bf16.msra.mxu0 %v10141_v42  ;;  %v12861_v56 = vld [vmem:[#allocation2 + $0x15d4] sm:$0xf0]  ;;  %v11116_v42 = vld [vmem:[#allocation2 + $0x17c8] sm:$0xf]  ;;  %v10733_v24 = vor.u32 %v12829_v26, %v10732_v59 }
 0x2a5   :  { %7361 = vmatpush.bf16.msra.mxu1 %v10269_v53  ;;  %v12893_v38 = vld [vmem:[#allocation2 + $0x16d4] sm:$0xf0]  ;;  %v10861_v53 = vor.u32 %v12861_v56, %v10860_v50  ;;  %v10716_v48 = vld [vmem:[#allocation2 + $0x14a8] sm:$0xf] }
 0x2a6   :  { %7374 = vmatpush.bf16.msra.mxu2 %v10397_v36  ;;  %v12925_v5 = vld [vmem:[#allocation2 + $0x17d4] sm:$0xf0]  ;;  %v10989_v36 = vor.u32 %v12893_v38, %v10988_v41  ;;  %v10844_v54 = vld [vmem:[#allocation2 + $0x15a8] sm:$0xf] }
 0x2a7   :  { %7387 = vmatpush.bf16.msra.mxu3 %v10525_v1  ;;  %v12825_v62 = vld [vmem:[#allocation2 + $0x14b4] sm:$0xf0]  ;;  %v11117_v1 = vor.u32 %v12925_v5, %v11116_v42  ;;  %v10972_v18 = vld [vmem:[#allocation2 + $0x16a8] sm:$0xf] }
 0x2a8   :  { %7349 = vmatpush.bf16.msra.mxu0 %v10125_v43  ;;  %v12857_v3 = vld [vmem:[#allocation2 + $0x15b4] sm:$0xf0]  ;;  %v11100_v40 = vld [vmem:[#allocation2 + $0x17a8] sm:$0xf]  ;;  %v10717_v58 = vor.u32 %v12825_v62, %v10716_v48 }
 0x2a9   :  { %7362 = vmatpush.bf16.msra.mxu1 %v10253_v0  ;;  %v12889_v17 = vld [vmem:[#allocation2 + $0x16b4] sm:$0xf0]  ;;  %v13624_v33 = vld [vmem:[#allocation10_spill] sm:$0xff]  ;;  %v10845_v49 = vor.u32 %v12857_v3, %v10844_v54  ;;  %v7156_v41 = vpop.f32.mrf.mxu1 }
 0x2aa   :  { %7375 = vmatpush.bf16.msra.mxu2 %v10381_v34  ;;  %v12921_v60 = vld [vmem:[#allocation2 + $0x17b4] sm:$0xf0]  ;;  %v10973_v43 = vor.u32 %v12889_v17, %v10972_v18  ;;  %v10700_v61 = vld [vmem:[#allocation2 + $0x1488] sm:$0xf] }
 0x2ab   :  { %7388 = vmatpush.bf16.msra.mxu3 %v10509_v39  ;;  %7350 = vmatmul.bf16.vlgmr.msra.gmra.mxu0 %v13324_v37  ;;  %v12821_v32 = vld [vmem:[#allocation2 + $0x1494] sm:$0xf0]  ;;  %v10828_v44 = vld [vmem:[#allocation2 + $0x1588] sm:$0xf]  ;;  %v11101_v0 = vor.u32 %v12921_v60, %v11100_v40 }
 0x2ac   :  { %7394 = vmatpush.bf16.msrb.mxu0 %v10749_v55  ;;  %7363 = vmatmul.bf16.vlgmr.msra.gmra.mxu1 %v13328_v46  ;;  %v12853_v34 = vld [vmem:[#allocation2 + $0x1594] sm:$0xf0]  ;;  %v10956_v7 = vld [vmem:[#allocation2 + $0x1688] sm:$0xf] }
 0x2ad   :  { %7407 = vmatpush.bf16.msrb.mxu1 %v10877_v11  ;;  %7376 = vmatmul.bf16.vlgmr.msra.gmra.mxu2 %v13326_v45  ;;  %v12885_v14 = vld [vmem:[#allocation2 + $0x1694] sm:$0xf0]  ;;  %v11084_v39 = vld [vmem:[#allocation2 + $0x1788] sm:$0xf]  ;;  %v10701_v11 = vor.u32 %v12821_v32, %v10700_v61  ;;  %v10829_v59 = vor.u32 %v12853_v34, %v10828_v44 }
 0x2ae   :  { %7420 = vmatpush.bf16.msrb.mxu2 %v11005_v47  ;;  %7389 = vmatmul.bf16.vlgmr.msra.gmra.mxu3 %v13624_v33  ;;  %v12917_v55 = vld [vmem:[#allocation2 + $0x1794] sm:$0xf0]  ;;  %v7143_v47 = vpop.f32.mrf.mxu0  ;;  %v10957_v26 = vor.u32 %v12885_v14, %v10956_v7  ;;  %v10684_v50 = vld [vmem:[#allocation2 + $0x1468] sm:$0xf] }
 0x2af   :  { %7433 = vmatpush.bf16.msrb.mxu3 %v11133_v19  ;;  %v12817_v19 = vld [vmem:[#allocation2 + $0x1474] sm:$0xf0]  ;;  %v10812_v56 = vld [vmem:[#allocation2 + $0x1568] sm:$0xf]  ;;  %v11085_v38 = vor.u32 %v12917_v55, %v11084_v39 }
 0x2b0   :  { %7395 = vmatpush.bf16.msrb.mxu0 %v10733_v24  ;;  %v12849_v42 = vld [vmem:[#allocation2 + $0x1574] sm:$0xf0]  ;;  %v10940_v5 = vld [vmem:[#allocation2 + $0x1668] sm:$0xf]  ;;  %v10685_v62 = vor.u32 %v12817_v19, %v10684_v50  ;;  %v7169_v40 = vpop.f32.mrf.mxu2 }
 0x2b1   :  { %7408 = vmatpush.bf16.msrb.mxu1 %v10861_v53  ;;  %v12881_v24 = vld [vmem:[#allocation2 + $0x1674] sm:$0xf0]  ;;  %v7157_v53 = vadd.f32 %v7156_v41, %v7143_v47  ;;  %v10813_v54 = vor.u32 %v12849_v42, %v10812_v56  ;;  %v10668_v3 = vld [vmem:[#allocation2 + $0x1448] sm:$0xf]  ;;  %v7182_v32 = vpop.f32.mrf.mxu3 }
 0x2b2   :  { %7421 = vmatpush.bf16.msrb.mxu2 %v10989_v36  ;;  %v11068_v36 = vld [vmem:[#allocation2 + $0x1768] sm:$0xf]  ;;  %v12913_v48 = vld [vmem:[#allocation2 + $0x1774] sm:$0xf0] }
 0x2b3   :  { %7434 = vmatpush.bf16.msrb.mxu3 %v11117_v1  ;;  %v10941_v1 = vor.u32 %v12881_v24, %v10940_v5  ;;  %v12813_v18 = vld [vmem:[#allocation2 + $0x1454] sm:$0xf0]  ;;  %v10796_v17 = vld [vmem:[#allocation2 + $0x1548] sm:$0xf]  ;;  %v11069_v60 = vor.u32 %v12913_v48, %v11068_v36  ;;  %v7170_v61 = vadd.f32 %v7169_v40, %v7157_v53 }
 0x2b4   :  { %7396 = vmatpush.bf16.msrb.mxu0 %v10717_v58  ;;  %v12845_v58 = vld [vmem:[#allocation2 + $0x1554] sm:$0xf0]  ;;  %v11052_v44 = vld [vmem:[#allocation2 + $0x1748] sm:$0xf]  ;;  %v10669_v34 = vor.u32 %v12813_v18, %v10668_v3 }
 0x2b5   :  { %7409 = vmatpush.bf16.msrb.mxu1 %v10845_v49  ;;  %v10924_v49 = vld [vmem:[#allocation2 + $0x1648] sm:$0xf]  ;;  %v13511_v7 = vadd.f32 %v7182_v32, %v7170_v61  ;;  %v10797_v39 = vor.u32 %v12845_v58, %v10796_v17  ;;  %v12809_v47 = vld [vmem:[#allocation2 + $0x1434] sm:$0xf0] }
 0x2b6   :  { %7422 = vmatpush.bf16.msrb.mxu2 %v10973_v43  ;;  %v12877_v43 = vld [vmem:[#allocation2 + $0x1654] sm:$0xf0]  ;;  %v7145_v14 = vpop.f32.mrf.mxu0  ;;  %v10908_v56 = vld [vmem:[#allocation2 + $0x1628] sm:$0xf] }
 0x2b7   :  { %7435 = vmatpush.bf16.msrb.mxu3 %v11101_v0  ;;  %v12909_v0 = vld [vmem:[#allocation2 + $0x1754] sm:$0xf0]  ;;  %v10925_v55 = vor.u32 %v12877_v43, %v10924_v49  ;;  %v10636_v24 = vld [vmem:[#allocation2 + $0x1408] sm:$0xf] }
 0x2b8   :  { %7397 = vmatpush.bf16.msrb.mxu0 %v10701_v11  ;;  %v10652_v11 = vld [vmem:[#allocation2 + $0x1428] sm:$0xf]  ;;  %v11053_v50 = vor.u32 %v12909_v0, %v11052_v44  ;;  %v12841_v19 = vld [vmem:[#allocation2 + $0x1534] sm:$0xf0]  ;;  %v7171_v3 = vpop.f32.mrf.mxu2 }
 0x2b9   :  { %7410 = vmatpush.bf16.msrb.mxu1 %v10829_v59  ;;  %v10780_v59 = vld [vmem:[#allocation2 + $0x1528] sm:$0xf]  ;;  %v12873_v41 = vld [vmem:[#allocation2 + $0x1634] sm:$0xf0]  ;;  %v10653_v5 = vor.u32 %v12809_v47, %v10652_v11  ;;  %v7184_v58 = vpop.f32.mrf.mxu3 }
 0x2ba   :  { %7423 = vmatpush.bf16.msrb.mxu2 %v10957_v26  ;;  %v7158_v26 = vpop.f32.mrf.mxu1  ;;  %v12905_v42 = vld [vmem:[#allocation2 + $0x1734] sm:$0xf0]  ;;  %v10781_v36 = vor.u32 %v12841_v19, %v10780_v59  ;;  %v10909_v48 = vor.u32 %v12873_v41, %v10908_v56  ;;  %v11020_v40 = vld [vmem:[#allocation2 + $0x1708] sm:$0xf] }
 0x2bb   :  { %7436 = vmatpush.bf16.msrb.mxu3 %v11085_v38  ;;  %v11036_v38 = vld [vmem:[#allocation2 + $0x1728] sm:$0xf]  ;;  %v12805_v53 = vld [vmem:[#allocation2 + $0x1414] sm:$0xf0] }
 0x2bc   :  { %7398 = vmatpush.bf16.msrb.mxu0 %v10685_v62  ;;  %v10764_v62 = vld [vmem:[#allocation2 + $0x1508] sm:$0xf]  ;;  %v11037_v18 = vor.u32 %v12905_v42, %v11036_v38  ;;  %v12869_v17 = vld [vmem:[#allocation2 + $0x1614] sm:$0xf0]  ;;  %v10637_v32 = vor.u32 %v12805_v53, %v10636_v24 }
 0x2bd   :  { %7411 = vmatpush.bf16.msrb.mxu1 %v10813_v54  ;;  %v12837_v54 = vld [vmem:[#allocation2 + $0x1514] sm:$0xf0]  ;;  %v11260_v49 = vld [vmem:[#allocation2 + $0x18e8] sm:$0xf] }
 0x2be   :  { %7424 = vmatpush.bf16.msrb.mxu2 %v10941_v1  ;;  %v10892_v1 = vld [vmem:[#allocation2 + $0x1608] sm:$0xf]  ;;  %v12961_v43 = vld [vmem:[#allocation2 + $0x18f4] sm:$0xf0]  ;;  %v10765_v14 = vor.u32 %v12837_v54, %v10764_v62 }
 0x2bf   :  { %7437 = vmatpush.bf16.msrb.mxu3 %v11069_v60  ;;  %v12901_v60 = vld [vmem:[#allocation2 + $0x1714] sm:$0xf0]  ;;  %v11388_v61 = vld [vmem:[#allocation2 + $0x19e8] sm:$0xf]  ;;  %v11261_v59 = vor.u32 %v12961_v43, %v11260_v49 }
 0x2c0   :  { %7399 = vmatpush.bf16.msrb.mxu0 %v10669_v34  ;;  %v12993_v44 = vld [vmem:[#allocation2 + $0x19f4] sm:$0xf0]  ;;  %v11516_v0 = vld [vmem:[#allocation2 + $0x1ae8] sm:$0xf]  ;;  %v11021_v47 = vor.u32 %v12901_v60, %v11020_v40 }
 0x2c1   :  { %7412 = vmatpush.bf16.msrb.mxu1 %v10797_v39  ;;  %v13025_v34 = vld [vmem:[#allocation2 + $0x1af4] sm:$0xf0]  ;;  %v10893_v39 = vor.u32 %v12869_v17, %v10892_v1  ;;  %v11389_v26 = vor.u32 %v12993_v44, %v11388_v61  ;;  %v11244_v19 = vld [vmem:[#allocation2 + $0x18c8] sm:$0xf] }
 0x2c2   :  { %7425 = vmatpush.bf16.msrb.mxu2 %v10925_v55  ;;  %v11644_v55 = vld [vmem:[#allocation2 + $0x1be8] sm:$0xf]  ;;  %v13057_v11 = vld [vmem:[#allocation2 + $0x1bf4] sm:$0xf0] }
 0x2c3   :  { %7438 = vmatpush.bf16.msrb.mxu3 %v11053_v50  ;;  %v11517_v50 = vor.u32 %v13025_v34, %v11516_v0  ;;  %v12957_v56 = vld [vmem:[#allocation2 + $0x18d4] sm:$0xf0]  ;;  %v11372_v41 = vld [vmem:[#allocation2 + $0x19c8] sm:$0xf]  ;;  %v11645_v38 = vor.u32 %v13057_v11, %v11644_v55 }
 0x2c4   :  { %7400 = vmatpush.bf16.msrb.mxu0 %v10653_v5  ;;  %v12989_v42 = vld [vmem:[#allocation2 + $0x19d4] sm:$0xf0]  ;;  %v11500_v5 = vld [vmem:[#allocation2 + $0x1ac8] sm:$0xf] }
 0x2c5   :  { %7413 = vmatpush.bf16.msrb.mxu1 %v10781_v36  ;;  %v13021_v24 = vld [vmem:[#allocation2 + $0x1ad4] sm:$0xf0]  ;;  %v11628_v53 = vld [vmem:[#allocation2 + $0x1bc8] sm:$0xf]  ;;  %v11373_v62 = vor.u32 %v12989_v42, %v11372_v41 }
 0x2c6   :  { %7426 = vmatpush.bf16.msrb.mxu2 %v10909_v48  ;;  %v13053_v36 = vld [vmem:[#allocation2 + $0x1bd4] sm:$0xf0]  ;;  %v11245_v48 = vor.u32 %v12957_v56, %v11244_v19  ;;  %v11501_v54 = vor.u32 %v13021_v24, %v11500_v5  ;;  %v11228_v1 = vld [vmem:[#allocation2 + $0x18a8] sm:$0xf] }
 0x2c7   :  { %7439 = vmatpush.bf16.msrb.mxu3 %v11037_v18  ;;  %v12953_v3 = vld [vmem:[#allocation2 + $0x18b4] sm:$0xf0]  ;;  %v11356_v18 = vld [vmem:[#allocation2 + $0x19a8] sm:$0xf]  ;;  %v11629_v17 = vor.u32 %v13053_v36, %v11628_v53 }
 0x2c8   :  { %7401 = vmatpush.bf16.msrb.mxu0 %v10637_v32  ;;  %v12985_v40 = vld [vmem:[#allocation2 + $0x19b4] sm:$0xf0]  ;;  %v11484_v60 = vld [vmem:[#allocation2 + $0x1aa8] sm:$0xf]  ;;  %v11229_v61 = vor.u32 %v12953_v3, %v11228_v1  ;;  %v7195_v19 = vpop.f32.mrf.mxu0 }
 0x2c9   :  { %7414 = vmatpush.bf16.msrb.mxu1 %v10765_v14  ;;  %v13017_v58 = vld [vmem:[#allocation2 + $0x1ab4] sm:$0xf0]  ;;  %v11612_v49 = vld [vmem:[#allocation2 + $0x1ba8] sm:$0xf]  ;;  %v11357_v32 = vor.u32 %v12985_v40, %v11356_v18  ;;  %v7196_v24 = vadd.f32 %v7195_v19, %v13511_v7  ;;  %v7208_v53 = vpop.f32.mrf.mxu1 }
 0x2ca   :  { %7427 = vmatpush.bf16.msrb.mxu2 %v10893_v39  ;;  %v13049_v43 = vld [vmem:[#allocation2 + $0x1bb4] sm:$0xf0]  ;;  %v11485_v44 = vor.u32 %v13017_v58, %v11484_v60  ;;  %v11212_v0 = vld [vmem:[#allocation2 + $0x1888] sm:$0xf] }
 0x2cb   :  { %7440 = vmatpush.bf16.msrb.mxu3 %v11021_v47  ;;  %7402 = vmatmul.bf16.vlgmr.msrb.gmra.mxu0 %v13344_v8  ;;  %v12949_v34 = vld [vmem:[#allocation2 + $0x1894] sm:$0xf0]  ;;  %v11340_v14 = vld [vmem:[#allocation2 + $0x1988] sm:$0xf]  ;;  %v11613_v39 = vor.u32 %v13049_v43, %v11612_v49  ;;  %v7209_v18 = vadd.f32 %v7208_v53, %v7196_v24 }
 0x2cc   :  { %7446 = vmatpush.bf16.msra.mxu0 %v11261_v59  ;;  %7415 = vmatmul.bf16.vlgmr.msrb.gmra.mxu1 %v13348_v13  ;;  %v12981_v55 = vld [vmem:[#allocation2 + $0x1994] sm:$0xf0]  ;;  %v11468_v11 = vld [vmem:[#allocation2 + $0x1a88] sm:$0xf] }
 0x2cd   :  { %7459 = vmatpush.bf16.msra.mxu1 %v11389_v26  ;;  %7428 = vmatmul.bf16.vlgmr.msrb.gmra.mxu2 %v13346_v12  ;;  %v13013_v47 = vld [vmem:[#allocation2 + $0x1a94] sm:$0xf0]  ;;  %v11596_v59 = vld [vmem:[#allocation2 + $0x1b88] sm:$0xf]  ;;  %v11341_v56 = vor.u32 %v12981_v55, %v11340_v14 }
 0x2ce   :  { %7472 = vmatpush.bf16.msra.mxu2 %v11517_v50  ;;  %7441 = vmatmul.bf16.vlgmr.msrb.gmra.mxu3 %v13350_v16  ;;  %v13045_v26 = vld [vmem:[#allocation2 + $0x1b94] sm:$0xf0]  ;;  %v11213_v50 = vor.u32 %v12949_v34, %v11212_v0  ;;  %v11469_v41 = vor.u32 %v13013_v47, %v11468_v11  ;;  %v11324_v5 = vld [vmem:[#allocation2 + $0x1968] sm:$0xf] }
 0x2cf   :  { %7485 = vmatpush.bf16.msra.mxu3 %v11645_v38  ;;  %v11196_v38 = vld [vmem:[#allocation2 + $0x1868] sm:$0xf]  ;;  %v12945_v42 = vld [vmem:[#allocation2 + $0x1874] sm:$0xf0]  ;;  %v11597_v36 = vor.u32 %v13045_v26, %v11596_v59 }
 0x2d0   :  { %7447 = vmatpush.bf16.msra.mxu0 %v11245_v48  ;;  %v12977_v48 = vld [vmem:[#allocation2 + $0x1974] sm:$0xf0]  ;;  %v11580_v1 = vld [vmem:[#allocation2 + $0x1b68] sm:$0xf]  ;;  %v7197_v59 = vpop.f32.mrf.mxu0 }
 0x2d1   :  { %7460 = vmatpush.bf16.msra.mxu1 %v11373_v62  ;;  %v11452_v62 = vld [vmem:[#allocation2 + $0x1a68] sm:$0xf]  ;;  %v13041_v3 = vld [vmem:[#allocation2 + $0x1b74] sm:$0xf0]  ;;  %v11325_v40 = vor.u32 %v12977_v48, %v11324_v5  ;;  %v7234_v14 = vpop.f32.mrf.mxu3 }
 0x2d2   :  { %7473 = vmatpush.bf16.msra.mxu2 %v11501_v54  ;;  %v13009_v54 = vld [vmem:[#allocation2 + $0x1a74] sm:$0xf0]  ;;  %v11180_v58 = vld [vmem:[#allocation2 + $0x1848] sm:$0xf]  ;;  %v11581_v7 = vor.u32 %v13041_v3, %v11580_v1 }
 0x2d3   :  { %7486 = vmatpush.bf16.msra.mxu3 %v11629_v17  ;;  %v11197_v17 = vor.u32 %v12945_v42, %v11196_v38  ;;  %v11453_v60 = vor.u32 %v13009_v54, %v11452_v62  ;;  %v12941_v49 = vld [vmem:[#allocation2 + $0x1854] sm:$0xf0]  ;;  %v11308_v43 = vld [vmem:[#allocation2 + $0x1948] sm:$0xf]  ;;  %v7210_v38 = vpop.f32.mrf.mxu1 }
 0x2d4   :  { %7448 = vmatpush.bf16.msra.mxu0 %v11229_v61  ;;  %v7221_v61 = vpop.f32.mrf.mxu2  ;;  %v13005_v0 = vld [vmem:[#allocation2 + $0x1a54] sm:$0xf0]  ;;  %v11181_v11 = vor.u32 %v12941_v49, %v11180_v58  ;;  %v11164_v19 = vld [vmem:[#allocation2 + $0x1828] sm:$0xf] }
 0x2d5   :  { %7461 = vmatpush.bf16.msra.mxu1 %v11357_v32  ;;  %v12973_v32 = vld [vmem:[#allocation2 + $0x1954] sm:$0xf0]  ;;  %v7222_v34 = vadd.f32 %v7221_v61, %v7209_v18  ;;  %v11420_v24 = vld [vmem:[#allocation2 + $0x1a28] sm:$0xf] }
 0x2d6   :  { %7474 = vmatpush.bf16.msra.mxu2 %v11485_v44  ;;  %v11436_v44 = vld [vmem:[#allocation2 + $0x1a48] sm:$0xf]  ;;  %v13037_v55 = vld [vmem:[#allocation2 + $0x1b54] sm:$0xf0]  ;;  %v11309_v26 = vor.u32 %v12973_v32, %v11308_v43 }
 0x2d7   :  { %7487 = vmatpush.bf16.msra.mxu3 %v11613_v39  ;;  %v11564_v39 = vld [vmem:[#allocation2 + $0x1b48] sm:$0xf]  ;;  %v13518_v47 = vadd.f32 %v7234_v14, %v7222_v34  ;;  %v12969_v5 = vld [vmem:[#allocation2 + $0x1934] sm:$0xf0] }
 0x2d8   :  { %7449 = vmatpush.bf16.msra.mxu0 %v11213_v50  ;;  %v11437_v50 = vor.u32 %v13005_v0, %v11436_v44  ;;  %v11565_v42 = vor.u32 %v13037_v55, %v11564_v39  ;;  %v13001_v53 = vld [vmem:[#allocation2 + $0x1a34] sm:$0xf0]  ;;  %v11148_v54 = vld [vmem:[#allocation2 + $0x1808] sm:$0xf] }
 0x2d9   :  { %7462 = vmatpush.bf16.msra.mxu1 %v11341_v56  ;;  %v12937_v56 = vld [vmem:[#allocation2 + $0x1834] sm:$0xf0]  ;;  %v11421_v18 = vor.u32 %v13001_v53, %v11420_v24  ;;  %v11532_v61 = vld [vmem:[#allocation2 + $0x1b08] sm:$0xf]  ;;  %v7236_v32 = vpop.f32.mrf.mxu3 }
 0x2da   :  { %7475 = vmatpush.bf16.msra.mxu2 %v11469_v41  ;;  %v11292_v41 = vld [vmem:[#allocation2 + $0x1928] sm:$0xf]  ;;  %v13033_v48 = vld [vmem:[#allocation2 + $0x1b34] sm:$0xf0]  ;;  %v11165_v62 = vor.u32 %v12937_v56, %v11164_v19 }
 0x2db   :  { %7488 = vmatpush.bf16.msra.mxu3 %v11597_v36  ;;  %v11548_v36 = vld [vmem:[#allocation2 + $0x1b28] sm:$0xf]  ;;  %v12933_v1 = vld [vmem:[#allocation2 + $0x1814] sm:$0xf0]  ;;  %v11293_v3 = vor.u32 %v12969_v5, %v11292_v41 }
 0x2dc   :  { %7450 = vmatpush.bf16.msra.mxu0 %v11197_v17  ;;  %v11276_v17 = vld [vmem:[#allocation2 + $0x1908] sm:$0xf]  ;;  %v7223_v58 = vpop.f32.mrf.mxu2  ;;  %v11549_v49 = vor.u32 %v13033_v48, %v11548_v36  ;;  %v12997_v43 = vld [vmem:[#allocation2 + $0x1a14] sm:$0xf0]  ;;  %v11149_v14 = vor.u32 %v12933_v1, %v11148_v54 }
 0x2dd   :  { %7463 = vmatpush.bf16.msra.mxu1 %v11325_v40  ;;  %v12965_v40 = vld [vmem:[#allocation2 + $0x1914] sm:$0xf0]  ;;  %v11772_v44 = vld [vmem:[#allocation2 + $0x1ce8] sm:$0xf] }
 0x2de   :  { %7476 = vmatpush.bf16.msra.mxu2 %v11453_v60  ;;  %v11404_v60 = vld [vmem:[#allocation2 + $0x1a08] sm:$0xf]  ;;  %v13089_v0 = vld [vmem:[#allocation2 + $0x1cf4] sm:$0xf0]  ;;  %v11277_v59 = vor.u32 %v12965_v40, %v11276_v17 }
 0x2df   :  { %7489 = vmatpush.bf16.msra.mxu3 %v11581_v7  ;;  %v13029_v7 = vld [vmem:[#allocation2 + $0x1b14] sm:$0xf0]  ;;  %v11900_v34 = vld [vmem:[#allocation2 + $0x1de8] sm:$0xf]  ;;  %v11773_v41 = vor.u32 %v13089_v0, %v11772_v44 }
 0x2e0   :  { %7451 = vmatpush.bf16.msra.mxu0 %v11181_v11  ;;  %v13121_v39 = vld [vmem:[#allocation2 + $0x1df4] sm:$0xf0]  ;;  %v12028_v55 = vld [vmem:[#allocation2 + $0x1ee8] sm:$0xf]  ;;  %v11533_v56 = vor.u32 %v13029_v7, %v11532_v61 }
 0x2e1   :  { %7464 = vmatpush.bf16.msra.mxu1 %v11309_v26  ;;  %v13153_v11 = vld [vmem:[#allocation2 + $0x1ef4] sm:$0xf0]  ;;  %v11405_v26 = vor.u32 %v12997_v43, %v11404_v60  ;;  %v11901_v38 = vor.u32 %v13121_v39, %v11900_v34  ;;  %v11756_v5 = vld [vmem:[#allocation2 + $0x1cc8] sm:$0xf] }
 0x2e2   :  { %7477 = vmatpush.bf16.msra.mxu2 %v11437_v50  ;;  %v12156_v50 = vld [vmem:[#allocation2 + $0x1fe8] sm:$0xf]  ;;  %v13185_v19 = vld [vmem:[#allocation2 + $0x1ff4] sm:$0xf0] }
 0x2e3   :  { %7490 = vmatpush.bf16.msra.mxu3 %v11565_v42  ;;  %v12029_v42 = vor.u32 %v13153_v11, %v12028_v55  ;;  %v13085_v24 = vld [vmem:[#allocation2 + $0x1cd4] sm:$0xf0]  ;;  %v11884_v53 = vld [vmem:[#allocation2 + $0x1dc8] sm:$0xf]  ;;  %v12157_v36 = vor.u32 %v13185_v19, %v12156_v50 }
 0x2e4   :  { %7452 = vmatpush.bf16.msra.mxu0 %v11165_v62  ;;  %v13117_v48 = vld [vmem:[#allocation2 + $0x1dd4] sm:$0xf0]  ;;  %v12012_v62 = vld [vmem:[#allocation2 + $0x1ec8] sm:$0xf] }
 0x2e5   :  { %7465 = vmatpush.bf16.msra.mxu1 %v11293_v3  ;;  %v13149_v54 = vld [vmem:[#allocation2 + $0x1ed4] sm:$0xf0]  ;;  %v12140_v1 = vld [vmem:[#allocation2 + $0x1fc8] sm:$0xf]  ;;  %v11885_v17 = vor.u32 %v13117_v48, %v11884_v53 }
 0x2e6   :  { %7478 = vmatpush.bf16.msra.mxu2 %v11421_v18  ;;  %v13181_v3 = vld [vmem:[#allocation2 + $0x1fd4] sm:$0xf0]  ;;  %v11757_v18 = vor.u32 %v13085_v24, %v11756_v5  ;;  %v12013_v40 = vor.u32 %v13149_v54, %v12012_v62  ;;  %v11740_v60 = vld [vmem:[#allocation2 + $0x1ca8] sm:$0xf] }
 0x2e7   :  { %7491 = vmatpush.bf16.msra.mxu3 %v11549_v49  ;;  %v13081_v58 = vld [vmem:[#allocation2 + $0x1cb4] sm:$0xf0]  ;;  %v11868_v49 = vld [vmem:[#allocation2 + $0x1da8] sm:$0xf]  ;;  %v12141_v43 = vor.u32 %v13181_v3, %v12140_v1 }
 0x2e8   :  { %7453 = vmatpush.bf16.msra.mxu0 %v11149_v14  ;;  %v13113_v61 = vld [vmem:[#allocation2 + $0x1db4] sm:$0xf0]  ;;  %v11996_v7 = vld [vmem:[#allocation2 + $0x1ea8] sm:$0xf]  ;;  %v11741_v34 = vor.u32 %v13081_v58, %v11740_v60 }
 0x2e9   :  { %7466 = vmatpush.bf16.msra.mxu1 %v11277_v59  ;;  %v13145_v32 = vld [vmem:[#allocation2 + $0x1eb4] sm:$0xf0]  ;;  %v12124_v44 = vld [vmem:[#allocation2 + $0x1fa8] sm:$0xf]  ;;  %v11869_v14 = vor.u32 %v13113_v61, %v11868_v49  ;;  %v7260_v53 = vpop.f32.mrf.mxu1 }
 0x2ea   :  { %7479 = vmatpush.bf16.msra.mxu2 %v11405_v26  ;;  %v13177_v0 = vld [vmem:[#allocation2 + $0x1fb4] sm:$0xf0]  ;;  %v11997_v39 = vor.u32 %v13145_v32, %v11996_v7  ;;  %v11724_v55 = vld [vmem:[#allocation2 + $0x1c88] sm:$0xf] }
 0x2eb   :  { %7492 = vmatpush.bf16.msra.mxu3 %v11533_v56  ;;  %7454 = vmatmul.bf16.vlgmr.msra.gmra.mxu0 %v13365_v2  ;;  %v13077_v11 = vld [vmem:[#allocation2 + $0x1c94] sm:$0xf0]  ;;  %v11852_v59 = vld [vmem:[#allocation2 + $0x1d88] sm:$0xf]  ;;  %v12125_v26 = vor.u32 %v13177_v0, %v12124_v44 }
 0x2ec   :  { %7498 = vmatpush.bf16.msrb.mxu0 %v11773_v41  ;;  %7467 = vmatmul.bf16.vlgmr.msra.gmra.mxu1 %v13369_v10  ;;  %v13109_v50 = vld [vmem:[#allocation2 + $0x1d94] sm:$0xf0]  ;;  %v11980_v19 = vld [vmem:[#allocation2 + $0x1e88] sm:$0xf]  ;;  %v7247_v41 = vpop.f32.mrf.mxu0  ;;  %v11725_v24 = vor.u32 %v13077_v11, %v11724_v55 }
 0x2ed   :  { %7511 = vmatpush.bf16.msrb.mxu1 %v11901_v38  ;;  %7480 = vmatmul.bf16.vlgmr.msra.gmra.mxu2 %v13367_v9  ;;  %v13141_v56 = vld [vmem:[#allocation2 + $0x1e94] sm:$0xf0]  ;;  %v12108_v38 = vld [vmem:[#allocation2 + $0x1f88] sm:$0xf]  ;;  %v7248_v5 = vadd.f32 %v7247_v41, %v13518_v47 }
 0x2ee   :  { %7524 = vmatpush.bf16.msrb.mxu2 %v12029_v42  ;;  %7493 = vmatmul.bf16.vlgmr.msra.gmra.mxu3 %v13371_v15  ;;  %v13173_v42 = vld [vmem:[#allocation2 + $0x1f94] sm:$0xf0]  ;;  %v11981_v48 = vor.u32 %v13141_v56, %v11980_v19  ;;  %v11708_v62 = vld [vmem:[#allocation2 + $0x1c68] sm:$0xf] }
 0x2ef   :  { %7537 = vmatpush.bf16.msrb.mxu3 %v12157_v36  ;;  %v11853_v36 = vor.u32 %v13109_v50, %v11852_v59  ;;  %v13073_v54 = vld [vmem:[#allocation2 + $0x1c74] sm:$0xf0]  ;;  %v11836_v1 = vld [vmem:[#allocation2 + $0x1d68] sm:$0xf]  ;;  %v12109_v3 = vor.u32 %v13173_v42, %v12108_v38 }
 0x2f0   :  { %7499 = vmatpush.bf16.msrb.mxu0 %v11757_v18  ;;  %v7261_v18 = vadd.f32 %v7260_v53, %v7248_v5  ;;  %v13137_v60 = vld [vmem:[#allocation2 + $0x1e74] sm:$0xf0]  ;;  %v12092_v58 = vld [vmem:[#allocation2 + $0x1f68] sm:$0xf] }
 0x2f1   :  { %7512 = vmatpush.bf16.msrb.mxu1 %v11885_v17  ;;  %v13105_v17 = vld [vmem:[#allocation2 + $0x1d74] sm:$0xf0]  ;;  %v11692_v7 = vld [vmem:[#allocation2 + $0x1c48] sm:$0xf]  ;;  %v7286_v59 = vpop.f32.mrf.mxu3  ;;  %v7262_v41 = vpop.f32.mrf.mxu1 }
 0x2f2   :  { %7525 = vmatpush.bf16.msrb.mxu2 %v12013_v40  ;;  %v11964_v40 = vld [vmem:[#allocation2 + $0x1e68] sm:$0xf]  ;;  %v13169_v49 = vld [vmem:[#allocation2 + $0x1f74] sm:$0xf0]  ;;  %v11837_v47 = vor.u32 %v13105_v17, %v11836_v1 }
 0x2f3   :  { %7538 = vmatpush.bf16.msrb.mxu3 %v12141_v43  ;;  %v11709_v43 = vor.u32 %v13073_v54, %v11708_v62  ;;  %v11965_v61 = vor.u32 %v13137_v60, %v11964_v40  ;;  %v13069_v32 = vld [vmem:[#allocation2 + $0x1c54] sm:$0xf0]  ;;  %v11820_v44 = vld [vmem:[#allocation2 + $0x1d48] sm:$0xf]  ;;  %v12093_v0 = vor.u32 %v13169_v49, %v12092_v58 }
 0x2f4   :  { %7500 = vmatpush.bf16.msrb.mxu0 %v11741_v34  ;;  %v7273_v34 = vpop.f32.mrf.mxu2  ;;  %v13133_v55 = vld [vmem:[#allocation2 + $0x1e54] sm:$0xf0]  ;;  %v7249_v19 = vpop.f32.mrf.mxu0  ;;  %v11693_v56 = vor.u32 %v13069_v32, %v11692_v7  ;;  %v11932_v54 = vld [vmem:[#allocation2 + $0x1e28] sm:$0xf] }
 0x2f5   :  { %7513 = vmatpush.bf16.msrb.mxu1 %v11869_v14  ;;  %v13101_v14 = vld [vmem:[#allocation2 + $0x1d54] sm:$0xf0]  ;;  %v7274_v11 = vadd.f32 %v7273_v34, %v7261_v18  ;;  %v11660_v40 = vld [vmem:[#allocation2 + $0x1c08] sm:$0xf]  ;;  %v8446_v19 = vld [vmem:[#allocation2 + $0x2f8] sm:$0xf0] }
 0x2f6   :  { %7526 = vmatpush.bf16.msrb.mxu2 %v11997_v39  ;;  %v11948_v39 = vld [vmem:[#allocation2 + $0x1e48] sm:$0xf]  ;;  %v13165_v50 = vld [vmem:[#allocation2 + $0x1f54] sm:$0xf0]  ;;  %v11821_v42 = vor.u32 %v13101_v14, %v11820_v44  ;;  %v12191_v14 = vld [vmem:[#allocation2 + $0xec] sm:$0xf] }
 0x2f7   :  { %7539 = vmatpush.bf16.msrb.mxu3 %v12125_v26  ;;  %v12076_v26 = vld [vmem:[#allocation2 + $0x1f48] sm:$0xf]  ;;  %v13525_v38 = vadd.f32 %v7286_v59, %v7274_v11  ;;  %v11949_v5 = vor.u32 %v13133_v55, %v11948_v39  ;;  %v13065_v53 = vld [vmem:[#allocation2 + $0x1c34] sm:$0xf0]  ;;  %v8190_v39 = vld [vmem:[#allocation2 + $0xf8] sm:$0xf0] }
 0x2f8   :  { %7501 = vmatpush.bf16.msrb.mxu0 %v11725_v24  ;;  %v11676_v24 = vld [vmem:[#allocation2 + $0x1c28] sm:$0xf]  ;;  %v13097_v62 = vld [vmem:[#allocation2 + $0x1d34] sm:$0xf0]  ;;  %v12223_v55 = vld [vmem:[#allocation2 + $0x1ec] sm:$0xf] }
 0x2f9   :  { %7514 = vmatpush.bf16.msrb.mxu1 %v11853_v36  ;;  %v11804_v36 = vld [vmem:[#allocation2 + $0x1d28] sm:$0xf]  ;;  %v13129_v1 = vld [vmem:[#allocation2 + $0x1e34] sm:$0xf0]  ;;  %v11677_v17 = vor.u32 %v13065_v53, %v11676_v24  ;;  %v7288_v11 = vpop.f32.mrf.mxu3  ;;  %v8193_v53 = vor.u32 %v12191_v14, %v8190_v39  ;;  %v8414_v14 = vld [vmem:[#allocation2 + $0x2b8] sm:$0xf0] }
 0x2fa   :  { %7527 = vmatpush.bf16.msrb.mxu2 %v11981_v48  ;;  %v12077_v48 = vor.u32 %v13165_v50, %v12076_v26  ;;  %v13161_v18 = vld [vmem:[#allocation2 + $0x1f34] sm:$0xf0]  ;;  %v11805_v58 = vor.u32 %v13097_v62, %v11804_v36  ;;  %v11933_v49 = vor.u32 %v13129_v1, %v11932_v54  ;;  %v12044_v44 = vld [vmem:[#allocation2 + $0x1f08] sm:$0xf]  ;;  %v8318_v26 = vld [vmem:[#allocation2 + $0x1f8] sm:$0xf0] }
 0x2fb   :  { %7540 = vmatpush.bf16.msrb.mxu3 %v12109_v3  ;;  %v12060_v3 = vld [vmem:[#allocation2 + $0x1f28] sm:$0xf]  ;;  %v13061_v60 = vld [vmem:[#allocation2 + $0x1c14] sm:$0xf0]  ;;  %v12255_v50 = vld [vmem:[#allocation2 + $0x2ec] sm:$0xf]  ;;  %v8321_v36 = vor.u32 %v12223_v55, %v8318_v26 }
 0x2fc   :  { %7502 = vmatpush.bf16.msrb.mxu0 %v11709_v43  ;;  %v11788_v43 = vld [vmem:[#allocation2 + $0x1d08] sm:$0xf]  ;;  %v12061_v7 = vor.u32 %v13161_v18, %v12060_v3  ;;  %v13125_v32 = vld [vmem:[#allocation2 + $0x1e14] sm:$0xf0]  ;;  %v7275_v34 = vpop.f32.mrf.mxu2  ;;  %v11661_v59 = vor.u32 %v13061_v60, %v11660_v40  ;;  %v12187_v62 = vld [vmem:[#allocation2 + $0xcc] sm:$0xf] }
 0x2fd   :  { %7515 = vmatpush.bf16.msrb.mxu1 %v11837_v47  ;;  %v13093_v47 = vld [vmem:[#allocation2 + $0x1d14] sm:$0xf0]  ;;  %v8174_v54 = vld [vmem:[#allocation2 + $0xd8] sm:$0xf0]  ;;  %v12219_v1 = vld [vmem:[#allocation2 + $0x1cc] sm:$0xf] }
 0x2fe   :  { %7528 = vmatpush.bf16.msrb.mxu2 %v11965_v61  ;;  %v11916_v61 = vld [vmem:[#allocation2 + $0x1e08] sm:$0xf]  ;;  %v8302_v18 = vld [vmem:[#allocation2 + $0x1d8] sm:$0xf0]  ;;  %v12283_v60 = vld [vmem:[#allocation2 + $0x3cc] sm:$0xf] }
 0x2ff   :  { %7541 = vmatpush.bf16.msrb.mxu3 %v12093_v0  ;;  %v13157_v0 = vld [vmem:[#allocation2 + $0x1f14] sm:$0xf0]  ;;  %v11917_v41 = vor.u32 %v13125_v32, %v11916_v61  ;;  %v8430_v40 = vld [vmem:[#allocation2 + $0x2d8] sm:$0xf0]  ;;  %v12183_v61 = vld [vmem:[#allocation2 + $0xac] sm:$0xf] }
 0x300   :  { %7503 = vmatpush.bf16.msrb.mxu0 %v11693_v56  ;;  %v11789_v56 = vor.u32 %v13093_v47, %v11788_v43  ;;  %v12045_v24 = vor.u32 %v13157_v0, %v12044_v44  ;;  %v8305_v43 = vor.u32 %v12219_v1, %v8302_v18  ;;  %v12215_v32 = vld [vmem:[#allocation2 + $0x1ac] sm:$0xf]  ;;  %v8286_v0 = vld [vmem:[#allocation2 + $0x1b8] sm:$0xf0] }
 0x301   :  { %7516 = vmatpush.bf16.msrb.mxu1 %v11821_v42  ;;  %v12287_v42 = vld [vmem:[#allocation2 + $0x3ec] sm:$0xf]  ;;  %v8542_v55 = vld [vmem:[#allocation2 + $0x3b8] sm:$0xf0] }
 0x302   :  { %7529 = vmatpush.bf16.msrb.mxu2 %v11949_v5  ;;  %v8574_v5 = vld [vmem:[#allocation2 + $0x3f8] sm:$0xf0]  ;;  %v12247_v34 = vld [vmem:[#allocation2 + $0x2ac] sm:$0xf] }
 0x303   :  { %7542 = vmatpush.bf16.msrb.mxu3 %v12077_v48  ;;  %v8449_v48 = vor.u32 %v12255_v50, %v8446_v19  ;;  %v8577_v3 = vor.u32 %v12287_v42, %v8574_v5  ;;  %v12279_v39 = vld [vmem:[#allocation2 + $0x3ac] sm:$0xf]  ;;  %v8417_v26 = vor.u32 %v12247_v34, %v8414_v14  ;;  %v8142_v19 = vld [vmem:[#allocation2 + $0x98] sm:$0xf0] }
 0x304   :  { %7504 = vmatpush.bf16.msrb.mxu0 %v11677_v17  ;;  %v12251_v17 = vld [vmem:[#allocation2 + $0x2cc] sm:$0xf]  ;;  %v8270_v42 = vld [vmem:[#allocation2 + $0x198] sm:$0xf0] }
 0x305   :  { %7517 = vmatpush.bf16.msrb.mxu1 %v11805_v58  ;;  %v8558_v58 = vld [vmem:[#allocation2 + $0x3d8] sm:$0xf0]  ;;  %v8433_v47 = vor.u32 %v12251_v17, %v8430_v40  ;;  %v12179_v50 = vld [vmem:[#allocation2 + $0x8c] sm:$0xf] }
 0x306   :  { %7530 = vmatpush.bf16.msrb.mxu2 %v11933_v49  ;;  %v8177_v49 = vor.u32 %v12187_v62, %v8174_v54  ;;  %v8561_v44 = vor.u32 %v12283_v60, %v8558_v58  ;;  %v12243_v5 = vld [vmem:[#allocation2 + $0x28c] sm:$0xf]  ;;  %v8145_v54 = vor.u32 %v12179_v50, %v8142_v19  ;;  %v8126_v40 = vld [vmem:[#allocation2 + $0x78] sm:$0xf0] }
 0x307   :  { %7543 = vmatpush.bf16.msrb.mxu3 %v12061_v7  ;;  %v8158_v7 = vld [vmem:[#allocation2 + $0xb8] sm:$0xf0]  ;;  %v12175_v17 = vld [vmem:[#allocation2 + $0x6c] sm:$0xf] }
 0x308   :  { %7505 = vmatpush.bf16.msrb.mxu0 %v11661_v59  ;;  %v8161_v11 = vor.u32 %v12183_v61, %v8158_v7  ;;  %v8289_v59 = vor.u32 %v12215_v32, %v8286_v0  ;;  %v12207_v60 = vld [vmem:[#allocation2 + $0x16c] sm:$0xf]  ;;  %v8382_v61 = vld [vmem:[#allocation2 + $0x278] sm:$0xf0] }
 0x309   :  { %7518 = vmatpush.bf16.msrb.mxu1 %v11789_v56  ;;  %v12211_v56 = vld [vmem:[#allocation2 + $0x18c] sm:$0xf]  ;;  %v7312_v1 = vpop.f32.mrf.mxu1  ;;  %v8510_v32 = vld [vmem:[#allocation2 + $0x378] sm:$0xf0] }
 0x30a   :  { %7531 = vmatpush.bf16.msrb.mxu2 %v11917_v41  ;;  %v8545_v41 = vor.u32 %v12279_v39, %v8542_v55  ;;  %v12271_v7 = vld [vmem:[#allocation2 + $0x36c] sm:$0xf]  ;;  %v8110_v14 = vld [vmem:[#allocation2 + $0x58] sm:$0xf0] }
 0x30b   :  { %7544 = vmatpush.bf16.msrb.mxu3 %v12045_v24  ;;  %7506 = vmatmul.bf16.vlgmr.msrb.gmra.mxu0 %v13386_v51  ;;  %v8398_v24 = vld [vmem:[#allocation2 + $0x298] sm:$0xf0]  ;;  %v12171_v34 = vld [vmem:[#allocation2 + $0x4c] sm:$0xf]  ;;  %v8513_v55 = vor.u32 %v12271_v7, %v8510_v32 }
 0x30c   :  { %7550 = vmatpush.bf16.msra.mxu0 %v8193_v53  ;;  %7519 = vmatmul.bf16.vlgmr.msrb.gmra.mxu1 %v13390_v52  ;;  %v7299_v53 = vpop.f32.mrf.mxu0  ;;  %v8401_v18 = vor.u32 %v12243_v5, %v8398_v24  ;;  %v12203_v39 = vld [vmem:[#allocation2 + $0x14c] sm:$0xf]  ;;  %v8366_v50 = vld [vmem:[#allocation2 + $0x258] sm:$0xf0]  ;;  %v8113_v24 = vor.u32 %v12171_v34, %v8110_v14 }
 0x30d   :  { %7563 = vmatpush.bf16.msra.mxu1 %v8321_v36  ;;  %7532 = vmatmul.bf16.vlgmr.msrb.gmra.mxu2 %v13388_v27  ;;  %v12275_v36 = vld [vmem:[#allocation2 + $0x38c] sm:$0xf]  ;;  %v7300_v62 = vadd.f32 %v7299_v53, %v13525_v38  ;;  %v8334_v14 = vld [vmem:[#allocation2 + $0x218] sm:$0xf0] }
 0x30e   :  { %7576 = vmatpush.bf16.msra.mxu2 %v8449_v48  ;;  %7545 = vmatmul.bf16.vlgmr.msrb.gmra.mxu3 %v13392_v22  ;;  %v8526_v48 = vld [vmem:[#allocation2 + $0x398] sm:$0xf0] }
 0x30f   :  { %7589 = vmatpush.bf16.msra.mxu3 %v8577_v3  ;;  %v8273_v3 = vor.u32 %v12211_v56, %v8270_v42  ;;  %v8529_v58 = vor.u32 %v12275_v36, %v8526_v48  ;;  %v8494_v42 = vld [vmem:[#allocation2 + $0x358] sm:$0xf0] }
 0x310   :  { %7551 = vmatpush.bf16.msra.mxu0 %v8177_v49  ;;  %v7313_v49 = vadd.f32 %v7312_v1, %v7300_v62  ;;  %v8094_v1 = vld [vmem:[#allocation2 + $0x38] sm:$0xf0] }
 0x311   :  { %7564 = vmatpush.bf16.msra.mxu1 %v8305_v43  ;;  %v8254_v43 = vld [vmem:[#allocation2 + $0x178] sm:$0xf0]  ;;  %v7338_v56 = vpop.f32.mrf.mxu3  ;;  %v7314_v53 = vpop.f32.mrf.mxu1 }
 0x312   :  { %7577 = vmatpush.bf16.msra.mxu2 %v8433_v47  ;;  %v12239_v47 = vld [vmem:[#allocation2 + $0x26c] sm:$0xf]  ;;  %v8257_v38 = vor.u32 %v12207_v60, %v8254_v43  ;;  %v8350_v60 = vld [vmem:[#allocation2 + $0x238] sm:$0xf0] }
 0x313   :  { %7590 = vmatpush.bf16.msra.mxu3 %v8561_v44  ;;  %v8129_v44 = vor.u32 %v12175_v17, %v8126_v40  ;;  %v8385_v0 = vor.u32 %v12239_v47, %v8382_v61  ;;  %v8222_v17 = vld [vmem:[#allocation2 + $0x138] sm:$0xf0]  ;;  %v12231_v40 = vld [vmem:[#allocation2 + $0x22c] sm:$0xf] }
 0x314   :  { %7552 = vmatpush.bf16.msra.mxu0 %v8161_v11  ;;  %v7325_v11 = vpop.f32.mrf.mxu2  ;;  %v7301_v5 = vpop.f32.mrf.mxu0  ;;  %v12163_v47 = vld [vmem:[#allocation2 + $0xc] sm:$0xf]  ;;  %v8078_v61 = vld [vmem:[#allocation2 + $0x18] sm:$0xf0]  ;;  %v8353_v32 = vor.u32 %v12231_v40, %v8350_v60 }
 0x315   :  { %7565 = vmatpush.bf16.msra.mxu1 %v8289_v59  ;;  %v8238_v59 = vld [vmem:[#allocation2 + $0x158] sm:$0xf0]  ;;  %v7326_v19 = vadd.f32 %v7325_v11, %v7313_v49  ;;  %v12347_v60 = vld [vmem:[#allocation2 + $0x5cc] sm:$0xf] }
 0x316   :  { %7578 = vmatpush.bf16.msra.mxu2 %v8417_v26  ;;  %v12235_v26 = vld [vmem:[#allocation2 + $0x24c] sm:$0xf]  ;;  %v8241_v48 = vor.u32 %v12203_v39, %v8238_v59  ;;  %v8478_v49 = vld [vmem:[#allocation2 + $0x338] sm:$0xf0] }
 0x317   :  { %7591 = vmatpush.bf16.msra.mxu3 %v8545_v41  ;;  %v12267_v41 = vld [vmem:[#allocation2 + $0x34c] sm:$0xf]  ;;  %v13532_v36 = vadd.f32 %v7338_v56, %v7326_v19  ;;  %v8369_v62 = vor.u32 %v12235_v26, %v8366_v50  ;;  %v8702_v26 = vld [vmem:[#allocation2 + $0x4f8] sm:$0xf0]  ;;  %v8081_v56 = vor.u32 %v12163_v47, %v8078_v61 }
 0x318   :  { %7553 = vmatpush.bf16.msra.mxu0 %v8145_v54  ;;  %v12167_v54 = vld [vmem:[#allocation2 + $0x2c] sm:$0xf]  ;;  %v8958_v5 = vld [vmem:[#allocation2 + $0x6f8] sm:$0xf0] }
 0x319   :  { %7566 = vmatpush.bf16.msra.mxu1 %v8273_v3  ;;  %v12199_v3 = vld [vmem:[#allocation2 + $0x12c] sm:$0xf]  ;;  %v8097_v43 = vor.u32 %v12167_v54, %v8094_v1  ;;  %v7340_v19 = vpop.f32.mrf.mxu3  ;;  %v8686_v40 = vld [vmem:[#allocation2 + $0x4d8] sm:$0xf0] }
 0x31a   :  { %7579 = vmatpush.bf16.msra.mxu2 %v8401_v18  ;;  %v8497_v18 = vor.u32 %v12267_v41, %v8494_v42  ;;  %v8225_v7 = vor.u32 %v12199_v3, %v8222_v17  ;;  %v12259_v39 = vld [vmem:[#allocation2 + $0x30c] sm:$0xf]  ;;  %v8830_v41 = vld [vmem:[#allocation2 + $0x5f8] sm:$0xf0] }
 0x31b   :  { %7592 = vmatpush.bf16.msra.mxu3 %v8529_v58  ;;  %v12263_v58 = vld [vmem:[#allocation2 + $0x32c] sm:$0xf]  ;;  %v8942_v47 = vld [vmem:[#allocation2 + $0x6d8] sm:$0xf0] }
 0x31c   :  { %7554 = vmatpush.bf16.msra.mxu0 %v8129_v44  ;;  %v12195_v44 = vld [vmem:[#allocation2 + $0x10c] sm:$0xf]  ;;  %v8481_v34 = vor.u32 %v12263_v58, %v8478_v49  ;;  %v7327_v11 = vpop.f32.mrf.mxu2  ;;  %v8814_v49 = vld [vmem:[#allocation2 + $0x5d8] sm:$0xf0] }
 0x31d   :  { %7567 = vmatpush.bf16.msra.mxu1 %v8257_v38  ;;  %v8206_v38 = vld [vmem:[#allocation2 + $0x118] sm:$0xf0]  ;;  %v12319_v59 = vld [vmem:[#allocation2 + $0x4ec] sm:$0xf] }
 0x31e   :  { %7580 = vmatpush.bf16.msra.mxu2 %v8385_v0  ;;  %v12227_v0 = vld [vmem:[#allocation2 + $0x20c] sm:$0xf]  ;;  %v8705_v1 = vor.u32 %v12319_v59, %v8702_v26  ;;  %v8926_v59 = vld [vmem:[#allocation2 + $0x6b8] sm:$0xf0] }
 0x31f   :  { %7593 = vmatpush.bf16.msra.mxu3 %v8513_v55  ;;  %v8462_v55 = vld [vmem:[#allocation2 + $0x318] sm:$0xf0]  ;;  %v12351_v50 = vld [vmem:[#allocation2 + $0x5ec] sm:$0xf]  ;;  %v8337_v53 = vor.u32 %v12227_v0, %v8334_v14 }
 0x320   :  { %7555 = vmatpush.bf16.msra.mxu0 %v8113_v24  ;;  %v12383_v42 = vld [vmem:[#allocation2 + $0x6ec] sm:$0xf]  ;;  %v8209_v24 = vor.u32 %v12195_v44, %v8206_v38  ;;  %v8465_v54 = vor.u32 %v12259_v39, %v8462_v55  ;;  %v8833_v3 = vor.u32 %v12351_v50, %v8830_v41  ;;  %v8817_v44 = vor.u32 %v12347_v60, %v8814_v49  ;;  %v8798_v55 = vld [vmem:[#allocation2 + $0x5b8] sm:$0xf0] }
 0x321   :  { %7568 = vmatpush.bf16.msra.mxu1 %v8241_v48  ;;  %v12415_v48 = vld [vmem:[#allocation2 + $0x7ec] sm:$0xf]  ;;  %v9054_v50 = vld [vmem:[#allocation2 + $0x7b8] sm:$0xf0] }
 0x322   :  { %7581 = vmatpush.bf16.msra.mxu2 %v8369_v62  ;;  %v9086_v62 = vld [vmem:[#allocation2 + $0x7f8] sm:$0xf0]  ;;  %v12315_v17 = vld [vmem:[#allocation2 + $0x4cc] sm:$0xf] }
 0x323   :  { %7594 = vmatpush.bf16.msra.mxu3 %v8497_v18  ;;  %v8961_v18 = vor.u32 %v12383_v42, %v8958_v5  ;;  %v9089_v58 = vor.u32 %v12415_v48, %v9086_v62  ;;  %v12411_v61 = vld [vmem:[#allocation2 + $0x7cc] sm:$0xf]  ;;  %v8654_v5 = vld [vmem:[#allocation2 + $0x498] sm:$0xf0] }
 0x324   :  { %7556 = vmatpush.bf16.msra.mxu0 %v8097_v43  ;;  %v12379_v43 = vld [vmem:[#allocation2 + $0x6cc] sm:$0xf]  ;;  %v8910_v62 = vld [vmem:[#allocation2 + $0x698] sm:$0xf0] }
 0x325   :  { %7569 = vmatpush.bf16.msra.mxu1 %v8225_v7  ;;  %v9070_v7 = vld [vmem:[#allocation2 + $0x7d8] sm:$0xf0]  ;;  %v8945_v38 = vor.u32 %v12379_v43, %v8942_v47  ;;  %v12311_v0 = vld [vmem:[#allocation2 + $0x4ac] sm:$0xf] }
 0x326   :  { %7582 = vmatpush.bf16.msra.mxu2 %v8353_v32  ;;  %v8689_v32 = vor.u32 %v12315_v17, %v8686_v40  ;;  %v12343_v14 = vld [vmem:[#allocation2 + $0x5ac] sm:$0xf]  ;;  %v9073_v39 = vor.u32 %v12411_v61, %v9070_v7  ;;  %v8638_v60 = vld [vmem:[#allocation2 + $0x478] sm:$0xf0] }
 0x327   :  { %7595 = vmatpush.bf16.msra.mxu3 %v8481_v34  ;;  %v8670_v34 = vld [vmem:[#allocation2 + $0x4b8] sm:$0xf0]  ;;  %v12375_v11 = vld [vmem:[#allocation2 + $0x6ac] sm:$0xf] }
 0x328   :  { %7557 = vmatpush.bf16.msra.mxu0 %v8081_v56  ;;  %v12407_v26 = vld [vmem:[#allocation2 + $0x7ac] sm:$0xf]  ;;  %v8673_v19 = vor.u32 %v12311_v0, %v8670_v34  ;;  %v8801_v56 = vor.u32 %v12343_v14, %v8798_v55  ;;  %v8929_v41 = vor.u32 %v12375_v11, %v8926_v59  ;;  %v8766_v47 = vld [vmem:[#allocation2 + $0x578] sm:$0xf0] }
 0x329   :  { %7570 = vmatpush.bf16.msra.mxu1 %v8209_v24  ;;  %v12307_v42 = vld [vmem:[#allocation2 + $0x48c] sm:$0xf]  ;;  %v8894_v7 = vld [vmem:[#allocation2 + $0x678] sm:$0xf0] }
 0x32a   :  { %7583 = vmatpush.bf16.msra.mxu2 %v8337_v53  ;;  %v12339_v24 = vld [vmem:[#allocation2 + $0x58c] sm:$0xf]  ;;  %v9057_v53 = vor.u32 %v12407_v26, %v9054_v50  ;;  %v8622_v14 = vld [vmem:[#allocation2 + $0x458] sm:$0xf0] }
 0x32b   :  { %7596 = vmatpush.bf16.msra.mxu3 %v8465_v54  ;;  %7558 = vmatmul.bf16.vlgmr.msra.gmra.mxu0 %v13257_v20  ;;  %v12371_v48 = vld [vmem:[#allocation2 + $0x68c] sm:$0xf]  ;;  %v7351_v54 = vpop.f32.mrf.mxu0  ;;  %v8750_v59 = vld [vmem:[#allocation2 + $0x558] sm:$0xf0] }
 0x32c   :  { %7602 = vmatpush.bf16.msrb.mxu0 %v8705_v1  ;;  %7571 = vmatmul.bf16.vlgmr.msra.gmra.mxu1 %v13260_v21  ;;  %v12403_v20 = vld [vmem:[#allocation2 + $0x78c] sm:$0xf]  ;;  %v9038_v1 = vld [vmem:[#allocation2 + $0x798] sm:$0xf0]  ;;  %v7364_v21 = vpop.f32.mrf.mxu1  ;;  %v8913_v17 = vor.u32 %v12371_v48, %v8910_v62 }
 0x32d   :  { %7615 = vmatpush.bf16.msrb.mxu1 %v8833_v3  ;;  %7584 = vmatmul.bf16.vlgmr.msra.gmra.mxu2 %v13249_v4  ;;  %v8782_v4 = vld [vmem:[#allocation2 + $0x598] sm:$0xf0]  ;;  %v8657_v3 = vor.u32 %v12307_v42, %v8654_v5  ;;  %v12303_v40 = vld [vmem:[#allocation2 + $0x46c] sm:$0xf]  ;;  %v9041_v49 = vor.u32 %v12403_v20, %v9038_v1 }
 0x32e   :  { %7628 = vmatpush.bf16.msrb.mxu2 %v8961_v18  ;;  %7597 = vmatmul.bf16.vlgmr.msra.gmra.mxu3 %v13254_v6  ;;  %v7352_v6 = vadd.f32 %v7351_v54, %v13532_v36  ;;  %v8785_v18 = vor.u32 %v12339_v24, %v8782_v4  ;;  %v12367_v61 = vld [vmem:[#allocation2 + $0x66c] sm:$0xf]  ;;  %v8878_v50 = vld [vmem:[#allocation2 + $0x658] sm:$0xf0] }
 0x32f   :  { %7641 = vmatpush.bf16.msrb.mxu3 %v9089_v58  ;;  %v12335_v58 = vld [vmem:[#allocation2 + $0x56c] sm:$0xf]  ;;  %v8897_v0 = vor.u32 %v12367_v61, %v8894_v7  ;;  %v9006_v42 = vld [vmem:[#allocation2 + $0x758] sm:$0xf0] }
 0x330   :  { %7603 = vmatpush.bf16.msrb.mxu0 %v8689_v32  ;;  %v7365_v43 = vadd.f32 %v7364_v21, %v7352_v6  ;;  %v12399_v32 = vld [vmem:[#allocation2 + $0x76c] sm:$0xf]  ;;  %v8769_v36 = vor.u32 %v12335_v58, %v8766_v47  ;;  %v7377_v11 = vpop.f32.mrf.mxu2  ;;  %v8606_v20 = vld [vmem:[#allocation2 + $0x438] sm:$0xf0] }
 0x331   :  { %7616 = vmatpush.bf16.msrb.mxu1 %v8817_v44  ;;  %v9022_v44 = vld [vmem:[#allocation2 + $0x778] sm:$0xf0]  ;;  %v12299_v34 = vld [vmem:[#allocation2 + $0x44c] sm:$0xf] }
 0x332   :  { %7629 = vmatpush.bf16.msrb.mxu2 %v8945_v38  ;;  %v8641_v38 = vor.u32 %v12303_v40, %v8638_v60  ;;  %v9025_v55 = vor.u32 %v12399_v32, %v9022_v44  ;;  %v12363_v26 = vld [vmem:[#allocation2 + $0x64c] sm:$0xf]  ;;  %v8625_v24 = vor.u32 %v12299_v34, %v8622_v14  ;;  %v8990_v40 = vld [vmem:[#allocation2 + $0x738] sm:$0xf0] }
 0x333   :  { %7642 = vmatpush.bf16.msrb.mxu3 %v9073_v39  ;;  %v12331_v39 = vld [vmem:[#allocation2 + $0x54c] sm:$0xf]  ;;  %v7353_v5 = vpop.f32.mrf.mxu0  ;;  %v8881_v62 = vor.u32 %v12363_v26, %v8878_v50  ;;  %v8718_v7 = vld [vmem:[#allocation2 + $0x518] sm:$0xf0] }
 0x334   :  { %7604 = vmatpush.bf16.msrb.mxu0 %v8673_v19  ;;  %v7378_v19 = vadd.f32 %v7377_v11, %v7365_v43  ;;  %v8753_v48 = vor.u32 %v12331_v39, %v8750_v59  ;;  %v12295_v54 = vld [vmem:[#allocation2 + $0x42c] sm:$0xf]  ;;  %v9214_v39 = vld [vmem:[#allocation2 + $0x8f8] sm:$0xf0] }
 0x335   :  { %7617 = vmatpush.bf16.msrb.mxu1 %v8801_v56  ;;  %v7390_v56 = vpop.f32.mrf.mxu3  ;;  %v12327_v1 = vld [vmem:[#allocation2 + $0x52c] sm:$0xf]  ;;  %v8609_v60 = vor.u32 %v12295_v54, %v8606_v20  ;;  %v9342_v26 = vld [vmem:[#allocation2 + $0x9f8] sm:$0xf0] }
 0x336   :  { %7630 = vmatpush.bf16.msrb.mxu2 %v8929_v41  ;;  %v12395_v41 = vld [vmem:[#allocation2 + $0x74c] sm:$0xf]  ;;  %v13539_v4 = vadd.f32 %v7390_v56, %v7378_v19  ;;  %v9470_v19 = vld [vmem:[#allocation2 + $0xaf8] sm:$0xf0] }
 0x337   :  { %7643 = vmatpush.bf16.msrb.mxu3 %v9057_v53  ;;  %v7366_v53 = vpop.f32.mrf.mxu1  ;;  %v9009_v6 = vor.u32 %v12395_v41, %v9006_v42  ;;  %v12359_v21 = vld [vmem:[#allocation2 + $0x62c] sm:$0xf]  ;;  %v9598_v5 = vld [vmem:[#allocation2 + $0xbf8] sm:$0xf0] }
 0x338   :  { %7605 = vmatpush.bf16.msrb.mxu0 %v8657_v3  ;;  %v8734_v3 = vld [vmem:[#allocation2 + $0x538] sm:$0xf0]  ;;  %v12291_v58 = vld [vmem:[#allocation2 + $0x40c] sm:$0xf]  ;;  %v7379_v34 = vpop.f32.mrf.mxu2 }
 0x339   :  { %7618 = vmatpush.bf16.msrb.mxu1 %v8785_v18  ;;  %v8862_v18 = vld [vmem:[#allocation2 + $0x638] sm:$0xf0]  ;;  %v8737_v43 = vor.u32 %v12327_v1, %v8734_v3  ;;  %v12323_v61 = vld [vmem:[#allocation2 + $0x50c] sm:$0xf]  ;;  %v13627_v34 = vld [vmem:[#allocation7_spill] sm:$0xff] }
 0x33a   :  { %7631 = vmatpush.bf16.msrb.mxu2 %v8913_v17  ;;  %v12391_v17 = vld [vmem:[#allocation2 + $0x72c] sm:$0xf]  ;;  %v8865_v47 = vor.u32 %v12359_v21, %v8862_v18  ;;  %v8721_v56 = vor.u32 %v12323_v61, %v8718_v7  ;;  %v9198_v20 = vld [vmem:[#allocation2 + $0x8d8] sm:$0xf0] }
 0x33b   :  { %7644 = vmatpush.bf16.msrb.mxu3 %v9041_v49  ;;  %v8590_v49 = vld [vmem:[#allocation2 + $0x418] sm:$0xf0]  ;;  %v12355_v32 = vld [vmem:[#allocation2 + $0x60c] sm:$0xf]  ;;  %v8993_v44 = vor.u32 %v12391_v17, %v8990_v40 }
 0x33c   :  { %7606 = vmatpush.bf16.msrb.mxu0 %v8641_v38  ;;  %v8846_v38 = vld [vmem:[#allocation2 + $0x618] sm:$0xf0]  ;;  %v12447_v14 = vld [vmem:[#allocation2 + $0x8ec] sm:$0xf]  ;;  %v8593_v59 = vor.u32 %v12291_v58, %v8590_v49 }
 0x33d   :  { %7619 = vmatpush.bf16.msrb.mxu1 %v8769_v36  ;;  %v12387_v36 = vld [vmem:[#allocation2 + $0x70c] sm:$0xf]  ;;  %v7392_v11 = vpop.f32.mrf.mxu3  ;;  %v8849_v41 = vor.u32 %v12355_v32, %v8846_v38  ;;  %v9217_v53 = vor.u32 %v12447_v14, %v9214_v39  ;;  %v9326_v3 = vld [vmem:[#allocation2 + $0x9d8] sm:$0xf0]  ;;  %v13625_v32 = vld [vmem:[#allocation5_spill] sm:$0xff] }
 0x33e   :  { %7632 = vmatpush.bf16.msrb.mxu2 %v8897_v0  ;;  %v8974_v0 = vld [vmem:[#allocation2 + $0x718] sm:$0xf0]  ;;  %v12511_v50 = vld [vmem:[#allocation2 + $0xaec] sm:$0xf] }
 0x33f   :  { %7645 = vmatpush.bf16.msrb.mxu3 %v9025_v55  ;;  %v12479_v55 = vld [vmem:[#allocation2 + $0x9ec] sm:$0xf]  ;;  %v9454_v18 = vld [vmem:[#allocation2 + $0xad8] sm:$0xf0] }
 0x340   :  { %7607 = vmatpush.bf16.msrb.mxu0 %v8625_v24  ;;  %v12543_v42 = vld [vmem:[#allocation2 + $0xbec] sm:$0xf]  ;;  %v8977_v24 = vor.u32 %v12387_v36, %v8974_v0  ;;  %v9582_v40 = vld [vmem:[#allocation2 + $0xbd8] sm:$0xf0] }
 0x341   :  { %7620 = vmatpush.bf16.msrb.mxu1 %v8753_v48  ;;  %v9345_v48 = vor.u32 %v12479_v55, %v9342_v26  ;;  %v12443_v54 = vld [vmem:[#allocation2 + $0x8cc] sm:$0xf]  ;;  %v9438_v36 = vld [vmem:[#allocation2 + $0xab8] sm:$0xf0] }
 0x342   :  { %7633 = vmatpush.bf16.msrb.mxu2 %v8881_v62  ;;  %v9473_v62 = vor.u32 %v12511_v50, %v9470_v19  ;;  %v12475_v1 = vld [vmem:[#allocation2 + $0x9cc] sm:$0xf]  ;;  %v9566_v39 = vld [vmem:[#allocation2 + $0xbb8] sm:$0xf0] }
 0x343   :  { %7646 = vmatpush.bf16.msrb.mxu3 %v9009_v6  ;;  %v9601_v6 = vor.u32 %v12543_v42, %v9598_v5  ;;  %v12507_v21 = vld [vmem:[#allocation2 + $0xacc] sm:$0xf]  ;;  %v9329_v58 = vor.u32 %v12475_v1, %v9326_v3  ;;  %v13628_v11 = vld [vmem:[#allocation8_spill] sm:$0xff] }
 0x344   :  { %7608 = vmatpush.bf16.msrb.mxu0 %v8609_v60  ;;  %v12539_v17 = vld [vmem:[#allocation2 + $0xbcc] sm:$0xf]  ;;  %v9201_v60 = vor.u32 %v12443_v54, %v9198_v20  ;;  %v9457_v49 = vor.u32 %v12507_v21, %v9454_v18  ;;  %v9166_v19 = vld [vmem:[#allocation2 + $0x898] sm:$0xf0] }
 0x345   :  { %7621 = vmatpush.bf16.msrb.mxu1 %v8737_v43  ;;  %v12439_v43 = vld [vmem:[#allocation2 + $0x8ac] sm:$0xf]  ;;  %v9585_v7 = vor.u32 %v12539_v17, %v9582_v40  ;;  %v9294_v42 = vld [vmem:[#allocation2 + $0x998] sm:$0xf0] }
 0x346   :  { %7634 = vmatpush.bf16.msrb.mxu2 %v8865_v47  ;;  %v9182_v47 = vld [vmem:[#allocation2 + $0x8b8] sm:$0xf0]  ;;  %v12471_v61 = vld [vmem:[#allocation2 + $0x9ac] sm:$0xf] }
 0x347   :  { %7647 = vmatpush.bf16.msrb.mxu3 %v8993_v44  ;;  %v9310_v44 = vld [vmem:[#allocation2 + $0x9b8] sm:$0xf0]  ;;  %v12503_v38 = vld [vmem:[#allocation2 + $0xaac] sm:$0xf]  ;;  %v9185_v55 = vor.u32 %v12439_v43, %v9182_v47 }
 0x348   :  { %7609 = vmatpush.bf16.msrb.mxu0 %v8593_v59  ;;  %v13626_v0 = vld [vmem:[#allocation6_spill] sm:$0xff]  ;;  %v9313_v59 = vor.u32 %v12471_v61, %v9310_v44  ;;  %v9441_v26 = vor.u32 %v12503_v38, %v9438_v36  ;;  %v9150_v18 = vld [vmem:[#allocation2 + $0x878] sm:$0xf0] }
 0x349   :  { %7622 = vmatpush.bf16.msrb.mxu1 %v8721_v56  ;;  %v12535_v14 = vld [vmem:[#allocation2 + $0xbac] sm:$0xf]  ;;  %v7416_v1 = vpop.f32.mrf.mxu1  ;;  %v9406_v43 = vld [vmem:[#allocation2 + $0xa78] sm:$0xf0] }
 0x34a   :  { %7635 = vmatpush.bf16.msrb.mxu2 %v8849_v41  ;;  %v12435_v50 = vld [vmem:[#allocation2 + $0x88c] sm:$0xf]  ;;  %v9569_v41 = vor.u32 %v12535_v14, %v9566_v39  ;;  %v9534_v61 = vld [vmem:[#allocation2 + $0xb78] sm:$0xf0] }
 0x34b   :  { %7648 = vmatpush.bf16.msrb.mxu3 %v8977_v24  ;;  %7610 = vmatmul.bf16.vlgmr.msrb.gmra.mxu0 %v13626_v0  ;;  %v12467_v56 = vld [vmem:[#allocation2 + $0x98c] sm:$0xf]  ;;  %v9422_v24 = vld [vmem:[#allocation2 + $0xa98] sm:$0xf0]  ;;  %v9169_v20 = vor.u32 %v12435_v50, %v9166_v19 }
 0x34c   :  { %7654 = vmatpush.bf16.msra.mxu0 %v9217_v53  ;;  %7623 = vmatmul.bf16.vlgmr.msrb.gmra.mxu1 %v13628_v11  ;;  %v12499_v5 = vld [vmem:[#allocation2 + $0xa8c] sm:$0xf]  ;;  %v7403_v53 = vpop.f32.mrf.mxu0  ;;  %v9134_v38 = vld [vmem:[#allocation2 + $0x858] sm:$0xf0] }
 0x34d   :  { %7667 = vmatpush.bf16.msra.mxu1 %v9345_v48  ;;  %7636 = vmatmul.bf16.vlgmr.msrb.gmra.mxu2 %v13625_v32  ;;  %v12531_v48 = vld [vmem:[#allocation2 + $0xb8c] sm:$0xf]  ;;  %v7404_v54 = vadd.f32 %v7403_v53, %v13539_v4  ;;  %v9425_v3 = vor.u32 %v12499_v5, %v9422_v24  ;;  %v9262_v14 = vld [vmem:[#allocation2 + $0x958] sm:$0xf0] }
 0x34e   :  { %7680 = vmatpush.bf16.msra.mxu2 %v9473_v62  ;;  %7649 = vmatmul.bf16.vlgmr.msrb.gmra.mxu3 %v13627_v34  ;;  %v9550_v62 = vld [vmem:[#allocation2 + $0xb98] sm:$0xf0]  ;;  %v12431_v21 = vld [vmem:[#allocation2 + $0x86c] sm:$0xf] }
 0x34f   :  { %7693 = vmatpush.bf16.msra.mxu3 %v9601_v6  ;;  %v9297_v6 = vor.u32 %v12467_v56, %v9294_v42  ;;  %v12463_v17 = vld [vmem:[#allocation2 + $0x96c] sm:$0xf]  ;;  %v9553_v40 = vor.u32 %v12531_v48, %v9550_v62  ;;  %v9518_v50 = vld [vmem:[#allocation2 + $0xb58] sm:$0xf0] }
 0x350   :  { %7655 = vmatpush.bf16.msra.mxu0 %v9201_v60  ;;  %v7417_v60 = vadd.f32 %v7416_v1, %v7404_v54  ;;  %v12527_v47 = vld [vmem:[#allocation2 + $0xb6c] sm:$0xf]  ;;  %v7429_v34 = vpop.f32.mrf.mxu2  ;;  %v9118_v48 = vld [vmem:[#allocation2 + $0x838] sm:$0xf0] }
 0x351   :  { %7668 = vmatpush.bf16.msra.mxu1 %v9329_v58  ;;  %v9278_v58 = vld [vmem:[#allocation2 + $0x978] sm:$0xf0]  ;;  %v12427_v44 = vld [vmem:[#allocation2 + $0x84c] sm:$0xf]  ;;  %v9537_v0 = vor.u32 %v12527_v47, %v9534_v61 }
 0x352   :  { %7681 = vmatpush.bf16.msra.mxu2 %v9457_v49  ;;  %v12495_v49 = vld [vmem:[#allocation2 + $0xa6c] sm:$0xf]  ;;  %v9281_v4 = vor.u32 %v12463_v17, %v9278_v58  ;;  %v7430_v11 = vadd.f32 %v7429_v34, %v7417_v60  ;;  %v9137_v56 = vor.u32 %v12427_v44, %v9134_v38 }
 0x353   :  { %7694 = vmatpush.bf16.msra.mxu3 %v9585_v7  ;;  %v9153_v7 = vor.u32 %v12431_v21, %v9150_v18  ;;  %v9409_v32 = vor.u32 %v12495_v49, %v9406_v43  ;;  %v12459_v36 = vld [vmem:[#allocation2 + $0x94c] sm:$0xf]  ;;  %v9502_v21 = vld [vmem:[#allocation2 + $0xb38] sm:$0xf0] }
 0x354   :  { %7656 = vmatpush.bf16.msra.mxu0 %v9185_v55  ;;  %v12491_v39 = vld [vmem:[#allocation2 + $0xa4c] sm:$0xf]  ;;  %v9390_v55 = vld [vmem:[#allocation2 + $0xa58] sm:$0xf0]  ;;  %v7405_v19 = vpop.f32.mrf.mxu0  ;;  %v9265_v5 = vor.u32 %v12459_v36, %v9262_v14 }
 0x355   :  { %7669 = vmatpush.bf16.msra.mxu1 %v9313_v59  ;;  %v7442_v59 = vpop.f32.mrf.mxu3  ;;  %v9393_v24 = vor.u32 %v12491_v39, %v9390_v55  ;;  %v12423_v53 = vld [vmem:[#allocation2 + $0x82c] sm:$0xf]  ;;  %v9230_v43 = vld [vmem:[#allocation2 + $0x918] sm:$0xf0] }
 0x356   :  { %7682 = vmatpush.bf16.msra.mxu2 %v9441_v26  ;;  %v12523_v26 = vld [vmem:[#allocation2 + $0xb4c] sm:$0xf]  ;;  %v13546_v42 = vadd.f32 %v7442_v59, %v7430_v11  ;;  %v9121_v18 = vor.u32 %v12423_v53, %v9118_v48  ;;  %v9726_v36 = vld [vmem:[#allocation2 + $0xcf8] sm:$0xf0] }
 0x357   :  { %7695 = vmatpush.bf16.msra.mxu3 %v9569_v41  ;;  %v7418_v41 = vpop.f32.mrf.mxu1  ;;  %v12455_v62 = vld [vmem:[#allocation2 + $0x92c] sm:$0xf]  ;;  %v9521_v54 = vor.u32 %v12523_v26, %v9518_v50  ;;  %v9854_v39 = vld [vmem:[#allocation2 + $0xdf8] sm:$0xf0] }
 0x358   :  { %7657 = vmatpush.bf16.msra.mxu0 %v9169_v20  ;;  %v9246_v20 = vld [vmem:[#allocation2 + $0x938] sm:$0xf0]  ;;  %v12487_v1 = vld [vmem:[#allocation2 + $0xa2c] sm:$0xf]  ;;  %v7431_v44 = vpop.f32.mrf.mxu2 }
 0x359   :  { %7670 = vmatpush.bf16.msra.mxu1 %v9297_v6  ;;  %v9374_v6 = vld [vmem:[#allocation2 + $0xa38] sm:$0xf0]  ;;  %v12419_v17 = vld [vmem:[#allocation2 + $0x80c] sm:$0xf]  ;;  %v9249_v60 = vor.u32 %v12455_v62, %v9246_v20  ;;  %v13629_v44 = vld [vmem:[#allocation9_spill] sm:$0xff] }
 0x35a   :  { %7683 = vmatpush.bf16.msra.mxu2 %v9425_v3  ;;  %v12519_v3 = vld [vmem:[#allocation2 + $0xb2c] sm:$0xf]  ;;  %v9377_v58 = vor.u32 %v12487_v1, %v9374_v6  ;;  %v9982_v11 = vld [vmem:[#allocation2 + $0xef8] sm:$0xf0] }
 0x35b   :  { %7696 = vmatpush.bf16.msra.mxu3 %v9553_v40  ;;  %v9102_v40 = vld [vmem:[#allocation2 + $0x818] sm:$0xf0]  ;;  %v12451_v49 = vld [vmem:[#allocation2 + $0x90c] sm:$0xf]  ;;  %v9505_v61 = vor.u32 %v12519_v3, %v9502_v21 }
 0x35c   :  { %7658 = vmatpush.bf16.msra.mxu0 %v9153_v7  ;;  %v12483_v47 = vld [vmem:[#allocation2 + $0xa0c] sm:$0xf]  ;;  %v9358_v7 = vld [vmem:[#allocation2 + $0xa18] sm:$0xf0]  ;;  %v9105_v14 = vor.u32 %v12419_v17, %v9102_v40  ;;  %v9233_v59 = vor.u32 %v12451_v49, %v9230_v43 }
 0x35d   :  { %7671 = vmatpush.bf16.msra.mxu1 %v9281_v4  ;;  %v12515_v4 = vld [vmem:[#allocation2 + $0xb0c] sm:$0xf]  ;;  %v7444_v34 = vpop.f32.mrf.mxu3  ;;  %v9361_v26 = vor.u32 %v12483_v47, %v9358_v7  ;;  %v10110_v19 = vld [vmem:[#allocation2 + $0xff8] sm:$0xf0] }
 0x35e   :  { %7684 = vmatpush.bf16.msra.mxu2 %v9409_v32  ;;  %v9486_v32 = vld [vmem:[#allocation2 + $0xb18] sm:$0xf0]  ;;  %v12575_v38 = vld [vmem:[#allocation2 + $0xcec] sm:$0xf] }
 0x35f   :  { %7697 = vmatpush.bf16.msra.mxu3 %v9537_v0  ;;  %v12607_v0 = vld [vmem:[#allocation2 + $0xdec] sm:$0xf]  ;;  %v9729_v41 = vor.u32 %v12575_v38, %v9726_v36  ;;  %v9710_v48 = vld [vmem:[#allocation2 + $0xcd8] sm:$0xf0] }
 0x360   :  { %7659 = vmatpush.bf16.msra.mxu0 %v9137_v56  ;;  %v12639_v55 = vld [vmem:[#allocation2 + $0xeec] sm:$0xf]  ;;  %v9489_v56 = vor.u32 %v12515_v4, %v9486_v32  ;;  %v9838_v20 = vld [vmem:[#allocation2 + $0xdd8] sm:$0xf0] }
 0x361   :  { %7672 = vmatpush.bf16.msra.mxu1 %v9265_v5  ;;  %v12671_v50 = vld [vmem:[#allocation2 + $0xfec] sm:$0xf]  ;;  %v9857_v5 = vor.u32 %v12607_v0, %v9854_v39  ;;  %v9966_v6 = vld [vmem:[#allocation2 + $0xed8] sm:$0xf0] }
 0x362   :  { %7685 = vmatpush.bf16.msra.mxu2 %v9393_v24  ;;  %v9985_v24 = vor.u32 %v12639_v55, %v9982_v11  ;;  %v12571_v53 = vld [vmem:[#allocation2 + $0xccc] sm:$0xf]  ;;  %v10094_v21 = vld [vmem:[#allocation2 + $0xfd8] sm:$0xf0] }
 0x363   :  { %7698 = vmatpush.bf16.msra.mxu3 %v9521_v54  ;;  %v12603_v62 = vld [vmem:[#allocation2 + $0xdcc] sm:$0xf]  ;;  %v10113_v54 = vor.u32 %v12671_v50, %v10110_v19  ;;  %v9822_v47 = vld [vmem:[#allocation2 + $0xdb8] sm:$0xf0] }
 0x364   :  { %7660 = vmatpush.bf16.msra.mxu0 %v9121_v18  ;;  %v12635_v1 = vld [vmem:[#allocation2 + $0xecc] sm:$0xf]  ;;  %v9713_v18 = vor.u32 %v12571_v53, %v9710_v48  ;;  %v9841_v17 = vor.u32 %v12603_v62, %v9838_v20  ;;  %v9950_v7 = vld [vmem:[#allocation2 + $0xeb8] sm:$0xf0] }
 0x365   :  { %7673 = vmatpush.bf16.msra.mxu1 %v9249_v60  ;;  %v12667_v3 = vld [vmem:[#allocation2 + $0xfcc] sm:$0xf]  ;;  %v9969_v40 = vor.u32 %v12635_v1, %v9966_v6  ;;  %v10078_v32 = vld [vmem:[#allocation2 + $0xfb8] sm:$0xf0] }
 0x366   :  { %7686 = vmatpush.bf16.msra.mxu2 %v9377_v58  ;;  %v12567_v60 = vld [vmem:[#allocation2 + $0xcac] sm:$0xf]  ;;  %v9694_v58 = vld [vmem:[#allocation2 + $0xcb8] sm:$0xf0]  ;;  %v10097_v43 = vor.u32 %v12667_v3, %v10094_v21 }
 0x367   :  { %7699 = vmatpush.bf16.msra.mxu3 %v9505_v61  ;;  %v12599_v49 = vld [vmem:[#allocation2 + $0xdac] sm:$0xf]  ;;  %v9697_v38 = vor.u32 %v12567_v60, %v9694_v58  ;;  %v9806_v55 = vld [vmem:[#allocation2 + $0xd98] sm:$0xf0] }
 0x368   :  { %7661 = vmatpush.bf16.msra.mxu0 %v9105_v14  ;;  %v12631_v61 = vld [vmem:[#allocation2 + $0xeac] sm:$0xf]  ;;  %v9825_v36 = vor.u32 %v12599_v49, %v9822_v47  ;;  %v9662_v53 = vld [vmem:[#allocation2 + $0xc78] sm:$0xf0] }
 0x369   :  { %7674 = vmatpush.bf16.msra.mxu1 %v9233_v59  ;;  %v12663_v4 = vld [vmem:[#allocation2 + $0xfac] sm:$0xf]  ;;  %v9953_v0 = vor.u32 %v12631_v61, %v9950_v7  ;;  %v7455_v59 = vpop.f32.mrf.mxu0  ;;  %v9790_v20 = vld [vmem:[#allocation2 + $0xd78] sm:$0xf0] }
 0x36a   :  { %7687 = vmatpush.bf16.msra.mxu2 %v9361_v26  ;;  %v12563_v34 = vld [vmem:[#allocation2 + $0xc8c] sm:$0xf]  ;;  %v10081_v39 = vor.u32 %v12663_v4, %v10078_v32  ;;  %v10062_v26 = vld [vmem:[#allocation2 + $0xf98] sm:$0xf0]  ;;  %v7456_v50 = vadd.f32 %v7455_v59, %v13546_v42 }
 0x36b   :  { %7700 = vmatpush.bf16.msra.mxu3 %v9489_v56  ;;  %7662 = vmatmul.bf16.vlgmr.msra.gmra.mxu0 %v13288_v25  ;;  %v9678_v25 = vld [vmem:[#allocation2 + $0xc98] sm:$0xf0]  ;;  %v12595_v14 = vld [vmem:[#allocation2 + $0xd8c] sm:$0xf]  ;;  %v7468_v56 = vpop.f32.mrf.mxu1 }
 0x36c   :  { %7706 = vmatpush.bf16.msrb.mxu0 %v9729_v41  ;;  %7675 = vmatmul.bf16.vlgmr.msra.gmra.mxu1 %v13292_v30  ;;  %v12627_v11 = vld [vmem:[#allocation2 + $0xe8c] sm:$0xf]  ;;  %v9681_v19 = vor.u32 %v12563_v34, %v9678_v25  ;;  %v9809_v41 = vor.u32 %v12595_v14, %v9806_v55  ;;  %v9918_v6 = vld [vmem:[#allocation2 + $0xe78] sm:$0xf0] }
 0x36d   :  { %7719 = vmatpush.bf16.msrb.mxu1 %v9857_v5  ;;  %7688 = vmatmul.bf16.vlgmr.msra.gmra.mxu2 %v13290_v29  ;;  %v9934_v29 = vld [vmem:[#allocation2 + $0xe98] sm:$0xf0]  ;;  %v12659_v30 = vld [vmem:[#allocation2 + $0xf8c] sm:$0xf] }
 0x36e   :  { %7732 = vmatpush.bf16.msrb.mxu2 %v9985_v24  ;;  %7701 = vmatmul.bf16.vlgmr.msra.gmra.mxu3 %v13629_v44  ;;  %v9937_v5 = vor.u32 %v12627_v11, %v9934_v29  ;;  %v12559_v24 = vld [vmem:[#allocation2 + $0xc6c] sm:$0xf]  ;;  %v10065_v62 = vor.u32 %v12659_v30, %v10062_v26  ;;  %v10046_v21 = vld [vmem:[#allocation2 + $0xf78] sm:$0xf0] }
 0x36f   :  { %7745 = vmatpush.bf16.msrb.mxu3 %v10113_v54  ;;  %v12591_v48 = vld [vmem:[#allocation2 + $0xd6c] sm:$0xf]  ;;  %v7469_v54 = vadd.f32 %v7468_v56, %v7456_v50  ;;  %v9646_v60 = vld [vmem:[#allocation2 + $0xc58] sm:$0xf0] }
 0x370   :  { %7707 = vmatpush.bf16.msrb.mxu0 %v9713_v18  ;;  %v12623_v1 = vld [vmem:[#allocation2 + $0xe6c] sm:$0xf]  ;;  %v9665_v18 = vor.u32 %v12559_v24, %v9662_v53  ;;  %v9793_v42 = vor.u32 %v12591_v48, %v9790_v20  ;;  %v9774_v47 = vld [vmem:[#allocation2 + $0xd58] sm:$0xf0] }
 0x371   :  { %7720 = vmatpush.bf16.msrb.mxu1 %v9841_v17  ;;  %v12655_v3 = vld [vmem:[#allocation2 + $0xf6c] sm:$0xf]  ;;  %v9921_v17 = vor.u32 %v12623_v1, %v9918_v6  ;;  %v9902_v7 = vld [vmem:[#allocation2 + $0xe58] sm:$0xf0]  ;;  %v7494_v32 = vpop.f32.mrf.mxu3 }
 0x372   :  { %7733 = vmatpush.bf16.msrb.mxu2 %v9969_v40  ;;  %v12555_v40 = vld [vmem:[#allocation2 + $0xc4c] sm:$0xf]  ;;  %v10049_v49 = vor.u32 %v12655_v3, %v10046_v21  ;;  %v9630_v11 = vld [vmem:[#allocation2 + $0xc38] sm:$0xf0] }
 0x373   :  { %7746 = vmatpush.bf16.msrb.mxu3 %v10097_v43  ;;  %v12587_v58 = vld [vmem:[#allocation2 + $0xd4c] sm:$0xf]  ;;  %v7481_v43 = vpop.f32.mrf.mxu2  ;;  %v7470_v34 = vpop.f32.mrf.mxu1  ;;  %v9758_v30 = vld [vmem:[#allocation2 + $0xd38] sm:$0xf0] }
 0x374   :  { %7708 = vmatpush.bf16.msrb.mxu0 %v9697_v38  ;;  %v12619_v61 = vld [vmem:[#allocation2 + $0xe4c] sm:$0xf]  ;;  %v7482_v4 = vadd.f32 %v7481_v43, %v7469_v54  ;;  %v10030_v38 = vld [vmem:[#allocation2 + $0xf58] sm:$0xf0]  ;;  %v9777_v14 = vor.u32 %v12587_v58, %v9774_v47 }
 0x375   :  { %7721 = vmatpush.bf16.msrb.mxu1 %v9825_v36  ;;  %v12651_v44 = vld [vmem:[#allocation2 + $0xf4c] sm:$0xf]  ;;  %v7457_v36 = vpop.f32.mrf.mxu0  ;;  %v9886_v50 = vld [vmem:[#allocation2 + $0xe38] sm:$0xf0] }
 0x376   :  { %7734 = vmatpush.bf16.msrb.mxu2 %v9953_v0  ;;  %v9649_v0 = vor.u32 %v12555_v40, %v9646_v60  ;;  %v13553_v25 = vadd.f32 %v7494_v32, %v7482_v4  ;;  %v12551_v55 = vld [vmem:[#allocation2 + $0xc2c] sm:$0xf]  ;;  %v10033_v59 = vor.u32 %v12651_v44, %v10030_v38  ;;  %v10014_v56 = vld [vmem:[#allocation2 + $0xf38] sm:$0xf0] }
 0x377   :  { %7747 = vmatpush.bf16.msrb.mxu3 %v10081_v39  ;;  %v9905_v39 = vor.u32 %v12619_v61, %v9902_v7  ;;  %v12583_v29 = vld [vmem:[#allocation2 + $0xd2c] sm:$0xf]  ;;  %v9614_v24 = vld [vmem:[#allocation2 + $0xc18] sm:$0xf0] }
 0x378   :  { %7709 = vmatpush.bf16.msrb.mxu0 %v9681_v19  ;;  %v12615_v26 = vld [vmem:[#allocation2 + $0xe2c] sm:$0xf]  ;;  %v9761_v53 = vor.u32 %v12583_v29, %v9758_v30  ;;  %v9742_v54 = vld [vmem:[#allocation2 + $0xd18] sm:$0xf0] }
 0x379   :  { %7722 = vmatpush.bf16.msrb.mxu1 %v9809_v41  ;;  %v12647_v19 = vld [vmem:[#allocation2 + $0xf2c] sm:$0xf]  ;;  %v9633_v41 = vor.u32 %v12551_v55, %v9630_v11  ;;  %v9889_v48 = vor.u32 %v12615_v26, %v9886_v50  ;;  %v9870_v6 = vld [vmem:[#allocation2 + $0xe18] sm:$0xf0]  ;;  %v7496_v60 = vpop.f32.mrf.mxu3 }
 0x37a   :  { %7735 = vmatpush.bf16.msrb.mxu2 %v9937_v5  ;;  %v12547_v5 = vld [vmem:[#allocation2 + $0xc0c] sm:$0xf]  ;;  %v10017_v1 = vor.u32 %v12647_v19, %v10014_v56  ;;  %v9998_v21 = vld [vmem:[#allocation2 + $0xf18] sm:$0xf0] }
 0x37b   :  { %7748 = vmatpush.bf16.msrb.mxu3 %v10065_v62  ;;  %v12579_v62 = vld [vmem:[#allocation2 + $0xd0c] sm:$0xf]  ;;  %v9617_v58 = vor.u32 %v12547_v5, %v9614_v24  ;;  %v10494_v47 = vld [vmem:[#allocation2 + $0x12f8] sm:$0xf0] }
 0x37c   :  { %7710 = vmatpush.bf16.msrb.mxu0 %v9665_v18  ;;  %v12611_v20 = vld [vmem:[#allocation2 + $0xe0c] sm:$0xf]  ;;  %v7483_v18 = vpop.f32.mrf.mxu2  ;;  %v9745_v61 = vor.u32 %v12579_v62, %v9742_v54  ;;  %v10622_v32 = vld [vmem:[#allocation2 + $0x13f8] sm:$0xf0] }
 0x37d   :  { %7723 = vmatpush.bf16.msrb.mxu1 %v9793_v42  ;;  %v12643_v3 = vld [vmem:[#allocation2 + $0xf0c] sm:$0xf]  ;;  %v9873_v7 = vor.u32 %v12611_v20, %v9870_v6  ;;  %v10350_v11 = vld [vmem:[#allocation2 + $0x11d8] sm:$0xf0] }
 0x37e   :  { %7736 = vmatpush.bf16.msrb.mxu2 %v9921_v17  ;;  %v12703_v42 = vld [vmem:[#allocation2 + $0x10ec] sm:$0xf]  ;;  %v10238_v17 = vld [vmem:[#allocation2 + $0x10f8] sm:$0xf0]  ;;  %v10001_v44 = vor.u32 %v12643_v3, %v9998_v21 }
 0x37f   :  { %7749 = vmatpush.bf16.msrb.mxu3 %v10049_v49  ;;  %v12735_v40 = vld [vmem:[#allocation2 + $0x11ec] sm:$0xf]  ;;  %v10366_v49 = vld [vmem:[#allocation2 + $0x11f8] sm:$0xf0]  ;;  %v10241_v38 = vor.u32 %v12703_v42, %v10238_v17 }
 0x380   :  { %7711 = vmatpush.bf16.msrb.mxu0 %v9649_v0  ;;  %v12767_v43 = vld [vmem:[#allocation2 + $0x12ec] sm:$0xf]  ;;  %v10369_v36 = vor.u32 %v12735_v40, %v10366_v49  ;;  %v10606_v26 = vld [vmem:[#allocation2 + $0x13d8] sm:$0xf0] }
 0x381   :  { %7724 = vmatpush.bf16.msrb.mxu1 %v9777_v14  ;;  %v12799_v4 = vld [vmem:[#allocation2 + $0x13ec] sm:$0xf]  ;;  %v10497_v0 = vor.u32 %v12767_v43, %v10494_v47  ;;  %v10222_v14 = vld [vmem:[#allocation2 + $0x10d8] sm:$0xf0] }
 0x382   :  { %7737 = vmatpush.bf16.msrb.mxu2 %v9905_v39  ;;  %v12699_v34 = vld [vmem:[#allocation2 + $0x10cc] sm:$0xf]  ;;  %v10625_v55 = vor.u32 %v12799_v4, %v10622_v32  ;;  %v10206_v5 = vld [vmem:[#allocation2 + $0x10b8] sm:$0xf0] }
 0x383   :  { %7750 = vmatpush.bf16.msrb.mxu3 %v10033_v59  ;;  %v12731_v39 = vld [vmem:[#allocation2 + $0x11cc] sm:$0xf]  ;;  %v10478_v59 = vld [vmem:[#allocation2 + $0x12d8] sm:$0xf0]  ;;  %v10225_v50 = vor.u32 %v12699_v34, %v10222_v14 }
 0x384   :  { %7712 = vmatpush.bf16.msrb.mxu0 %v9633_v41  ;;  %v12763_v29 = vld [vmem:[#allocation2 + $0x12cc] sm:$0xf]  ;;  %v10353_v19 = vor.u32 %v12731_v39, %v10350_v11  ;;  %v10462_v54 = vld [vmem:[#allocation2 + $0x12b8] sm:$0xf0] }
 0x385   :  { %7725 = vmatpush.bf16.msrb.mxu1 %v9761_v53  ;;  %v12795_v30 = vld [vmem:[#allocation2 + $0x13cc] sm:$0xf]  ;;  %v10481_v56 = vor.u32 %v12763_v29, %v10478_v59  ;;  %v10318_v40 = vld [vmem:[#allocation2 + $0x1198] sm:$0xf0] }
 0x386   :  { %7738 = vmatpush.bf16.msrb.mxu2 %v9889_v48  ;;  %v12695_v41 = vld [vmem:[#allocation2 + $0x10ac] sm:$0xf]  ;;  %v10609_v53 = vor.u32 %v12795_v30, %v10606_v26  ;;  %v10334_v48 = vld [vmem:[#allocation2 + $0x11b8] sm:$0xf0] }
 0x387   :  { %7751 = vmatpush.bf16.msrb.mxu3 %v10017_v1  ;;  %v12727_v24 = vld [vmem:[#allocation2 + $0x11ac] sm:$0xf]  ;;  %v10590_v1 = vld [vmem:[#allocation2 + $0x13b8] sm:$0xf0]  ;;  %v10209_v6 = vor.u32 %v12695_v41, %v10206_v5 }
 0x388   :  { %7713 = vmatpush.bf16.msrb.mxu0 %v9617_v58  ;;  %v12759_v62 = vld [vmem:[#allocation2 + $0x12ac] sm:$0xf]  ;;  %v10337_v3 = vor.u32 %v12727_v24, %v10334_v48  ;;  %v7507_v58 = vpop.f32.mrf.mxu0  ;;  %v10574_v49 = vld [vmem:[#allocation2 + $0x1398] sm:$0xf0] }
 0x389   :  { %7726 = vmatpush.bf16.msrb.mxu1 %v9745_v61  ;;  %v12791_v20 = vld [vmem:[#allocation2 + $0x13ac] sm:$0xf]  ;;  %v10465_v21 = vor.u32 %v12759_v62, %v10462_v54  ;;  %v7520_v47 = vpop.f32.mrf.mxu1  ;;  %v10174_v32 = vld [vmem:[#allocation2 + $0x1078] sm:$0xf0] }
 0x38a   :  { %7739 = vmatpush.bf16.msrb.mxu2 %v9873_v7  ;;  %v12691_v18 = vld [vmem:[#allocation2 + $0x108c] sm:$0xf]  ;;  %v10593_v17 = vor.u32 %v12791_v20, %v10590_v1  ;;  %v10430_v14 = vld [vmem:[#allocation2 + $0x1278] sm:$0xf0] }
 0x38b   :  { %7752 = vmatpush.bf16.msrb.mxu3 %v10001_v44  ;;  %7714 = vmatmul.bf16.vlgmr.msrb.gmra.mxu0 %v13306_v23  ;;  %v10190_v23 = vld [vmem:[#allocation2 + $0x1098] sm:$0xf0]  ;;  %v12723_v42 = vld [vmem:[#allocation2 + $0x118c] sm:$0xf] }
 0x38c   :  { %7758 = vmatpush.bf16.msra.mxu0 %v10241_v38  ;;  %7727 = vmatmul.bf16.vlgmr.msrb.gmra.mxu1 %v13310_v31  ;;  %v12755_v60 = vld [vmem:[#allocation2 + $0x128c] sm:$0xf]  ;;  %v10193_v43 = vor.u32 %v12691_v18, %v10190_v23  ;;  %v10321_v61 = vor.u32 %v12723_v42, %v10318_v40  ;;  %v10158_v30 = vld [vmem:[#allocation2 + $0x1058] sm:$0xf0] }
 0x38d   :  { %7771 = vmatpush.bf16.msra.mxu1 %v10369_v36  ;;  %7740 = vmatmul.bf16.vlgmr.msrb.gmra.mxu2 %v13308_v28  ;;  %v10446_v28 = vld [vmem:[#allocation2 + $0x1298] sm:$0xf0]  ;;  %v12787_v31 = vld [vmem:[#allocation2 + $0x138c] sm:$0xf] }
 0x38e   :  { %7784 = vmatpush.bf16.msra.mxu2 %v10497_v0  ;;  %7753 = vmatmul.bf16.vlgmr.msrb.gmra.mxu3 %v13312_v35  ;;  %v7508_v35 = vadd.f32 %v7507_v58, %v13553_v25  ;;  %v10449_v7 = vor.u32 %v12755_v60, %v10446_v28  ;;  %v12687_v4 = vld [vmem:[#allocation2 + $0x106c] sm:$0xf]  ;;  %v10577_v38 = vor.u32 %v12787_v31, %v10574_v49  ;;  %v10302_v0 = vld [vmem:[#allocation2 + $0x1178] sm:$0xf0] }
 0x38f   :  { %7797 = vmatpush.bf16.msra.mxu3 %v10625_v55  ;;  %v12719_v44 = vld [vmem:[#allocation2 + $0x116c] sm:$0xf]  ;;  %v10558_v55 = vld [vmem:[#allocation2 + $0x1378] sm:$0xf0]  ;;  %v10177_v11 = vor.u32 %v12687_v4, %v10174_v32 }
 0x390   :  { %7759 = vmatpush.bf16.msra.mxu0 %v10225_v50  ;;  %v7521_v36 = vadd.f32 %v7520_v47, %v7508_v35  ;;  %v12751_v34 = vld [vmem:[#allocation2 + $0x126c] sm:$0xf]  ;;  %v10305_v25 = vor.u32 %v12719_v44, %v10302_v0  ;;  %v10414_v5 = vld [vmem:[#allocation2 + $0x1258] sm:$0xf0]  ;;  %v7509_v54 = vpop.f32.mrf.mxu0 }
 0x391   :  { %7772 = vmatpush.bf16.msra.mxu1 %v10353_v19  ;;  %v12783_v39 = vld [vmem:[#allocation2 + $0x136c] sm:$0xf]  ;;  %v10433_v29 = vor.u32 %v12751_v34, %v10430_v14  ;;  %v7533_v19 = vpop.f32.mrf.mxu2  ;;  %v10542_v62 = vld [vmem:[#allocation2 + $0x1358] sm:$0xf0]  ;;  %v7522_v1 = vpop.f32.mrf.mxu1 }
 0x392   :  { %7785 = vmatpush.bf16.msra.mxu2 %v10481_v56  ;;  %v12683_v59 = vld [vmem:[#allocation2 + $0x104c] sm:$0xf]  ;;  %v10561_v50 = vor.u32 %v12783_v39, %v10558_v55  ;;  %v10286_v56 = vld [vmem:[#allocation2 + $0x1158] sm:$0xf0]  ;;  %v7534_v24 = vadd.f32 %v7533_v19, %v7521_v36 }
 0x393   :  { %7798 = vmatpush.bf16.msra.mxu3 %v10609_v53  ;;  %v12715_v26 = vld [vmem:[#allocation2 + $0x114c] sm:$0xf]  ;;  %v7546_v53 = vpop.f32.mrf.mxu3  ;;  %v10161_v20 = vor.u32 %v12683_v59, %v10158_v30  ;;  %v10142_v23 = vld [vmem:[#allocation2 + $0x1038] sm:$0xf0] }
 0x394   :  { %7760 = vmatpush.bf16.msra.mxu0 %v10209_v6  ;;  %v12747_v41 = vld [vmem:[#allocation2 + $0x124c] sm:$0xf]  ;;  %v13560_v6 = vadd.f32 %v7546_v53, %v7534_v24  ;;  %v10270_v40 = vld [vmem:[#allocation2 + $0x1138] sm:$0xf0] }
 0x395   :  { %7773 = vmatpush.bf16.msra.mxu1 %v10337_v3  ;;  %v12779_v48 = vld [vmem:[#allocation2 + $0x134c] sm:$0xf]  ;;  %v10289_v3 = vor.u32 %v12715_v26, %v10286_v56  ;;  %v10398_v28 = vld [vmem:[#allocation2 + $0x1238] sm:$0xf0] }
 0x396   :  { %7786 = vmatpush.bf16.msra.mxu2 %v10465_v21  ;;  %v10417_v21 = vor.u32 %v12747_v41, %v10414_v5  ;;  %v12679_v18 = vld [vmem:[#allocation2 + $0x102c] sm:$0xf]  ;;  %v10526_v31 = vld [vmem:[#allocation2 + $0x1338] sm:$0xf0] }
 0x397   :  { %7799 = vmatpush.bf16.msra.mxu3 %v10593_v17  ;;  %v12711_v42 = vld [vmem:[#allocation2 + $0x112c] sm:$0xf]  ;;  %v10545_v17 = vor.u32 %v12779_v48, %v10542_v62  ;;  %v10145_v49 = vor.u32 %v12679_v18, %v10142_v23  ;;  %v10254_v4 = vld [vmem:[#allocation2 + $0x1118] sm:$0xf0] }
 0x398   :  { %7761 = vmatpush.bf16.msra.mxu0 %v10193_v43  ;;  %v12743_v60 = vld [vmem:[#allocation2 + $0x122c] sm:$0xf]  ;;  %v10126_v43 = vld [vmem:[#allocation2 + $0x1018] sm:$0xf0]  ;;  %v10273_v47 = vor.u32 %v12711_v42, %v10270_v40 }
 0x399   :  { %7774 = vmatpush.bf16.msra.mxu1 %v10321_v61  ;;  %v12775_v58 = vld [vmem:[#allocation2 + $0x132c] sm:$0xf]  ;;  %v10401_v61 = vor.u32 %v12743_v60, %v10398_v28  ;;  %v10510_v0 = vld [vmem:[#allocation2 + $0x1318] sm:$0xf0]  ;;  %v7535_v34 = vpop.f32.mrf.mxu2 }
 0x39a   :  { %7787 = vmatpush.bf16.msra.mxu2 %v10449_v7  ;;  %v12675_v35 = vld [vmem:[#allocation2 + $0x100c] sm:$0xf]  ;;  %v10529_v44 = vor.u32 %v12775_v58, %v10526_v31  ;;  %v10750_v39 = vld [vmem:[#allocation2 + $0x14f8] sm:$0xf0] }
 0x39b   :  { %7800 = vmatpush.bf16.msra.mxu3 %v10577_v38  ;;  %v12707_v7 = vld [vmem:[#allocation2 + $0x110c] sm:$0xf]  ;;  %v10382_v38 = vld [vmem:[#allocation2 + $0x1218] sm:$0xf0] }
 0x39c   :  { %7762 = vmatpush.bf16.msra.mxu0 %v10177_v11  ;;  %v12739_v32 = vld [vmem:[#allocation2 + $0x120c] sm:$0xf]  ;;  %v7548_v11 = vpop.f32.mrf.mxu3  ;;  %v11006_v30 = vld [vmem:[#allocation2 + $0x16f8] sm:$0xf0]  ;;  %v10257_v26 = vor.u32 %v12707_v7, %v10254_v4 }
 0x39d   :  { %7775 = vmatpush.bf16.msra.mxu1 %v10305_v25  ;;  %v12771_v36 = vld [vmem:[#allocation2 + $0x130c] sm:$0xf]  ;;  %v10129_v25 = vor.u32 %v12675_v35, %v10126_v43  ;;  %v11134_v56 = vld [vmem:[#allocation2 + $0x17f8] sm:$0xf0] }
 0x39e   :  { %7788 = vmatpush.bf16.msra.mxu2 %v10433_v29  ;;  %v12831_v14 = vld [vmem:[#allocation2 + $0x14ec] sm:$0xf]  ;;  %v10878_v29 = vld [vmem:[#allocation2 + $0x15f8] sm:$0xf0]  ;;  %v10513_v41 = vor.u32 %v12771_v36, %v10510_v0 }
 0x39f   :  { %7801 = vmatpush.bf16.msra.mxu3 %v10561_v50  ;;  %v12863_v55 = vld [vmem:[#allocation2 + $0x15ec] sm:$0xf]  ;;  %v10385_v50 = vor.u32 %v12739_v32, %v10382_v38  ;;  %v10753_v5 = vor.u32 %v12831_v14, %v10750_v39  ;;  %v10734_v62 = vld [vmem:[#allocation2 + $0x14d8] sm:$0xf0] }
 0x3a0   :  { %7763 = vmatpush.bf16.msra.mxu0 %v10161_v20  ;;  %v12895_v59 = vld [vmem:[#allocation2 + $0x16ec] sm:$0xf]  ;;  %v10881_v24 = vor.u32 %v12863_v55, %v10878_v29  ;;  %v10862_v1 = vld [vmem:[#allocation2 + $0x15d8] sm:$0xf0] }
 0x3a1   :  { %7776 = vmatpush.bf16.msra.mxu1 %v10289_v3  ;;  %v12927_v19 = vld [vmem:[#allocation2 + $0x17ec] sm:$0xf]  ;;  %v11009_v53 = vor.u32 %v12895_v59, %v11006_v30  ;;  %v11118_v23 = vld [vmem:[#allocation2 + $0x17d8] sm:$0xf0] }
 0x3a2   :  { %7789 = vmatpush.bf16.msra.mxu2 %v10417_v21  ;;  %v12827_v48 = vld [vmem:[#allocation2 + $0x14cc] sm:$0xf]  ;;  %v11137_v20 = vor.u32 %v12927_v19, %v11134_v56  ;;  %v10990_v21 = vld [vmem:[#allocation2 + $0x16d8] sm:$0xf0] }
 0x3a3   :  { %7802 = vmatpush.bf16.msra.mxu3 %v10545_v17  ;;  %v12859_v54 = vld [vmem:[#allocation2 + $0x15cc] sm:$0xf]  ;;  %v10737_v42 = vor.u32 %v12827_v48, %v10734_v62  ;;  %v10718_v28 = vld [vmem:[#allocation2 + $0x14b8] sm:$0xf0] }
 0x3a4   :  { %7764 = vmatpush.bf16.msra.mxu0 %v10145_v49  ;;  %v12891_v3 = vld [vmem:[#allocation2 + $0x16cc] sm:$0xf]  ;;  %v10865_v17 = vor.u32 %v12859_v54, %v10862_v1  ;;  %v10846_v49 = vld [vmem:[#allocation2 + $0x15b8] sm:$0xf0] }
 0x3a5   :  { %7777 = vmatpush.bf16.msra.mxu1 %v10273_v47  ;;  %v12923_v18 = vld [vmem:[#allocation2 + $0x17cc] sm:$0xf]  ;;  %v10993_v40 = vor.u32 %v12891_v3, %v10990_v21  ;;  %v10974_v43 = vld [vmem:[#allocation2 + $0x16b8] sm:$0xf0] }
 0x3a6   :  { %7790 = vmatpush.bf16.msra.mxu2 %v10401_v61  ;;  %v12823_v60 = vld [vmem:[#allocation2 + $0x14ac] sm:$0xf]  ;;  %v11121_v31 = vor.u32 %v12923_v18, %v11118_v23  ;;  %v11102_v61 = vld [vmem:[#allocation2 + $0x17b8] sm:$0xf0] }
 0x3a7   :  { %7803 = vmatpush.bf16.msra.mxu3 %v10529_v44  ;;  %v12855_v58 = vld [vmem:[#allocation2 + $0x15ac] sm:$0xf]  ;;  %v10721_v7 = vor.u32 %v12823_v60, %v10718_v28  ;;  %v10830_v0 = vld [vmem:[#allocation2 + $0x1598] sm:$0xf0] }
 0x3a8   :  { %7765 = vmatpush.bf16.msra.mxu0 %v10129_v25  ;;  %v12887_v35 = vld [vmem:[#allocation2 + $0x16ac] sm:$0xf]  ;;  %v10849_v4 = vor.u32 %v12855_v58, %v10846_v49  ;;  %v7559_v55 = vpop.f32.mrf.mxu0  ;;  %v10686_v29 = vld [vmem:[#allocation2 + $0x1478] sm:$0xf0] }
 0x3a9   :  { %7778 = vmatpush.bf16.msra.mxu1 %v10257_v26  ;;  %v12919_v47 = vld [vmem:[#allocation2 + $0x17ac] sm:$0xf]  ;;  %v10977_v32 = vor.u32 %v12887_v35, %v10974_v43  ;;  %v7572_v30 = vpop.f32.mrf.mxu1  ;;  %v10942_v56 = vld [vmem:[#allocation2 + $0x1678] sm:$0xf0] }
 0x3aa   :  { %7791 = vmatpush.bf16.msra.mxu2 %v10385_v50  ;;  %v12819_v44 = vld [vmem:[#allocation2 + $0x148c] sm:$0xf]  ;;  %v11105_v36 = vor.u32 %v12919_v47, %v11102_v61  ;;  %v10814_v50 = vld [vmem:[#allocation2 + $0x1578] sm:$0xf0] }
 0x3ab   :  { %7804 = vmatpush.bf16.msra.mxu3 %v10513_v41  ;;  %7766 = vmatmul.bf16.vlgmr.msra.gmra.mxu0 %v13324_v37  ;;  %v10702_v37 = vld [vmem:[#allocation2 + $0x1498] sm:$0xf0]  ;;  %v12851_v38 = vld [vmem:[#allocation2 + $0x158c] sm:$0xf]  ;;  %v7573_v41 = vadd.f32 %v7572_v30, %v7559_v55 }
 0x3ac   :  { %7810 = vmatpush.bf16.msrb.mxu0 %v10753_v5  ;;  %7779 = vmatmul.bf16.vlgmr.msra.gmra.mxu1 %v13328_v46  ;;  %v12883_v34 = vld [vmem:[#allocation2 + $0x168c] sm:$0xf]  ;;  %v11086_v46 = vld [vmem:[#allocation2 + $0x1798] sm:$0xf0]  ;;  %v10705_v39 = vor.u32 %v12819_v44, %v10702_v37 }
 0x3ad   :  { %7823 = vmatpush.bf16.msrb.mxu1 %v10881_v24  ;;  %7792 = vmatmul.bf16.vlgmr.msra.gmra.mxu2 %v13326_v45  ;;  %v10958_v45 = vld [vmem:[#allocation2 + $0x1698] sm:$0xf0]  ;;  %v12915_v14 = vld [vmem:[#allocation2 + $0x178c] sm:$0xf] }
 0x3ae   :  { %7836 = vmatpush.bf16.msrb.mxu2 %v11009_v53  ;;  %7805 = vmatmul.bf16.vlgmr.msra.gmra.mxu3 %v13624_v33  ;;  %v10833_v33 = vor.u32 %v12851_v38, %v10830_v0  ;;  %v10961_v11 = vor.u32 %v12883_v34, %v10958_v45  ;;  %v12815_v25 = vld [vmem:[#allocation2 + $0x146c] sm:$0xf]  ;;  %v11089_v26 = vor.u32 %v12915_v14, %v11086_v46  ;;  %v11070_v24 = vld [vmem:[#allocation2 + $0x1778] sm:$0xf0] }
 0x3af   :  { %7849 = vmatpush.bf16.msrb.mxu3 %v11137_v20  ;;  %v12847_v59 = vld [vmem:[#allocation2 + $0x156c] sm:$0xf]  ;;  %v10689_v53 = vor.u32 %v12815_v25, %v10686_v29  ;;  %v10670_v20 = vld [vmem:[#allocation2 + $0x1458] sm:$0xf0] }
 0x3b0   :  { %7811 = vmatpush.bf16.msrb.mxu0 %v10737_v42  ;;  %v12879_v19 = vld [vmem:[#allocation2 + $0x166c] sm:$0xf]  ;;  %v10817_v48 = vor.u32 %v12847_v59, %v10814_v50  ;;  %v7585_v3 = vpop.f32.mrf.mxu2  ;;  %v10798_v18 = vld [vmem:[#allocation2 + $0x1558] sm:$0xf0]  ;;  %v7561_v49 = vpop.f32.mrf.mxu0 }
 0x3b1   :  { %7824 = vmatpush.bf16.msrb.mxu1 %v10865_v17  ;;  %v12911_v5 = vld [vmem:[#allocation2 + $0x176c] sm:$0xf]  ;;  %v10945_v62 = vor.u32 %v12879_v19, %v10942_v56  ;;  %v10926_v42 = vld [vmem:[#allocation2 + $0x1658] sm:$0xf0]  ;;  %v7586_v17 = vadd.f32 %v7585_v3, %v7573_v41 }
 0x3b2   :  { %7837 = vmatpush.bf16.msrb.mxu2 %v10993_v40  ;;  %v12811_v54 = vld [vmem:[#allocation2 + $0x144c] sm:$0xf]  ;;  %v11073_v21 = vor.u32 %v12911_v5, %v11070_v24  ;;  %v7598_v40 = vpop.f32.mrf.mxu3  ;;  %v11054_v28 = vld [vmem:[#allocation2 + $0x1758] sm:$0xf0] }
 0x3b3   :  { %7850 = vmatpush.bf16.msrb.mxu3 %v11121_v31  ;;  %v12843_v1 = vld [vmem:[#allocation2 + $0x154c] sm:$0xf]  ;;  %v10673_v58 = vor.u32 %v12811_v54, %v10670_v20  ;;  %v13566_v31 = vadd.f32 %v7598_v40, %v7586_v17  ;;  %v10654_v61 = vld [vmem:[#allocation2 + $0x1438] sm:$0xf0] }
 0x3b4   :  { %7812 = vmatpush.bf16.msrb.mxu0 %v10721_v7  ;;  %v12875_v23 = vld [vmem:[#allocation2 + $0x164c] sm:$0xf]  ;;  %v10801_v35 = vor.u32 %v12843_v1, %v10798_v18  ;;  %v10782_v44 = vld [vmem:[#allocation2 + $0x1538] sm:$0xf0] }
 0x3b5   :  { %7825 = vmatpush.bf16.msrb.mxu1 %v10849_v4  ;;  %v12907_v60 = vld [vmem:[#allocation2 + $0x174c] sm:$0xf]  ;;  %v10929_v43 = vor.u32 %v12875_v23, %v10926_v42  ;;  %v7574_v4 = vpop.f32.mrf.mxu1  ;;  %v10910_v38 = vld [vmem:[#allocation2 + $0x1638] sm:$0xf0] }
 0x3b6   :  { %7838 = vmatpush.bf16.msrb.mxu2 %v10977_v32  ;;  %v12807_v47 = vld [vmem:[#allocation2 + $0x142c] sm:$0xf]  ;;  %v11057_v32 = vor.u32 %v12907_v60, %v11054_v28  ;;  %v11038_v0 = vld [vmem:[#allocation2 + $0x1738] sm:$0xf0] }
 0x3b7   :  { %7851 = vmatpush.bf16.msrb.mxu3 %v11105_v36  ;;  %v12839_v7 = vld [vmem:[#allocation2 + $0x152c] sm:$0xf]  ;;  %v10657_v34 = vor.u32 %v12807_v47, %v10654_v61  ;;  %v10638_v14 = vld [vmem:[#allocation2 + $0x1418] sm:$0xf0] }
 0x3b8   :  { %7813 = vmatpush.bf16.msrb.mxu0 %v10705_v39  ;;  %v12871_v37 = vld [vmem:[#allocation2 + $0x162c] sm:$0xf]  ;;  %v10785_v46 = vor.u32 %v12839_v7, %v10782_v44  ;;  %v7587_v25 = vpop.f32.mrf.mxu2  ;;  %v10894_v59 = vld [vmem:[#allocation2 + $0x1618] sm:$0xf0] }
 0x3b9   :  { %7826 = vmatpush.bf16.msrb.mxu1 %v10833_v33  ;;  %v12903_v36 = vld [vmem:[#allocation2 + $0x172c] sm:$0xf]  ;;  %v10913_v39 = vor.u32 %v12871_v37, %v10910_v38  ;;  %v10766_v33 = vld [vmem:[#allocation2 + $0x1518] sm:$0xf0] }
 0x3ba   :  { %7839 = vmatpush.bf16.msrb.mxu2 %v10961_v11  ;;  %v12803_v45 = vld [vmem:[#allocation2 + $0x140c] sm:$0xf]  ;;  %v11041_v29 = vor.u32 %v12903_v36, %v11038_v0  ;;  %v7600_v50 = vpop.f32.mrf.mxu3  ;;  %v11262_v56 = vld [vmem:[#allocation2 + $0x18f8] sm:$0xf0] }
 0x3bb   :  { %7852 = vmatpush.bf16.msrb.mxu3 %v11089_v26  ;;  %v12835_v55 = vld [vmem:[#allocation2 + $0x150c] sm:$0xf]  ;;  %v11022_v26 = vld [vmem:[#allocation2 + $0x1718] sm:$0xf0]  ;;  %v10641_v5 = vor.u32 %v12803_v45, %v10638_v14 }
 0x3bc   :  { %7814 = vmatpush.bf16.msrb.mxu0 %v10689_v53  ;;  %v12867_v11 = vld [vmem:[#allocation2 + $0x160c] sm:$0xf]  ;;  %v11390_v24 = vld [vmem:[#allocation2 + $0x19f8] sm:$0xf0] }
 0x3bd   :  { %7827 = vmatpush.bf16.msrb.mxu1 %v10817_v48  ;;  %v12899_v30 = vld [vmem:[#allocation2 + $0x170c] sm:$0xf]  ;;  %v11518_v48 = vld [vmem:[#allocation2 + $0x1af8] sm:$0xf0]  ;;  %v10897_v54 = vor.u32 %v12867_v11, %v10894_v59 }
 0x3be   :  { %7840 = vmatpush.bf16.msrb.mxu2 %v10945_v62  ;;  %v12959_v19 = vld [vmem:[#allocation2 + $0x18ec] sm:$0xf]  ;;  %v10769_v62 = vor.u32 %v12835_v55, %v10766_v33  ;;  %v11646_v1 = vld [vmem:[#allocation2 + $0x1bf8] sm:$0xf0]  ;;  %v11025_v3 = vor.u32 %v12899_v30, %v11022_v26 }
 0x3bf   :  { %7853 = vmatpush.bf16.msrb.mxu3 %v11073_v21  ;;  %v12991_v41 = vld [vmem:[#allocation2 + $0x19ec] sm:$0xf]  ;;  %v11265_v21 = vor.u32 %v12959_v19, %v11262_v56  ;;  %v11246_v17 = vld [vmem:[#allocation2 + $0x18d8] sm:$0xf0] }
 0x3c0   :  { %7815 = vmatpush.bf16.msrb.mxu0 %v10673_v58  ;;  %v13023_v53 = vld [vmem:[#allocation2 + $0x1aec] sm:$0xf]  ;;  %v11393_v18 = vor.u32 %v12991_v41, %v11390_v24  ;;  %v11374_v28 = vld [vmem:[#allocation2 + $0x19d8] sm:$0xf0] }
 0x3c1   :  { %7828 = vmatpush.bf16.msrb.mxu1 %v10801_v35  ;;  %v13055_v20 = vld [vmem:[#allocation2 + $0x1bec] sm:$0xf]  ;;  %v11521_v23 = vor.u32 %v13023_v53, %v11518_v48  ;;  %v11502_v49 = vld [vmem:[#allocation2 + $0x1ad8] sm:$0xf0] }
 0x3c2   :  { %7841 = vmatpush.bf16.msrb.mxu2 %v10929_v43  ;;  %v12955_v42 = vld [vmem:[#allocation2 + $0x18cc] sm:$0xf]  ;;  %v11649_v60 = vor.u32 %v13055_v20, %v11646_v1  ;;  %v11630_v43 = vld [vmem:[#allocation2 + $0x1bd8] sm:$0xf0] }
 0x3c3   :  { %7854 = vmatpush.bf16.msrb.mxu3 %v11057_v32  ;;  %v12987_v40 = vld [vmem:[#allocation2 + $0x19cc] sm:$0xf]  ;;  %v11249_v47 = vor.u32 %v12955_v42, %v11246_v17  ;;  %v11230_v32 = vld [vmem:[#allocation2 + $0x18b8] sm:$0xf0] }
 0x3c4   :  { %7816 = vmatpush.bf16.msrb.mxu0 %v10657_v34  ;;  %v13019_v58 = vld [vmem:[#allocation2 + $0x1acc] sm:$0xf]  ;;  %v11377_v61 = vor.u32 %v12987_v40, %v11374_v28  ;;  %v11358_v38 = vld [vmem:[#allocation2 + $0x19b8] sm:$0xf0] }
 0x3c5   :  { %7829 = vmatpush.bf16.msrb.mxu1 %v10785_v46  ;;  %v13051_v35 = vld [vmem:[#allocation2 + $0x1bcc] sm:$0xf]  ;;  %v11505_v7 = vor.u32 %v13019_v58, %v11502_v49  ;;  %v11486_v0 = vld [vmem:[#allocation2 + $0x1ab8] sm:$0xf0] }
 0x3c6   :  { %7842 = vmatpush.bf16.msrb.mxu2 %v10913_v39  ;;  %v12951_v4 = vld [vmem:[#allocation2 + $0x18ac] sm:$0xf]  ;;  %v11633_v37 = vor.u32 %v13051_v35, %v11630_v43  ;;  %v11614_v45 = vld [vmem:[#allocation2 + $0x1bb8] sm:$0xf0] }
 0x3c7   :  { %7855 = vmatpush.bf16.msrb.mxu3 %v11041_v29  ;;  %v12983_v44 = vld [vmem:[#allocation2 + $0x19ac] sm:$0xf]  ;;  %v11233_v14 = vor.u32 %v12951_v4, %v11230_v32  ;;  %v11342_v25 = vld [vmem:[#allocation2 + $0x1998] sm:$0xf0] }
 0x3c8   :  { %7817 = vmatpush.bf16.msrb.mxu0 %v10641_v5  ;;  %v13015_v36 = vld [vmem:[#allocation2 + $0x1aac] sm:$0xf]  ;;  %v11361_v46 = vor.u32 %v12983_v44, %v11358_v38  ;;  %v7611_v26 = vpop.f32.mrf.mxu0  ;;  %v11198_v56 = vld [vmem:[#allocation2 + $0x1878] sm:$0xf0] }
 0x3c9   :  { %7830 = vmatpush.bf16.msrb.mxu1 %v10769_v62  ;;  %v13047_v34 = vld [vmem:[#allocation2 + $0x1bac] sm:$0xf]  ;;  %v11489_v39 = vor.u32 %v13015_v36, %v11486_v0  ;;  %v7612_v5 = vadd.f32 %v7611_v26, %v13566_v31  ;;  %v7624_v24 = vpop.f32.mrf.mxu1  ;;  %v11326_v48 = vld [vmem:[#allocation2 + $0x1978] sm:$0xf0] }
 0x3ca   :  { %7843 = vmatpush.bf16.msrb.mxu2 %v10897_v54  ;;  %v12947_v55 = vld [vmem:[#allocation2 + $0x188c] sm:$0xf]  ;;  %v11617_v11 = vor.u32 %v13047_v34, %v11614_v45  ;;  %v11454_v54 = vld [vmem:[#allocation2 + $0x1a78] sm:$0xf0] }
 0x3cb   :  { %7856 = vmatpush.bf16.msrb.mxu3 %v11025_v3  ;;  %7818 = vmatmul.bf16.vlgmr.msrb.gmra.mxu0 %v13344_v8  ;;  %v11214_v8 = vld [vmem:[#allocation2 + $0x1898] sm:$0xf0]  ;;  %v12979_v33 = vld [vmem:[#allocation2 + $0x198c] sm:$0xf]  ;;  %v7625_v3 = vadd.f32 %v7624_v24, %v7612_v5 }
 0x3cc   :  { %7862 = vmatpush.bf16.msra.mxu0 %v11265_v21  ;;  %7831 = vmatmul.bf16.vlgmr.msrb.gmra.mxu1 %v13348_v13  ;;  %v13011_v29 = vld [vmem:[#allocation2 + $0x1a8c] sm:$0xf]  ;;  %v11598_v13 = vld [vmem:[#allocation2 + $0x1b98] sm:$0xf0]  ;;  %v11217_v30 = vor.u32 %v12947_v55, %v11214_v8 }
 0x3cd   :  { %7875 = vmatpush.bf16.msra.mxu1 %v11393_v18  ;;  %7844 = vmatmul.bf16.vlgmr.msrb.gmra.mxu2 %v13346_v12  ;;  %v11470_v12 = vld [vmem:[#allocation2 + $0x1a98] sm:$0xf0]  ;;  %v13043_v59 = vld [vmem:[#allocation2 + $0x1b8c] sm:$0xf] }
 0x3ce   :  { %7888 = vmatpush.bf16.msra.mxu2 %v11521_v23  ;;  %7857 = vmatmul.bf16.vlgmr.msrb.gmra.mxu3 %v13350_v16  ;;  %v11345_v16 = vor.u32 %v12979_v33, %v11342_v25  ;;  %v11473_v50 = vor.u32 %v13011_v29, %v11470_v12  ;;  %v12943_v19 = vld [vmem:[#allocation2 + $0x186c] sm:$0xf]  ;;  %v11601_v53 = vor.u32 %v13043_v59, %v11598_v13  ;;  %v11582_v1 = vld [vmem:[#allocation2 + $0x1b78] sm:$0xf0] }
 0x3cf   :  { %7901 = vmatpush.bf16.msra.mxu3 %v11649_v60  ;;  %v12975_v41 = vld [vmem:[#allocation2 + $0x196c] sm:$0xf]  ;;  %v11201_v21 = vor.u32 %v12943_v19, %v11198_v56  ;;  %v11182_v17 = vld [vmem:[#allocation2 + $0x1858] sm:$0xf0] }
 0x3d0   :  { %7863 = vmatpush.bf16.msra.mxu0 %v11249_v47  ;;  %v13007_v62 = vld [vmem:[#allocation2 + $0x1a6c] sm:$0xf]  ;;  %v11329_v18 = vor.u32 %v12975_v41, %v11326_v48  ;;  %v7637_v60 = vpop.f32.mrf.mxu2  ;;  %v11310_v28 = vld [vmem:[#allocation2 + $0x1958] sm:$0xf0]  ;;  %v7613_v32 = vpop.f32.mrf.mxu0 }
 0x3d1   :  { %7876 = vmatpush.bf16.msra.mxu1 %v11377_v61  ;;  %v13039_v20 = vld [vmem:[#allocation2 + $0x1b6c] sm:$0xf]  ;;  %v11457_v23 = vor.u32 %v13007_v62, %v11454_v54  ;;  %v11438_v49 = vld [vmem:[#allocation2 + $0x1a58] sm:$0xf0]  ;;  %v7638_v35 = vadd.f32 %v7637_v60, %v7625_v3  ;;  %v7650_v43 = vpop.f32.mrf.mxu3  ;;  %v7626_v34 = vpop.f32.mrf.mxu1 }
 0x3d2   :  { %7889 = vmatpush.bf16.msra.mxu2 %v11505_v7  ;;  %v12939_v42 = vld [vmem:[#allocation2 + $0x184c] sm:$0xf]  ;;  %v11585_v31 = vor.u32 %v13039_v20, %v11582_v1  ;;  %v11566_v61 = vld [vmem:[#allocation2 + $0x1b58] sm:$0xf0] }
 0x3d3   :  { %7902 = vmatpush.bf16.msra.mxu3 %v11633_v37  ;;  %v12971_v40 = vld [vmem:[#allocation2 + $0x194c] sm:$0xf]  ;;  %v11185_v7 = vor.u32 %v12939_v42, %v11182_v17  ;;  %v13573_v4 = vadd.f32 %v7650_v43, %v7638_v35  ;;  %v11166_v36 = vld [vmem:[#allocation2 + $0x1838] sm:$0xf0] }
 0x3d4   :  { %7864 = vmatpush.bf16.msra.mxu0 %v11233_v14  ;;  %v13003_v58 = vld [vmem:[#allocation2 + $0x1a4c] sm:$0xf]  ;;  %v11313_v44 = vor.u32 %v12971_v40, %v11310_v28  ;;  %v11294_v14 = vld [vmem:[#allocation2 + $0x1938] sm:$0xf0] }
 0x3d5   :  { %7877 = vmatpush.bf16.msra.mxu1 %v11361_v46  ;;  %v13035_v47 = vld [vmem:[#allocation2 + $0x1b4c] sm:$0xf]  ;;  %v11441_v37 = vor.u32 %v13003_v58, %v11438_v49  ;;  %v11550_v8 = vld [vmem:[#allocation2 + $0x1b38] sm:$0xf0] }
 0x3d6   :  { %7890 = vmatpush.bf16.msra.mxu2 %v11489_v39  ;;  %v12935_v38 = vld [vmem:[#allocation2 + $0x182c] sm:$0xf]  ;;  %v11569_v45 = vor.u32 %v13035_v47, %v11566_v61  ;;  %v11422_v39 = vld [vmem:[#allocation2 + $0x1a38] sm:$0xf0] }
 0x3d7   :  { %7903 = vmatpush.bf16.msra.mxu3 %v11617_v11  ;;  %v12967_v0 = vld [vmem:[#allocation2 + $0x192c] sm:$0xf]  ;;  %v11169_v33 = vor.u32 %v12935_v38, %v11166_v36  ;;  %v11150_v25 = vld [vmem:[#allocation2 + $0x1818] sm:$0xf0] }
 0x3d8   :  { %7865 = vmatpush.bf16.msra.mxu0 %v11217_v30  ;;  %v12999_v46 = vld [vmem:[#allocation2 + $0x1a2c] sm:$0xf]  ;;  %v11297_v29 = vor.u32 %v12967_v0, %v11294_v14  ;;  %v11278_v13 = vld [vmem:[#allocation2 + $0x1918] sm:$0xf0]  ;;  %v7639_v26 = vpop.f32.mrf.mxu2 }
 0x3d9   :  { %7878 = vmatpush.bf16.msra.mxu1 %v11345_v16  ;;  %v13031_v55 = vld [vmem:[#allocation2 + $0x1b2c] sm:$0xf]  ;;  %v11425_v12 = vor.u32 %v12999_v46, %v11422_v39  ;;  %v11534_v56 = vld [vmem:[#allocation2 + $0x1b18] sm:$0xf0]  ;;  %v7652_v41 = vpop.f32.mrf.mxu3 }
 0x3da   :  { %7891 = vmatpush.bf16.msra.mxu2 %v11473_v50  ;;  %v12931_v11 = vld [vmem:[#allocation2 + $0x180c] sm:$0xf]  ;;  %v11553_v16 = vor.u32 %v13031_v55, %v11550_v8  ;;  %v11406_v50 = vld [vmem:[#allocation2 + $0x1a18] sm:$0xf0] }
 0x3db   :  { %7904 = vmatpush.bf16.msra.mxu3 %v11601_v53  ;;  %v12963_v59 = vld [vmem:[#allocation2 + $0x190c] sm:$0xf]  ;;  %v11774_v24 = vld [vmem:[#allocation2 + $0x1cf8] sm:$0xf0]  ;;  %v11153_v48 = vor.u32 %v12931_v11, %v11150_v25 }
 0x3dc   :  { %7866 = vmatpush.bf16.msra.mxu0 %v11201_v21  ;;  %v12995_v30 = vld [vmem:[#allocation2 + $0x1a0c] sm:$0xf]  ;;  %v11902_v62 = vld [vmem:[#allocation2 + $0x1df8] sm:$0xf0]  ;;  %v11281_v1 = vor.u32 %v12963_v59, %v11278_v13 }
 0x3dd   :  { %7879 = vmatpush.bf16.msra.mxu1 %v11329_v18  ;;  %v13027_v19 = vld [vmem:[#allocation2 + $0x1b0c] sm:$0xf]  ;;  %v12030_v20 = vld [vmem:[#allocation2 + $0x1ef8] sm:$0xf0]  ;;  %v11409_v3 = vor.u32 %v12995_v30, %v11406_v50 }
 0x3de   :  { %7892 = vmatpush.bf16.msra.mxu2 %v11457_v23  ;;  %v13087_v5 = vld [vmem:[#allocation2 + $0x1cec] sm:$0xf]  ;;  %v12158_v18 = vld [vmem:[#allocation2 + $0x1ff8] sm:$0xf0]  ;;  %v11537_v23 = vor.u32 %v13027_v19, %v11534_v56 }
 0x3df   :  { %7905 = vmatpush.bf16.msra.mxu3 %v11585_v31  ;;  %v13119_v53 = vld [vmem:[#allocation2 + $0x1dec] sm:$0xf]  ;;  %v11777_v42 = vor.u32 %v13087_v5, %v11774_v24  ;;  %v11758_v31 = vld [vmem:[#allocation2 + $0x1cd8] sm:$0xf0] }
 0x3e0   :  { %7867 = vmatpush.bf16.msra.mxu0 %v11185_v7  ;;  %v13151_v54 = vld [vmem:[#allocation2 + $0x1eec] sm:$0xf]  ;;  %v11905_v17 = vor.u32 %v13119_v53, %v11902_v62  ;;  %v11886_v49 = vld [vmem:[#allocation2 + $0x1dd8] sm:$0xf0] }
 0x3e1   :  { %7880 = vmatpush.bf16.msra.mxu1 %v11313_v44  ;;  %v13183_v21 = vld [vmem:[#allocation2 + $0x1fec] sm:$0xf]  ;;  %v12033_v40 = vor.u32 %v13151_v54, %v12030_v20  ;;  %v12014_v43 = vld [vmem:[#allocation2 + $0x1ed8] sm:$0xf0] }
 0x3e2   :  { %7893 = vmatpush.bf16.msra.mxu2 %v11441_v37  ;;  %v13083_v60 = vld [vmem:[#allocation2 + $0x1ccc] sm:$0xf]  ;;  %v12161_v58 = vor.u32 %v13183_v21, %v12158_v18  ;;  %v12142_v61 = vld [vmem:[#allocation2 + $0x1fd8] sm:$0xf0] }
 0x3e3   :  { %7906 = vmatpush.bf16.msra.mxu3 %v11569_v45  ;;  %v13115_v28 = vld [vmem:[#allocation2 + $0x1dcc] sm:$0xf]  ;;  %v11761_v7 = vor.u32 %v13083_v60, %v11758_v31  ;;  %v11742_v38 = vld [vmem:[#allocation2 + $0x1cb8] sm:$0xf0] }
 0x3e4   :  { %7868 = vmatpush.bf16.msra.mxu0 %v11169_v33  ;;  %v13147_v35 = vld [vmem:[#allocation2 + $0x1ecc] sm:$0xf]  ;;  %v11889_v32 = vor.u32 %v13115_v28, %v11886_v49  ;;  %v11870_v34 = vld [vmem:[#allocation2 + $0x1db8] sm:$0xf0] }
 0x3e5   :  { %7881 = vmatpush.bf16.msra.mxu1 %v11297_v29  ;;  %v13179_v47 = vld [vmem:[#allocation2 + $0x1fcc] sm:$0xf]  ;;  %v12017_v44 = vor.u32 %v13147_v35, %v12014_v43  ;;  %v11998_v14 = vld [vmem:[#allocation2 + $0x1eb8] sm:$0xf0] }
 0x3e6   :  { %7894 = vmatpush.bf16.msra.mxu2 %v11425_v12  ;;  %v13079_v37 = vld [vmem:[#allocation2 + $0x1cac] sm:$0xf]  ;;  %v12145_v0 = vor.u32 %v13179_v47, %v12142_v61  ;;  %v12126_v39 = vld [vmem:[#allocation2 + $0x1fb8] sm:$0xf0] }
 0x3e7   :  { %7907 = vmatpush.bf16.msra.mxu3 %v11553_v16  ;;  %v13111_v36 = vld [vmem:[#allocation2 + $0x1dac] sm:$0xf]  ;;  %v11745_v55 = vor.u32 %v13079_v37, %v11742_v38  ;;  %v11854_v12 = vld [vmem:[#allocation2 + $0x1d98] sm:$0xf0] }
 0x3e8   :  { %7869 = vmatpush.bf16.msra.mxu0 %v11153_v48  ;;  %v13143_v45 = vld [vmem:[#allocation2 + $0x1eac] sm:$0xf]  ;;  %v11873_v8 = vor.u32 %v13111_v36, %v11870_v34  ;;  %v7663_v13 = vpop.f32.mrf.mxu0  ;;  %v12110_v30 = vld [vmem:[#allocation2 + $0x1f98] sm:$0xf0] }
 0x3e9   :  { %7882 = vmatpush.bf16.msra.mxu1 %v11281_v1  ;;  %v13175_v46 = vld [vmem:[#allocation2 + $0x1fac] sm:$0xf]  ;;  %v12001_v33 = vor.u32 %v13143_v45, %v11998_v14  ;;  %v7676_v16 = vpop.f32.mrf.mxu1  ;;  %v11710_v41 = vld [vmem:[#allocation2 + $0x1c78] sm:$0xf0] }
 0x3ea   :  { %7895 = vmatpush.bf16.msra.mxu2 %v11409_v3  ;;  %v13075_v11 = vld [vmem:[#allocation2 + $0x1c8c] sm:$0xf]  ;;  %v12129_v29 = vor.u32 %v13175_v46, %v12126_v39  ;;  %v11838_v48 = vld [vmem:[#allocation2 + $0x1d78] sm:$0xf0] }
 0x3eb   :  { %7908 = vmatpush.bf16.msra.mxu3 %v11537_v23  ;;  %7870 = vmatmul.bf16.vlgmr.msra.gmra.mxu0 %v13365_v2  ;;  %v11726_v2 = vld [vmem:[#allocation2 + $0x1c98] sm:$0xf0]  ;;  %v13107_v25 = vld [vmem:[#allocation2 + $0x1d8c] sm:$0xf] }
 0x3ec   :  { %7914 = vmatpush.bf16.msrb.mxu0 %v11777_v42  ;;  %7883 = vmatmul.bf16.vlgmr.msra.gmra.mxu1 %v13369_v10  ;;  %v13139_v59 = vld [vmem:[#allocation2 + $0x1e8c] sm:$0xf]  ;;  %v11729_v26 = vor.u32 %v13075_v11, %v11726_v2  ;;  %v11857_v50 = vor.u32 %v13107_v25, %v11854_v12  ;;  %v11966_v54 = vld [vmem:[#allocation2 + $0x1e78] sm:$0xf0] }
 0x3ed   :  { %7927 = vmatpush.bf16.msrb.mxu1 %v11905_v17  ;;  %7896 = vmatmul.bf16.vlgmr.msra.gmra.mxu2 %v13367_v9  ;;  %v11982_v9 = vld [vmem:[#allocation2 + $0x1e98] sm:$0xf0]  ;;  %v13171_v10 = vld [vmem:[#allocation2 + $0x1f8c] sm:$0xf] }
 0x3ee   :  { %7940 = vmatpush.bf16.msrb.mxu2 %v12033_v40  ;;  %7909 = vmatmul.bf16.vlgmr.msra.gmra.mxu3 %v13371_v15  ;;  %v7664_v15 = vadd.f32 %v7663_v13, %v13573_v4  ;;  %v11985_v19 = vor.u32 %v13139_v59, %v11982_v9  ;;  %v13071_v56 = vld [vmem:[#allocation2 + $0x1c6c] sm:$0xf]  ;;  %v12113_v24 = vor.u32 %v13171_v10, %v12110_v30  ;;  %v12094_v1 = vld [vmem:[#allocation2 + $0x1f78] sm:$0xf0] }
 0x3ef   :  { %7953 = vmatpush.bf16.msrb.mxu3 %v12161_v58  ;;  %v13103_v5 = vld [vmem:[#allocation2 + $0x1d6c] sm:$0xf]  ;;  %v11713_v3 = vor.u32 %v13071_v56, %v11710_v41  ;;  %v11694_v23 = vld [vmem:[#allocation2 + $0x1c58] sm:$0xf0] }
 0x3f0   :  { %7915 = vmatpush.bf16.msrb.mxu0 %v11761_v7  ;;  %v7677_v53 = vadd.f32 %v7676_v16, %v7664_v15  ;;  %v13135_v62 = vld [vmem:[#allocation2 + $0x1e6c] sm:$0xf]  ;;  %v11841_v4 = vor.u32 %v13103_v5, %v11838_v48  ;;  %v7689_v40 = vpop.f32.mrf.mxu2  ;;  %v11822_v60 = vld [vmem:[#allocation2 + $0x1d58] sm:$0xf0]  ;;  %v7665_v47 = vpop.f32.mrf.mxu0 }
 0x3f1   :  { %7928 = vmatpush.bf16.msrb.mxu1 %v11889_v32  ;;  %v13167_v20 = vld [vmem:[#allocation2 + $0x1f6c] sm:$0xf]  ;;  %v11969_v21 = vor.u32 %v13135_v62, %v11966_v54  ;;  %v11950_v28 = vld [vmem:[#allocation2 + $0x1e58] sm:$0xf0]  ;;  %v7702_v49 = vpop.f32.mrf.mxu3  ;;  %v7678_v7 = vpop.f32.mrf.mxu1 }
 0x3f2   :  { %7941 = vmatpush.bf16.msrb.mxu2 %v12017_v44  ;;  %v13067_v18 = vld [vmem:[#allocation2 + $0x1c4c] sm:$0xf]  ;;  %v12097_v17 = vor.u32 %v13167_v20, %v12094_v1  ;;  %v7690_v58 = vadd.f32 %v7689_v40, %v7677_v53  ;;  %v12078_v43 = vld [vmem:[#allocation2 + $0x1f58] sm:$0xf0] }
 0x3f3   :  { %7954 = vmatpush.bf16.msrb.mxu3 %v12145_v0  ;;  %v13099_v42 = vld [vmem:[#allocation2 + $0x1d4c] sm:$0xf]  ;;  %v11697_v61 = vor.u32 %v13067_v18, %v11694_v23  ;;  %v11678_v36 = vld [vmem:[#allocation2 + $0x1c38] sm:$0xf0] }
 0x3f4   :  { %7916 = vmatpush.bf16.msrb.mxu0 %v11745_v55  ;;  %v13131_v31 = vld [vmem:[#allocation2 + $0x1e4c] sm:$0xf]  ;;  %v7703_v32 = vadd.f32 %v7702_v49, %v7690_v58  ;;  %v11825_v44 = vor.u32 %v13099_v42, %v11822_v60  ;;  %v11806_v45 = vld [vmem:[#allocation2 + $0x1d38] sm:$0xf0] }
 0x3f5   :  { %7929 = vmatpush.bf16.msrb.mxu1 %v11873_v8  ;;  %v13163_v35 = vld [vmem:[#allocation2 + $0x1f4c] sm:$0xf]  ;;  %v11953_v37 = vor.u32 %v13131_v31, %v11950_v28  ;;  %v11934_v46 = vld [vmem:[#allocation2 + $0x1e38] sm:$0xf0] }
 0x3f6   :  { %7942 = vmatpush.bf16.msrb.mxu2 %v12001_v33  ;;  %v13063_v38 = vld [vmem:[#allocation2 + $0x1c2c] sm:$0xf]  ;;  %v12081_v34 = vor.u32 %v13163_v35, %v12078_v43  ;;  %v12062_v55 = vld [vmem:[#allocation2 + $0x1f38] sm:$0xf0] }
 0x3f7   :  { %7955 = vmatpush.bf16.msrb.mxu3 %v12129_v29  ;;  %v13095_v0 = vld [vmem:[#allocation2 + $0x1d2c] sm:$0xf]  ;;  %v11681_v8 = vor.u32 %v13063_v38, %v11678_v36  ;;  %v11662_v25 = vld [vmem:[#allocation2 + $0x1c18] sm:$0xf0] }
 0x3f8   :  { %7917 = vmatpush.bf16.msrb.mxu0 %v11729_v26  ;;  %v13127_v14 = vld [vmem:[#allocation2 + $0x1e2c] sm:$0xf]  ;;  %v11809_v33 = vor.u32 %v13095_v0, %v11806_v45  ;;  %v11790_v59 = vld [vmem:[#allocation2 + $0x1d18] sm:$0xf0]  ;;  %v7691_v10 = vpop.f32.mrf.mxu2 }
 0x3f9   :  { %7930 = vmatpush.bf16.msrb.mxu1 %v11857_v50  ;;  %v13159_v39 = vld [vmem:[#allocation2 + $0x1f2c] sm:$0xf]  ;;  %v11937_v11 = vor.u32 %v13127_v14, %v11934_v46  ;;  %v11918_v13 = vld [vmem:[#allocation2 + $0x1e18] sm:$0xf0]  ;;  %v7704_v26 = vpop.f32.mrf.mxu3 }
 0x3fa   :  { %7943 = vmatpush.bf16.msrb.mxu2 %v11985_v19  ;;  %v13059_v2 = vld [vmem:[#allocation2 + $0x1c0c] sm:$0xf]  ;;  %v12065_v12 = vor.u32 %v13159_v39, %v12062_v55  ;;  %v12046_v15 = vld [vmem:[#allocation2 + $0x1f18] sm:$0xf0] }
 0x3fb   :  { %7956 = vmatpush.bf16.msrb.mxu3 %v12113_v24  ;;  %v13091_v29 = vld [vmem:[#allocation2 + $0x1d0c] sm:$0xf]  ;;  %v11665_v16 = vor.u32 %v13059_v2, %v11662_v25  ;;  %v8014_v2 = vmul.f32 %v13500_v57, %v13500_v57 }
 0x3fc   :  { %7918 = vmatpush.bf16.msrb.mxu0 %v11713_v3  ;;  %v13123_v9 = vld [vmem:[#allocation2 + $0x1e0c] sm:$0xf]  ;;  %v11793_v50 = vor.u32 %v13091_v29, %v11790_v59  ;;  %v7976_v29 = vrot.slane %v13500_v57, 4 }
 0x3fd   :  { %7931 = vmatpush.bf16.msrb.mxu1 %v11841_v4  ;;  %v13155_v30 = vld [vmem:[#allocation2 + $0x1f0c] sm:$0xf]  ;;  %v11921_v19 = vor.u32 %v13123_v9, %v11918_v13  ;;  %v8023_v59 = vrot.slane %v8014_v2, 4  ;;  %v7982_v9 = vrot.slane %v13560_v6, 4 }
 0x3fe   :  { %7944 = vmatpush.bf16.msrb.mxu2 %v11969_v21  ;;  %v12049_v56 = vor.u32 %v13155_v30, %v12046_v15  ;;  %v8013_v30 = vmul.f32 %v13427_v63, %v13427_v63  ;;  %v7977_v26 = vadd.f32 %v7976_v29, %v13500_v57 }
 0x3ff   :  { %7957 = vmatpush.bf16.msrb.mxu3 %v12097_v17 }
 0x400   :  { %7919 = vmatpush.bf16.msrb.mxu0 %v11697_v61 }
 0x401   :  { %7932 = vmatpush.bf16.msrb.mxu1 %v11825_v44 }
 0x402   :  { %7945 = vmatpush.bf16.msrb.mxu2 %v11953_v37 }
 0x403   :  { %7958 = vmatpush.bf16.msrb.mxu3 %v12081_v34 }
 0x404   :  { %7920 = vmatpush.bf16.msrb.mxu0 %v11681_v8 }
 0x405   :  { %7933 = vmatpush.bf16.msrb.mxu1 %v11809_v33 }
 0x406   :  { %7946 = vmatpush.bf16.msrb.mxu2 %v11937_v11 }
 0x407   :  { %7959 = vmatpush.bf16.msrb.mxu3 %v12065_v12  ;;  %v8015_v12 = vmul.f32 %v13560_v6, %v13560_v6 }
 0x408   :  { %7921 = vmatpush.bf16.msrb.mxu0 %v11665_v16  ;;  %v7715_v41 = vpop.f32.mrf.mxu0 }
 0x409   :  { %7934 = vmatpush.bf16.msrb.mxu1 %v11793_v50  ;;  %v7716_v5 = vadd.f32 %v7715_v41, %v7703_v32  ;;  %v7728_v24 = vpop.f32.mrf.mxu1  ;;  %v8029_v16 = vrot.slane %v8015_v12, 4  ;;  %v7983_v41 = vadd.f32 %v7982_v9, %v13560_v6 }
 0x40a   :  { %7947 = vmatpush.bf16.msrb.mxu2 %v11921_v19  ;;  %v7970_v19 = vrot.slane %v13427_v63, 4 }
 0x40b   :  { %7960 = vmatpush.bf16.msrb.mxu3 %v12049_v56  ;;  %7922 = vmatmul.bf16.vlgmr.msrb.gmra.mxu0 %v13386_v51  ;;  %v7729_v53 = vadd.f32 %v7728_v24, %v7716_v5  ;;  %v8024_v56 = vadd.f32 %v8023_v59, %v8014_v2  ;;  %v8017_v5 = vrot.slane %v8013_v30, 4  ;;  %v7978_v24 = vrot.slane %v7977_v26, 2 }
 0x40c   :  { %7935 = vmatmul.bf16.vlgmr.msrb.gmra.mxu1 %v13390_v52 }
 0x40d   :  { %7948 = vmatmul.bf16.vlgmr.msrb.gmra.mxu2 %v13388_v27  ;;  %v8018_v57 = vadd.f32 %v8017_v5, %v8013_v30 }
 0x40e   :  { %7961 = vmatmul.bf16.vlgmr.msrb.gmra.mxu3 %v13392_v22 }
 0x410   :  { %v7741_v48 = vpop.f32.mrf.mxu2  ;;  %v7717_v20 = vpop.f32.mrf.mxu0 }
 0x411   :  { %v7742_v62 = vadd.f32 %v7741_v48, %v7729_v53  ;;  %v7754_v54 = vpop.f32.mrf.mxu3  ;;  %v7730_v1 = vpop.f32.mrf.mxu1  ;;  %v8030_v53 = vadd.f32 %v8029_v16, %v8015_v12 }
 0x412   :  { %v7984_v1 = vrot.slane %v7983_v41, 2 }
 0x413   :  { %v7755_v3 = vadd.f32 %v7754_v54, %v7742_v62  ;;  %v7971_v62 = vadd.f32 %v7970_v19, %v13427_v63  ;;  %v8025_v54 = vrot.slane %v8024_v56, 2 }
 0x418   :  { %v7743_v4 = vpop.f32.mrf.mxu2 }
 0x419   :  { %v7756_v21 = vpop.f32.mrf.mxu3 }
 0x428   :  { %v7767_v18 = vpop.f32.mrf.mxu0 }
 0x429   :  { %v7768_v51 = vadd.f32 %v7767_v18, %v7755_v3  ;;  %v7780_v23 = vpop.f32.mrf.mxu1 }
 0x42b   :  { %v7781_v52 = vadd.f32 %v7780_v23, %v7768_v51  ;;  %v7979_v51 = vadd.f32 %v7978_v24, %v7977_v26  ;;  %v8031_v23 = vrot.slane %v8030_v53, 2 }
 0x42d   :  { %v7980_v63 = vrot.slane %v7979_v51, 1 }
 0x430   :  { %v7793_v42 = vpop.f32.mrf.mxu2  ;;  %v7769_v22 = vpop.f32.mrf.mxu0 }
 0x431   :  { %v7794_v27 = vadd.f32 %v7793_v42, %v7781_v52  ;;  %v7806_v17 = vpop.f32.mrf.mxu3  ;;  %v7782_v40 = vpop.f32.mrf.mxu1  ;;  %v7972_v42 = vrot.slane %v7971_v62, 2 }
 0x433   :  { %v7807_v60 = vadd.f32 %v7806_v17, %v7794_v27  ;;  %v8026_v27 = vadd.f32 %v8025_v54, %v8024_v56  ;;  %v7985_v17 = vadd.f32 %v7984_v1, %v7983_v41 }
 0x438   :  { %v7795_v31 = vpop.f32.mrf.mxu2 }
 0x439   :  { %v7808_v28 = vpop.f32.mrf.mxu3  ;;  %v8019_v31 = vrot.slane %v8018_v57, 2 }
 0x43a   :  { %v8032_v28 = vadd.f32 %v8031_v23, %v8030_v53 }
 0x448   :  { %v7819_v58 = vpop.f32.mrf.mxu0 }
 0x449   :  { %v7832_v49 = vpop.f32.mrf.mxu1  ;;  %v7820_v38 = vadd.f32 %v7819_v58, %v7807_v60 }
 0x44b   :  { %v7833_v14 = vadd.f32 %v7832_v49, %v7820_v38  ;;  %v8033_v38 = vrot.slane %v8032_v28, 1 }
 0x450   :  { %v7845_v35 = vpop.f32.mrf.mxu2  ;;  %v7821_v47 = vpop.f32.mrf.mxu0 }
 0x451   :  { %v7858_v43 = vpop.f32.mrf.mxu3  ;;  %v7834_v61 = vpop.f32.mrf.mxu1  ;;  %v7846_v46 = vadd.f32 %v7845_v35, %v7833_v14  ;;  %v7973_v35 = vadd.f32 %v7972_v42, %v7971_v62 }
 0x452   :  { %v7986_v61 = vrot.slane %v7985_v17, 1 }
 0x453   :  { %v7859_v8 = vadd.f32 %v7858_v43, %v7846_v46  ;;  %v8027_v43 = vrot.slane %v8026_v27, 1 }
 0x454   :  { %v7987_v14 = vadd.f32 %v7986_v61, %v7985_v17 }
 0x456   :  { %v7999_v59 = vrot.slane %v7987_v14, 6 }
 0x458   :  { %v7847_v7 = vpop.f32.mrf.mxu2 }
 0x459   :  { %v7860_v32 = vpop.f32.mrf.mxu3 }
 0x468   :  { %v7871_v44 = vpop.f32.mrf.mxu0 }
 0x469   :  { %v7884_v37 = vpop.f32.mrf.mxu1  ;;  %v7872_v33 = vadd.f32 %v7871_v44, %v7859_v8  ;;  %v8008_v8 = vlaneseq }
 0x46b   :  { %v7885_v11 = vadd.f32 %v7884_v37, %v7872_v33  ;;  %v8020_v37 = vadd.f32 %v8019_v31, %v8018_v57  ;;  %vm8010_vm3 = vcmp.lt.s32.totalorder %v8008_v8, 512 }
 0x470   :  { %v7897_v36 = vpop.f32.mrf.mxu2  ;;  %v7873_v34 = vpop.f32.mrf.mxu0 }
 0x471   :  { %v7910_v0 = vpop.f32.mrf.mxu3  ;;  %v7886_v45 = vpop.f32.mrf.mxu1  ;;  %v7898_v25 = vadd.f32 %v7897_v36, %v7885_v11  ;;  %v7974_v34 = vrot.slane %v7973_v35, 1  ;;  %v8034_v11 = vadd.f32 %v8033_v38, %v8032_v28 }
 0x472   :  { %v8028_v45 = vadd.f32 %v8027_v43, %v8026_v27 }
 0x473   :  { %v7911_v13 = vadd.f32 %v7910_v0, %v7898_v25  ;;  %v7975_v29 = vadd.f32 %v7974_v34, %v7973_v35 }
 0x474   :  { %v8045_v12 = vrot.slane %v8028_v45, 7 }
 0x478   :  { %v7899_v39 = vpop.f32.mrf.mxu2 }
 0x479   :  { %v7912_v55 = vpop.f32.mrf.mxu3 }
 0x47a   :  { %v8021_v55 = vrot.slane %v8020_v37, 1 }
 0x488   :  { %v7923_v10 = vpop.f32.mrf.mxu0 }
 0x489   :  { %v7936_v15 = vpop.f32.mrf.mxu1  ;;  %v7924_v50 = vadd.f32 %v7923_v10, %v7911_v13  ;;  %v8022_v10 = vadd.f32 %v8021_v55, %v8020_v37 }
 0x48b   :  { %v7937_v48 = vadd.f32 %v7936_v15, %v7924_v50  ;;  %v8046_v15 = vrot.slane %v8034_v11, 6  ;;  %v8048_v19 = vsel %vm8001_vm0, %v8022_v10, %v8045_v12 }
 0x490   :  { %v7949_v20 = vpop.f32.mrf.mxu2  ;;  %v7925_v21 = vpop.f32.mrf.mxu0 }
 0x491   :  { %v7950_v3 = vadd.f32 %v7949_v20, %v7937_v48  ;;  %v7962_v4 = vpop.f32.mrf.mxu3  ;;  %v7938_v18 = vpop.f32.mrf.mxu1 }
 0x493   :  { %v7963_v52 = vadd.f32 %v7962_v4, %v7950_v3 }
 0x495   :  { %v7967_v22 = vpack.c.bf16 %v7963_v52, %v13560_v6  ;;  %v7988_v40 = vrot.slane %v7963_v52, 4  ;;  %v8016_v60 = vmul.f32 %v7963_v52, %v7963_v52  ;;  %v7981_v6 = vadd.f32 %v7980_v63, %v7979_v51 }
 0x497   :  { %7969 = vst [vmem:[%s13608_s2 + $0x8] sm:$0xff] %v7967_v22  ;;  %v7989_v58 = vadd.f32 %v7988_v40, %v7963_v52  ;;  %v8035_v49 = vrot.slane %v8016_v60, 4  ;;  %v7998_v33 = vrot.slane %v7981_v6, 7 }
 0x498   :  { %v7951_v47 = vpop.f32.mrf.mxu2 }
 0x499   :  { %v7990_v7 = vrot.slane %v7989_v58, 2  ;;  %v8036_v32 = vadd.f32 %v8035_v49, %v8016_v60  ;;  %v7964_v44 = vpop.f32.mrf.mxu3  ;;  %v8002_v30 = vsel %vm8001_vm0, %v7975_v29, %v7998_v33 }
 0x49b   :  { %v7991_v36 = vadd.f32 %v7990_v7, %v7989_v58  ;;  %v8037_v0 = vrot.slane %v8036_v32, 2 }
 0x49d   :  { %v7992_v46 = vrot.slane %v7991_v36, 1  ;;  %v8038_v39 = vadd.f32 %v8037_v0, %v8036_v32 }
 0x49f   :  { %v7993_v2 = vadd.f32 %v7992_v46, %v7991_v36  ;;  %v8039_v25 = vrot.slane %v8038_v39, 1 }
 0x4a1   :  { %v8000_v9 = vrot.slane %v7993_v2, 5  ;;  %v8040_v13 = vadd.f32 %v8039_v25, %v8038_v39 }
 0x4a3   :  { %v8004_v26 = vsel %vm8003_vm1, %v7999_v59, %v8000_v9  ;;  %v8047_v16 = vrot.slane %v8040_v13, 5 }
 0x4a4   :  { %v8006_v50 = vsel %vm8005_vm2, %v8002_v30, %v8004_v26 }
 0x4a5   :  { %8012 = vst.msk [vmem:[%s13609_s3] sm:$0xf] %vm8010_vm3, %v8006_v50  ;;  %v8049_v56 = vsel %vm8003_vm1, %v8046_v15, %v8047_v16 }
 0x4a6   :  { %v8050_v41 = vsel %vm8005_vm2, %v8048_v19, %v8049_v56 }
 0x4a7   :  { %8052 = vst.msk [vmem:[%s13610_s4] sm:$0xf] %vm8010_vm3, %v8050_v41 }
 0x4a8   :  { %8065 = vsyncpa [#allocation3], 1 }

</bundles_post_ra>
